<compile_context>
chip_gen: v7x
topology: tpu7x:2x2x1
jax: 0.10.0
libtpu: 0.0.40
codegen_flags: <defaults>
</compile_context>

<pallas_src>
import functools
import math

import jax
import jax.numpy as jnp
import numpy as np
from jax.experimental import pallas as pl
from jax.experimental.pallas import tpu as pltpu


# ----------------------------------------------------------------------------
# Constant shift / pooling matrices (built once on host, right-multiply slabs).
# ----------------------------------------------------------------------------
def _shift_and_pool_matrices(T, F):
    N = T * F
    n = np.arange(N)

    # Freq tap kf=0: out[.., n] = x[.., n-1] if (n % F) >= 1 else 0.
    S0 = np.zeros((N, N), np.float32)
    v = (n % F) >= 1
    S0[n[v] - 1, n[v]] = 1.0

    # Freq tap kf=2: out[.., n] = x[.., n+1] if (n % F) <= F-2 else 0.
    S2 = np.zeros((N, N), np.float32)
    v = (n % F) <= F - 2
    S2[n[v] + 1, n[v]] = 1.0

    # LayerNorm pooling: out[.., n] = mean over the F-chunk containing n.
    P = ((n[:, None] // F) == (n[None, :] // F)).astype(np.float32) / float(F)
    return S0, S2, P


def _time_shift_matrix(T, F, dil):
    # out[.., t*F+f] = x[.., (t-dil)*F+f] if t >= dil else 0  (zero mat if dil>=T)
    N = T * F
    ST = np.zeros((N, N), np.float32)
    n = np.arange(N)
    v = n >= dil * F
    ST[n[v] - dil * F, n[v]] = 1.0
    return ST


# ----------------------------------------------------------------------------
# Fused kernel: all `depth` layers for one batch element.
# ----------------------------------------------------------------------------
def _dense_block_kernel(x_ref, wall_ref, b_ref, g_ref, bt_ref, a_ref,
                        st_ref, s0_ref, s2_ref, p_ref, o_ref, skip_ref,
                        *, depth, C, N):
    # x_ref   : (1, C, N)              flattened input, N = T*F
    # wall_ref: (depth, 6*C, Cmax)     conv weights, taps stacked, zero-padded K
    # b_ref   : (depth, C, 1)          conv bias
    # g_ref   : (depth, 1, N)          LayerNorm gamma, tiled over T
    # bt_ref  : (depth, 1, N)          LayerNorm beta, tiled over T
    # a_ref   : (depth, C, 1)          PReLU per-channel slope
    # st_ref  : (depth, N, N)          dilated time-shift matrices
    # s0/s2   : (N, N)                 freq-tap shift matrices
    # p_ref   : (N, N)                 LayerNorm chunk-mean pooling matrix
    # o_ref   : (1, C, N)              last-layer output (lane-dense)
    # skip_ref: (Cmax, N) VMEM scratch holding the dense skip stack
    cmax = depth * C
    dot = functools.partial(jax.lax.dot,
                            precision=jax.lax.Precision.HIGHEST,
                            preferred_element_type=jnp.float32)

    # Fresh skip buffer for this batch element. Rows grow "newest first"
    # towards row 0 (matching torch.cat([out, skip], dim=1)); the input sits in
    # the last C rows. Zeroing makes the zero-padded weight columns harmless.
    skip_ref[...] = jnp.zeros_like(skip_ref)
    skip_ref[cmax - C:cmax, :] = x_ref[0]

    s0 = s0_ref[...]
    s2 = s2_ref[...]
    pool = p_ref[...]

    y = None
    for i in range(depth):
        slab = skip_ref[...]                         # (cmax, N), unused rows are 0
        yall = dot(wall_ref[i], slab)                # (6*C, N): rows = (kf, kt, cout)
        blk0 = yall[0 * 2 * C:1 * 2 * C]             # kf = 0
        blk1 = yall[1 * 2 * C:2 * 2 * C]             # kf = 1
        blk2 = yall[2 * 2 * C:3 * 2 * C]             # kf = 2
        z = blk1 + dot(blk0, s0) + dot(blk2, s2)     # (2*C, N): freq taps folded in
        # kt=1 term uses skip[t]; kt=0 term uses skip[t-dil] (zero for t < dil).
        acc = z[C:] + dot(z[:C], st_ref[i]) + b_ref[i]   # (C, N) conv out + bias

        # LayerNorm over F (chunk mean via pooling matmul), eps=1e-5, biased var.
        mean_b = dot(acc, pool)
        cent = acc - mean_b
        var_b = dot(cent * cent, pool)
        y = cent * jax.lax.rsqrt(var_b + 1e-5)
        y = y * g_ref[i] + bt_ref[i]

        # PReLU with per-channel slope.
        y = jnp.where(y >= 0, y, a_ref[i] * y)

        if i < depth - 1:                            # dense concat, in place
            r = cmax - (i + 2) * C
            skip_ref[r:r + C, :] = y

    o_ref[0] = y


# ----------------------------------------------------------------------------
# DenseBlock forward (Pallas). x is NCHW = (B, C, T, F), like the torch module.
# ----------------------------------------------------------------------------
def dense_block_pallas(x_nchw, params, depth):
    B, C, T, F = x_nchw.shape
    N = T * F
    cmax = depth * C
    x_flat = x_nchw.reshape(B, C, N)                 # free reshape (row-major)

    S0, S2, P = _shift_and_pool_matrices(T, F)
    S0 = jnp.asarray(S0)
    S2 = jnp.asarray(S2)
    P = jnp.asarray(P)
    st_s = jnp.asarray(
        np.stack([_time_shift_matrix(T, F, 2 ** i) for i in range(depth)]))

    wall_l, b_l, g_l, bt_l, a_l = [], [], [], [], []
    for i in range(depth):
        p = params[i]
        cin = C * (i + 1)
        # w is (kt, kf, cout, cin); stack taps on M: row = (kf*2 + kt)*C + cout.
        wall = jnp.transpose(p["w"], (1, 0, 2, 3)).reshape(6 * C, cin)
        # Zero-pad K so all layers share the (6*C, cmax) shape; column j of the
        # padded weight multiplies skip-scratch row j.
        wall_pad = jnp.zeros((6 * C, cmax), jnp.float32).at[:, cmax - cin:].set(wall)
        wall_l.append(wall_pad)
        b_l.append(p["b"].reshape(C, 1))
        g_l.append(jnp.tile(p["gamma"], T).reshape(1, N))
        bt_l.append(jnp.tile(p["beta"], T).reshape(1, N))
        a_l.append(p["alpha"].reshape(C, 1))
    wall_s = jnp.stack(wall_l)
    b_s = jnp.stack(b_l)
    g_s = jnp.stack(g_l)
    bt_s = jnp.stack(bt_l)
    a_s = jnp.stack(a_l)

    kernel = functools.partial(_dense_block_kernel, depth=depth, C=C, N=N)
    out_flat = pl.pallas_call(
        kernel,
        out_shape=jax.ShapeDtypeStruct((B, C, N), jnp.float32),
        grid=(B,),
        in_specs=[
            pl.BlockSpec((1, C, N), lambda b: (b, 0, 0)),
            pl.BlockSpec((depth, 6 * C, cmax), lambda b: (0, 0, 0)),
            pl.BlockSpec((depth, C, 1), lambda b: (0, 0, 0)),
            pl.BlockSpec((depth, 1, N), lambda b: (0, 0, 0)),
            pl.BlockSpec((depth, 1, N), lambda b: (0, 0, 0)),
            pl.BlockSpec((depth, C, 1), lambda b: (0, 0, 0)),
            pl.BlockSpec((depth, N, N), lambda b: (0, 0, 0)),
            pl.BlockSpec((N, N), lambda b: (0, 0)),
            pl.BlockSpec((N, N), lambda b: (0, 0)),
            pl.BlockSpec((N, N), lambda b: (0, 0)),
        ],
        out_specs=pl.BlockSpec((1, C, N), lambda b: (b, 0, 0)),
        scratch_shapes=[pltpu.VMEM((cmax, N), jnp.float32)],
        compiler_params=pltpu.CompilerParams(
            dimension_semantics=("parallel",)),
    )(x_flat, wall_s, b_s, g_s, bt_s, a_s, st_s, S0, S2, P)
    return out_flat.reshape(B, C, T, F)


# ----------------------------------------------------------------------------
# Pure-JAX reference (mirrors the PyTorch forward exactly), for validation.
# ----------------------------------------------------------------------------
def dense_block_ref(x_nchw, params, depth):
    skip = x_nchw
    out = None
    for i in range(depth):
        p = params[i]
        dil = 2 ** i
        xp = jnp.pad(skip, ((0, 0), (0, 0), (dil, 0), (1, 1)))
        w_oihw = jnp.transpose(p["w"], (2, 3, 0, 1))  # (Cout, Cin, 2, 3)
        out = jax.lax.conv_general_dilated(
            xp, w_oihw, window_strides=(1, 1), padding="VALID",
            rhs_dilation=(dil, 1),
            dimension_numbers=("NCHW", "OIHW", "NCHW"),
            precision=jax.lax.Precision.HIGHEST)
        out = out + p["b"][None, :, None, None]
        mean = out.mean(-1, keepdims=True)
        var = ((out - mean) ** 2).mean(-1, keepdims=True)
        out = (out - mean) / jnp.sqrt(var + 1e-5)
        out = out * p["gamma"] + p["beta"]
        out = jnp.where(out >= 0, out, p["alpha"][None, :, None, None] * out)
        skip = jnp.concatenate([out, skip], axis=1)
    return out


# ----------------------------------------------------------------------------
# Deterministic parameter init (shapes follow the module __init__).
# ----------------------------------------------------------------------------
def init_params(key, depth, in_channels, input_size):
    params = []
    for i in range(depth):
        cin = in_channels * (i + 1)
        cout = in_channels
        key, kw, kb, kg, kbt, ka = jax.random.split(key, 6)
        w = jax.random.normal(kw, (2, 3, cout, cin), jnp.float32)
        w = w * (1.0 / math.sqrt(6.0 * cin))
        b = 0.1 * jax.random.normal(kb, (cout,), jnp.float32)
        gamma = 1.0 + 0.1 * jax.random.normal(kg, (input_size,), jnp.float32)
        beta = 0.1 * jax.random.normal(kbt, (input_size,), jnp.float32)
        alpha = 0.25 + 0.05 * jax.random.normal(ka, (cout,), jnp.float32)
        params.append(dict(w=w, b=b, gamma=gamma, beta=beta, alpha=alpha))
    return params


if __name__ == "__main__":
    depth = 5
    in_channels = 4   # C
    input_size = 16   # F (LayerNorm size)
    B, T = 2, 8       # N = T*F = 128 (lane-dense)

    key = jax.random.PRNGKey(0)
    key, kx = jax.random.split(key)
    x = jax.random.normal(kx, (B, in_channels, T, input_size), jnp.float32)

    params = init_params(key, depth, in_channels, input_size)

    out = jax.block_until_ready(dense_block_pallas(x, params, depth))
    ref = jax.block_until_ready(dense_block_ref(x, params, depth))

    assert out.shape == (B, in_channels, T, input_size)
    np.testing.assert_allclose(np.asarray(out), np.asarray(ref),
                               rtol=2e-3, atol=2e-3)
    print("KERNEL_OK")
</pallas_src>

<mosaic_0001>
module attributes {stable_mosaic.version = 11 : i64} {
  func.func @_dense_block_kernel(%arg0: i32, %arg1: memref<1x4x128xf32, #tpu.memory_space<vmem>>, %arg2: memref<5x24x20xf32, #tpu.memory_space<vmem>>, %arg3: memref<5x4x1xf32, #tpu.memory_space<vmem>>, %arg4: memref<5x1x128xf32, #tpu.memory_space<vmem>>, %arg5: memref<5x1x128xf32, #tpu.memory_space<vmem>>, %arg6: memref<5x4x1xf32, #tpu.memory_space<vmem>>, %arg7: memref<5x128x128xf32, #tpu.memory_space<vmem>>, %arg8: memref<128x128xf32, #tpu.memory_space<vmem>>, %arg9: memref<128x128xf32, #tpu.memory_space<vmem>>, %arg10: memref<128x128xf32, #tpu.memory_space<vmem>>, %arg11: memref<1x4x128xf32, #tpu.memory_space<vmem>>, %arg12: memref<20x128xf32, #tpu.memory_space<vmem>>) attributes {dimension_semantics = [#tpu.dimension_semantics<parallel>], iteration_bounds = array<i64: 2>, scalar_prefetch = 0 : i64, scratch_operands = 1 : i64, tpu.core_type = #tpu.core_type<tc>, window_params = [{transform_indices = @transform_0, window_bounds = array<i64: 1, 4, 128>}, {pipeline_mode = #tpu.pipeline_mode<synchronous>, transform_indices = @transform_1, window_bounds = array<i64: 5, 24, 20>}, {pipeline_mode = #tpu.pipeline_mode<synchronous>, transform_indices = @transform_2, window_bounds = array<i64: 5, 4, 1>}, {pipeline_mode = #tpu.pipeline_mode<synchronous>, transform_indices = @transform_3, window_bounds = array<i64: 5, 1, 128>}, {pipeline_mode = #tpu.pipeline_mode<synchronous>, transform_indices = @transform_4, window_bounds = array<i64: 5, 1, 128>}, {pipeline_mode = #tpu.pipeline_mode<synchronous>, transform_indices = @transform_5, window_bounds = array<i64: 5, 4, 1>}, {pipeline_mode = #tpu.pipeline_mode<synchronous>, transform_indices = @transform_6, window_bounds = array<i64: 5, 128, 128>}, {pipeline_mode = #tpu.pipeline_mode<synchronous>, transform_indices = @transform_7, window_bounds = array<i64: 128, 128>}, {pipeline_mode = #tpu.pipeline_mode<synchronous>, transform_indices = @transform_8, window_bounds = array<i64: 128, 128>}, {pipeline_mode = #tpu.pipeline_mode<synchronous>, transform_indices = @transform_9, window_bounds = array<i64: 128, 128>}, {transform_indices = @transform_10, window_bounds = array<i64: 1, 4, 128>}]} {
    %cst = arith.constant 0.000000e+00 : f32
    %0 = vector.broadcast %cst : f32 to vector<20x128xf32>
    %c0 = arith.constant 0 : index
    %c0_0 = arith.constant 0 : index
    %1 = vector.load %arg12[%c0, %c0_0] : memref<20x128xf32, #tpu.memory_space<vmem>>, vector<20x128xf32>
    tpu.vector_store %arg12[%c0, %c0_0], %0 {strides = array<i32>} : memref<20x128xf32, #tpu.memory_space<vmem>>, vector<20x128xf32>,
    %c0_1 = arith.constant 0 : index
    %c0_2 = arith.constant 0 : index
    %c0_3 = arith.constant 0 : index
    %2 = vector.load %arg1[%c0_1, %c0_2, %c0_3] : memref<1x4x128xf32, #tpu.memory_space<vmem>>, vector<1x4x128xf32>
    %3 = vector.shape_cast %2 : vector<1x4x128xf32> to vector<4x128xf32>
    %c16 = arith.constant 16 : index
    %c0_4 = arith.constant 0 : index
    %4 = vector.load %arg12[%c16, %c0_4] : memref<20x128xf32, #tpu.memory_space<vmem>>, vector<4x128xf32>
    tpu.vector_store %arg12[%c16, %c0_4], %3 {strides = array<i32>} : memref<20x128xf32, #tpu.memory_space<vmem>>, vector<4x128xf32>,
    %c0_5 = arith.constant 0 : index
    %c0_6 = arith.constant 0 : index
    %5 = vector.load %arg8[%c0_5, %c0_6] : memref<128x128xf32, #tpu.memory_space<vmem>>, vector<128x128xf32>
    %c0_7 = arith.constant 0 : index
    %c0_8 = arith.constant 0 : index
    %6 = vector.load %arg9[%c0_7, %c0_8] : memref<128x128xf32, #tpu.memory_space<vmem>>, vector<128x128xf32>
    %c0_9 = arith.constant 0 : index
    %c0_10 = arith.constant 0 : index
    %7 = vector.load %arg10[%c0_9, %c0_10] : memref<128x128xf32, #tpu.memory_space<vmem>>, vector<128x128xf32>
    %c0_11 = arith.constant 0 : index
    %c0_12 = arith.constant 0 : index
    %8 = vector.load %arg12[%c0_11, %c0_12] : memref<20x128xf32, #tpu.memory_space<vmem>>, vector<20x128xf32>
    %c0_13 = arith.constant 0 : index
    %c0_14 = arith.constant 0 : index
    %c0_15 = arith.constant 0 : index
    %9 = vector.load %arg2[%c0_13, %c0_14, %c0_15] : memref<5x24x20xf32, #tpu.memory_space<vmem>>, vector<1x24x20xf32>
    %10 = vector.shape_cast %9 : vector<1x24x20xf32> to vector<24x20xf32>
    %cst_16 = arith.constant dense<0.000000e+00> : vector<24x128xf32>
    %11 = tpu.matmul %10, %8, %cst_16 {dimension_numbers = #tpu.dot_dimension_numbers<[1], [0], [0], [1], [0, 0, 1, 1], [], []>, precision = #tpu.contract_precision<fp32>} : vector<24x20xf32>, vector<20x128xf32>, vector<24x128xf32> -> vector<24x128xf32>
    %12 = vector.extract_strided_slice %11 {offsets = [0, 0], sizes = [8, 128], strides = [1, 1]} : vector<24x128xf32> to vector<8x128xf32>
    %13 = vector.extract_strided_slice %11 {offsets = [8, 0], sizes = [8, 128], strides = [1, 1]} : vector<24x128xf32> to vector<8x128xf32>
    %14 = vector.extract_strided_slice %11 {offsets = [16, 0], sizes = [8, 128], strides = [1, 1]} : vector<24x128xf32> to vector<8x128xf32>
    %cst_17 = arith.constant dense<0.000000e+00> : vector<8x128xf32>
    %15 = tpu.matmul %12, %5, %cst_17 {dimension_numbers = #tpu.dot_dimension_numbers<[1], [0], [0], [1], [0, 0, 1, 1], [], []>, precision = #tpu.contract_precision<fp32>} : vector<8x128xf32>, vector<128x128xf32>, vector<8x128xf32> -> vector<8x128xf32>
    %16 = arith.addf %13, %15 : vector<8x128xf32>
    %cst_18 = arith.constant dense<0.000000e+00> : vector<8x128xf32>
    %17 = tpu.matmul %14, %6, %cst_18 {dimension_numbers = #tpu.dot_dimension_numbers<[1], [0], [0], [1], [0, 0, 1, 1], [], []>, precision = #tpu.contract_precision<fp32>} : vector<8x128xf32>, vector<128x128xf32>, vector<8x128xf32> -> vector<8x128xf32>
    %18 = arith.addf %16, %17 : vector<8x128xf32>
    %19 = vector.extract_strided_slice %18 {offsets = [4, 0], sizes = [4, 128], strides = [1, 1]} : vector<8x128xf32> to vector<4x128xf32>
    %20 = vector.extract_strided_slice %18 {offsets = [0, 0], sizes = [4, 128], strides = [1, 1]} : vector<8x128xf32> to vector<4x128xf32>
    %c0_19 = arith.constant 0 : index
    %c0_20 = arith.constant 0 : index
    %c0_21 = arith.constant 0 : index
    %21 = vector.load %arg7[%c0_19, %c0_20, %c0_21] : memref<5x128x128xf32, #tpu.memory_space<vmem>>, vector<1x128x128xf32>
    %22 = vector.shape_cast %21 : vector<1x128x128xf32> to vector<128x128xf32>
    %cst_22 = arith.constant dense<0.000000e+00> : vector<4x128xf32>
    %23 = tpu.matmul %20, %22, %cst_22 {dimension_numbers = #tpu.dot_dimension_numbers<[1], [0], [0], [1], [0, 0, 1, 1], [], []>, precision = #tpu.contract_precision<fp32>} : vector<4x128xf32>, vector<128x128xf32>, vector<4x128xf32> -> vector<4x128xf32>
    %24 = arith.addf %19, %23 : vector<4x128xf32>
    %c0_23 = arith.constant 0 : index
    %c0_24 = arith.constant 0 : index
    %c0_25 = arith.constant 0 : index
    %25 = vector.load %arg3[%c0_23, %c0_24, %c0_25] : memref<5x4x1xf32, #tpu.memory_space<vmem>>, vector<1x4x1xf32>
    %26 = vector.shape_cast %25 : vector<1x4x1xf32> to vector<4x1xf32>
    %27 = vector.broadcast %26 : vector<4x1xf32> to vector<4x128xf32>
    %28 = arith.addf %24, %27 : vector<4x128xf32>
    %cst_26 = arith.constant dense<0.000000e+00> : vector<4x128xf32>
    %29 = tpu.matmul %28, %7, %cst_26 {dimension_numbers = #tpu.dot_dimension_numbers<[1], [0], [0], [1], [0, 0, 1, 1], [], []>, precision = #tpu.contract_precision<fp32>} : vector<4x128xf32>, vector<128x128xf32>, vector<4x128xf32> -> vector<4x128xf32>
    %30 = arith.subf %28, %29 : vector<4x128xf32>
    %31 = arith.mulf %30, %30 : vector<4x128xf32>
    %cst_27 = arith.constant dense<0.000000e+00> : vector<4x128xf32>
    %32 = tpu.matmul %31, %7, %cst_27 {dimension_numbers = #tpu.dot_dimension_numbers<[1], [0], [0], [1], [0, 0, 1, 1], [], []>, precision = #tpu.contract_precision<fp32>} : vector<4x128xf32>, vector<128x128xf32>, vector<4x128xf32> -> vector<4x128xf32>
    %cst_28 = arith.constant 9.99999974E-6 : f32
    %33 = vector.broadcast %cst_28 : f32 to vector<4x128xf32>
    %34 = arith.addf %32, %33 : vector<4x128xf32>
    %35 = math.rsqrt %34 : vector<4x128xf32>
    %36 = arith.mulf %30, %35 : vector<4x128xf32>
    %c0_29 = arith.constant 0 : index
    %c0_30 = arith.constant 0 : index
    %c0_31 = arith.constant 0 : index
    %37 = vector.load %arg4[%c0_29, %c0_30, %c0_31] : memref<5x1x128xf32, #tpu.memory_space<vmem>>, vector<1x1x128xf32>
    %38 = vector.shape_cast %37 : vector<1x1x128xf32> to vector<1x128xf32>
    %39 = vector.broadcast %38 : vector<1x128xf32> to vector<4x128xf32>
    %40 = arith.mulf %36, %39 : vector<4x128xf32>
    %c0_32 = arith.constant 0 : index
    %c0_33 = arith.constant 0 : index
    %c0_34 = arith.constant 0 : index
    %41 = vector.load %arg5[%c0_32, %c0_33, %c0_34] : memref<5x1x128xf32, #tpu.memory_space<vmem>>, vector<1x1x128xf32>
    %42 = vector.shape_cast %41 : vector<1x1x128xf32> to vector<1x128xf32>
    %43 = vector.broadcast %42 : vector<1x128xf32> to vector<4x128xf32>
    %44 = arith.addf %40, %43 : vector<4x128xf32>
    %cst_35 = arith.constant 0.000000e+00 : f32
    %45 = vector.broadcast %cst_35 : f32 to vector<4x128xf32>
    %46 = arith.cmpf oge, %44, %45 : vector<4x128xf32>
    %c0_36 = arith.constant 0 : index
    %c0_37 = arith.constant 0 : index
    %c0_38 = arith.constant 0 : index
    %47 = vector.load %arg6[%c0_36, %c0_37, %c0_38] : memref<5x4x1xf32, #tpu.memory_space<vmem>>, vector<1x4x1xf32>
    %48 = vector.shape_cast %47 : vector<1x4x1xf32> to vector<4x1xf32>
    %49 = vector.broadcast %48 : vector<4x1xf32> to vector<4x128xf32>
    %50 = arith.mulf %49, %44 : vector<4x128xf32>
    %51 = arith.select %46, %44, %50 : vector<4x128xi1>, vector<4x128xf32>
    %c12 = arith.constant 12 : index
    %c0_39 = arith.constant 0 : index
    %52 = vector.load %arg12[%c12, %c0_39] : memref<20x128xf32, #tpu.memory_space<vmem>>, vector<4x128xf32>
    tpu.vector_store %arg12[%c12, %c0_39], %51 {strides = array<i32>} : memref<20x128xf32, #tpu.memory_space<vmem>>, vector<4x128xf32>,
    %c0_40 = arith.constant 0 : index
    %c0_41 = arith.constant 0 : index
    %53 = vector.load %arg12[%c0_40, %c0_41] : memref<20x128xf32, #tpu.memory_space<vmem>>, vector<20x128xf32>
    %c1 = arith.constant 1 : index
    %c0_42 = arith.constant 0 : index
    %c0_43 = arith.constant 0 : index
    %54 = vector.load %arg2[%c1, %c0_42, %c0_43] : memref<5x24x20xf32, #tpu.memory_space<vmem>>, vector<1x24x20xf32>
    %55 = vector.shape_cast %54 : vector<1x24x20xf32> to vector<24x20xf32>
    %cst_44 = arith.constant dense<0.000000e+00> : vector<24x128xf32>
    %56 = tpu.matmul %55, %53, %cst_44 {dimension_numbers = #tpu.dot_dimension_numbers<[1], [0], [0], [1], [0, 0, 1, 1], [], []>, precision = #tpu.contract_precision<fp32>} : vector<24x20xf32>, vector<20x128xf32>, vector<24x128xf32> -> vector<24x128xf32>
    %57 = vector.extract_strided_slice %56 {offsets = [0, 0], sizes = [8, 128], strides = [1, 1]} : vector<24x128xf32> to vector<8x128xf32>
    %58 = vector.extract_strided_slice %56 {offsets = [8, 0], sizes = [8, 128], strides = [1, 1]} : vector<24x128xf32> to vector<8x128xf32>
    %59 = vector.extract_strided_slice %56 {offsets = [16, 0], sizes = [8, 128], strides = [1, 1]} : vector<24x128xf32> to vector<8x128xf32>
    %cst_45 = arith.constant dense<0.000000e+00> : vector<8x128xf32>
    %60 = tpu.matmul %57, %5, %cst_45 {dimension_numbers = #tpu.dot_dimension_numbers<[1], [0], [0], [1], [0, 0, 1, 1], [], []>, precision = #tpu.contract_precision<fp32>} : vector<8x128xf32>, vector<128x128xf32>, vector<8x128xf32> -> vector<8x128xf32>
    %61 = arith.addf %58, %60 : vector<8x128xf32>
    %cst_46 = arith.constant dense<0.000000e+00> : vector<8x128xf32>
    %62 = tpu.matmul %59, %6, %cst_46 {dimension_numbers = #tpu.dot_dimension_numbers<[1], [0], [0], [1], [0, 0, 1, 1], [], []>, precision = #tpu.contract_precision<fp32>} : vector<8x128xf32>, vector<128x128xf32>, vector<8x128xf32> -> vector<8x128xf32>
    %63 = arith.addf %61, %62 : vector<8x128xf32>
    %64 = vector.extract_strided_slice %63 {offsets = [4, 0], sizes = [4, 128], strides = [1, 1]} : vector<8x128xf32> to vector<4x128xf32>
    %65 = vector.extract_strided_slice %63 {offsets = [0, 0], sizes = [4, 128], strides = [1, 1]} : vector<8x128xf32> to vector<4x128xf32>
    %c1_47 = arith.constant 1 : index
    %c0_48 = arith.constant 0 : index
    %c0_49 = arith.constant 0 : index
    %66 = vector.load %arg7[%c1_47, %c0_48, %c0_49] : memref<5x128x128xf32, #tpu.memory_space<vmem>>, vector<1x128x128xf32>
    %67 = vector.shape_cast %66 : vector<1x128x128xf32> to vector<128x128xf32>
    %cst_50 = arith.constant dense<0.000000e+00> : vector<4x128xf32>
    %68 = tpu.matmul %65, %67, %cst_50 {dimension_numbers = #tpu.dot_dimension_numbers<[1], [0], [0], [1], [0, 0, 1, 1], [], []>, precision = #tpu.contract_precision<fp32>} : vector<4x128xf32>, vector<128x128xf32>, vector<4x128xf32> -> vector<4x128xf32>
    %69 = arith.addf %64, %68 : vector<4x128xf32>
    %c1_51 = arith.constant 1 : index
    %c0_52 = arith.constant 0 : index
    %c0_53 = arith.constant 0 : index
    %70 = vector.load %arg3[%c1_51, %c0_52, %c0_53] : memref<5x4x1xf32, #tpu.memory_space<vmem>>, vector<1x4x1xf32>
    %71 = vector.shape_cast %70 : vector<1x4x1xf32> to vector<4x1xf32>
    %72 = vector.broadcast %71 : vector<4x1xf32> to vector<4x128xf32>
    %73 = arith.addf %69, %72 : vector<4x128xf32>
    %cst_54 = arith.constant dense<0.000000e+00> : vector<4x128xf32>
    %74 = tpu.matmul %73, %7, %cst_54 {dimension_numbers = #tpu.dot_dimension_numbers<[1], [0], [0], [1], [0, 0, 1, 1], [], []>, precision = #tpu.contract_precision<fp32>} : vector<4x128xf32>, vector<128x128xf32>, vector<4x128xf32> -> vector<4x128xf32>
    %75 = arith.subf %73, %74 : vector<4x128xf32>
    %76 = arith.mulf %75, %75 : vector<4x128xf32>
    %cst_55 = arith.constant dense<0.000000e+00> : vector<4x128xf32>
    %77 = tpu.matmul %76, %7, %cst_55 {dimension_numbers = #tpu.dot_dimension_numbers<[1], [0], [0], [1], [0, 0, 1, 1], [], []>, precision = #tpu.contract_precision<fp32>} : vector<4x128xf32>, vector<128x128xf32>, vector<4x128xf32> -> vector<4x128xf32>
    %cst_56 = arith.constant 9.99999974E-6 : f32
    %78 = vector.broadcast %cst_56 : f32 to vector<4x128xf32>
    %79 = arith.addf %77, %78 : vector<4x128xf32>
    %80 = math.rsqrt %79 : vector<4x128xf32>
    %81 = arith.mulf %75, %80 : vector<4x128xf32>
    %c1_57 = arith.constant 1 : index
    %c0_58 = arith.constant 0 : index
    %c0_59 = arith.constant 0 : index
    %82 = vector.load %arg4[%c1_57, %c0_58, %c0_59] : memref<5x1x128xf32, #tpu.memory_space<vmem>>, vector<1x1x128xf32>
    %83 = vector.shape_cast %82 : vector<1x1x128xf32> to vector<1x128xf32>
    %84 = vector.broadcast %83 : vector<1x128xf32> to vector<4x128xf32>
    %85 = arith.mulf %81, %84 : vector<4x128xf32>
    %c1_60 = arith.constant 1 : index
    %c0_61 = arith.constant 0 : index
    %c0_62 = arith.constant 0 : index
    %86 = vector.load %arg5[%c1_60, %c0_61, %c0_62] : memref<5x1x128xf32, #tpu.memory_space<vmem>>, vector<1x1x128xf32>
    %87 = vector.shape_cast %86 : vector<1x1x128xf32> to vector<1x128xf32>
    %88 = vector.broadcast %87 : vector<1x128xf32> to vector<4x128xf32>
    %89 = arith.addf %85, %88 : vector<4x128xf32>
    %cst_63 = arith.constant 0.000000e+00 : f32
    %90 = vector.broadcast %cst_63 : f32 to vector<4x128xf32>
    %91 = arith.cmpf oge, %89, %90 : vector<4x128xf32>
    %c1_64 = arith.constant 1 : index
    %c0_65 = arith.constant 0 : index
    %c0_66 = arith.constant 0 : index
    %92 = vector.load %arg6[%c1_64, %c0_65, %c0_66] : memref<5x4x1xf32, #tpu.memory_space<vmem>>, vector<1x4x1xf32>
    %93 = vector.shape_cast %92 : vector<1x4x1xf32> to vector<4x1xf32>
    %94 = vector.broadcast %93 : vector<4x1xf32> to vector<4x128xf32>
    %95 = arith.mulf %94, %89 : vector<4x128xf32>
    %96 = arith.select %91, %89, %95 : vector<4x128xi1>, vector<4x128xf32>
    %c8 = arith.constant 8 : index
    %c0_67 = arith.constant 0 : index
    %97 = vector.load %arg12[%c8, %c0_67] : memref<20x128xf32, #tpu.memory_space<vmem>>, vector<4x128xf32>
    tpu.vector_store %arg12[%c8, %c0_67], %96 {strides = array<i32>} : memref<20x128xf32, #tpu.memory_space<vmem>>, vector<4x128xf32>,
    %c0_68 = arith.constant 0 : index
    %c0_69 = arith.constant 0 : index
    %98 = vector.load %arg12[%c0_68, %c0_69] : memref<20x128xf32, #tpu.memory_space<vmem>>, vector<20x128xf32>
    %c2 = arith.constant 2 : index
    %c0_70 = arith.constant 0 : index
    %c0_71 = arith.constant 0 : index
    %99 = vector.load %arg2[%c2, %c0_70, %c0_71] : memref<5x24x20xf32, #tpu.memory_space<vmem>>, vector<1x24x20xf32>
    %100 = vector.shape_cast %99 : vector<1x24x20xf32> to vector<24x20xf32>
    %cst_72 = arith.constant dense<0.000000e+00> : vector<24x128xf32>
    %101 = tpu.matmul %100, %98, %cst_72 {dimension_numbers = #tpu.dot_dimension_numbers<[1], [0], [0], [1], [0, 0, 1, 1], [], []>, precision = #tpu.contract_precision<fp32>} : vector<24x20xf32>, vector<20x128xf32>, vector<24x128xf32> -> vector<24x128xf32>
    %102 = vector.extract_strided_slice %101 {offsets = [0, 0], sizes = [8, 128], strides = [1, 1]} : vector<24x128xf32> to vector<8x128xf32>
    %103 = vector.extract_strided_slice %101 {offsets = [8, 0], sizes = [8, 128], strides = [1, 1]} : vector<24x128xf32> to vector<8x128xf32>
    %104 = vector.extract_strided_slice %101 {offsets = [16, 0], sizes = [8, 128], strides = [1, 1]} : vector<24x128xf32> to vector<8x128xf32>
    %cst_73 = arith.constant dense<0.000000e+00> : vector<8x128xf32>
    %105 = tpu.matmul %102, %5, %cst_73 {dimension_numbers = #tpu.dot_dimension_numbers<[1], [0], [0], [1], [0, 0, 1, 1], [], []>, precision = #tpu.contract_precision<fp32>} : vector<8x128xf32>, vector<128x128xf32>, vector<8x128xf32> -> vector<8x128xf32>
    %106 = arith.addf %103, %105 : vector<8x128xf32>
    %cst_74 = arith.constant dense<0.000000e+00> : vector<8x128xf32>
    %107 = tpu.matmul %104, %6, %cst_74 {dimension_numbers = #tpu.dot_dimension_numbers<[1], [0], [0], [1], [0, 0, 1, 1], [], []>, precision = #tpu.contract_precision<fp32>} : vector<8x128xf32>, vector<128x128xf32>, vector<8x128xf32> -> vector<8x128xf32>
    %108 = arith.addf %106, %107 : vector<8x128xf32>
    %109 = vector.extract_strided_slice %108 {offsets = [4, 0], sizes = [4, 128], strides = [1, 1]} : vector<8x128xf32> to vector<4x128xf32>
    %110 = vector.extract_strided_slice %108 {offsets = [0, 0], sizes = [4, 128], strides = [1, 1]} : vector<8x128xf32> to vector<4x128xf32>
    %c2_75 = arith.constant 2 : index
    %c0_76 = arith.constant 0 : index
    %c0_77 = arith.constant 0 : index
    %111 = vector.load %arg7[%c2_75, %c0_76, %c0_77] : memref<5x128x128xf32, #tpu.memory_space<vmem>>, vector<1x128x128xf32>
    %112 = vector.shape_cast %111 : vector<1x128x128xf32> to vector<128x128xf32>
    %cst_78 = arith.constant dense<0.000000e+00> : vector<4x128xf32>
    %113 = tpu.matmul %110, %112, %cst_78 {dimension_numbers = #tpu.dot_dimension_numbers<[1], [0], [0], [1], [0, 0, 1, 1], [], []>, precision = #tpu.contract_precision<fp32>} : vector<4x128xf32>, vector<128x128xf32>, vector<4x128xf32> -> vector<4x128xf32>
    %114 = arith.addf %109, %113 : vector<4x128xf32>
    %c2_79 = arith.constant 2 : index
    %c0_80 = arith.constant 0 : index
    %c0_81 = arith.constant 0 : index
    %115 = vector.load %arg3[%c2_79, %c0_80, %c0_81] : memref<5x4x1xf32, #tpu.memory_space<vmem>>, vector<1x4x1xf32>
    %116 = vector.shape_cast %115 : vector<1x4x1xf32> to vector<4x1xf32>
    %117 = vector.broadcast %116 : vector<4x1xf32> to vector<4x128xf32>
    %118 = arith.addf %114, %117 : vector<4x128xf32>
    %cst_82 = arith.constant dense<0.000000e+00> : vector<4x128xf32>
    %119 = tpu.matmul %118, %7, %cst_82 {dimension_numbers = #tpu.dot_dimension_numbers<[1], [0], [0], [1], [0, 0, 1, 1], [], []>, precision = #tpu.contract_precision<fp32>} : vector<4x128xf32>, vector<128x128xf32>, vector<4x128xf32> -> vector<4x128xf32>
    %120 = arith.subf %118, %119 : vector<4x128xf32>
    %121 = arith.mulf %120, %120 : vector<4x128xf32>
    %cst_83 = arith.constant dense<0.000000e+00> : vector<4x128xf32>
    %122 = tpu.matmul %121, %7, %cst_83 {dimension_numbers = #tpu.dot_dimension_numbers<[1], [0], [0], [1], [0, 0, 1, 1], [], []>, precision = #tpu.contract_precision<fp32>} : vector<4x128xf32>, vector<128x128xf32>, vector<4x128xf32> -> vector<4x128xf32>
    %cst_84 = arith.constant 9.99999974E-6 : f32
    %123 = vector.broadcast %cst_84 : f32 to vector<4x128xf32>
    %124 = arith.addf %122, %123 : vector<4x128xf32>
    %125 = math.rsqrt %124 : vector<4x128xf32>
    %126 = arith.mulf %120, %125 : vector<4x128xf32>
    %c2_85 = arith.constant 2 : index
    %c0_86 = arith.constant 0 : index
    %c0_87 = arith.constant 0 : index
    %127 = vector.load %arg4[%c2_85, %c0_86, %c0_87] : memref<5x1x128xf32, #tpu.memory_space<vmem>>, vector<1x1x128xf32>
    %128 = vector.shape_cast %127 : vector<1x1x128xf32> to vector<1x128xf32>
    %129 = vector.broadcast %128 : vector<1x128xf32> to vector<4x128xf32>
    %130 = arith.mulf %126, %129 : vector<4x128xf32>
    %c2_88 = arith.constant 2 : index
    %c0_89 = arith.constant 0 : index
    %c0_90 = arith.constant 0 : index
    %131 = vector.load %arg5[%c2_88, %c0_89, %c0_90] : memref<5x1x128xf32, #tpu.memory_space<vmem>>, vector<1x1x128xf32>
    %132 = vector.shape_cast %131 : vector<1x1x128xf32> to vector<1x128xf32>
    %133 = vector.broadcast %132 : vector<1x128xf32> to vector<4x128xf32>
    %134 = arith.addf %130, %133 : vector<4x128xf32>
    %cst_91 = arith.constant 0.000000e+00 : f32
    %135 = vector.broadcast %cst_91 : f32 to vector<4x128xf32>
    %136 = arith.cmpf oge, %134, %135 : vector<4x128xf32>
    %c2_92 = arith.constant 2 : index
    %c0_93 = arith.constant 0 : index
    %c0_94 = arith.constant 0 : index
    %137 = vector.load %arg6[%c2_92, %c0_93, %c0_94] : memref<5x4x1xf32, #tpu.memory_space<vmem>>, vector<1x4x1xf32>
    %138 = vector.shape_cast %137 : vector<1x4x1xf32> to vector<4x1xf32>
    %139 = vector.broadcast %138 : vector<4x1xf32> to vector<4x128xf32>
    %140 = arith.mulf %139, %134 : vector<4x128xf32>
    %141 = arith.select %136, %134, %140 : vector<4x128xi1>, vector<4x128xf32>
    %c4 = arith.constant 4 : index
    %c0_95 = arith.constant 0 : index
    %142 = vector.load %arg12[%c4, %c0_95] : memref<20x128xf32, #tpu.memory_space<vmem>>, vector<4x128xf32>
    tpu.vector_store %arg12[%c4, %c0_95], %141 {strides = array<i32>} : memref<20x128xf32, #tpu.memory_space<vmem>>, vector<4x128xf32>,
    %c0_96 = arith.constant 0 : index
    %c0_97 = arith.constant 0 : index
    %143 = vector.load %arg12[%c0_96, %c0_97] : memref<20x128xf32, #tpu.memory_space<vmem>>, vector<20x128xf32>
    %c3 = arith.constant 3 : index
    %c0_98 = arith.constant 0 : index
    %c0_99 = arith.constant 0 : index
    %144 = vector.load %arg2[%c3, %c0_98, %c0_99] : memref<5x24x20xf32, #tpu.memory_space<vmem>>, vector<1x24x20xf32>
    %145 = vector.shape_cast %144 : vector<1x24x20xf32> to vector<24x20xf32>
    %cst_100 = arith.constant dense<0.000000e+00> : vector<24x128xf32>
    %146 = tpu.matmul %145, %143, %cst_100 {dimension_numbers = #tpu.dot_dimension_numbers<[1], [0], [0], [1], [0, 0, 1, 1], [], []>, precision = #tpu.contract_precision<fp32>} : vector<24x20xf32>, vector<20x128xf32>, vector<24x128xf32> -> vector<24x128xf32>
    %147 = vector.extract_strided_slice %146 {offsets = [0, 0], sizes = [8, 128], strides = [1, 1]} : vector<24x128xf32> to vector<8x128xf32>
    %148 = vector.extract_strided_slice %146 {offsets = [8, 0], sizes = [8, 128], strides = [1, 1]} : vector<24x128xf32> to vector<8x128xf32>
    %149 = vector.extract_strided_slice %146 {offsets = [16, 0], sizes = [8, 128], strides = [1, 1]} : vector<24x128xf32> to vector<8x128xf32>
    %cst_101 = arith.constant dense<0.000000e+00> : vector<8x128xf32>
    %150 = tpu.matmul %147, %5, %cst_101 {dimension_numbers = #tpu.dot_dimension_numbers<[1], [0], [0], [1], [0, 0, 1, 1], [], []>, precision = #tpu.contract_precision<fp32>} : vector<8x128xf32>, vector<128x128xf32>, vector<8x128xf32> -> vector<8x128xf32>
    %151 = arith.addf %148, %150 : vector<8x128xf32>
    %cst_102 = arith.constant dense<0.000000e+00> : vector<8x128xf32>
    %152 = tpu.matmul %149, %6, %cst_102 {dimension_numbers = #tpu.dot_dimension_numbers<[1], [0], [0], [1], [0, 0, 1, 1], [], []>, precision = #tpu.contract_precision<fp32>} : vector<8x128xf32>, vector<128x128xf32>, vector<8x128xf32> -> vector<8x128xf32>
    %153 = arith.addf %151, %152 : vector<8x128xf32>
    %154 = vector.extract_strided_slice %153 {offsets = [4, 0], sizes = [4, 128], strides = [1, 1]} : vector<8x128xf32> to vector<4x128xf32>
    %155 = vector.extract_strided_slice %153 {offsets = [0, 0], sizes = [4, 128], strides = [1, 1]} : vector<8x128xf32> to vector<4x128xf32>
    %c3_103 = arith.constant 3 : index
    %c0_104 = arith.constant 0 : index
    %c0_105 = arith.constant 0 : index
    %156 = vector.load %arg7[%c3_103, %c0_104, %c0_105] : memref<5x128x128xf32, #tpu.memory_space<vmem>>, vector<1x128x128xf32>
    %157 = vector.shape_cast %156 : vector<1x128x128xf32> to vector<128x128xf32>
    %cst_106 = arith.constant dense<0.000000e+00> : vector<4x128xf32>
    %158 = tpu.matmul %155, %157, %cst_106 {dimension_numbers = #tpu.dot_dimension_numbers<[1], [0], [0], [1], [0, 0, 1, 1], [], []>, precision = #tpu.contract_precision<fp32>} : vector<4x128xf32>, vector<128x128xf32>, vector<4x128xf32> -> vector<4x128xf32>
    %159 = arith.addf %154, %158 : vector<4x128xf32>
    %c3_107 = arith.constant 3 : index
    %c0_108 = arith.constant 0 : index
    %c0_109 = arith.constant 0 : index
    %160 = vector.load %arg3[%c3_107, %c0_108, %c0_109] : memref<5x4x1xf32, #tpu.memory_space<vmem>>, vector<1x4x1xf32>
    %161 = vector.shape_cast %160 : vector<1x4x1xf32> to vector<4x1xf32>
    %162 = vector.broadcast %161 : vector<4x1xf32> to vector<4x128xf32>
    %163 = arith.addf %159, %162 : vector<4x128xf32>
    %cst_110 = arith.constant dense<0.000000e+00> : vector<4x128xf32>
    %164 = tpu.matmul %163, %7, %cst_110 {dimension_numbers = #tpu.dot_dimension_numbers<[1], [0], [0], [1], [0, 0, 1, 1], [], []>, precision = #tpu.contract_precision<fp32>} : vector<4x128xf32>, vector<128x128xf32>, vector<4x128xf32> -> vector<4x128xf32>
    %165 = arith.subf %163, %164 : vector<4x128xf32>
    %166 = arith.mulf %165, %165 : vector<4x128xf32>
    %cst_111 = arith.constant dense<0.000000e+00> : vector<4x128xf32>
    %167 = tpu.matmul %166, %7, %cst_111 {dimension_numbers = #tpu.dot_dimension_numbers<[1], [0], [0], [1], [0, 0, 1, 1], [], []>, precision = #tpu.contract_precision<fp32>} : vector<4x128xf32>, vector<128x128xf32>, vector<4x128xf32> -> vector<4x128xf32>
    %cst_112 = arith.constant 9.99999974E-6 : f32
    %168 = vector.broadcast %cst_112 : f32 to vector<4x128xf32>
    %169 = arith.addf %167, %168 : vector<4x128xf32>
    %170 = math.rsqrt %169 : vector<4x128xf32>
    %171 = arith.mulf %165, %170 : vector<4x128xf32>
    %c3_113 = arith.constant 3 : index
    %c0_114 = arith.constant 0 : index
    %c0_115 = arith.constant 0 : index
    %172 = vector.load %arg4[%c3_113, %c0_114, %c0_115] : memref<5x1x128xf32, #tpu.memory_space<vmem>>, vector<1x1x128xf32>
    %173 = vector.shape_cast %172 : vector<1x1x128xf32> to vector<1x128xf32>
    %174 = vector.broadcast %173 : vector<1x128xf32> to vector<4x128xf32>
    %175 = arith.mulf %171, %174 : vector<4x128xf32>
    %c3_116 = arith.constant 3 : index
    %c0_117 = arith.constant 0 : index
    %c0_118 = arith.constant 0 : index
    %176 = vector.load %arg5[%c3_116, %c0_117, %c0_118] : memref<5x1x128xf32, #tpu.memory_space<vmem>>, vector<1x1x128xf32>
    %177 = vector.shape_cast %176 : vector<1x1x128xf32> to vector<1x128xf32>
    %178 = vector.broadcast %177 : vector<1x128xf32> to vector<4x128xf32>
    %179 = arith.addf %175, %178 : vector<4x128xf32>
    %cst_119 = arith.constant 0.000000e+00 : f32
    %180 = vector.broadcast %cst_119 : f32 to vector<4x128xf32>
    %181 = arith.cmpf oge, %179, %180 : vector<4x128xf32>
    %c3_120 = arith.constant 3 : index
    %c0_121 = arith.constant 0 : index
    %c0_122 = arith.constant 0 : index
    %182 = vector.load %arg6[%c3_120, %c0_121, %c0_122] : memref<5x4x1xf32, #tpu.memory_space<vmem>>, vector<1x4x1xf32>
    %183 = vector.shape_cast %182 : vector<1x4x1xf32> to vector<4x1xf32>
    %184 = vector.broadcast %183 : vector<4x1xf32> to vector<4x128xf32>
    %185 = arith.mulf %184, %179 : vector<4x128xf32>
    %186 = arith.select %181, %179, %185 : vector<4x128xi1>, vector<4x128xf32>
    %c0_123 = arith.constant 0 : index
    %c0_124 = arith.constant 0 : index
    %187 = vector.load %arg12[%c0_123, %c0_124] : memref<20x128xf32, #tpu.memory_space<vmem>>, vector<4x128xf32>
    tpu.vector_store %arg12[%c0_123, %c0_124], %186 {strides = array<i32>} : memref<20x128xf32, #tpu.memory_space<vmem>>, vector<4x128xf32>,
    %c0_125 = arith.constant 0 : index
    %c0_126 = arith.constant 0 : index
    %188 = vector.load %arg12[%c0_125, %c0_126] : memref<20x128xf32, #tpu.memory_space<vmem>>, vector<20x128xf32>
    %c4_127 = arith.constant 4 : index
    %c0_128 = arith.constant 0 : index
    %c0_129 = arith.constant 0 : index
    %189 = vector.load %arg2[%c4_127, %c0_128, %c0_129] : memref<5x24x20xf32, #tpu.memory_space<vmem>>, vector<1x24x20xf32>
    %190 = vector.shape_cast %189 : vector<1x24x20xf32> to vector<24x20xf32>
    %cst_130 = arith.constant dense<0.000000e+00> : vector<24x128xf32>
    %191 = tpu.matmul %190, %188, %cst_130 {dimension_numbers = #tpu.dot_dimension_numbers<[1], [0], [0], [1], [0, 0, 1, 1], [], []>, precision = #tpu.contract_precision<fp32>} : vector<24x20xf32>, vector<20x128xf32>, vector<24x128xf32> -> vector<24x128xf32>
    %192 = vector.extract_strided_slice %191 {offsets = [0, 0], sizes = [8, 128], strides = [1, 1]} : vector<24x128xf32> to vector<8x128xf32>
    %193 = vector.extract_strided_slice %191 {offsets = [8, 0], sizes = [8, 128], strides = [1, 1]} : vector<24x128xf32> to vector<8x128xf32>
    %194 = vector.extract_strided_slice %191 {offsets = [16, 0], sizes = [8, 128], strides = [1, 1]} : vector<24x128xf32> to vector<8x128xf32>
    %cst_131 = arith.constant dense<0.000000e+00> : vector<8x128xf32>
    %195 = tpu.matmul %192, %5, %cst_131 {dimension_numbers = #tpu.dot_dimension_numbers<[1], [0], [0], [1], [0, 0, 1, 1], [], []>, precision = #tpu.contract_precision<fp32>} : vector<8x128xf32>, vector<128x128xf32>, vector<8x128xf32> -> vector<8x128xf32>
    %196 = arith.addf %193, %195 : vector<8x128xf32>
    %cst_132 = arith.constant dense<0.000000e+00> : vector<8x128xf32>
    %197 = tpu.matmul %194, %6, %cst_132 {dimension_numbers = #tpu.dot_dimension_numbers<[1], [0], [0], [1], [0, 0, 1, 1], [], []>, precision = #tpu.contract_precision<fp32>} : vector<8x128xf32>, vector<128x128xf32>, vector<8x128xf32> -> vector<8x128xf32>
    %198 = arith.addf %196, %197 : vector<8x128xf32>
    %199 = vector.extract_strided_slice %198 {offsets = [4, 0], sizes = [4, 128], strides = [1, 1]} : vector<8x128xf32> to vector<4x128xf32>
    %200 = vector.extract_strided_slice %198 {offsets = [0, 0], sizes = [4, 128], strides = [1, 1]} : vector<8x128xf32> to vector<4x128xf32>
    %c4_133 = arith.constant 4 : index
    %c0_134 = arith.constant 0 : index
    %c0_135 = arith.constant 0 : index
    %201 = vector.load %arg7[%c4_133, %c0_134, %c0_135] : memref<5x128x128xf32, #tpu.memory_space<vmem>>, vector<1x128x128xf32>
    %202 = vector.shape_cast %201 : vector<1x128x128xf32> to vector<128x128xf32>
    %cst_136 = arith.constant dense<0.000000e+00> : vector<4x128xf32>
    %203 = tpu.matmul %200, %202, %cst_136 {dimension_numbers = #tpu.dot_dimension_numbers<[1], [0], [0], [1], [0, 0, 1, 1], [], []>, precision = #tpu.contract_precision<fp32>} : vector<4x128xf32>, vector<128x128xf32>, vector<4x128xf32> -> vector<4x128xf32>
    %204 = arith.addf %199, %203 : vector<4x128xf32>
    %c4_137 = arith.constant 4 : index
    %c0_138 = arith.constant 0 : index
    %c0_139 = arith.constant 0 : index
    %205 = vector.load %arg3[%c4_137, %c0_138, %c0_139] : memref<5x4x1xf32, #tpu.memory_space<vmem>>, vector<1x4x1xf32>
    %206 = vector.shape_cast %205 : vector<1x4x1xf32> to vector<4x1xf32>
    %207 = vector.broadcast %206 : vector<4x1xf32> to vector<4x128xf32>
    %208 = arith.addf %204, %207 : vector<4x128xf32>
    %cst_140 = arith.constant dense<0.000000e+00> : vector<4x128xf32>
    %209 = tpu.matmul %208, %7, %cst_140 {dimension_numbers = #tpu.dot_dimension_numbers<[1], [0], [0], [1], [0, 0, 1, 1], [], []>, precision = #tpu.contract_precision<fp32>} : vector<4x128xf32>, vector<128x128xf32>, vector<4x128xf32> -> vector<4x128xf32>
    %210 = arith.subf %208, %209 : vector<4x128xf32>
    %211 = arith.mulf %210, %210 : vector<4x128xf32>
    %cst_141 = arith.constant dense<0.000000e+00> : vector<4x128xf32>
    %212 = tpu.matmul %211, %7, %cst_141 {dimension_numbers = #tpu.dot_dimension_numbers<[1], [0], [0], [1], [0, 0, 1, 1], [], []>, precision = #tpu.contract_precision<fp32>} : vector<4x128xf32>, vector<128x128xf32>, vector<4x128xf32> -> vector<4x128xf32>
    %cst_142 = arith.constant 9.99999974E-6 : f32
    %213 = vector.broadcast %cst_142 : f32 to vector<4x128xf32>
    %214 = arith.addf %212, %213 : vector<4x128xf32>
    %215 = math.rsqrt %214 : vector<4x128xf32>
    %216 = arith.mulf %210, %215 : vector<4x128xf32>
    %c4_143 = arith.constant 4 : index
    %c0_144 = arith.constant 0 : index
    %c0_145 = arith.constant 0 : index
    %217 = vector.load %arg4[%c4_143, %c0_144, %c0_145] : memref<5x1x128xf32, #tpu.memory_space<vmem>>, vector<1x1x128xf32>
    %218 = vector.shape_cast %217 : vector<1x1x128xf32> to vector<1x128xf32>
    %219 = vector.broadcast %218 : vector<1x128xf32> to vector<4x128xf32>
    %220 = arith.mulf %216, %219 : vector<4x128xf32>
    %c4_146 = arith.constant 4 : index
    %c0_147 = arith.constant 0 : index
    %c0_148 = arith.constant 0 : index
    %221 = vector.load %arg5[%c4_146, %c0_147, %c0_148] : memref<5x1x128xf32, #tpu.memory_space<vmem>>, vector<1x1x128xf32>
    %222 = vector.shape_cast %221 : vector<1x1x128xf32> to vector<1x128xf32>
    %223 = vector.broadcast %222 : vector<1x128xf32> to vector<4x128xf32>
    %224 = arith.addf %220, %223 : vector<4x128xf32>
    %cst_149 = arith.constant 0.000000e+00 : f32
    %225 = vector.broadcast %cst_149 : f32 to vector<4x128xf32>
    %226 = arith.cmpf oge, %224, %225 : vector<4x128xf32>
    %c4_150 = arith.constant 4 : index
    %c0_151 = arith.constant 0 : index
    %c0_152 = arith.constant 0 : index
    %227 = vector.load %arg6[%c4_150, %c0_151, %c0_152] : memref<5x4x1xf32, #tpu.memory_space<vmem>>, vector<1x4x1xf32>
    %228 = vector.shape_cast %227 : vector<1x4x1xf32> to vector<4x1xf32>
    %229 = vector.broadcast %228 : vector<4x1xf32> to vector<4x128xf32>
    %230 = arith.mulf %229, %224 : vector<4x128xf32>
    %231 = arith.select %226, %224, %230 : vector<4x128xi1>, vector<4x128xf32>
    %c0_153 = arith.constant 0 : index
    %c0_154 = arith.constant 0 : index
    %c0_155 = arith.constant 0 : index
    %232 = vector.load %arg11[%c0_153, %c0_154, %c0_155] : memref<1x4x128xf32, #tpu.memory_space<vmem>>, vector<1x4x128xf32>
    %233 = vector.shape_cast %232 : vector<1x4x128xf32> to vector<4x128xf32>
    %234 = vector.shape_cast %231 : vector<4x128xf32> to vector<1x4x128xf32>
    tpu.vector_store %arg11[%c0_153, %c0_154, %c0_155], %234 {strides = array<i32>} : memref<1x4x128xf32, #tpu.memory_space<vmem>>, vector<1x4x128xf32>,
    return
  }
  func.func @transform_0(%arg0: i32) -> (i32, i32, i32) {
    %c0_i32 = arith.constant 0 : i32
    %c0_i32_0 = arith.constant 0 : i32
    %c0_i32_1 = arith.constant 0 : i32
    return %arg0, %c0_i32, %c0_i32_0 : i32, i32, i32
  }
  func.func @transform_1(%arg0: i32) -> (i32, i32, i32) {
    %c0_i32 = arith.constant 0 : i32
    %c0_i32_0 = arith.constant 0 : i32
    %c0_i32_1 = arith.constant 0 : i32
    %c0_i32_2 = arith.constant 0 : i32
    return %c0_i32, %c0_i32_0, %c0_i32_1 : i32, i32, i32
  }
  func.func @transform_2(%arg0: i32) -> (i32, i32, i32) {
    %c0_i32 = arith.constant 0 : i32
    %c0_i32_0 = arith.constant 0 : i32
    %c0_i32_1 = arith.constant 0 : i32
    %c0_i32_2 = arith.constant 0 : i32
    return %c0_i32, %c0_i32_0, %c0_i32_1 : i32, i32, i32
  }
  func.func @transform_3(%arg0: i32) -> (i32, i32, i32) {
    %c0_i32 = arith.constant 0 : i32
    %c0_i32_0 = arith.constant 0 : i32
    %c0_i32_1 = arith.constant 0 : i32
    %c0_i32_2 = arith.constant 0 : i32
    return %c0_i32, %c0_i32_0, %c0_i32_1 : i32, i32, i32
  }
  func.func @transform_4(%arg0: i32) -> (i32, i32, i32) {
    %c0_i32 = arith.constant 0 : i32
    %c0_i32_0 = arith.constant 0 : i32
    %c0_i32_1 = arith.constant 0 : i32
    %c0_i32_2 = arith.constant 0 : i32
    return %c0_i32, %c0_i32_0, %c0_i32_1 : i32, i32, i32
  }
  func.func @transform_5(%arg0: i32) -> (i32, i32, i32) {
    %c0_i32 = arith.constant 0 : i32
    %c0_i32_0 = arith.constant 0 : i32
    %c0_i32_1 = arith.constant 0 : i32
    %c0_i32_2 = arith.constant 0 : i32
    return %c0_i32, %c0_i32_0, %c0_i32_1 : i32, i32, i32
  }
  func.func @transform_6(%arg0: i32) -> (i32, i32, i32) {
    %c0_i32 = arith.constant 0 : i32
    %c0_i32_0 = arith.constant 0 : i32
    %c0_i32_1 = arith.constant 0 : i32
    %c0_i32_2 = arith.constant 0 : i32
    return %c0_i32, %c0_i32_0, %c0_i32_1 : i32, i32, i32
  }
  func.func @transform_7(%arg0: i32) -> (i32, i32) {
    %c0_i32 = arith.constant 0 : i32
    %c0_i32_0 = arith.constant 0 : i32
    %c0_i32_1 = arith.constant 0 : i32
    return %c0_i32, %c0_i32_0 : i32, i32
  }
  func.func @transform_8(%arg0: i32) -> (i32, i32) {
    %c0_i32 = arith.constant 0 : i32
    %c0_i32_0 = arith.constant 0 : i32
    %c0_i32_1 = arith.constant 0 : i32
    return %c0_i32, %c0_i32_0 : i32, i32
  }
  func.func @transform_9(%arg0: i32) -> (i32, i32) {
    %c0_i32 = arith.constant 0 : i32
    %c0_i32_0 = arith.constant 0 : i32
    %c0_i32_1 = arith.constant 0 : i32
    return %c0_i32, %c0_i32_0 : i32, i32
  }
  func.func @transform_10(%arg0: i32) -> (i32, i32, i32) {
    %c0_i32 = arith.constant 0 : i32
    %c0_i32_0 = arith.constant 0 : i32
    %c0_i32_1 = arith.constant 0 : i32
    return %arg0, %c0_i32, %c0_i32_0 : i32, i32, i32
  }
}

</mosaic_0001>

<bundles_post_ra>
// kernel: tpu_custom_call.1
= control target key start
LH: loop header
LB: loop body
LE: loop exit
PB: predicated region body
PF: predicated region fallthrough
CT: control target
= control target key end

     0   :  { %s38248_s0 = inlined_call_operand.vmem [shape: f32[2,4,128], index: 0, kind: input, shape index: {}]   ;;  %s38249_s1 = inlined_call_operand.hbm [shape: f32[5,24,20], index: 1, kind: input, shape index: {}]   ;;  %s38250_s2 = inlined_call_operand.vmem [shape: f32[5,4,1], index: 2, kind: input, shape index: {}]   ;;  %s38251_s3 = inlined_call_operand.vmem [shape: f32[5,1,128], index: 3, kind: input, shape index: {}]   ;;  %s38252_s4 = inlined_call_operand.vmem [shape: f32[5,1,128], index: 4, kind: input, shape index: {}]   ;;  %s38253_s5 = inlined_call_operand.vmem [shape: f32[5,4,1], index: 5, kind: input, shape index: {}]   ;;  %s38254_s6 = inlined_call_operand.hbm [shape: f32[5,128,128], index: 6, kind: input, shape index: {}]   ;;  %s38255_s7 = inlined_call_operand.hbm [shape: f32[128,128], index: 7, kind: input, shape index: {}]   ;;  %s38256_s8 = inlined_call_operand.hbm [shape: f32[128,128], index: 8, kind: input, shape index: {}]   ;;  %s38257_s9 = inlined_call_operand.hbm [shape: f32[128,128], index: 9, kind: input, shape index: {}]   ;;  %s38258_s10 = inlined_call_operand.hbm [shape: f32[2,4,128], index: 10, kind: output, shape index: {}]  }
   0x1   :  { %38637 = sst [smem:[#allocation104_spill]] %s38254_s6 }
   0x2   :  { %15 = vsyncpa [#allocation4], 0 }
   0x3   :  { %16 = vsyncpa [#allocation7], 0 }
   0x4   :  { %17 = vsyncpa [#allocation10], 0 }
   0x5   :  { %18 = vsyncpa [#allocation5], 0 }
   0x6   :  { %20 = vsyncpa [#allocation5 + $0x1], 0  ;;  %s32911_s13 = smov 0   ;;  %s32913_s14 = smov 0  }
   0x7   :  { %s32915_s15 = smov 0   ;;  %s32917_s16 = smov 0  }
   0x8 LB: > { %38638 = sst [smem:[#allocation17_spill]] %s32830_s13  ;;  %s32932_s17 = sadd.s32 4294967295, %s32842_s16   ;;  %s32842_s16 = sphi %s32917_s16, %s39194_s16   ;;  %s32838_s15 = sphi %s32915_s15, %s39196_s15   ;;  %s32834_s14 = sphi %s32913_s14, %s39198_s14   ;;  %s32830_s13 = sphi %s32911_s13, %s39197_s13  }
   0x9   : > { %38639 = sst [smem:[#allocation18_spill]] %s32838_s15  ;;  %s19925_s18 = sadd.s32 4294967294, %s32842_s16  }
   0xa   : > { %38640 = sst [smem:[#allocation19_spill]] %s32842_s16  ;;  %s32936_s19 = sadd.s32 1, %s32842_s16  }
   0xb   : > { %38641 = sst [smem:[#allocation20_spill]] %s32936_s19  ;;  %s248_s20 = sadd.s32 1, %s32838_s15 }
   0xc   : > { %s245_s21 = ssub.s32 %s32842_s16, %s32936_s19  ;;  %p258_p0 = scmp.ne.s32.totalorder %s32838_s15, %s32834_s14 }
   0xd   : > { %p246_p1 = scmp.eq.s32.totalorder %s245_s21, 0  ;;  %p259_p2 = scmp.eq.s32.totalorder %s32932_s17, 1 }
   0xe   : > { %p264_p3 = scmp.ne.s32.totalorder %s32834_s14, %s32830_s13  ;;  %p265_p4 = scmp.eq.s32.totalorder %s19925_s18, 1 }
   0xf   : > { %s32947_s22 = scalar_select %p246_p1, %s32838_s15, %s248_s20  }
  0x10   : > { %p32949_p5 = por %p259_p2, %p258_p0  ;;  %p32953_p6 = por %p265_p4, %p264_p3 }
  0x11   : > { %38642 = sst [smem:[#allocation21_spill]] %s32947_s22  ;;  %p19926_p7 = scmp.ge.s32.totalorder %s32842_s16, 1 }
  0x12   : > { %s38643_s23 = scalar_select %p32949_p5, 1, 0 }
  0x13   : > { %s38644_s24 = scalar_select %p32953_p6, 1, 0 }
  0x14   : > { %p272_p8 = scmp.lt.s32.totalorder %s32842_s16, 3  ;;  %p38260_p9 = scmp.eq.s32.totalorder %s32932_s17, 0 }
  0x15   : > { %38645 = sst [smem:[#allocation22_spill]] %s38644_s24  ;;  %s32844_s26 = smov [#allocation6]  }
  0x16   : > { %p32960_p10 = pnand %p19926_p7, %p272_p8  ;;  %s309_s27 = sshll.u32 %s32844_s26, 4  ;;  %s32966_s27 = int_to_ptr.vmem [resolvable:$true] %s309_s27 }
  0x17   : > { %s32845_s29 = smov [#allocation9]   ;;  %s32846_s11 = smov [#allocation3]  }
  0x18   : > { %s38646_s25 = scalar_select %p32960_p10, 1, 0 }
  0x19   : > { %p32537_p11 = pneg %p32960_p10  ;;  %s335_s30 = sshll.u32 %s32845_s29, 4  ;;  %s32974_s30 = int_to_ptr.vmem [resolvable:$true] %s335_s30 }
  0x1a   : > { %s32976_s12 = sshll.u32 %s32846_s11, 4  ;;  %s38648_s6 = sld [smem:[#allocation104_spill]]  ;;  %s285_s12 = int_to_ptr.vmem [resolvable:$true] %s32976_s12 }
  0x1b   : > { %p32970_p12 = pnand %p38260_p9, %p32537_p11 }
  0x1d   : > { %p32986_p0 = pneg %p32970_p12 }
  0x20   : > { %s32628_s21 = scalar_lea.hbm %s38648_s6, 10240 }
  0x21   : > { %p32629_p13 = scmp.ne.s32.totalorder %s38648_s6, %s32628_s21  ;;  %p32635_p3 = scmp.lt.u32.totalorder %s32628_s21, %s38648_s6 }
  0x23   : > { %p32631_p1 = pnand %p32986_p0, %p32629_p13 }
  0x25   : > { %p32632_p2 = pneg %p32631_p1 }
  0x27   : > { %p32637_p4 = pnand %p32635_p3, %p32632_p2 }
  0x29   : > { %32640 = shalt.err (!%p32637_p4)
}
  0x2a   : > { %s32641_s22 = scalar_lea.vmem %s32966_s27, 10240  ;;  %p32649_p9 = scmp.lt.s32.totalorder %s32966_s27, %s32966_s27 }
  0x2b   : > { %p32642_p7 = scmp.ne.s32.totalorder %s32966_s27, %s32641_s22  ;;  %p32650_p6 = scmp.lt.s32.totalorder %s32641_s22, %s32641_s22 }
  0x2d   : > { %p32644_p8 = pnand %p32642_p7, %p32986_p0  ;;  %p32651_p13 = por %p32650_p6, %p32649_p9 }
  0x2f   : > { %p32645_p11 = pneg %p32644_p8 }
  0x31   : > { %p32652_p1 = pnand %p32651_p13, %p32645_p11 }
  0x33   : > { %32655 = shalt.err (!%p32652_p1)
}
  0x34   : > { %s32847_s18 = smov 128   ;;  %s32848_s20 = smov 8  }
  0x35   : > { %32543 = dma.hbm_to_vmem [thread:$0]  (!%p32970_p12), %s38648_s6, 10240, %s32966_s27, [#allocation7], %s32847_s18, %s32847_s18, %s32848_s20  }
  0x36   : > { %s32656_s22 = scalar_lea.hbm %s38256_s8, 2048 }
  0x37   : > { %p32657_p6 = scmp.ne.s32.totalorder %s38256_s8, %s32656_s22  ;;  %p32663_p3 = scmp.lt.u32.totalorder %s32656_s22, %s38256_s8 }
  0x39   : > { %p32659_p9 = pnand %p32657_p6, %p32986_p0 }
  0x3b   : > { %p32660_p2 = pneg %p32659_p9 }
  0x3d   : > { %p32665_p4 = pnand %p32663_p3, %p32660_p2 }
  0x3f   : > { %32668 = shalt.err (!%p32665_p4)
}
  0x40   : > { %s32669_s27 = scalar_lea.vmem %s32974_s30, 2048  ;;  %p32677_p13 = scmp.lt.s32.totalorder %s32974_s30, %s32974_s30 }
  0x41   : > { %p32670_p7 = scmp.ne.s32.totalorder %s32974_s30, %s32669_s27  ;;  %p32678_p1 = scmp.lt.s32.totalorder %s32669_s27, %s32669_s27 }
  0x43   : > { %p32672_p8 = pnand %p32670_p7, %p32986_p0  ;;  %p32679_p6 = por %p32678_p1, %p32677_p13 }
  0x45   : > { %p32673_p11 = pneg %p32672_p8 }
  0x47   : > { %p32680_p9 = pnand %p32679_p6, %p32673_p11 }
  0x49   : > { %32683 = shalt.err (!%p32680_p9)
}
  0x4a   : > { %32549 = dma.hbm_to_vmem [thread:$0]  (!%p32970_p12), %s38256_s8, 2048, %s32974_s30, [#allocation10], %s32847_s18, %s32847_s18, %s32848_s20  }
  0x4b   : > { %s32684_s21 = scalar_lea.hbm %s38249_s1, 1920 }
  0x4c   : > { %p32685_p2 = scmp.ne.s32.totalorder %s38249_s1, %s32684_s21  ;;  %p32691_p7 = scmp.lt.u32.totalorder %s32684_s21, %s38249_s1 }
  0x4e   : > { %p32687_p3 = pnand %p32685_p2, %p32986_p0 }
  0x50   : > { %p32688_p4 = pneg %p32687_p3 }
  0x52   : > { %p32693_p8 = pnand %p32691_p7, %p32688_p4 }
  0x54   : > { %32696 = shalt.err (!%p32693_p8)
}
  0x55   : > { %s32697_s27 = scalar_lea.vmem %s285_s12, 1920  ;;  %p32705_p6 = scmp.lt.s32.totalorder %s285_s12, %s285_s12 }
  0x56   : > { %p32698_p11 = scmp.ne.s32.totalorder %s285_s12, %s32697_s27  ;;  %p32706_p9 = scmp.lt.s32.totalorder %s32697_s27, %s32697_s27 }
  0x58   : > { %p32700_p13 = pnand %p32698_p11, %p32986_p0  ;;  %p32707_p5 = por %p32706_p9, %p32705_p6 }
  0x5a   : > { %p32701_p1 = pneg %p32700_p13 }
  0x5c   : > { %p32708_p10 = pnand %p32707_p5, %p32701_p1 }
  0x5e   : > { %32711 = shalt.err (!%p32708_p10)
}
  0x5f   : > { %32540 = dma.hbm_to_vmem [thread:$0]  (!%p32970_p12), %s38249_s1, 1920, %s285_s12, [#allocation4], %s32847_s18, %s32847_s18, %s32848_s20  }
  0x60   : > { %s32849_s16 = smov [#allocation8]   ;;  %s32850_s24 = smov [#allocation11]  }
  0x61   : > { %s322_s19 = sshll.u32 %s32849_s16, 4  ;;  %s348_s21 = sshll.u32 %s32850_s24, 4  ;;  %s323_s19 = int_to_ptr.vmem [resolvable:$true] %s322_s19  ;;  %s349_s21 = int_to_ptr.vmem [resolvable:$true] %s348_s21 }
  0x62   : > { %s32712_s11 = scalar_lea.hbm %s38255_s7, 2048 }
  0x63   : > { %p32713_p5 = scmp.ne.s32.totalorder %s38255_s7, %s32712_s11  ;;  %p32719_p3 = scmp.lt.u32.totalorder %s32712_s11, %s38255_s7 }
  0x65   : > { %p32715_p10 = pnand %p32713_p5, %p32986_p0 }
  0x67   : > { %p32716_p2 = pneg %p32715_p10 }
  0x69   : > { %p32721_p4 = pnand %p32719_p3, %p32716_p2 }
  0x6b   : > { %32724 = shalt.err (!%p32721_p4)
}
  0x6c   : > { %s32725_s12 = scalar_lea.vmem %s323_s19, 2048  ;;  %p32733_p13 = scmp.lt.s32.totalorder %s323_s19, %s323_s19 }
  0x6d   : > { %p32726_p7 = scmp.ne.s32.totalorder %s323_s19, %s32725_s12  ;;  %p32734_p1 = scmp.lt.s32.totalorder %s32725_s12, %s32725_s12 }
  0x6f   : > { %p32728_p8 = pnand %p32726_p7, %p32986_p0  ;;  %p32735_p6 = por %p32734_p1, %p32733_p13 }
  0x71   : > { %p32729_p11 = pneg %p32728_p8 }
  0x73   : > { %p32736_p9 = pnand %p32735_p6, %p32729_p11 }
  0x75   : > { %32739 = shalt.err (!%p32736_p9)
}
  0x76   : > { %32546 = dma.hbm_to_vmem [thread:$0]  (!%p32970_p12), %s38255_s7, 2048, %s323_s19, [#allocation7], %s32847_s18, %s32847_s18, %s32848_s20  }
  0x77   : > { %s32740_s26 = scalar_lea.hbm %s38257_s9, 2048 }
  0x78   : > { %p32741_p5 = scmp.ne.s32.totalorder %s38257_s9, %s32740_s26  ;;  %p32747_p3 = scmp.lt.u32.totalorder %s32740_s26, %s38257_s9 }
  0x7a   : > { %p32743_p10 = pnand %p32741_p5, %p32986_p0 }
  0x7c   : > { %p32744_p2 = pneg %p32743_p10 }
  0x7e   : > { %p32749_p4 = pnand %p32747_p3, %p32744_p2 }
  0x80   : > { %32752 = shalt.err (!%p32749_p4)
}
  0x81   : > { %s32753_s30 = scalar_lea.vmem %s349_s21, 2048  ;;  %p32761_p13 = scmp.lt.s32.totalorder %s349_s21, %s349_s21 }
  0x82   : > { %p32754_p7 = scmp.ne.s32.totalorder %s349_s21, %s32753_s30  ;;  %p32762_p1 = scmp.lt.s32.totalorder %s32753_s30, %s32753_s30 }
  0x84   : > { %p32756_p8 = pnand %p32754_p7, %p32986_p0  ;;  %p32763_p6 = por %p32762_p1, %p32761_p13 }
  0x86   : > { %p32757_p11 = pneg %p32756_p8 }
  0x88   : > { %p32764_p9 = pnand %p32763_p6, %p32757_p11 }
  0x8a   : > { %32767 = shalt.err (!%p32764_p9)
}
  0x8b   : > { %32552 = dma.hbm_to_vmem [thread:$0]  (!%p32970_p12), %s38257_s9, 2048, %s349_s21, [#allocation10], %s32847_s18, %s32847_s18, %s32848_s20  }
  0x8c   : > { %p38650_p5 = scmp.ne.s32.totalorder %s38646_s25, 0 }
  0x8e   : > { %371 = sbr.rel (%p38650_p5) target bundleno = 10371 (0x2883), region = 60 }
  0x95   : > { %p38651_p0 = scmp.eq.s32.totalorder %s32932_s17, 0 }
  0x97   : > { %32813 = dma.done.wait (%p38651_p0), [#allocation4], 1920   ;;  %p38652_p10 = pmov %p38651_p0 }
  0x98   : > { %p38653_p2 = pmov %p38651_p0 }
  0x99   : > { %32815 = vsyncadd (%p38652_p10), [#allocation4], 4294965376 }
  0x9a   : > { %32817 = dma.done.wait (%p38653_p2), [#allocation7], 12288   ;;  %p38654_p3 = pmov %p38651_p0 }
  0x9b   : > { %p38655_p4 = pmov %p38651_p0 }
  0x9c   : > { %32819 = vsyncadd (%p38654_p3), [#allocation7], 4294955008 }
  0x9d   : > { %32821 = dma.done.wait (%p38655_p4), [#allocation10], 4096   ;;  %p38656_p12 = pmov %p38651_p0 }
  0x9e   : > { %p424_p7 = scmp.lt.s32.totalorder %s32932_s17, 1  ;;  %v38274_v0 = vmov 0.0|0.0   ;;  %v38269_v1 = vmov 0.0   ;;  %vm32853_vm0 = vmmov 0   ;;  %vm487_vm1 = vcmask 162816   ;;  %v484_v3 = vld [vmem:[#allocation3] sm:$0xff] }
  0x9f   : > { %32823 = vsyncadd (%p38656_p12), [#allocation10], 4294963200  ;;  %28401 = vmatprep.subr.bf16.mxu0 %v38274_v0  ;;  %428 = vst [vmem:[#allocation2] sm:$0xff] %v38269_v1  ;;  %28755 = vmatprep.subr.bf16.mxu1 %v38274_v0  ;;  %v485_v4 = vld [vmem:[#allocation3 + $0x8] sm:$0xff]  ;;  %v489_v5 = vsel %vm487_vm1, %v484_v3, 0  ;;  %v486_v7 = vld [vmem:[#allocation3 + $0x10] sm:$0xff] }
  0xa0   : > { %429 = vst [vmem:[#allocation2 + $0x8] sm:$0xff] %v38269_v1  ;;  %430 = vst [vmem:[#allocation2 + $0x10] sm:$0xf] %v38269_v1  ;;  %s425_s15 = scalar_select %p424_p7, %s32932_s17, 1  ;;  %22707 = vmatprep.mubr.msk.f32.mxu0 %vm32853_vm0, %v38269_v1  ;;  %23313 = vmatprep.mubr.msk.f32.mxu1 %vm32853_vm0, %v38269_v1  ;;  %v492_v6 = vsel %vm487_vm1, %v485_v4, 0  ;;  %v33132_v8 = vand.u32 4294901760, %v489_v5 }
  0xa1   : > { %28403 = vmatpush3.bf16.msra.mxu0 %v38274_v0  ;;  %v33134_v9 = vand.u32 4294901760, %v492_v6  ;;  %v495_v10 = vsel %vm487_vm1, %v486_v7, 0  ;;  %vm497_vm2 = vcmask 1043456   ;;  %v33188_v31 = vld [vmem:[#allocation8] sm:$0xff]  ;;  %v33190_v32 = vld [vmem:[#allocation8 + $0x8] sm:$0xff]  ;;  %v33198_v35 = vld [vmem:[#allocation8 + $0x10] sm:$0xff] }
  0xa2   : > { %s19940_s25 = sshll.u32 %s425_s15, 2  ;;  %22705 = vmatprep.subr.mxu0 %v38269_v1  ;;  %v33137_v11 = vand.u32 4294901760, %v495_v10  ;;  %v570_v12 = vsub.f32 %v489_v5, %v33132_v8  ;;  %v1060_v33 = vand.u32 4294901760, %v33188_v31  ;;  %v1063_v34 = vand.u32 4294901760, %v33190_v32  ;;  %v33200_v36 = vld [vmem:[#allocation8 + $0x18] sm:$0xff]  ;;  %v33213_v40 = vld [vmem:[#allocation8 + $0x20] sm:$0xff] }
  0xa3   : > { %s427_s20 = scalar_lea.vmem %s38248_s0, %s19940_s25  ;;  %v580_v13 = vsub.f32 %v492_v6, %v33134_v9  ;;  %v1066_v38 = vand.u32 4294901760, %v33198_v35  ;;  %v1069_v39 = vand.u32 4294901760, %v33200_v36  ;;  %v33215_v41 = vld [vmem:[#allocation8 + $0x28] sm:$0xff]  ;;  %v1072_v43 = vand.u32 4294901760, %v33213_v40  ;;  %v33230_v45 = vld [vmem:[#allocation8 + $0x30] sm:$0xff]  ;;  %v33232_v46 = vld [vmem:[#allocation8 + $0x38] sm:$0xff] }
  0xa4   : > { %v431_v2 = vld [vmem:[%s427_s20] sm:$0xf]  ;;  %v590_v14 = vsub.f32 %v495_v10, %v33137_v11  ;;  %v571_v15 = vand.u32 4294901760, %v570_v12  ;;  %v33209_v37 = vpack.c.bf16 %v1063_v34, %v1060_v33  ;;  %v1075_v44 = vand.u32 4294901760, %v33215_v41  ;;  %v33247_v50 = vld [vmem:[#allocation8 + $0x40] sm:$0xff]  ;;  %v33249_v51 = vld [vmem:[#allocation8 + $0x48] sm:$0xff] }
  0xa5   : > { %432 = vst [vmem:[#allocation2 + $0x10] sm:$0xf] %v431_v2  ;;  %v581_v16 = vand.u32 4294901760, %v580_v13  ;;  %v33225_v42 = vpack.c.bf16 %v1069_v39, %v1066_v38  ;;  %v1078_v48 = vand.u32 4294901760, %v33230_v45  ;;  %v1081_v49 = vand.u32 4294901760, %v33232_v46  ;;  %v33264_v55 = vld [vmem:[#allocation8 + $0x50] sm:$0xff] }
  0xa6   : > { %v572_v18 = vsub.f32 %v570_v12, %v571_v15  ;;  %v591_v21 = vand.u32 4294901760, %v590_v14  ;;  %38657 = vst [vmem:[#allocation23_spill] sm:$0xff] %v33209_v37  ;;  %v33242_v47 = vpack.c.bf16 %v1075_v44, %v1072_v43  ;;  %v1084_v53 = vand.u32 4294901760, %v33247_v50  ;;  %v33266_v56 = vld [vmem:[#allocation8 + $0x58] sm:$0xff]  ;;  %v445_v61 = vld [vmem:[#allocation8 + $0x60] sm:$0xff]  ;;  %v446_v62 = vld [vmem:[#allocation8 + $0x68] sm:$0xff] }
  0xa7   : > { %v582_v20 = vsub.f32 %v580_v13, %v581_v16  ;;  %38658 = vst [vmem:[#allocation24_spill] sm:$0xff] %v33225_v42  ;;  %v33257_v52 = vpack.c.bf16 %v1081_v49, %v1078_v48  ;;  %v1087_v54 = vand.u32 4294901760, %v33249_v51  ;;  %v1090_v58 = vand.u32 4294901760, %v33264_v55  ;;  %v447_v4 = vld [vmem:[#allocation8 + $0x70] sm:$0xff]  ;;  %v448_v5 = vld [vmem:[#allocation8 + $0x78] sm:$0xff]  ;;  %s421_s13 = sand.u32 1, %s32834_s14  }
  0xa8   : > { %v573_v23 = vand.u32 4294901760, %v572_v18  ;;  %v592_v26 = vsub.f32 %v590_v14, %v591_v21  ;;  %38659 = vst [vmem:[#allocation25_spill] sm:$0xff] %v33242_v47  ;;  %v1093_v59 = vand.u32 4294901760, %v33266_v56  ;;  %v1096_v63 = vand.u32 4294901760, %v445_v61  ;;  %s19939_s26 = sshll.u32 %s421_s13, 2  ;;  %s19968_s29 = sshll.u32 %s32932_s17, 6 }
  0xa9   : > { %v583_v25 = vand.u32 4294901760, %v582_v20  ;;  %38660 = vst [vmem:[#allocation26_spill] sm:$0xff] %v33257_v52  ;;  %v33273_v57 = vpack.c.bf16 %v1087_v54, %v1084_v53  ;;  %v1099_v2 = vand.u32 4294901760, %v446_v62  ;;  %v1102_v6 = vand.u32 4294901760, %v447_v4  ;;  %s423_s11 = scalar_lea.vmem [#allocation12], %s19939_s26  ;;  %s38206_s19 = scalar_lea.hbm %s38258_s10, %s19968_s29 }
  0xaa   : > { %v593_v29 = vand.u32 4294901760, %v592_v26  ;;  %v33283_v60 = vpack.c.bf16 %v1093_v59, %v1090_v58  ;;  %v1105_v7 = vand.u32 4294901760, %v448_v5  ;;  %s19816_s22 = sshll.u32 %s423_s11, 4  ;;  %s19803_s12 = scalar_lea.sflag [#allocation5], %s421_s13  ;;  %s38208_s22 = int_to_ptr.vmem [resolvable:$true] %s19816_s22 }
  0xab   : > { %38661 = vst [vmem:[#allocation27_spill] sm:$0xff] %v33273_v57  ;;  %v33288_v3 = vpack.c.bf16 %v1099_v2, %v1096_v63  ;;  %v33298_v10 = vsub.f32 %v446_v62, %v1099_v2  ;;  %v33350_v62 = vsub.f32 %v33200_v36, %v1069_v39  ;;  %s32768_s15 = scalar_lea.vmem %s38208_s22, 64  ;;  %p39189_p11 = scmp.ne.s32.totalorder %s38643_s23, 0 }
  0xac   : > { %v483_v17 = vld [vmem:[#allocation2 + $0x10] sm:$0xf]  ;;  %38662 = vst [vmem:[#allocation28_spill] sm:$0xff] %v33283_v60  ;;  %p32769_p8 = scmp.ne.s32.totalorder %s38208_s22, %s32768_s15  ;;  %s32855_s17 = smov [#allocation12]  }
  0xad   : > { %v499_v19 = vsel %vm497_vm2, %v483_v17, 0  ;;  %38663 = vst [vmem:[#allocation29_spill] sm:$0xff] %v33288_v3  ;;  %v1174_v2 = vand.u32 4294901760, %v33350_v62  ;;  %s32772_s25 = sshll.u32 %s32855_s17, 4  ;;  %s32773_s25 = int_to_ptr.vmem [resolvable:$false] %s32772_s25 }
  0xae   : > { %v508_v22 = vand.u32 4294901760, %v499_v19  ;;  %p32770_p13 = pnand %p32769_p8, %p39189_p11  ;;  %s32774_s28 = scalar_lea.vmem %s32773_s25, 128 }
  0xaf   : > { %p32775_p6 = scmp.lt.s32.totalorder %s38208_s22, %s32773_s25  ;;  %p32776_p9 = scmp.lt.s32.totalorder %s32774_s28, %s32768_s15 }
  0xb0   : > { %22706 = vmatpush3.msra.mxu0 %v508_v22  ;;  %v615_v24 = vsub.f32 %v499_v19, %v508_v22  ;;  %p32771_p1 = pneg %p32770_p13 }
  0xb1   : > { %22708 = vmatmul.mubr.f32.vlgmr.msra.gmra.mrb[0].mxu0 %v573_v23  ;;  %28404 = vmatprep.subr.bf16.mxu0 %v38274_v0  ;;  %p32777_p5 = por %p32776_p9, %p32775_p6 }
  0xb2   : > { %22710 = vmatprep.mubr.msk.f32.mxu0 %vm32853_vm0, %v38269_v1  ;;  %28406 = vmatpush3.bf16.msra.mxu0 %v38274_v0  ;;  %v616_v27 = vand.u32 4294901760, %v615_v24 }
  0xb3   : > { %22720 = vmatprep.subr.mxu0 %v38269_v1  ;;  %p32778_p0 = pnand %p32777_p5, %p32771_p1 }
  0xb4   : > { %v617_v28 = vsub.f32 %v615_v24, %v616_v27 }
  0xb5   : > { %22711 = vmatmul.mubr.f32.gmra.mrb[2].mxu0 %v583_v25 }
  0xb6   : > { %22713 = vmatprep.mubr.msk.f32.mxu0 %vm32853_vm0, %v38269_v1  ;;  %v618_v30 = vand.u32 4294901760, %v617_v28 }
  0xb8   : > { %22721 = vmatpush3.msra.mxu0 %v618_v30  ;;  %v33340_v30 = vsub.f32 %v33190_v32, %v1063_v34  ;;  %v33359_v32 = vsub.f32 %v33213_v40, %v1072_v43  ;;  %v33364_v34 = vsub.f32 %v33215_v41, %v1075_v44  ;;  %v1175_v41 = vsub.f32 %v33350_v62, %v1174_v2 }
  0xb9   : > { %22714 = vmatmul.mubr.f32.gmra.mrb[4].mxu0 %v593_v29  ;;  %28407 = vmatprep.subr.bf16.mxu0 %v38274_v0  ;;  %v33335_v29 = vsub.f32 %v33188_v31, %v1060_v33 }
  0xba   : > { %22722 = vmatprep.mubr.msk.f32.mxu0 %vm32853_vm0, %v38269_v1  ;;  %v1160_v31 = vand.u32 4294901760, %v33340_v30  ;;  %v1181_v43 = vand.u32 4294901760, %v33359_v32 }
  0xbd   : > { %22723 = vmatmul.mubr.f32.vlgmr.msra.gmra.mrb[0].mxu0 %v33132_v8 }
  0xbe   : > { %22725 = vmatprep.mubr.msk.f32.mxu0 %vm32853_vm0, %v38269_v1  ;;  %28409 = vmatpush3.bf16.msra.mxu0 %v38274_v0 }
  0xbf   : > { %22735 = vmatprep.subr.mxu0 %v38269_v1 }
  0xc1   : > { %22726 = vmatmul.mubr.f32.gmra.mrb[2].mxu0 %v33134_v9 }
  0xc2   : > { %22728 = vmatprep.mubr.msk.f32.mxu0 %vm32853_vm0, %v38269_v1  ;;  %22736 = vmatpush3.msra.mxu0 %v615_v24 }
  0xc3   : > { %28410 = vmatprep.subr.bf16.mxu0 %v38274_v0 }
  0xc5   : > { %22729 = vmatmul.mubr.f32.gmra.mrb[4].mxu0 %v33137_v11 }
  0xc6   : > { %22737 = vmatprep.mubr.msk.f32.mxu0 %vm32853_vm0, %v38269_v1 }
  0xc9   : > { %22738 = vmatmul.mubr.f32.vlgmr.msra.gmra.mrb[0].mxu0 %v570_v12  ;;  %v1244_v12 = vand.u32 4294901760, %v33298_v10 }
  0xca   : > { %22740 = vmatprep.mubr.msk.f32.mxu0 %vm32853_vm0, %v38269_v1  ;;  %28412 = vmatpush3.bf16.msra.mxu0 %v38274_v0 }
  0xcb   : > { %22750 = vmatprep.subr.mxu0 %v38269_v1 }
  0xcd   : > { %22741 = vmatmul.mubr.f32.gmra.mrb[2].mxu0 %v580_v13 }
  0xce   : > { %22743 = vmatprep.mubr.msk.f32.mxu0 %vm32853_vm0, %v38269_v1  ;;  %22751 = vmatpush3.msra.mxu0 %v508_v22 }
  0xcf   : > { %28413 = vmatprep.subr.bf16.mxu0 %v38274_v0 }
  0xd1   : > { %22744 = vmatmul.mubr.f32.gmra.mrb[4].mxu0 %v590_v14  ;;  %v33305_v14 = vsub.f32 %v447_v4, %v1102_v6 }
  0xd2   : > { %22752 = vmatprep.mubr.msk.f32.mxu0 %vm32853_vm0, %v38269_v1 }
  0xd3   : > { %v1251_v18 = vand.u32 4294901760, %v33305_v14 }
  0xd5   : > { %22753 = vmatmul.mubr.f32.vlgmr.msra.gmra.mrb[0].mxu0 %v571_v15  ;;  %v33307_v15 = vsub.f32 %v448_v5, %v1105_v7  ;;  %v1188_v5 = vand.u32 4294901760, %v33364_v34 }
  0xd6   : > { %22755 = vmatprep.mubr.msk.f32.mxu0 %vm32853_vm0, %v38269_v1  ;;  %28415 = vmatpush3.bf16.msra.mxu0 %v38274_v0 }
  0xd7   : > { %22765 = vmatprep.subr.mxu0 %v38269_v1  ;;  %v38268_v19 = vand.u32 4294901760, %v33307_v15  ;;  %v33330_v28 = vpack.c.bf16 %v33307_v15, %v33305_v14 }
  0xd9   : > { %22756 = vmatmul.mubr.f32.gmra.mrb[2].mxu0 %v581_v16  ;;  %v1245_v16 = vsub.f32 %v33298_v10, %v1244_v12  ;;  %38668 = vst [vmem:[#allocation34_spill] sm:$0xff] %v33330_v28 }
  0xda   : > { %22758 = vmatprep.mubr.msk.f32.mxu0 %vm32853_vm0, %v38269_v1  ;;  %22766 = vmatpush3.msra.mxu0 %v616_v27 }
  0xdb   : > { %28416 = vmatprep.subr.bf16.mxu0 %v38274_v0  ;;  %v1246_v20 = vand.u32 4294901760, %v1245_v16 }
  0xdd   : > { %22759 = vmatmul.mubr.f32.gmra.mrb[4].mxu0 %v591_v21  ;;  %v1252_v21 = vsub.f32 %v33305_v14, %v1251_v18  ;;  %v451_v14 = vld [vmem:[#allocation9 + $0x10] sm:$0xff] }
  0xde   : > { %22767 = vmatprep.mubr.msk.f32.mxu0 %vm32853_vm0, %v38269_v1 }
  0xdf   : > { %v1253_v24 = vand.u32 4294901760, %v1252_v21  ;;  %v1176_v21 = vand.u32 4294901760, %v1175_v41 }
  0xe1   : > { %22768 = vmatmul.mubr.f32.vlgmr.msra.gmra.mrb[0].mxu0 %v33132_v8 }
  0xe2   : > { %22770 = vmatprep.mubr.msk.f32.mxu0 %vm32853_vm0, %v38269_v1  ;;  %28418 = vmatpush3.bf16.msra.mxu0 %v38274_v0 }
  0xe3   : > { %22780 = vmatprep.subr.mxu0 %v38269_v1 }
  0xe5   : > { %22771 = vmatmul.mubr.f32.gmra.mrb[2].mxu0 %v33134_v9 }
  0xe6   : > { %22773 = vmatprep.mubr.msk.f32.mxu0 %vm32853_vm0, %v38269_v1  ;;  %22781 = vmatpush3.msra.mxu0 %v508_v22  ;;  %v1259_v22 = vsub.f32 %v33307_v15, %v38268_v19 }
  0xe7   : > { %28419 = vmatprep.subr.bf16.mxu0 %v38274_v0 }
  0xe8   : > { %v1260_v25 = vand.u32 4294901760, %v1259_v22  ;;  %v1182_v22 = vsub.f32 %v33359_v32, %v1181_v43 }
  0xe9   : > { %22774 = vmatmul.mubr.f32.gmra.mrb[4].mxu0 %v33137_v11 }
  0xea   : > { %22782 = vmatprep.mubr.msk.f32.mxu0 %vm32853_vm0, %v38269_v1  ;;  %v33322_v26 = vpack.c.bf16 %v1260_v25, %v1253_v24  ;;  %v1183_v41 = vand.u32 4294901760, %v1182_v22 }
  0xec   : > { %38666 = vst [vmem:[#allocation32_spill] sm:$0xff] %v33322_v26 }
  0xed   : > { %22783 = vmatmul.mubr.f32.vlgmr.msra.gmra.mrb[0].mxu0 %v33132_v8  ;;  %v33292_v8 = vpack.c.bf16 %v1105_v7, %v1102_v6  ;;  %v33388_v6 = vsub.f32 %v33230_v45, %v1078_v48  ;;  %v33393_v7 = vsub.f32 %v33232_v46, %v1081_v49  ;;  %v1189_v48 = vsub.f32 %v33364_v34, %v1188_v5 }
  0xee   : > { %22785 = vmatprep.mubr.msk.f32.mxu0 %vm32853_vm0, %v38269_v1  ;;  %28421 = vmatpush3.bf16.msra.mxu0 %v33209_v37 }
  0xef   : > { %28422 = vmatprep.subr.bf16.mxu0 %v38274_v0  ;;  %38664 = vst [vmem:[#allocation30_spill] sm:$0xff] %v33292_v8  ;;  %v1195_v46 = vand.u32 4294901760, %v33388_v6  ;;  %v1202_v49 = vand.u32 4294901760, %v33393_v7  ;;  %v1190_v19 = vand.u32 4294901760, %v1189_v48 }
  0xf1   : > { %22786 = vmatmul.mubr.f32.gmra.mrb[2].mxu0 %v33134_v9  ;;  %v33296_v9 = vsub.f32 %v445_v61, %v1096_v63  ;;  %v33345_v61 = vsub.f32 %v33198_v35, %v1066_v38  ;;  %v1153_v63 = vand.u32 4294901760, %v33335_v29  ;;  %v1161_v38 = vsub.f32 %v33340_v30, %v1160_v31 }
  0xf2   : > { %22788 = vmatprep.mubr.msk.f32.mxu0 %vm32853_vm0, %v38269_v1  ;;  %28424 = vmatpush3.bf16.msra.mxu0 %v33225_v42 }
  0xf3   : > { %28425 = vmatprep.subr.bf16.mxu0 %v38274_v0  ;;  %v33326_v27 = vpack.c.bf16 %v33298_v10, %v33296_v9  ;;  %v1167_v33 = vand.u32 4294901760, %v33345_v61  ;;  %v1154_v36 = vsub.f32 %v33335_v29, %v1153_v63  ;;  %v1162_v16 = vand.u32 4294901760, %v1161_v38  ;;  %v450_v10 = vld [vmem:[#allocation9 + $0x8] sm:$0xff] }
  0xf5   : > { %22789 = vmatmul.mubr.f32.gmra.mrb[4].mxu0 %v33137_v11  ;;  %v1237_v11 = vand.u32 4294901760, %v33296_v9  ;;  %38667 = vst [vmem:[#allocation33_spill] sm:$0xff] %v33326_v27  ;;  %v1168_v40 = vsub.f32 %v33345_v61, %v1167_v33 }
  0xf6   : > { %28427 = vmatpush3.bf16.msra.mxu0 %v33242_v47  ;;  %22823 = vmatprep.mubr.msk.f32.mxu0 %vm32853_vm0, %v38269_v1 }
  0xf7   : > { %28428 = vmatprep.subr.bf16.mxu0 %v38274_v0  ;;  %v1238_v13 = vsub.f32 %v33296_v9, %v1237_v11  ;;  %v449_v9 = vld [vmem:[#allocation9] sm:$0xff] }
  0xf9   : > { %v1239_v17 = vand.u32 4294901760, %v1238_v13  ;;  %v1155_v13 = vand.u32 4294901760, %v1154_v36  ;;  %v33419_v36 = vsub.f32 %v33249_v51, %v1087_v54  ;;  %v33435_v54 = vsub.f32 %v33264_v55, %v1090_v58 }
  0xfa   : > { %28430 = vmatpush3.bf16.msra.mxu0 %v33257_v52 }
  0xfb   : > { %28431 = vmatprep.subr.bf16.mxu0 %v38274_v0  ;;  %v33320_v23 = vpack.c.bf16 %v1246_v20, %v1239_v17  ;;  %v1169_v20 = vand.u32 4294901760, %v1168_v40  ;;  %v33409_v25 = vpack.c.bf16 %v1162_v16, %v1155_v13  ;;  %v1196_v13 = vsub.f32 %v33388_v6, %v1195_v46 }
  0xfc   : > { %v33440_v16 = vsub.f32 %v33266_v56, %v1093_v59  ;;  %v1223_v58 = vand.u32 4294901760, %v33435_v54 }
  0xfd   : > { %38665 = vst [vmem:[#allocation31_spill] sm:$0xff] %v33320_v23  ;;  %38669 = vst [vmem:[#allocation35_spill] sm:$0xff] %v33409_v25  ;;  %v33421_v40 = vpack.c.bf16 %v1176_v21, %v1169_v20  ;;  %v33445_v20 = vpack.c.bf16 %v1190_v19, %v1183_v41  ;;  %v1197_v21 = vand.u32 4294901760, %v1196_v13 }
  0xfe   : > { %28433 = vmatpush3.bf16.msra.mxu0 %v33273_v57  ;;  %v1230_v59 = vand.u32 4294901760, %v33440_v16 }
  0xff   : > { %28434 = vmatprep.subr.bf16.mxu0 %v38274_v0  ;;  %38670 = vst [vmem:[#allocation36_spill] sm:$0xff] %v33421_v40  ;;  %38671 = vst [vmem:[#allocation37_spill] sm:$0xff] %v33445_v20 }
 0x102   : > { %28436 = vmatpush3.bf16.msra.mxu0 %v33283_v60 }
 0x103   : > { %28437 = vmatprep.subr.bf16.mxu0 %v38274_v0 }
 0x106   : > { %28439 = vmatpush3.bf16.msra.mxu0 %v33288_v3 }
 0x107   : > { %28440 = vmatprep.subr.bf16.mxu0 %v38274_v0 }
 0x10a   : > { %28442 = vmatpush3.bf16.msra.mxu0 %v33292_v8 }
 0x10b   : > { %28443 = vmatprep.subr.bf16.mxu0 %v38274_v0 }
 0x1c0   : > { %v1043_v35 = vpop.f32.mrb[0].mxu0 }
 0x1c1   : > { %v33372_v39 = vand.u32 4294901760, %v1043_v35  ;;  %v22784_v4 = vpop.f32.mrb[1].mxu0 }
 0x1c3   : > { %v33382_v44 = vsub.f32 %v1043_v35, %v33372_v39  ;;  %v33414_v35 = vsub.f32 %v33247_v50, %v1084_v53  ;;  %v1203_v50 = vsub.f32 %v33393_v7, %v1202_v49  ;;  %v1216_v53 = vand.u32 4294901760, %v33419_v36 }
 0x1c5   : > { %v1142_v17 = vand.u32 4294901760, %v33382_v44  ;;  %v1209_v51 = vand.u32 4294901760, %v33414_v35  ;;  %v1204_v22 = vand.u32 4294901760, %v1203_v50  ;;  %v1217_v56 = vsub.f32 %v33419_v36, %v1216_v53 }
 0x1c7   : > { %v1143_v45 = vsub.f32 %v33382_v44, %v1142_v17  ;;  %v1210_v55 = vsub.f32 %v33414_v35, %v1209_v51  ;;  %v33457_v19 = vpack.c.bf16 %v1204_v22, %v1197_v21  ;;  %v1218_v48 = vand.u32 4294901760, %v1217_v56 }
 0x1c8   : > { %v33407_v24 = vpop.f32.mrb[4].mxu0  ;;  %v33482_v22 = vpack.c.bf16 %v33340_v30, %v33335_v29  ;;  %v33497_v56 = vpack.c.bf16 %v33364_v34, %v33359_v32  ;;  %v33566_v29 = vpack.c.bf16 %v1188_v5, %v1181_v43  ;;  %v33574_v30 = vpack.c.bf16 %v1202_v49, %v1195_v46  ;;  %v453_v34 = vld [vmem:[#allocation9 + $0x20] sm:$0xff]  ;;  %v454_v43 = vld [vmem:[#allocation9 + $0x28] sm:$0xff] }
 0x1c9   : > { %v1144_v38 = vand.u32 4294901760, %v1143_v45  ;;  %v22790_v4 = vpop.f32.mrb[5].mxu0  ;;  %38672 = vst [vmem:[#allocation38_spill] sm:$0xff] %v33457_v19  ;;  %v1211_v45 = vand.u32 4294901760, %v1210_v55  ;;  %v33489_v55 = vpack.c.bf16 %v33350_v62, %v33345_v61  ;;  %v33582_v61 = vpack.c.bf16 %v1216_v53, %v1209_v51 }
 0x1ca   : > { %v1231_v4 = vsub.f32 %v33440_v16, %v1230_v59  ;;  %38675 = vst [vmem:[#allocation41_spill] sm:$0xff] %v33482_v22  ;;  %38677 = vst [vmem:[#allocation43_spill] sm:$0xff] %v33497_v56  ;;  %v33590_v62 = vpack.c.bf16 %v1230_v59, %v1223_v58  ;;  %v1714_v5 = vand.u32 4294901760, %v453_v34  ;;  %v33651_v59 = vld [vmem:[#allocation9 + $0x60] sm:$0xff] }
 0x1cb   : > { %22824 = vmatmul.mubr.f32.vlgmr.msra.gmra.mrb[2].mxu0 %v1144_v38  ;;  %v1224_v38 = vsub.f32 %v33435_v54, %v1223_v58  ;;  %v33468_v41 = vpack.c.bf16 %v1218_v48, %v1211_v45  ;;  %38676 = vst [vmem:[#allocation42_spill] sm:$0xff] %v33489_v55  ;;  %v33503_v45 = vpack.c.bf16 %v33393_v7, %v33388_v6  ;;  %38683 = vst [vmem:[#allocation49_spill] sm:$0xff] %v33566_v29  ;;  %v455_v7 = vld [vmem:[#allocation9 + $0x30] sm:$0xff]  ;;  %v33649_v58 = vld [vmem:[#allocation9 + $0x58] sm:$0xff] }
 0x1cc   : > { %28445 = vmatpush3.bf16.msra.mxu0 %v33409_v25  ;;  %22858 = vmatprep.mubr.msk.f32.mxu0 %vm32853_vm0, %v38269_v1  ;;  %v1232_v50 = vand.u32 4294901760, %v1231_v4  ;;  %v33509_v48 = vpack.c.bf16 %v33419_v36, %v33414_v35  ;;  %v33546_v4 = vpack.c.bf16 %v1160_v31, %v1153_v63  ;;  %38684 = vst [vmem:[#allocation50_spill] sm:$0xff] %v33574_v30  ;;  %38685 = vst [vmem:[#allocation51_spill] sm:$0xff] %v33582_v61  ;;  %v458_v36 = vld [vmem:[#allocation9 + $0x48] sm:$0xff] }
 0x1cd   : > { %28446 = vmatprep.subr.bf16.mxu0 %v38274_v0  ;;  %38673 = vst [vmem:[#allocation39_spill] sm:$0xff] %v33468_v41  ;;  %v1225_v13 = vand.u32 4294901760, %v1224_v38  ;;  %38678 = vst [vmem:[#allocation44_spill] sm:$0xff] %v33503_v45  ;;  %v33515_v38 = vpack.c.bf16 %v33440_v16, %v33435_v54  ;;  %v33598_v63 = vpack.c.bf16 %v1244_v12, %v1237_v11  ;;  %v38688_v31 = vand.u32 4294901760, %v33307_v15  ;;  %v452_v15 = vld [vmem:[#allocation9 + $0x18] sm:$0xff]  ;;  %v33647_v16 = vld [vmem:[#allocation9 + $0x50] sm:$0xff] }
 0x1ce   : > { %38679 = vst [vmem:[#allocation45_spill] sm:$0xff] %v33509_v48  ;;  %38681 = vst [vmem:[#allocation47_spill] sm:$0xff] %v33546_v4  ;;  %v1702_v11 = vand.u32 4294901760, %v449_v9  ;;  %v1705_v12 = vand.u32 4294901760, %v450_v10  ;;  %v1711_v32 = vand.u32 4294901760, %v452_v15  ;;  %v1717_v6 = vand.u32 4294901760, %v454_v43 }
 0x1cf   : > { %v33472_v21 = vpack.c.bf16 %v1232_v50, %v1225_v13  ;;  %38680 = vst [vmem:[#allocation46_spill] sm:$0xff] %v33515_v38  ;;  %v33556_v13 = vpack.c.bf16 %v1174_v2, %v1167_v33  ;;  %38686 = vst [vmem:[#allocation52_spill] sm:$0xff] %v33590_v62  ;;  %v33606_v33 = vpack.c.bf16 %v38688_v31, %v1251_v18  ;;  %v1708_v2 = vand.u32 4294901760, %v451_v14  ;;  %v33653_v50 = vld [vmem:[#allocation9 + $0x68] sm:$0xff] }
 0x1d0   : > { %28448 = vmatpush3.bf16.msra.mxu0 %v33421_v40  ;;  %38687 = vst [vmem:[#allocation53_spill] sm:$0xff] %v33598_v63  ;;  %v33629_v18 = vpack.c.bf16 %v1705_v12, %v1702_v11  ;;  %v33640_v46 = vpack.c.bf16 %v1717_v6, %v1714_v5  ;;  %v1720_v49 = vand.u32 4294901760, %v455_v7  ;;  %v1729_v54 = vand.u32 4294901760, %v458_v36 }
 0x1d1   : > { %28449 = vmatprep.subr.bf16.mxu0 %v38274_v0  ;;  %38674 = vst [vmem:[#allocation40_spill] sm:$0xff] %v33472_v21  ;;  %38682 = vst [vmem:[#allocation48_spill] sm:$0xff] %v33556_v13  ;;  %v33655_v31 = vsub.f32 %v449_v9, %v1702_v11  ;;  %v38296_v9 = vand.u32 4294901760, %v33653_v50  ;;  %v38697_v11 = vand.u32 4294901760, %v33651_v59 }
 0x1d2   : > { %38689 = vst [vmem:[#allocation54_spill] sm:$0xff] %v33606_v33  ;;  %38690 = vst [vmem:[#allocation55_spill] sm:$0xff] %v33629_v18 }
 0x1d3   : > { %38692 = vst [vmem:[#allocation57_spill] sm:$0xff] %v33640_v46 }
 0x1d4   : > { %28451 = vmatpush3.bf16.msra.mxu0 %v33445_v20  ;;  %v2354_v20 = vld [vmem:[#allocation6 + $0x58] sm:$0xff] }
 0x1d5   : > { %28452 = vmatprep.subr.bf16.mxu0 %v38274_v0 }
 0x1d8   : > { %28454 = vmatpush3.bf16.msra.mxu0 %v33457_v19  ;;  %v2353_v19 = vld [vmem:[#allocation6 + $0x50] sm:$0xff] }
 0x1d9   : > { %28455 = vmatprep.subr.bf16.mxu0 %v38274_v0 }
 0x1dc   : > { %28457 = vmatpush3.bf16.msra.mxu0 %v33468_v41 }
 0x1dd   : > { %28458 = vmatprep.subr.bf16.mxu0 %v38274_v0 }
 0x1e0   : > { %28460 = vmatpush3.bf16.msra.mxu0 %v33472_v21 }
 0x1e1   : > { %28461 = vmatprep.subr.bf16.mxu0 %v38274_v0 }
 0x1e4   : > { %28463 = vmatpush3.bf16.msra.mxu0 %v33320_v23  ;;  %v2352_v23 = vld [vmem:[#allocation6 + $0x48] sm:$0xff] }
 0x1e5   : > { %28464 = vmatprep.subr.bf16.mxu0 %v38274_v0 }
 0x1e8   : > { %28466 = vmatpush3.bf16.msra.mxu0 %v33322_v26  ;;  %v2349_v26 = vld [vmem:[#allocation6 + $0x30] sm:$0xff] }
 0x1e9   : > { %28467 = vmatprep.subr.bf16.mxu0 %v38274_v0 }
 0x1eb   : > { %22859 = vmatmul.mubr.f32.vlgmr.msra.gmra.mrb[2].mxu0 %v33372_v39 }
 0x1ec   : > { %28469 = vmatpush3.bf16.msra.mxu0 %v33482_v22  ;;  %22893 = vmatprep.mubr.msk.f32.mxu0 %vm32853_vm0, %v38269_v1 }
 0x1ed   : > { %28470 = vmatprep.subr.bf16.mxu0 %v38274_v0 }
 0x1f0   : > { %28472 = vmatpush3.bf16.msra.mxu0 %v33489_v55 }
 0x1f1   : > { %28473 = vmatprep.subr.bf16.mxu0 %v38274_v0 }
 0x1f4   : > { %28475 = vmatpush3.bf16.msra.mxu0 %v33497_v56 }
 0x1f5   : > { %28476 = vmatprep.subr.bf16.mxu0 %v38274_v0 }
 0x1f8   : > { %28478 = vmatpush3.bf16.msra.mxu0 %v33503_v45 }
 0x1f9   : > { %28479 = vmatprep.subr.bf16.mxu0 %v38274_v0 }
 0x1fc   : > { %28481 = vmatpush3.bf16.msra.mxu0 %v33509_v48 }
 0x1fd   : > { %28482 = vmatprep.subr.bf16.mxu0 %v38274_v0 }
 0x200   : > { %28484 = vmatpush3.bf16.msra.mxu0 %v33515_v38 }
 0x201   : > { %28485 = vmatprep.subr.bf16.mxu0 %v38274_v0 }
 0x204   : > { %28487 = vmatpush3.bf16.msra.mxu0 %v33326_v27  ;;  %v33711_v27 = vsub.f32 %v455_v7, %v1720_v49 }
 0x205   : > { %28488 = vmatprep.subr.bf16.mxu0 %v38274_v0 }
 0x208   : > { %28490 = vmatpush3.bf16.msra.mxu0 %v33330_v28  ;;  %v33681_v28 = vsub.f32 %v452_v15, %v1711_v32 }
 0x209   : > { %28491 = vmatprep.subr.bf16.mxu0 %v38274_v0 }
 0x20b   : > { %22894 = vmatmul.mubr.f32.vlgmr.msra.gmra.mrb[2].mxu0 %v33382_v44  ;;  %v33634_v44 = vpack.c.bf16 %v1711_v32, %v1708_v2 }
 0x20c   : > { %28493 = vmatpush3.bf16.msra.mxu0 %v33209_v37  ;;  %22928 = vmatprep.mubr.msk.f32.mxu0 %vm32853_vm0, %v38269_v1 }
 0x20d   : > { %28494 = vmatprep.subr.bf16.mxu0 %v38274_v0  ;;  %38691 = vst [vmem:[#allocation56_spill] sm:$0xff] %v33634_v44 }
 0x210   : > { %28496 = vmatpush3.bf16.msra.mxu0 %v33225_v42 }
 0x211   : > { %28497 = vmatprep.subr.bf16.mxu0 %v38274_v0 }
 0x214   : > { %28499 = vmatpush3.bf16.msra.mxu0 %v33242_v47 }
 0x215   : > { %28500 = vmatprep.subr.bf16.mxu0 %v38274_v0 }
 0x218   : > { %28502 = vmatpush3.bf16.msra.mxu0 %v33257_v52 }
 0x219   : > { %28503 = vmatprep.subr.bf16.mxu0 %v38274_v0 }
 0x21c   : > { %28505 = vmatpush3.bf16.msra.mxu0 %v33273_v57 }
 0x21d   : > { %28506 = vmatprep.subr.bf16.mxu0 %v38274_v0 }
 0x220   : > { %28508 = vmatpush3.bf16.msra.mxu0 %v33283_v60 }
 0x221   : > { %28509 = vmatprep.subr.bf16.mxu0 %v38274_v0 }
 0x224   : > { %28511 = vmatpush3.bf16.msra.mxu0 %v33288_v3 }
 0x225   : > { %28512 = vmatprep.subr.bf16.mxu0 %v38274_v0 }
 0x228   : > { %28514 = vmatpush3.bf16.msra.mxu0 %v33292_v8 }
 0x229   : > { %28515 = vmatprep.subr.bf16.mxu0 %v38274_v0 }
 0x22b   : > { %22929 = vmatmul.mubr.f32.vlgmr.msra.gmra.mrb[2].mxu0 %v1142_v17  ;;  %v456_v17 = vld [vmem:[#allocation9 + $0x38] sm:$0xff] }
 0x22c   : > { %28517 = vmatpush3.bf16.msra.mxu0 %v33546_v4  ;;  %22963 = vmatprep.mubr.msk.f32.mxu0 %vm32853_vm0, %v38269_v1  ;;  %v1723_v35 = vand.u32 4294901760, %v456_v17  ;;  %v33679_v4 = vsub.f32 %v451_v14, %v1708_v2  ;;  %v38699_v14 = vand.u32 4294901760, %v33655_v31 }
 0x22d   : > { %28518 = vmatprep.subr.bf16.mxu0 %v38274_v0 }
 0x22e   : > { %v33644_v51 = vpack.c.bf16 %v1723_v35, %v1720_v49  ;;  %v1796_v15 = vsub.f32 %v33655_v31, %v38699_v14  ;;  %v33713_v14 = vsub.f32 %v456_v17, %v1723_v35 }
 0x230   : > { %28520 = vmatpush3.bf16.msra.mxu0 %v33556_v13  ;;  %38693 = vst [vmem:[#allocation58_spill] sm:$0xff] %v33644_v51  ;;  %v33677_v13 = vld [vmem:[#allocation9 + $0x78] sm:$0xff]  ;;  %v1797_v32 = vand.u32 4294901760, %v1796_v15  ;;  %v38305_v35 = vand.u32 4294901760, %v33713_v14 }
 0x231   : > { %28521 = vmatprep.subr.bf16.mxu0 %v38274_v0  ;;  %v38702_v45 = vand.u32 4294901760, %v33677_v13 }
 0x234   : > { %28523 = vmatpush3.bf16.msra.mxu0 %v33566_v29  ;;  %v33675_v29 = vld [vmem:[#allocation9 + $0x70] sm:$0xff] }
 0x235   : > { %28524 = vmatprep.subr.bf16.mxu0 %v38274_v0 }
 0x238   : > { %28526 = vmatpush3.bf16.msra.mxu0 %v33574_v30 }
 0x239   : > { %28527 = vmatprep.subr.bf16.mxu0 %v38274_v0 }
 0x23c   : > { %28529 = vmatpush3.bf16.msra.mxu0 %v33582_v61  ;;  %v38695_v61 = vmov 0.0|0.0  }
 0x23d   : > { %28530 = vmatprep.subr.bf16.mxu0 %v38274_v0 }
 0x240   : > { %28532 = vmatpush3.bf16.msra.mxu0 %v33590_v62  ;;  %v33665_v62 = vand.u32 4294901760, %v33407_v24 }
 0x241   : > { %28533 = vmatprep.subr.bf16.mxu0 %v38274_v0 }
 0x242   : > { %v33685_v30 = vsub.f32 %v33407_v24, %v33665_v62 }
 0x244   : > { %28535 = vmatpush3.bf16.msra.mxu0 %v33598_v63  ;;  %v1732_v63 = vand.u32 4294901760, %v33647_v16  ;;  %v38301_v38 = vand.u32 4294901760, %v33685_v30 }
 0x245   : > { %28536 = vmatprep.subr.bf16.mxu0 %v38274_v0 }
 0x248   : > { %28538 = vmatpush3.bf16.msra.mxu0 %v33606_v33 }
 0x249   : > { %28539 = vmatprep.subr.bf16.mxu0 %v38274_v0 }
 0x24b   : > { %22964 = vmatmul.mubr.f32.vlgmr.msra.gmra.mrb[2].mxu0 %v33372_v39 }
 0x24c   : > { %28541 = vmatpush3.bf16.msra.mxu0 %v33209_v37  ;;  %22998 = vmatprep.mubr.msk.f32.mxu0 %vm32853_vm0, %v38269_v1 }
 0x24d   : > { %28542 = vmatprep.subr.bf16.mxu0 %v38274_v0 }
 0x250   : > { %28544 = vmatpush3.bf16.msra.mxu0 %v33225_v42 }
 0x251   : > { %28545 = vmatprep.subr.bf16.mxu0 %v38274_v0 }
 0x254   : > { %28547 = vmatpush3.bf16.msra.mxu0 %v33242_v47 }
 0x255   : > { %28548 = vmatprep.subr.bf16.mxu0 %v38274_v0 }
 0x258   : > { %28550 = vmatpush3.bf16.msra.mxu0 %v33257_v52 }
 0x259   : > { %28551 = vmatprep.subr.bf16.mxu0 %v38274_v0 }
 0x25c   : > { %28553 = vmatpush3.bf16.msra.mxu0 %v33273_v57 }
 0x25d   : > { %28554 = vmatprep.subr.bf16.mxu0 %v38274_v0 }
 0x260   : > { %28556 = vmatpush3.bf16.msra.mxu0 %v33283_v60 }
 0x261   : > { %28557 = vmatprep.subr.bf16.mxu0 %v38274_v0 }
 0x264   : > { %28559 = vmatpush3.bf16.msra.mxu0 %v33288_v3 }
 0x265   : > { %28560 = vmatprep.subr.bf16.mxu0 %v38274_v0 }
 0x268   : > { %28562 = vmatpush3.bf16.msra.mxu0 %v33292_v8 }
 0x269   : > { %28563 = vmatprep.subr.bf16.mxu0 %v38274_v0 }
 0x26b   : > { %22999 = vmatmul.mubr.f32.vlgmr.msra.gmra.mrb[2].mxu0 %v33372_v39  ;;  %v457_v39 = vld [vmem:[#allocation9 + $0x40] sm:$0xff] }
 0x26c   : > { %28565 = vmatpush3.bf16.msra.mxu0 %v33629_v18  ;;  %23033 = vmatprep.mubr.msk.f32.mxu0 %vm32853_vm0, %v38269_v1  ;;  %v1726_v53 = vand.u32 4294901760, %v457_v39  ;;  %v33657_v1 = vsub.f32 %v450_v10, %v1705_v12  ;;  %v33692_v10 = vpack.c.bf16 %v38296_v9, %v38697_v11  ;;  %v33705_v11 = vsub.f32 %v453_v34, %v1714_v5 }
 0x26d   : > { %28566 = vmatprep.subr.bf16.mxu0 %v38274_v0  ;;  %v33707_v9 = vsub.f32 %v454_v43, %v1717_v6  ;;  %v38704_v34 = vand.u32 4294901760, %v33679_v4  ;;  %v38705_v5 = vand.u32 4294901760, %v33681_v28 }
 0x26e   : > { %v33660_v33 = vpack.c.bf16 %v1729_v54, %v1726_v53  ;;  %38698 = vst [vmem:[#allocation61_spill] sm:$0xff] %v33692_v10  ;;  %v38700_v2 = vand.u32 4294901760, %v33657_v1  ;;  %v38314_v7 = vand.u32 4294901760, %v33705_v11 }
 0x26f   : > { %v1810_v43 = vsub.f32 %v33679_v4, %v38704_v34  ;;  %v1817_v6 = vsub.f32 %v33681_v28, %v38705_v5  ;;  %v38304_v17 = vand.u32 4294901760, %v33707_v9  ;;  %v33876_v22 = vpack.c.bf16 %v33707_v9, %v33705_v11 }
 0x270   : > { %28568 = vmatpush3.bf16.msra.mxu0 %v33634_v44  ;;  %38694 = vst [vmem:[#allocation59_spill] sm:$0xff] %v33660_v33  ;;  %v1803_v24 = vsub.f32 %v33657_v1, %v38700_v2  ;;  %v38701_v2 = vand.u32 4294901760, %v33675_v29 }
 0x271   : > { %28569 = vmatprep.subr.bf16.mxu0 %v38274_v0  ;;  %v1811_v34 = vand.u32 4294901760, %v1810_v43  ;;  %v1818_v5 = vand.u32 4294901760, %v1817_v6  ;;  %v1831_v49 = vsub.f32 %v33707_v9, %v38304_v17  ;;  %v38709_v17 = vmov 0.0   ;;  %38722 = vst [vmem:[#allocation73_spill] sm:$0xff] %v33876_v22 }
 0x272   : > { %v33719_v56 = vpack.c.bf16 %v38702_v45, %v38701_v2  ;;  %v1804_v48 = vand.u32 4294901760, %v1803_v24  ;;  %v1785_v45 = vsub.f32 %v33685_v30, %v38301_v38  ;;  %v33738_v24 = vsub.f32 %v457_v39, %v1726_v53 }
 0x273   : > { %v33740_v2 = vsub.f32 %v458_v36, %v1729_v54  ;;  %v1824_v38 = vsub.f32 %v33705_v11, %v38314_v7  ;;  %v1845_v36 = vsub.f32 %v33713_v14, %v38305_v35  ;;  %v33765_v6 = vpack.c.bf16 %v1818_v5, %v1811_v34  ;;  %v2348_v7 = vld [vmem:[#allocation6 + $0x28] sm:$0xff] }
 0x274   : > { %28571 = vmatpush3.bf16.msra.mxu0 %v33640_v46  ;;  %38703 = vst [vmem:[#allocation62_spill] sm:$0xff] %v33719_v56  ;;  %v33736_v15 = vpack.c.bf16 %v1804_v48, %v1797_v32  ;;  %v1786_v55 = vand.u32 4294901760, %v1785_v45  ;;  %v38707_v48 = vand.u32 4294901760, %v33711_v27  ;;  %v38313_v53 = vand.u32 4294901760, %v33738_v24 }
 0x275   : > { %28572 = vmatprep.subr.bf16.mxu0 %v38274_v0  ;;  %v1735_v0 = vand.u32 4294901760, %v33649_v58  ;;  %v38306_v54 = vand.u32 4294901760, %v33740_v2  ;;  %v33759_v32 = vsub.f32 %v33647_v16, %v1732_v63  ;;  %38708 = vst [vmem:[#allocation64_spill] sm:$0xff] %v33765_v6  ;;  %v1825_v45 = vand.u32 4294901760, %v1824_v38 }
 0x276   : > { %38706 = vst [vmem:[#allocation63_spill] sm:$0xff] %v33736_v15  ;;  %v1838_v39 = vsub.f32 %v33711_v27, %v38707_v48  ;;  %v1832_v48 = vand.u32 4294901760, %v1831_v49  ;;  %v1846_v35 = vand.u32 4294901760, %v1845_v36  ;;  %v38712_v34 = vand.u32 4294901760, %v33653_v50 }
 0x277   : > { %v33673_v12 = vpack.c.bf16 %v1735_v0, %v1732_v63  ;;  %v33762_v43 = vsub.f32 %v33649_v58, %v1735_v0  ;;  %v1852_v63 = vsub.f32 %v33738_v24, %v38313_v53  ;;  %v1859_v0 = vsub.f32 %v33740_v2, %v38306_v54  ;;  %v2347_v53 = vld [vmem:[#allocation6 + $0x20] sm:$0xff] }
 0x278   : > { %28574 = vmatpush3.bf16.msra.mxu0 %v33644_v51  ;;  %v38308_v16 = vand.u32 4294901760, %v33759_v32  ;;  %v33779_v58 = vpack.c.bf16 %v1832_v48, %v1825_v45  ;;  %v33789_v5 = vsub.f32 %v33653_v50, %v38712_v34 }
 0x279   : > { %28575 = vmatprep.subr.bf16.mxu0 %v38695_v61  ;;  %38696 = vst [vmem:[#allocation60_spill] sm:$0xff] %v33673_v12  ;;  %v38307_v38 = vand.u32 4294901760, %v33762_v43  ;;  %v1853_v36 = vand.u32 4294901760, %v1852_v63  ;;  %v1860_v54 = vand.u32 4294901760, %v1859_v0 }
 0x27a   : > { %38710 = vst [vmem:[#allocation65_spill] sm:$0xff] %v33779_v58  ;;  %v1866_v45 = vsub.f32 %v33759_v32, %v38308_v16  ;;  %v38309_v50 = vand.u32 4294901760, %v33789_v5 }
 0x27b   : > { %v33814_v0 = vpack.c.bf16 %v1860_v54, %v1853_v36 }
 0x27c   : > { %28577 = vmatpush3.bf16.msra.mxu0 %v33660_v33  ;;  %v1867_v34 = vand.u32 4294901760, %v1866_v45 }
 0x27d   : > { %28578 = vmatprep.subr.bf16.mxu0 %v38695_v61  ;;  %38716 = vst [vmem:[#allocation67_spill] sm:$0xff] %v33814_v0 }
 0x280   : > { %28580 = vmatpush3.bf16.msra.mxu0 %v33673_v12 }
 0x281   : > { %28581 = vmatprep.subr.bf16.mxu0 %v38695_v61 }
 0x284   : > { %28583 = vmatpush3.bf16.msra.mxu0 %v33692_v10 }
 0x285   : > { %28584 = vmatprep.subr.bf16.mxu0 %v38695_v61 }
 0x288   : > { %28586 = vmatpush3.bf16.msra.mxu0 %v33719_v56 }
 0x289   : > { %28587 = vmatprep.subr.bf16.mxu0 %v38695_v61 }
 0x28b   : > { %23034 = vmatmul.mubr.f32.vlgmr.msra.gmra.mrb[2].mxu0 %v1786_v55  ;;  %v1839_v55 = vand.u32 4294901760, %v1838_v39 }
 0x28c   : > { %28589 = vmatpush3.bf16.msra.mxu0 %v33736_v15  ;;  %23068 = vmatprep.mubr.msk.f32.mxu0 %vm32853_vm0, %v38709_v17  ;;  %v38711_v17 = vand.u32 4294901760, %v33651_v59 }
 0x28d   : > { %28590 = vmatprep.subr.bf16.mxu0 %v38695_v61  ;;  %v33792_v39 = vpack.c.bf16 %v1846_v35, %v1839_v55  ;;  %v38715_v55 = vand.u32 4294901760, %v33677_v13 }
 0x28e   : > { %v33784_v49 = vsub.f32 %v33651_v59, %v38711_v17  ;;  %v1873_v59 = vsub.f32 %v33762_v43, %v38307_v38  ;;  %v38714_v17 = vand.u32 4294901760, %v33675_v29 }
 0x28f   : > { %38713 = vst [vmem:[#allocation66_spill] sm:$0xff] %v33792_v39  ;;  %v33811_v63 = vsub.f32 %v33677_v13, %v38715_v55 }
 0x290   : > { %28592 = vmatpush3.bf16.msra.mxu0 %v33765_v6  ;;  %v38312_v48 = vand.u32 4294901760, %v33784_v49  ;;  %v33806_v35 = vsub.f32 %v33675_v29, %v38714_v17  ;;  %v1874_v38 = vand.u32 4294901760, %v1873_v59  ;;  %v1887_v29 = vsub.f32 %v33789_v5, %v38309_v50 }
 0x291   : > { %28593 = vmatprep.subr.bf16.mxu0 %v38695_v61  ;;  %v38310_v13 = vand.u32 4294901760, %v33811_v63  ;;  %v33944_v3 = vpack.c.bf16 %v33789_v5, %v33784_v49 }
 0x292   : > { %v1880_v16 = vsub.f32 %v33784_v49, %v38312_v48  ;;  %v38311_v17 = vand.u32 4294901760, %v33806_v35  ;;  %v33826_v54 = vpack.c.bf16 %v1874_v38, %v1867_v34  ;;  %v1888_v45 = vand.u32 4294901760, %v1887_v29 }
 0x293   : > { %v1901_v55 = vsub.f32 %v33811_v63, %v38310_v13  ;;  %v33847_v29 = vpack.c.bf16 %v33657_v1, %v33655_v31  ;;  %38726 = vst [vmem:[#allocation77_spill] sm:$0xff] %v33944_v3 }
 0x294   : > { %28595 = vmatpush3.bf16.msra.mxu0 %v33779_v58  ;;  %38717 = vst [vmem:[#allocation68_spill] sm:$0xff] %v33826_v54  ;;  %v1881_v36 = vand.u32 4294901760, %v1880_v16  ;;  %v1894_v59 = vsub.f32 %v33806_v35, %v38311_v17  ;;  %v2346_v17 = vld [vmem:[#allocation6 + $0x18] sm:$0xff] }
 0x295   : > { %28596 = vmatprep.subr.bf16.mxu0 %v38695_v61  ;;  %v1902_v34 = vand.u32 4294901760, %v1901_v55  ;;  %38720 = vst [vmem:[#allocation71_spill] sm:$0xff] %v33847_v29  ;;  %v33854_v55 = vpack.c.bf16 %v33681_v28, %v33679_v4 }
 0x296   : > { %v33837_v50 = vpack.c.bf16 %v1888_v45, %v1881_v36  ;;  %v1895_v38 = vand.u32 4294901760, %v1894_v59  ;;  %v2343_v36 = vld [vmem:[#allocation6] sm:$0xff]  ;;  %v2344_v45 = vld [vmem:[#allocation6 + $0x8] sm:$0xff]  ;;  %v2345_v59 = vld [vmem:[#allocation6 + $0x10] sm:$0xff] }
 0x297   : > { %38721 = vst [vmem:[#allocation72_spill] sm:$0xff] %v33854_v55  ;;  %v2363_v13 = vand.u32 4294901760, %v2344_v45  ;;  %v2366_v48 = vand.u32 4294901760, %v2345_v59 }
 0x298   : > { %28598 = vmatpush3.bf16.msra.mxu0 %v33792_v39  ;;  %38718 = vst [vmem:[#allocation69_spill] sm:$0xff] %v33837_v50  ;;  %v33841_v16 = vpack.c.bf16 %v1902_v34, %v1895_v38  ;;  %v33856_v38 = vld [vmem:[#allocation2] sm:$0xff]  ;;  %v2360_v34 = vand.u32 4294901760, %v2343_v36 }
 0x299   : > { %28599 = vmatprep.subr.bf16.mxu0 %v38695_v61  ;;  %v33865_v39 = vsub.f32 %v2345_v59, %v2366_v48 }
 0x29a   : > { %38719 = vst [vmem:[#allocation70_spill] sm:$0xff] %v33841_v16  ;;  %v33867_v58 = vpack.c.bf16 %v2363_v13, %v2360_v34 }
 0x29c   : > { %28601 = vmatpush3.bf16.msra.mxu0 %v33814_v0  ;;  %v33863_v0 = vsub.f32 %v2344_v45, %v2363_v13  ;;  %v2350_v45 = vld [vmem:[#allocation6 + $0x38] sm:$0xff] }
 0x29d   : > { %28602 = vmatprep.subr.bf16.mxu0 %v38695_v61 }
 0x2a0   : > { %28604 = vmatpush3.bf16.msra.mxu0 %v33826_v54  ;;  %v33861_v54 = vsub.f32 %v2343_v36, %v2360_v34 }
 0x2a1   : > { %28605 = vmatprep.subr.bf16.mxu0 %v38695_v61 }
 0x2a2   : > { %v28756_v36 = vpack.c.bf16 %v33863_v0, %v33861_v54 }
 0x2a4   : > { %28607 = vmatpush3.bf16.msra.mxu0 %v33837_v50  ;;  %v2372_v50 = vand.u32 4294901760, %v2347_v53  ;;  %28757 = vmatpush3.bf16.msra.mxu1 %v28756_v36  ;;  %v2387_v36 = vand.u32 4294901760, %v2352_v23 }
 0x2a5   : > { %28608 = vmatprep.subr.bf16.mxu0 %v38695_v61  ;;  %28758 = vmatprep.subr.bf16.mxu1 %v38695_v61 }
 0x2a6   : > { %v33881_v59 = vsub.f32 %v2347_v53, %v2372_v50  ;;  %v2351_v53 = vld [vmem:[#allocation6 + $0x40] sm:$0xff]  ;;  %v33913_v40 = vsub.f32 %v2352_v23, %v2387_v36  ;;  %v33927_v23 = vld [vmem:[#allocation6 + $0x68] sm:$0xff] }
 0x2a7   : > { %v38363_v8 = vand.u32 4294901760, %v33927_v23 }
 0x2a8   : > { %28610 = vmatpush3.bf16.msra.mxu0 %v33841_v16  ;;  %v2369_v16 = vand.u32 4294901760, %v2346_v17 }
 0x2a9   : > { %28611 = vmatprep.subr.bf16.mxu0 %v38695_v61 }
 0x2aa   : > { %v33869_v6 = vsub.f32 %v2346_v17, %v2369_v16  ;;  %v33871_v15 = vpack.c.bf16 %v2369_v16, %v2366_v48  ;;  %v2378_v17 = vand.u32 4294901760, %v2349_v26  ;;  %v2381_v16 = vand.u32 4294901760, %v2350_v45 }
 0x2ab   : > { %23069 = vmatmul.mubr.f32.vlgmr.msra.gmra.mrb[2].mxu0 %v33665_v62 }
 0x2ac   : > { %28613 = vmatpush3.bf16.msra.mxu0 %v33847_v29  ;;  %23103 = vmatprep.mubr.msk.f32.mxu0 %vm32853_vm0, %v33856_v38  ;;  %v2375_v29 = vand.u32 4294901760, %v2348_v7  ;;  %v28759_v48 = vpack.c.bf16 %v33869_v6, %v33865_v39  ;;  %v33896_v21 = vpack.c.bf16 %v2381_v16, %v2378_v17  ;;  %v33902_v41 = vsub.f32 %v2350_v45, %v2381_v16 }
 0x2ad   : > { %28614 = vmatprep.subr.bf16.mxu0 %v38695_v61  ;;  %v2393_v16 = vand.u32 4294901760, %v2354_v20 }
 0x2ae   : > { %v33883_v13 = vsub.f32 %v2348_v7, %v2375_v29  ;;  %v33887_v34 = vpack.c.bf16 %v2375_v29, %v2372_v50  ;;  %v2384_v7 = vand.u32 4294901760, %v2351_v53  ;;  %28760 = vmatpush3.bf16.msra.mxu1 %v28759_v48  ;;  %v33900_v29 = vsub.f32 %v2349_v26, %v2378_v17 }
 0x2af   : > { %28761 = vmatprep.subr.bf16.mxu1 %v38695_v61  ;;  %v2390_v17 = vand.u32 4294901760, %v2353_v19  ;;  %v33936_v25 = vsub.f32 %v2354_v20, %v2393_v16 }
 0x2b0   : > { %28616 = vmatpush3.bf16.msra.mxu0 %v33854_v55  ;;  %v33893_v55 = vpack.c.bf16 %v33713_v14, %v33711_v27  ;;  %v28762_v50 = vpack.c.bf16 %v33883_v13, %v33881_v59  ;;  %v33911_v48 = vsub.f32 %v2351_v53, %v2384_v7  ;;  %v33915_v26 = vpack.c.bf16 %v2387_v36, %v2384_v7  ;;  %v33925_v53 = vld [vmem:[#allocation6 + $0x60] sm:$0xff] }
 0x2b1   : > { %28617 = vmatprep.subr.bf16.mxu0 %v38695_v61  ;;  %v28765_v45 = vpack.c.bf16 %v33902_v41, %v33900_v29  ;;  %v33932_v36 = vpack.c.bf16 %v2393_v16, %v2390_v17 }
 0x2b2   : > { %38723 = vst [vmem:[#allocation74_spill] sm:$0xff] %v33893_v55  ;;  %28763 = vmatpush3.bf16.msra.mxu1 %v28762_v50  ;;  %v28768_v7 = vpack.c.bf16 %v33913_v40, %v33911_v48  ;;  %v33934_v50 = vsub.f32 %v2353_v19, %v2390_v17  ;;  %v33963_v17 = vpack.c.bf16 %v33811_v63, %v33806_v35 }
 0x2b3   : > { %28764 = vmatprep.subr.bf16.mxu1 %v38695_v61 }
 0x2b4   : > { %28619 = vmatpush3.bf16.msra.mxu0 %v33876_v22  ;;  %v33908_v22 = vpack.c.bf16 %v33740_v2, %v33738_v24  ;;  %v28771_v19 = vpack.c.bf16 %v33936_v25, %v33934_v50  ;;  %38727 = vst [vmem:[#allocation78_spill] sm:$0xff] %v33963_v17 }
 0x2b5   : > { %28620 = vmatprep.subr.bf16.mxu0 %v38695_v61 }
 0x2b6   : > { %38724 = vst [vmem:[#allocation75_spill] sm:$0xff] %v33908_v22  ;;  %28766 = vmatpush3.bf16.msra.mxu1 %v28765_v45  ;;  %v33957_v45 = vsub.f32 %v33927_v23, %v38363_v8  ;;  %v38731_v8 = vand.u32 4294901760, %v33685_v30 }
 0x2b7   : > { %28767 = vmatprep.subr.bf16.mxu1 %v38695_v61 }
 0x2b8   : > { %28622 = vmatpush3.bf16.msra.mxu0 %v33893_v55  ;;  %v33923_v55 = vpack.c.bf16 %v33762_v43, %v33759_v32 }
 0x2b9   : > { %28623 = vmatprep.subr.bf16.mxu0 %v38695_v61 }
 0x2ba   : > { %38725 = vst [vmem:[#allocation76_spill] sm:$0xff] %v33923_v55  ;;  %28769 = vmatpush3.bf16.msra.mxu1 %v28768_v7  ;;  %v38728_v7 = vand.u32 4294901760, %v33655_v31  ;;  %v38741_v31 = vand.u32 4294901760, %v33738_v24  ;;  %v38747_v24 = vand.u32 4294901760, %v33784_v49  ;;  %v2358_v49 = vld [vmem:[#allocation6 + $0x78] sm:$0xff] }
 0x2bb   : > { %28770 = vmatprep.subr.bf16.mxu1 %v38695_v61 }
 0x2bc   : > { %28625 = vmatpush3.bf16.msra.mxu0 %v33908_v22  ;;  %v38364_v22 = vand.u32 4294901760, %v33925_v53 }
 0x2bd   : > { %28626 = vmatprep.subr.bf16.mxu0 %v38695_v61 }
 0x2be   : > { %v33952_v20 = vsub.f32 %v33925_v53, %v38364_v22  ;;  %28772 = vmatpush3.bf16.msra.mxu1 %v28771_v19  ;;  %v38729_v19 = vand.u32 4294901760, %v33657_v1  ;;  %v38732_v22 = vand.u32 4294901760, %v33679_v4  ;;  %v38735_v1 = vand.u32 4294901760, %v33705_v11 }
 0x2bf   : > { %28773 = vmatprep.subr.bf16.mxu1 %v38695_v61 }
 0x2c0   : > { %28628 = vmatpush3.bf16.msra.mxu0 %v33923_v55  ;;  %v28774_v16 = vpack.c.bf16 %v33957_v45, %v33952_v20 }
 0x2c1   : > { %28629 = vmatprep.subr.bf16.mxu0 %v38695_v61 }
 0x2c2   : > { %28775 = vmatpush3.bf16.msra.mxu1 %v28774_v16  ;;  %v33994_v16 = vpack.c.bf16 %v38729_v19, %v38728_v7 }
 0x2c3   : > { %28776 = vmatprep.subr.bf16.mxu1 %v38695_v61 }
 0x2c4   : > { %28631 = vmatpush3.bf16.msra.mxu0 %v33944_v3  ;;  %38730 = vst [vmem:[#allocation79_spill] sm:$0xff] %v33994_v16 }
 0x2c5   : > { %28632 = vmatprep.subr.bf16.mxu0 %v38695_v61 }
 0x2c8   : > { %28634 = vmatpush3.bf16.msra.mxu0 %v33963_v17  ;;  %v38733_v17 = vand.u32 4294901760, %v33681_v28  ;;  %v38738_v28 = vand.u32 4294901760, %v33711_v27  ;;  %v38744_v27 = vand.u32 4294901760, %v33759_v32  ;;  %v38750_v32 = vand.u32 4294901760, %v33806_v35 }
 0x2c9   : > { %28635 = vmatprep.subr.bf16.mxu0 %v38695_v61  ;;  %v2405_v35 = vand.u32 4294901760, %v2358_v49 }
 0x2ca   : > { %v34004_v3 = vpack.c.bf16 %v38733_v17, %v38732_v22  ;;  %v38739_v22 = vand.u32 4294901760, %v33713_v14  ;;  %v38745_v14 = vand.u32 4294901760, %v33762_v43  ;;  %v38751_v43 = vand.u32 4294901760, %v33811_v63 }
 0x2cb   : > { %23104 = vmatmul.mubr.f32.vlgmr.msra.gmra.mrb[2].mxu0 %v33685_v30  ;;  %v38736_v30 = vand.u32 4294901760, %v33707_v9  ;;  %v38742_v9 = vand.u32 4294901760, %v33740_v2  ;;  %v38748_v2 = vand.u32 4294901760, %v33789_v5 }
 0x2cc   : > { %28637 = vmatpush3.bf16.msra.mxu0 %v33629_v18  ;;  %23138 = vmatprep.mubr.msk.f32.mxu0 %vm32853_vm0, %v33856_v38  ;;  %38734 = vst [vmem:[#allocation80_spill] sm:$0xff] %v34004_v3  ;;  %v34022_v4 = vpack.c.bf16 %v38739_v22, %v38738_v28  ;;  %v34038_v17 = vpack.c.bf16 %v38745_v14, %v38744_v27  ;;  %v38753_v28 = vand.u32 4294901760, %v33925_v53  ;;  %v38754_v22 = vand.u32 4294901760, %v33927_v23 }
 0x2cd   : > { %28638 = vmatprep.subr.bf16.mxu0 %v38695_v61  ;;  %v34030_v11 = vpack.c.bf16 %v38742_v9, %v38741_v31  ;;  %v34046_v7 = vpack.c.bf16 %v38748_v2, %v38747_v24  ;;  %v34054_v19 = vpack.c.bf16 %v38751_v43, %v38750_v32 }
 0x2ce   : > { %38740 = vst [vmem:[#allocation82_spill] sm:$0xff] %v34022_v4  ;;  %38746 = vst [vmem:[#allocation84_spill] sm:$0xff] %v34038_v17  ;;  %v34097_v31 = vpack.c.bf16 %v38754_v22, %v38753_v28  ;;  %v38369_v28 = vand.u32 4294901760, %v33863_v0 }
 0x2cf   : > { %38743 = vst [vmem:[#allocation83_spill] sm:$0xff] %v34030_v11  ;;  %38749 = vst [vmem:[#allocation85_spill] sm:$0xff] %v34046_v7 }
 0x2d0   : > { %28640 = vmatpush3.bf16.msra.mxu0 %v33634_v44  ;;  %38752 = vst [vmem:[#allocation86_spill] sm:$0xff] %v34054_v19 }
 0x2d1   : > { %28641 = vmatprep.subr.bf16.mxu0 %v38695_v61 }
 0x2d4   : > { %28643 = vmatpush3.bf16.msra.mxu0 %v33640_v46 }
 0x2d5   : > { %28644 = vmatprep.subr.bf16.mxu0 %v38695_v61 }
 0x2d8   : > { %28646 = vmatpush3.bf16.msra.mxu0 %v33644_v51 }
 0x2d9   : > { %28647 = vmatprep.subr.bf16.mxu0 %v38695_v61 }
 0x2dc   : > { %28649 = vmatpush3.bf16.msra.mxu0 %v33660_v33 }
 0x2dd   : > { %28650 = vmatprep.subr.bf16.mxu0 %v38695_v61 }
 0x2e0   : > { %28652 = vmatpush3.bf16.msra.mxu0 %v33673_v12 }
 0x2e1   : > { %28653 = vmatprep.subr.bf16.mxu0 %v38695_v61 }
 0x2e4   : > { %28655 = vmatpush3.bf16.msra.mxu0 %v33692_v10 }
 0x2e5   : > { %28656 = vmatprep.subr.bf16.mxu0 %v38695_v61 }
 0x2e8   : > { %28658 = vmatpush3.bf16.msra.mxu0 %v33719_v56 }
 0x2e9   : > { %28659 = vmatprep.subr.bf16.mxu0 %v38695_v61 }
 0x2eb   : > { %23139 = vmatmul.mubr.f32.vlgmr.msra.gmra.mrb[2].mxu0 %v38731_v8  ;;  %v34014_v8 = vpack.c.bf16 %v38736_v30, %v38735_v1  ;;  %v2557_v1 = vsub.f32 %v2358_v49, %v2405_v35  ;;  %v32854_v49 = vmov 0  }
 0x2ec   : > { %28661 = vmatpush3.bf16.msra.mxu0 %v33994_v16  ;;  %23173 = vmatprep.mubr.msk.f32.mxu0 %vm32853_vm0, %v33856_v38 }
 0x2ed   : > { %28662 = vmatprep.subr.bf16.mxu0 %v38695_v61  ;;  %38737 = vst [vmem:[#allocation81_spill] sm:$0xff] %v34014_v8  ;;  %v2558_v14 = vand.u32 4294901760, %v2557_v1  ;;  %32611 = vset.pattern.permute.xlu0 %v32854_v49 }
 0x2ee   : > { %32612 = vset.pattern.permute.xlu1 %v32854_v49 }
 0x2ef   : > { %v2559_v53 = vsub.f32 %v2557_v1, %v2558_v14 }
 0x2f0   : > { %28664 = vmatpush3.bf16.msra.mxu0 %v34004_v3 }
 0x2f1   : > { %28665 = vmatprep.subr.bf16.mxu0 %v38695_v61  ;;  %v2560_v23 = vand.u32 4294901760, %v2559_v53  ;;  %v38370_v53 = vand.u32 4294901760, %v33869_v6 }
 0x2f4   : > { %28667 = vmatpush3.bf16.msra.mxu0 %v34014_v8 }
 0x2f5   : > { %28668 = vmatprep.subr.bf16.mxu0 %v38695_v61 }
 0x2f8   : > { %28670 = vmatpush3.bf16.msra.mxu0 %v34022_v4 }
 0x2f9   : > { %28671 = vmatprep.subr.bf16.mxu0 %v38695_v61 }
 0x2fc   : > { %28673 = vmatpush3.bf16.msra.mxu0 %v34030_v11 }
 0x2fd   : > { %28674 = vmatprep.subr.bf16.mxu0 %v38695_v61 }
 0x300   : > { %28676 = vmatpush3.bf16.msra.mxu0 %v34038_v17 }
 0x301   : > { %28677 = vmatprep.subr.bf16.mxu0 %v38695_v61 }
 0x304   : > { %28679 = vmatpush3.bf16.msra.mxu0 %v34046_v7  ;;  %v38755_v7 = vand.u32 4294901760, %v33883_v13 }
 0x305   : > { %28680 = vmatprep.subr.bf16.mxu0 %v38695_v61 }
 0x306   : > { %v2489_v17 = vsub.f32 %v33883_v13, %v38755_v7 }
 0x308   : > { %28682 = vmatpush3.bf16.msra.mxu0 %v34054_v19 }
 0x309   : > { %28683 = vmatprep.subr.bf16.mxu0 %v38695_v61 }
 0x30b   : > { %23174 = vmatmul.mubr.f32.vlgmr.msra.gmra.mrb[2].mxu0 %v33665_v62 }
 0x30c   : > { %28685 = vmatpush3.bf16.msra.mxu0 %v33629_v18  ;;  %23208 = vmatprep.mubr.msk.f32.mxu0 %vm32853_vm0, %v33856_v38 }
 0x30d   : > { %28686 = vmatprep.subr.bf16.mxu0 %v38695_v61 }
 0x310   : > { %28688 = vmatpush3.bf16.msra.mxu0 %v33634_v44 }
 0x311   : > { %28689 = vmatprep.subr.bf16.mxu0 %v38695_v61 }
 0x314   : > { %28691 = vmatpush3.bf16.msra.mxu0 %v33640_v46 }
 0x315   : > { %28692 = vmatprep.subr.bf16.mxu0 %v38695_v61 }
 0x318   : > { %28694 = vmatpush3.bf16.msra.mxu0 %v33644_v51 }
 0x319   : > { %28695 = vmatprep.subr.bf16.mxu0 %v38695_v61 }
 0x31c   : > { %28697 = vmatpush3.bf16.msra.mxu0 %v33660_v33 }
 0x31d   : > { %28698 = vmatprep.subr.bf16.mxu0 %v38695_v61 }
 0x320   : > { %28700 = vmatpush3.bf16.msra.mxu0 %v33673_v12 }
 0x321   : > { %28701 = vmatprep.subr.bf16.mxu0 %v38695_v61 }
 0x324   : > { %28703 = vmatpush3.bf16.msra.mxu0 %v33692_v10 }
 0x325   : > { %28704 = vmatprep.subr.bf16.mxu0 %v38695_v61 }
 0x328   : > { %28706 = vmatpush3.bf16.msra.mxu0 %v33719_v56 }
 0x329   : > { %28707 = vmatprep.subr.bf16.mxu0 %v38695_v61 }
 0x32b   : > { %23209 = vmatmul.mubr.f32.vlgmr.msra.gmra.mrb[2].mxu0 %v33665_v62  ;;  %v2357_v62 = vld [vmem:[#allocation6 + $0x70] sm:$0xff] }
 0x32c   : > { %28709 = vmatpush3.bf16.msra.mxu0 %v33867_v58  ;;  %23243 = vmatprep.mubr.msk.f32.mxu0 %vm32853_vm0, %v33856_v38  ;;  %v2402_v5 = vand.u32 4294901760, %v2357_v62 }
 0x32d   : > { %28710 = vmatprep.subr.bf16.mxu0 %v38695_v61 }
 0x32e   : > { %v2550_v63 = vsub.f32 %v2357_v62, %v2402_v5  ;;  %v34102_v9 = vpack.c.bf16 %v2405_v35, %v2402_v5  ;;  %v3004_v62 = vld [vmem:[%s38250_s2] sm:$0xf]  ;;  %v19949_v35 = vld [vmem:[%s38250_s2 + $0x8] sm:$0xf] }
 0x32f   : > { %3007 = vperm.xlu0 %32611, %v3004_v62   ;;  %v4327_v5 = vld [vmem:[%s38253_s5] sm:$0xf] }
 0x330   : > { %28712 = vmatpush3.bf16.msra.mxu0 %v33871_v15  ;;  %v28777_v30 = vpack.c.bf16 %v2557_v1, %v2550_v63  ;;  %v2551_v27 = vand.u32 4294901760, %v2550_v63  ;;  %v19961_v1 = vld [vmem:[%s38250_s2 + $0x10] sm:$0xf] }
 0x331   : > { %28713 = vmatprep.subr.bf16.mxu0 %v38695_v61 }
 0x332   : > { %28778 = vmatpush3.bf16.msra.mxu1 %v28777_v30  ;;  %v2552_v24 = vsub.f32 %v2550_v63, %v2551_v27  ;;  %v34108_v43 = vpack.c.bf16 %v2558_v14, %v2551_v27  ;;  %v19955_v63 = vld [vmem:[%s38250_s2 + $0xc] sm:$0xf]  ;;  %v38372_v30 = vand.u32 4294901760, %v33861_v54  ;;  %v2461_v27 = vsub.f32 %v33863_v0, %v38369_v28 }
 0x333   : > { %28779 = vmatprep.subr.bf16.mxu1 %v38695_v61  ;;  %4330 = vperm.xlu0 %32611, %v4327_v5  }
 0x334   : > { %28715 = vmatpush3.bf16.msra.mxu0 %v33887_v34  ;;  %v2553_v2 = vand.u32 4294901760, %v2552_v24  ;;  %v2454_v22 = vsub.f32 %v33861_v54, %v38372_v30  ;;  %v38371_v24 = vand.u32 4294901760, %v33865_v39  ;;  %v2462_v5 = vand.u32 4294901760, %v2461_v27 }
 0x335   : > { %28716 = vmatprep.subr.bf16.mxu0 %v38695_v61 }
 0x336   : > { %v34106_v32 = vpack.c.bf16 %v2560_v23, %v2553_v2  ;;  %v2455_v49 = vand.u32 4294901760, %v2454_v22 }
 0x337   : > { %10734 = vperm.xlu0 %32611, %v19949_v35   ;;  %v2468_v35 = vsub.f32 %v33865_v39, %v38371_v24  ;;  %v38383_v24 = vand.u32 4294901760, %v33902_v41 }
 0x338   : > { %28718 = vmatpush3.bf16.msra.mxu0 %v33896_v21  ;;  %v28732_v27 = vpack.c.bf16 %v2462_v5, %v2455_v49 }
 0x339   : > { %28719 = vmatprep.subr.bf16.mxu0 %v38695_v61  ;;  %v2469_v30 = vand.u32 4294901760, %v2468_v35  ;;  %v2503_v5 = vsub.f32 %v33902_v41, %v38383_v24  ;;  %v38384_v35 = vand.u32 4294901760, %v33911_v48 }
 0x33b   : > { %14599 = vperm.xlu0 %32611, %v19955_v63   ;;  %v2475_v63 = vsub.f32 %v33869_v6, %v38370_v53  ;;  %v38382_v53 = vand.u32 4294901760, %v33900_v29  ;;  %v2510_v24 = vsub.f32 %v33911_v48, %v38384_v35 }
 0x33c   : > { %28721 = vmatpush3.bf16.msra.mxu0 %v33915_v26 }
 0x33d   : > { %28722 = vmatprep.subr.bf16.mxu0 %v38695_v61  ;;  %v2476_v28 = vand.u32 4294901760, %v2475_v63  ;;  %v2496_v49 = vsub.f32 %v33900_v29, %v38382_v53  ;;  %v38385_v63 = vand.u32 4294901760, %v33913_v40  ;;  %v2504_v53 = vand.u32 4294901760, %v2503_v5 }
 0x33f   : > { %18464 = vperm.xlu0 %32611, %v19961_v1   ;;  %v38381_v1 = vand.u32 4294901760, %v33881_v59  ;;  %v28735_v7 = vpack.c.bf16 %v2476_v28, %v2469_v30  ;;  %v2523_v30 = vand.u32 4294901760, %v33934_v50  ;;  %v2530_v28 = vand.u32 4294901760, %v33936_v25 }
 0x340   : > { %28724 = vmatpush3.bf16.msra.mxu0 %v33932_v36 }
 0x341   : > { %28725 = vmatprep.subr.bf16.mxu0 %v38695_v61  ;;  %v2482_v19 = vsub.f32 %v33881_v59, %v38381_v1  ;;  %v2490_v1 = vand.u32 4294901760, %v2489_v17  ;;  %v2524_v35 = vsub.f32 %v33934_v50, %v2523_v30 }
 0x344   : > { %28727 = vmatpush3.bf16.msra.mxu0 %v34097_v31 }
 0x345   : > { %28728 = vmatprep.subr.bf16.mxu0 %v38695_v61 }
 0x348   : > { %28730 = vmatpush3.bf16.msra.mxu0 %v34102_v9 }
 0x349   : > { %28731 = vmatprep.subr.bf16.mxu0 %v38695_v61 }
 0x3fe   : > { %v34133_v14 = vpop.f32.mrb[2].mxu0 }
 0x3ff   : > { %v34138_v2 = vand.u32 4294901760, %v34133_v14  ;;  %v23210_v23 = vpop.f32.mrb[3].mxu0 }
 0x401   : > { %v34142_v62 = vsub.f32 %v34133_v14, %v34138_v2 }
 0x403   : > { %v2442_v23 = vand.u32 4294901760, %v34142_v62  ;;  %23314 = vmatmul.mubr.f32.vlgmr.msra.gmra.mrb[0].mxu1 %v34142_v62 }
 0x404   : > { %28781 = vmatpush3.bf16.msra.mxu1 %v33867_v58  ;;  %23348 = vmatprep.mubr.msk.f32.mxu1 %vm32853_vm0, %v33856_v38 }
 0x405   : > { %28782 = vmatprep.subr.bf16.mxu1 %v38695_v61  ;;  %v2443_v22 = vsub.f32 %v34142_v62, %v2442_v23 }
 0x407   : > { %v2444_v11 = vand.u32 4294901760, %v2443_v22  ;;  %v2483_v22 = vand.u32 4294901760, %v2482_v19  ;;  %v2517_v19 = vsub.f32 %v33913_v40, %v38385_v63  ;;  %v2531_v63 = vsub.f32 %v33936_v25, %v2530_v28 }
 0x408   : > { %28784 = vmatpush3.bf16.msra.mxu1 %v33871_v15 }
 0x409   : > { %23244 = vmatmul.mubr.f32.vlgmr.msra.gmra.mrb[6].mxu0 %v2444_v11  ;;  %28785 = vmatprep.subr.bf16.mxu1 %v38695_v61  ;;  %v2497_v11 = vand.u32 4294901760, %v2496_v49  ;;  %v28738_v17 = vpack.c.bf16 %v2490_v1, %v2483_v22  ;;  %v2511_v49 = vand.u32 4294901760, %v2510_v24  ;;  %v2518_v5 = vand.u32 4294901760, %v2517_v19 }
 0x40a   : > { %28733 = vmatpush3.bf16.msra.mxu0 %v28732_v27  ;;  %23278 = vmatprep.mubr.msk.f32.mxu0 %vm32853_vm0, %v33856_v38  ;;  %v2537_v1 = vand.u32 4294901760, %v33952_v20  ;;  %v2532_v24 = vand.u32 4294901760, %v2531_v63 }
 0x40b   : > { %28734 = vmatprep.subr.bf16.mxu0 %v38695_v61  ;;  %v28741_v27 = vpack.c.bf16 %v2504_v53, %v2497_v11  ;;  %v28744_v22 = vpack.c.bf16 %v2518_v5, %v2511_v49  ;;  %v2525_v53 = vand.u32 4294901760, %v2524_v35  ;;  %v38757_v35 = vand.u32 4294901760, %v33863_v0 }
 0x40c   : > { %28787 = vmatpush3.bf16.msra.mxu1 %v33887_v34  ;;  %v2538_v11 = vsub.f32 %v33952_v20, %v2537_v1  ;;  %v38759_v49 = vand.u32 4294901760, %v33869_v6  ;;  %v38760_v0 = vand.u32 4294901760, %v33881_v59  ;;  %v38762_v6 = vand.u32 4294901760, %v33900_v29 }
 0x40d   : > { %28788 = vmatprep.subr.bf16.mxu1 %v38695_v61  ;;  %v28747_v25 = vpack.c.bf16 %v2532_v24, %v2525_v53  ;;  %v38764_v59 = vand.u32 4294901760, %v33911_v48 }
 0x40e   : > { %28736 = vmatpush3.bf16.msra.mxu0 %v28735_v7  ;;  %v2544_v7 = vand.u32 4294901760, %v33957_v45  ;;  %v2539_v19 = vand.u32 4294901760, %v2538_v11 }
 0x40f   : > { %28737 = vmatprep.subr.bf16.mxu0 %v38695_v61 }
 0x410   : > { %28790 = vmatpush3.bf16.msra.mxu1 %v33896_v21  ;;  %v2545_v50 = vsub.f32 %v33957_v45, %v2544_v7  ;;  %v38756_v45 = vand.u32 4294901760, %v33861_v54  ;;  %v38761_v54 = vand.u32 4294901760, %v33883_v13  ;;  %v38765_v13 = vand.u32 4294901760, %v33913_v40  ;;  %v34274_v40 = vld [vmem:[#allocation11] sm:$0xff] }
 0x411   : > { %28791 = vmatprep.subr.bf16.mxu1 %v38695_v61  ;;  %v28822_v53 = vpack.c.bf16 %v2544_v7, %v2537_v1  ;;  %v472_v1 = vld [vmem:[#allocation11 + $0x38] sm:$0xff] }
 0x412   : > { %28739 = vmatpush3.bf16.msra.mxu0 %v28738_v17  ;;  %v2546_v17 = vand.u32 4294901760, %v2545_v50  ;;  %v28804_v63 = vpack.c.bf16 %v38757_v35, %v38756_v45  ;;  %v28810_v62 = vpack.c.bf16 %v38761_v54, %v38760_v0  ;;  %v3037_v24 = vand.u32 4294901760, %v472_v1  ;;  %v473_v50 = vld [vmem:[#allocation11 + $0x40] sm:$0xff]  ;;  %v475_v45 = vld [vmem:[#allocation11 + $0x50] sm:$0xff]  ;;  %v476_v35 = vld [vmem:[#allocation11 + $0x58] sm:$0xff] }
 0x413   : > { %28740 = vmatprep.subr.bf16.mxu0 %v38695_v61  ;;  %v478_v0 = vld [vmem:[#allocation11 + $0x68] sm:$0xff] }
 0x414   : > { %28793 = vmatpush3.bf16.msra.mxu1 %v33915_v26  ;;  %v28750_v20 = vpack.c.bf16 %v2546_v17, %v2539_v19  ;;  %v3040_v19 = vand.u32 4294901760, %v473_v50 }
 0x415   : > { %28794 = vmatprep.subr.bf16.mxu1 %v38695_v61 }
 0x416   : > { %28742 = vmatpush3.bf16.msra.mxu0 %v28741_v27  ;;  %v38758_v27 = vand.u32 4294901760, %v33865_v39  ;;  %v38763_v39 = vand.u32 4294901760, %v33902_v41  ;;  %v34276_v41 = vld [vmem:[#allocation11 + $0x8] sm:$0xff] }
 0x417   : > { %28743 = vmatprep.subr.bf16.mxu0 %v38695_v61 }
 0x418   : > { %28796 = vmatpush3.bf16.msra.mxu1 %v33932_v36  ;;  %v28807_v5 = vpack.c.bf16 %v38759_v49, %v38758_v27  ;;  %v3049_v27 = vand.u32 4294901760, %v476_v35 }
 0x419   : > { %28797 = vmatprep.subr.bf16.mxu1 %v38695_v61 }
 0x41a   : > { %28745 = vmatpush3.bf16.msra.mxu0 %v28744_v22  ;;  %v28819_v22 = vpack.c.bf16 %v2530_v28, %v2523_v30  ;;  %v471_v28 = vld [vmem:[#allocation11 + $0x30] sm:$0xff] }
 0x41b   : > { %28746 = vmatprep.subr.bf16.mxu0 %v38695_v61  ;;  %v3034_v7 = vand.u32 4294901760, %v471_v28 }
 0x41c   : > { %28799 = vmatpush3.bf16.msra.mxu1 %v34097_v31 }
 0x41d   : > { %28800 = vmatprep.subr.bf16.mxu1 %v38695_v61  ;;  %v34316_v11 = vpack.c.bf16 %v3037_v24, %v3034_v7 }
 0x41e   : > { %28748 = vmatpush3.bf16.msra.mxu0 %v28747_v25  ;;  %v474_v25 = vld [vmem:[#allocation11 + $0x48] sm:$0xff] }
 0x41f   : > { %28749 = vmatprep.subr.bf16.mxu0 %v38695_v61  ;;  %v3043_v17 = vand.u32 4294901760, %v474_v25 }
 0x420   : > { %28802 = vmatpush3.bf16.msra.mxu1 %v34102_v9 }
 0x421   : > { %28803 = vmatprep.subr.bf16.mxu1 %v38695_v61 }
 0x422   : > { %28751 = vmatpush3.bf16.msra.mxu0 %v28750_v20  ;;  %v34320_v20 = vpack.c.bf16 %v3043_v17, %v3040_v19 }
 0x423   : > { %23349 = vmatmul.mubr.f32.vlgmr.msra.gmra.mrb[0].mxu1 %v2442_v23  ;;  %28752 = vmatprep.subr.bf16.mxu0 %v38695_v61  ;;  %v28816_v23 = vpack.c.bf16 %v38765_v13, %v38764_v59 }
 0x424   : > { %28805 = vmatpush3.bf16.msra.mxu1 %v28804_v63  ;;  %23383 = vmatprep.mubr.msk.f32.mxu1 %vm32853_vm0, %v33856_v38  ;;  %v3046_v63 = vand.u32 4294901760, %v475_v45 }
 0x425   : > { %28806 = vmatprep.subr.bf16.mxu1 %v38695_v61 }
 0x426   : > { %28754 = vmatpush3.bf16.msra.mxu0 %v34106_v32  ;;  %v28813_v32 = vpack.c.bf16 %v38763_v39, %v38762_v6  ;;  %v34324_v49 = vpack.c.bf16 %v3049_v27, %v3046_v63  ;;  %v479_v39 = vld [vmem:[#allocation11 + $0x70] sm:$0xff] }
 0x427   : > { %29139 = vmatprep.subr.bf16.mxu0 %v38695_v61  ;;  %v3058_v59 = vand.u32 4294901760, %v479_v39 }
 0x428   : > { %28808 = vmatpush3.bf16.msra.mxu1 %v28807_v5  ;;  %v477_v5 = vld [vmem:[#allocation11 + $0x60] sm:$0xff] }
 0x429   : > { %23279 = vmatmul.mubr.f32.vlgmr.msra.gmra.mrb[6].mxu0 %v34138_v2  ;;  %28809 = vmatprep.subr.bf16.mxu1 %v38695_v61  ;;  %v3052_v54 = vand.u32 4294901760, %v477_v5 }
 0x42a   : > { %23847 = vmatprep.mubr.msk.f32.mxu0 %vm32853_vm0, %v33856_v38 }
 0x42c   : > { %28811 = vmatpush3.bf16.msra.mxu1 %v28810_v62  ;;  %v3055_v62 = vand.u32 4294901760, %v478_v0 }
 0x42d   : > { %28812 = vmatprep.subr.bf16.mxu1 %v38695_v61 }
 0x42e   : > { %v34328_v6 = vpack.c.bf16 %v3055_v62, %v3052_v54 }
 0x430   : > { %28814 = vmatpush3.bf16.msra.mxu1 %v28813_v32  ;;  %v480_v32 = vld [vmem:[#allocation11 + $0x78] sm:$0xff] }
 0x431   : > { %28815 = vmatprep.subr.bf16.mxu1 %v38695_v61  ;;  %v3061_v13 = vand.u32 4294901760, %v480_v32 }
 0x434   : > { %28817 = vmatpush3.bf16.msra.mxu1 %v28816_v23  ;;  %v34332_v23 = vpack.c.bf16 %v3061_v13, %v3058_v59 }
 0x435   : > { %28818 = vmatprep.subr.bf16.mxu1 %v38695_v61 }
 0x438   : > { %28820 = vmatpush3.bf16.msra.mxu1 %v28819_v22  ;;  %v34336_v22 = vsub.f32 %v471_v28, %v3034_v7 }
 0x439   : > { %28821 = vmatprep.subr.bf16.mxu1 %v38695_v61 }
 0x43c   : > { %28823 = vmatpush3.bf16.msra.mxu1 %v28822_v53  ;;  %v34338_v53 = vsub.f32 %v472_v1, %v3037_v24 }
 0x43d   : > { %28824 = vmatprep.subr.bf16.mxu1 %v38695_v61 }
 0x440   : > { %28826 = vmatpush3.bf16.msra.mxu1 %v34108_v43 }
 0x441   : > { %28827 = vmatprep.subr.bf16.mxu1 %v38695_v61 }
 0x443   : > { %23384 = vmatmul.mubr.f32.vlgmr.msra.gmra.mrb[0].mxu1 %v34138_v2 }
 0x444   : > { %28829 = vmatpush3.bf16.msra.mxu1 %v33867_v58  ;;  %23418 = vmatprep.mubr.msk.f32.mxu1 %vm32853_vm0, %v33856_v38  ;;  %v38390_v58 = vand.u32 4294901760, %v34276_v41 }
 0x445   : > { %28830 = vmatprep.subr.bf16.mxu1 %v38695_v61 }
 0x448   : > { %28832 = vmatpush3.bf16.msra.mxu1 %v33871_v15  ;;  %v38391_v15 = vand.u32 4294901760, %v34274_v40 }
 0x449   : > { %28833 = vmatprep.subr.bf16.mxu1 %v38695_v61 }
 0x44c   : > { %28835 = vmatpush3.bf16.msra.mxu1 %v33887_v34  ;;  %v34282_v34 = vld [vmem:[#allocation11 + $0x18] sm:$0xff] }
 0x44d   : > { %28836 = vmatprep.subr.bf16.mxu1 %v38695_v61  ;;  %v38388_v48 = vand.u32 4294901760, %v34282_v34 }
 0x450   : > { %28838 = vmatpush3.bf16.msra.mxu1 %v33896_v21  ;;  %v34278_v21 = vld [vmem:[#allocation11 + $0x10] sm:$0xff] }
 0x451   : > { %28839 = vmatprep.subr.bf16.mxu1 %v38695_v61  ;;  %v38389_v29 = vand.u32 4294901760, %v34278_v21 }
 0x454   : > { %28841 = vmatpush3.bf16.msra.mxu1 %v33915_v26  ;;  %v34286_v26 = vld [vmem:[#allocation11 + $0x20] sm:$0xff] }
 0x455   : > { %28842 = vmatprep.subr.bf16.mxu1 %v38695_v61  ;;  %v38387_v43 = vand.u32 4294901760, %v34286_v26 }
 0x458   : > { %28844 = vmatpush3.bf16.msra.mxu1 %v33932_v36  ;;  %v34288_v36 = vld [vmem:[#allocation11 + $0x28] sm:$0xff] }
 0x459   : > { %28845 = vmatprep.subr.bf16.mxu1 %v38695_v61 }
 0x45c   : > { %28847 = vmatpush3.bf16.msra.mxu1 %v34097_v31  ;;  %v34294_v31 = vpack.c.bf16 %v38390_v58, %v38391_v15  ;;  %v34347_v58 = vsub.f32 %v474_v25, %v3043_v17  ;;  %v34360_v25 = vsub.f32 %v475_v45, %v3046_v63  ;;  %v34378_v63 = vsub.f32 %v478_v0, %v3055_v62 }
 0x45d   : > { %28848 = vmatprep.subr.bf16.mxu1 %v38695_v61 }
 0x45e   : > { %v38405_v7 = vand.u32 4294901760, %v34347_v58 }
 0x460   : > { %28850 = vmatpush3.bf16.msra.mxu1 %v34102_v9  ;;  %v34301_v9 = vpack.c.bf16 %v38388_v48, %v38389_v29  ;;  %v34345_v29 = vsub.f32 %v473_v50, %v3040_v19  ;;  %v3173_v50 = vsub.f32 %v34347_v58, %v38405_v7  ;;  %v34362_v19 = vsub.f32 %v476_v35, %v3049_v27 }
 0x461   : > { %28851 = vmatprep.subr.bf16.mxu1 %v38695_v61  ;;  %v34376_v35 = vsub.f32 %v477_v5, %v3052_v54 }
 0x462   : > { %v38398_v1 = vand.u32 4294901760, %v34345_v29 }
 0x463   : > { %23419 = vmatmul.mubr.f32.vlgmr.msra.gmra.mrb[0].mxu1 %v34138_v2  ;;  %v38386_v2 = vand.u32 4294901760, %v34288_v36 }
 0x464   : > { %23453 = vmatprep.mubr.msk.f32.mxu1 %vm32853_vm0, %v33856_v38  ;;  %28853 = vmatpush3.bf16.msra.mxu1 %v34294_v31  ;;  %v3166_v4 = vsub.f32 %v34345_v29, %v38398_v1 }
 0x465   : > { %28854 = vmatprep.subr.bf16.mxu1 %v38695_v61  ;;  %v34311_v30 = vpack.c.bf16 %v38386_v2, %v38387_v43  ;;  %v38395_v2 = vand.u32 4294901760, %v34336_v22  ;;  %v38394_v43 = vand.u32 4294901760, %v34338_v53 }
 0x467   : > { %v3152_v48 = vsub.f32 %v34336_v22, %v38395_v2  ;;  %v3159_v15 = vsub.f32 %v34338_v53, %v38394_v43  ;;  %v3174_v43 = vand.u32 4294901760, %v3173_v50  ;;  %v38399_v2 = vand.u32 4294901760, %v34360_v25 }
 0x468   : > { %28856 = vmatpush3.bf16.msra.mxu1 %v34301_v9 }
 0x469   : > { %28857 = vmatprep.subr.bf16.mxu1 %v38695_v61  ;;  %v3153_v28 = vand.u32 4294901760, %v3152_v48  ;;  %v3160_v24 = vand.u32 4294901760, %v3159_v15  ;;  %v3167_v48 = vand.u32 4294901760, %v3166_v4  ;;  %v38404_v15 = vand.u32 4294901760, %v34362_v19 }
 0x46a   : > { %v3180_v1 = vsub.f32 %v34360_v25, %v38399_v2  ;;  %v34389_v2 = vsub.f32 %v480_v32, %v3061_v13 }
 0x46b   : > { %v34364_v17 = vpack.c.bf16 %v3160_v24, %v3153_v28  ;;  %v34368_v8 = vpack.c.bf16 %v3174_v43, %v3167_v48  ;;  %v3187_v45 = vsub.f32 %v34362_v19, %v38404_v15  ;;  %v38403_v28 = vand.u32 4294901760, %v34376_v35  ;;  %v3008_v15 = vpop.permute.xlu0 %3007 }
 0x46c   : > { %28859 = vmatpush3.bf16.msra.mxu1 %v34311_v30  ;;  %v3181_v4 = vand.u32 4294901760, %v3180_v1  ;;  %v38401_v24 = vand.u32 4294901760, %v34378_v63  ;;  %v34387_v48 = vsub.f32 %v479_v39, %v3058_v59  ;;  %v38402_v62 = vand.u32 4294901760, %v34389_v2 }
 0x46d   : > { %28860 = vmatprep.subr.bf16.mxu1 %v38695_v61  ;;  %v3188_v27 = vand.u32 4294901760, %v3187_v45  ;;  %v3194_v50 = vsub.f32 %v34376_v35, %v38403_v28  ;;  %v3009_v7 = vrot.slane %v3008_v15, 4 }
 0x46e   : > { %v3201_v5 = vsub.f32 %v34378_v63, %v38401_v24  ;;  %v38400_v54 = vand.u32 4294901760, %v34387_v48  ;;  %v3215_v39 = vsub.f32 %v34389_v2, %v38402_v62  ;;  %v34416_v24 = vpack.c.bf16 %v34362_v19, %v34360_v25 }
 0x46f   : > { %v34382_v43 = vpack.c.bf16 %v3188_v27, %v3181_v4  ;;  %v3195_v0 = vand.u32 4294901760, %v3194_v50  ;;  %v34408_v27 = vpack.c.bf16 %v34338_v53, %v34336_v22  ;;  %v34412_v50 = vpack.c.bf16 %v34347_v58, %v34345_v29 }
 0x470   : > { %28862 = vmatpush3.bf16.msra.mxu1 %v34316_v11  ;;  %v3202_v1 = vand.u32 4294901760, %v3201_v5  ;;  %v3208_v45 = vsub.f32 %v34387_v48, %v38400_v54  ;;  %v3216_v13 = vand.u32 4294901760, %v3215_v39  ;;  %38769 = vst [vmem:[#allocation90_spill] sm:$0xff] %v34416_v24 }
 0x471   : > { %28863 = vmatprep.subr.bf16.mxu1 %v38695_v61  ;;  %38767 = vst [vmem:[#allocation88_spill] sm:$0xff] %v34408_v27  ;;  %38768 = vst [vmem:[#allocation89_spill] sm:$0xff] %v34412_v50 }
 0x472   : > { %v34402_v32 = vpack.c.bf16 %v3202_v1, %v3195_v0  ;;  %v3209_v59 = vand.u32 4294901760, %v3208_v45  ;;  %v34420_v0 = vpack.c.bf16 %v34378_v63, %v34376_v35  ;;  %v34424_v1 = vpack.c.bf16 %v34389_v2, %v34387_v48 }
 0x474   : > { %28865 = vmatpush3.bf16.msra.mxu1 %v34320_v20  ;;  %v34404_v4 = vpack.c.bf16 %v3216_v13, %v3209_v59  ;;  %38770 = vst [vmem:[#allocation91_spill] sm:$0xff] %v34420_v0  ;;  %38771 = vst [vmem:[#allocation92_spill] sm:$0xff] %v34424_v1  ;;  %v38772_v13 = vand.u32 4294901760, %v34274_v40 }
 0x475   : > { %28866 = vmatprep.subr.bf16.mxu1 %v38695_v61 }
 0x476   : > { %38766 = vst [vmem:[#allocation87_spill] sm:$0xff] %v34404_v4  ;;  %v34429_v62 = vsub.f32 %v34274_v40, %v38772_v13  ;;  %v38775_v40 = vand.u32 4294901760, %v34282_v34 }
 0x478   : > { %28868 = vmatpush3.bf16.msra.mxu1 %v34324_v49  ;;  %v38413_v55 = vand.u32 4294901760, %v34429_v62  ;;  %v34447_v13 = vsub.f32 %v34282_v34, %v38775_v40 }
 0x479   : > { %28869 = vmatprep.subr.bf16.mxu1 %v38695_v61 }
 0x47a   : > { %v38778_v56 = vand.u32 4294901760, %v34447_v13 }
 0x47c   : > { %28871 = vmatpush3.bf16.msra.mxu1 %v34328_v6 }
 0x47d   : > { %28872 = vmatprep.subr.bf16.mxu1 %v38695_v61 }
 0x480   : > { %28874 = vmatpush3.bf16.msra.mxu1 %v34332_v23 }
 0x481   : > { %28875 = vmatprep.subr.bf16.mxu1 %v38695_v61 }
 0x4fc   : > { %v2597_v5 = vpop.f32.mrb[6].mxu0 }
 0x4fd   : > { %v23280_v54 = vpop.f32.mrb[7].mxu0 }
 0x4fe   : > { %v38773_v54 = vand.u32 4294901760, %v34276_v41 }
 0x500   : > { %v34434_v28 = vsub.f32 %v34276_v41, %v38773_v54  ;;  %v38776_v54 = vand.u32 4294901760, %v34286_v26 }
 0x502   : > { %v34463_v34 = vsub.f32 %v34286_v26, %v38776_v54  ;;  %v3131_v26 = vsub.f32 %v34447_v13, %v38778_v56 }
 0x504   : > { %v3137_v54 = vand.u32 4294901760, %v34463_v34  ;;  %v3132_v10 = vand.u32 4294901760, %v3131_v26 }
 0x536   : > { %v2996_v45 = vpop.f32.mrb[0].mxu1 }
 0x537   : > { %v32091_v39 = vadd.f32 %v2996_v45, %v2597_v5  ;;  %v23420_v59 = vpop.f32.mrb[1].mxu1  ;;  %v38412_v5 = vand.u32 4294901760, %v34434_v28  ;;  %v38774_v45 = vand.u32 4294901760, %v34278_v21 }
 0x539   : > { %v3001_v3 = vrot.slane %v32091_v39, 4  ;;  %v34442_v59 = vsub.f32 %v34278_v21, %v38774_v45 }
 0x53b   : > { %v3003_v16 = vadd.f32 %v3001_v3, %v34133_v14  ;;  %v3110_v3 = vsub.f32 %v34429_v62, %v38413_v55  ;;  %v3117_v14 = vsub.f32 %v34434_v28, %v38412_v5  ;;  %v38418_v21 = vand.u32 4294901760, %v34442_v59 }
 0x53d   : > { %v34449_v41 = vadd.f32 %v3009_v7, %v3003_v16  ;;  %v38777_v16 = vand.u32 4294901760, %v34288_v36  ;;  %v3111_v5 = vand.u32 4294901760, %v3110_v3  ;;  %v3118_v55 = vand.u32 4294901760, %v3117_v14 }
 0x53e   : > { %v3124_v39 = vsub.f32 %v34442_v59, %v38418_v21  ;;  %v3138_v21 = vsub.f32 %v34463_v34, %v3137_v54 }
 0x53f   : > { %v3013_v15 = vrot.slane %v34449_v41, 4  ;;  %v34468_v7 = vsub.f32 %v34288_v36, %v38777_v16  ;;  %v34487_v3 = vpack.c.bf16 %v3118_v55, %v3111_v5  ;;  %v38782_v5 = vand.u32 4294901760, %v34429_v62 }
 0x540   : > { %v3125_v14 = vand.u32 4294901760, %v3124_v39  ;;  %v3139_v51 = vand.u32 4294901760, %v3138_v21  ;;  %v38783_v21 = vand.u32 4294901760, %v34434_v28 }
 0x541   : > { %v34470_v45 = vand.u32 4294901760, %v3013_v15  ;;  %v3144_v36 = vand.u32 4294901760, %v34468_v7 }
 0x542   : > { %v34496_v33 = vpack.c.bf16 %v3132_v10, %v3125_v14  ;;  %v34525_v10 = vpack.c.bf16 %v34447_v13, %v34442_v59  ;;  %v34572_v39 = vpack.c.bf16 %v38783_v21, %v38782_v5 }
 0x543   : > { %v34473_v40 = vsub.f32 %v3013_v15, %v34470_v45  ;;  %v3145_v56 = vsub.f32 %v34468_v7, %v3144_v36 }
 0x544   : > { %38780 = vst [vmem:[#allocation94_spill] sm:$0xff] %v34525_v10  ;;  %38784 = vst [vmem:[#allocation96_spill] sm:$0xff] %v34572_v39 }
 0x545   : > { %v38425_v16 = vand.u32 4294901760, %v34473_v40  ;;  %v38785_v26 = vand.u32 4294901760, %v34473_v40 }
 0x547   : > { %v3099_v15 = vsub.f32 %v34473_v40, %v38425_v16  ;;  %v3146_v16 = vand.u32 4294901760, %v3145_v56 }
 0x549   : > { %v3100_v12 = vand.u32 4294901760, %v3099_v15  ;;  %v34502_v55 = vpack.c.bf16 %v3146_v16, %v3139_v51  ;;  %v34518_v51 = vpack.c.bf16 %v34434_v28, %v34429_v62  ;;  %v38786_v16 = vand.u32 4294901760, %v34442_v59 }
 0x54a   : > { %v38787_v15 = vand.u32 4294901760, %v34447_v13  ;;  %v34592_v28 = vpack.c.bf16 %v3144_v36, %v3137_v54  ;;  %v38790_v62 = vand.u32 4294901760, %v34336_v22  ;;  %v38791_v59 = vand.u32 4294901760, %v34338_v53 }
 0x54b   : > { %23454 = vmatmul.mubr.f32.vlgmr.msra.gmra.mrb[2].mxu1 %v3100_v12  ;;  %38779 = vst [vmem:[#allocation93_spill] sm:$0xff] %v34518_v51  ;;  %v34533_v12 = vpack.c.bf16 %v34468_v7, %v34463_v34  ;;  %v38793_v34 = vand.u32 4294901760, %v34345_v29  ;;  %v38794_v7 = vand.u32 4294901760, %v34347_v58  ;;  %v38796_v22 = vand.u32 4294901760, %v34360_v25 }
 0x54c   : > { %28877 = vmatpush3.bf16.msra.mxu1 %v34487_v3  ;;  %23488 = vmatprep.mubr.msk.f32.mxu1 %vm32853_vm0, %v33856_v38  ;;  %v34582_v14 = vpack.c.bf16 %v38787_v15, %v38786_v16  ;;  %38789 = vst [vmem:[#allocation98_spill] sm:$0xff] %v34592_v28  ;;  %v34600_v13 = vpack.c.bf16 %v38791_v59, %v38790_v62  ;;  %v38797_v53 = vand.u32 4294901760, %v34362_v19  ;;  %v38799_v29 = vand.u32 4294901760, %v34376_v35 }
 0x54d   : > { %28878 = vmatprep.subr.bf16.mxu1 %v38695_v61  ;;  %38781 = vst [vmem:[#allocation95_spill] sm:$0xff] %v34533_v12  ;;  %v38800_v58 = vand.u32 4294901760, %v34378_v63  ;;  %v38802_v25 = vand.u32 4294901760, %v34387_v48  ;;  %v38803_v19 = vand.u32 4294901760, %v34389_v2 }
 0x54e   : > { %38788 = vst [vmem:[#allocation97_spill] sm:$0xff] %v34582_v14  ;;  %38792 = vst [vmem:[#allocation99_spill] sm:$0xff] %v34600_v13  ;;  %v34616_v54 = vpack.c.bf16 %v38797_v53, %v38796_v22  ;;  %v19941_v53 = vld [vmem:[%s38251_s3] ss:$0 sm:$0xff] }
 0x54f   : > { %v34624_v36 = vpack.c.bf16 %v38800_v58, %v38799_v29  ;;  %v34632_v56 = vpack.c.bf16 %v38803_v19, %v38802_v25  ;;  %v19942_v58 = vld [vmem:[%s38252_s4] ss:$0 sm:$0xff] }
 0x550   : > { %28880 = vmatpush3.bf16.msra.mxu1 %v34496_v33  ;;  %38798 = vst [vmem:[#allocation101_spill] sm:$0xff] %v34616_v54 }
 0x551   : > { %28881 = vmatprep.subr.bf16.mxu1 %v38695_v61  ;;  %38801 = vst [vmem:[#allocation102_spill] sm:$0xff] %v34624_v36  ;;  %38804 = vst [vmem:[#allocation103_spill] sm:$0xff] %v34632_v56 }
 0x554   : > { %28883 = vmatpush3.bf16.msra.mxu1 %v34502_v55 }
 0x555   : > { %28884 = vmatprep.subr.bf16.mxu1 %v38695_v61 }
 0x558   : > { %28886 = vmatpush3.bf16.msra.mxu1 %v34364_v17 }
 0x559   : > { %28887 = vmatprep.subr.bf16.mxu1 %v38695_v61 }
 0x55c   : > { %28889 = vmatpush3.bf16.msra.mxu1 %v34368_v8 }
 0x55d   : > { %28890 = vmatprep.subr.bf16.mxu1 %v38695_v61 }
 0x560   : > { %28892 = vmatpush3.bf16.msra.mxu1 %v34382_v43 }
 0x561   : > { %28893 = vmatprep.subr.bf16.mxu1 %v38695_v61 }
 0x564   : > { %28895 = vmatpush3.bf16.msra.mxu1 %v34402_v32 }
 0x565   : > { %28896 = vmatprep.subr.bf16.mxu1 %v38695_v61 }
 0x568   : > { %28898 = vmatpush3.bf16.msra.mxu1 %v34404_v4 }
 0x569   : > { %28899 = vmatprep.subr.bf16.mxu1 %v38695_v61 }
 0x56b   : > { %23489 = vmatmul.mubr.f32.vlgmr.msra.gmra.mrb[2].mxu1 %v34470_v45 }
 0x56c   : > { %28901 = vmatpush3.bf16.msra.mxu1 %v34518_v51  ;;  %23523 = vmatprep.mubr.msk.f32.mxu1 %vm32853_vm0, %v33856_v38  ;;  %v34550_v38 = vld [vmem:[#allocation2] sm:$0xff] }
 0x56d   : > { %28902 = vmatprep.subr.bf16.mxu1 %v38695_v61 }
 0x570   : > { %28904 = vmatpush3.bf16.msra.mxu1 %v34525_v10 }
 0x571   : > { %28905 = vmatprep.subr.bf16.mxu1 %v38695_v61 }
 0x574   : > { %28907 = vmatpush3.bf16.msra.mxu1 %v34533_v12 }
 0x575   : > { %28908 = vmatprep.subr.bf16.mxu1 %v38695_v61 }
 0x578   : > { %28910 = vmatpush3.bf16.msra.mxu1 %v34408_v27 }
 0x579   : > { %28911 = vmatprep.subr.bf16.mxu1 %v38695_v61 }
 0x57c   : > { %28913 = vmatpush3.bf16.msra.mxu1 %v34412_v50 }
 0x57d   : > { %28914 = vmatprep.subr.bf16.mxu1 %v38695_v61 }
 0x580   : > { %28916 = vmatpush3.bf16.msra.mxu1 %v34416_v24 }
 0x581   : > { %28917 = vmatprep.subr.bf16.mxu1 %v38695_v61 }
 0x584   : > { %28919 = vmatpush3.bf16.msra.mxu1 %v34420_v0 }
 0x585   : > { %28920 = vmatprep.subr.bf16.mxu1 %v38695_v61 }
 0x588   : > { %28922 = vmatpush3.bf16.msra.mxu1 %v34424_v1 }
 0x589   : > { %28923 = vmatprep.subr.bf16.mxu1 %v38695_v61 }
 0x58b   : > { %23524 = vmatmul.mubr.f32.vlgmr.msra.gmra.mrb[2].mxu1 %v34473_v40  ;;  %v34608_v40 = vpack.c.bf16 %v38794_v7, %v38793_v34 }
 0x58c   : > { %28925 = vmatpush3.bf16.msra.mxu1 %v34294_v31  ;;  %23558 = vmatprep.mubr.msk.f32.mxu1 %vm32853_vm0, %v34550_v38 }
 0x58d   : > { %28926 = vmatprep.subr.bf16.mxu1 %v38695_v61  ;;  %38795 = vst [vmem:[#allocation100_spill] sm:$0xff] %v34608_v40 }
 0x590   : > { %28928 = vmatpush3.bf16.msra.mxu1 %v34301_v9 }
 0x591   : > { %28929 = vmatprep.subr.bf16.mxu1 %v38695_v61 }
 0x594   : > { %28931 = vmatpush3.bf16.msra.mxu1 %v34311_v30 }
 0x595   : > { %28932 = vmatprep.subr.bf16.mxu1 %v38695_v61 }
 0x598   : > { %28934 = vmatpush3.bf16.msra.mxu1 %v34316_v11 }
 0x599   : > { %28935 = vmatprep.subr.bf16.mxu1 %v38695_v61 }
 0x59c   : > { %28937 = vmatpush3.bf16.msra.mxu1 %v34320_v20 }
 0x59d   : > { %28938 = vmatprep.subr.bf16.mxu1 %v38695_v61 }
 0x5a0   : > { %28940 = vmatpush3.bf16.msra.mxu1 %v34324_v49 }
 0x5a1   : > { %28941 = vmatprep.subr.bf16.mxu1 %v38695_v61 }
 0x5a4   : > { %28943 = vmatpush3.bf16.msra.mxu1 %v34328_v6 }
 0x5a5   : > { %28944 = vmatprep.subr.bf16.mxu1 %v38695_v61 }
 0x5a8   : > { %28946 = vmatpush3.bf16.msra.mxu1 %v34332_v23 }
 0x5a9   : > { %28947 = vmatprep.subr.bf16.mxu1 %v38695_v61 }
 0x5ab   : > { %23559 = vmatmul.mubr.f32.vlgmr.msra.gmra.mrb[2].mxu1 %v38785_v26 }
 0x5ac   : > { %28949 = vmatpush3.bf16.msra.mxu1 %v34572_v39  ;;  %23593 = vmatprep.mubr.msk.f32.mxu1 %vm32853_vm0, %v34550_v38 }
 0x5ad   : > { %28950 = vmatprep.subr.bf16.mxu1 %v38695_v61 }
 0x5b0   : > { %28952 = vmatpush3.bf16.msra.mxu1 %v34582_v14 }
 0x5b1   : > { %28953 = vmatprep.subr.bf16.mxu1 %v38695_v61 }
 0x5b4   : > { %28955 = vmatpush3.bf16.msra.mxu1 %v34592_v28 }
 0x5b5   : > { %28956 = vmatprep.subr.bf16.mxu1 %v38695_v61 }
 0x5b8   : > { %28958 = vmatpush3.bf16.msra.mxu1 %v34600_v13 }
 0x5b9   : > { %28959 = vmatprep.subr.bf16.mxu1 %v38695_v61 }
 0x5bc   : > { %28961 = vmatpush3.bf16.msra.mxu1 %v34608_v40 }
 0x5bd   : > { %28962 = vmatprep.subr.bf16.mxu1 %v38695_v61 }
 0x5c0   : > { %28964 = vmatpush3.bf16.msra.mxu1 %v34616_v54 }
 0x5c1   : > { %28965 = vmatprep.subr.bf16.mxu1 %v38695_v61 }
 0x5c4   : > { %28967 = vmatpush3.bf16.msra.mxu1 %v34624_v36 }
 0x5c5   : > { %28968 = vmatprep.subr.bf16.mxu1 %v38695_v61 }
 0x5c8   : > { %28970 = vmatpush3.bf16.msra.mxu1 %v34632_v56 }
 0x5c9   : > { %28971 = vmatprep.subr.bf16.mxu1 %v38695_v61 }
 0x5cb   : > { %23594 = vmatmul.mubr.f32.vlgmr.msra.gmra.mrb[2].mxu1 %v34470_v45 }
 0x5cc   : > { %28973 = vmatpush3.bf16.msra.mxu1 %v34294_v31  ;;  %23628 = vmatprep.mubr.msk.f32.mxu1 %vm32853_vm0, %v34550_v38 }
 0x5cd   : > { %28974 = vmatprep.subr.bf16.mxu1 %v38695_v61 }
 0x5d0   : > { %28976 = vmatpush3.bf16.msra.mxu1 %v34301_v9 }
 0x5d1   : > { %28977 = vmatprep.subr.bf16.mxu1 %v38695_v61 }
 0x5d4   : > { %28979 = vmatpush3.bf16.msra.mxu1 %v34311_v30 }
 0x5d5   : > { %28980 = vmatprep.subr.bf16.mxu1 %v38695_v61 }
 0x5d8   : > { %28982 = vmatpush3.bf16.msra.mxu1 %v34316_v11 }
 0x5d9   : > { %28983 = vmatprep.subr.bf16.mxu1 %v38695_v61 }
 0x5dc   : > { %28985 = vmatpush3.bf16.msra.mxu1 %v34320_v20 }
 0x5dd   : > { %28986 = vmatprep.subr.bf16.mxu1 %v38695_v61 }
 0x5e0   : > { %28988 = vmatpush3.bf16.msra.mxu1 %v34324_v49 }
 0x5e1   : > { %28989 = vmatprep.subr.bf16.mxu1 %v38695_v61 }
 0x5e4   : > { %28991 = vmatpush3.bf16.msra.mxu1 %v34328_v6 }
 0x5e5   : > { %28992 = vmatprep.subr.bf16.mxu1 %v38695_v61 }
 0x5e8   : > { %28994 = vmatpush3.bf16.msra.mxu1 %v34332_v23 }
 0x5e9   : > { %28995 = vmatprep.subr.bf16.mxu1 %v38695_v61 }
 0x5eb   : > { %23629 = vmatmul.mubr.f32.vlgmr.msra.gmra.mrb[2].mxu1 %v34470_v45 }
 0x5ec   : > { %28997 = vmatpush3.bf16.msra.mxu1 %v34294_v31  ;;  %23663 = vmatprep.mubr.msk.f32.mxu1 %vm32853_vm0, %v34550_v38 }
 0x5ed   : > { %28998 = vmatprep.subr.bf16.mxu1 %v38695_v61 }
 0x5f0   : > { %29000 = vmatpush3.bf16.msra.mxu1 %v34301_v9 }
 0x5f1   : > { %29001 = vmatprep.subr.bf16.mxu1 %v38695_v61 }
 0x5f4   : > { %29003 = vmatpush3.bf16.msra.mxu1 %v34311_v30 }
 0x5f5   : > { %29004 = vmatprep.subr.bf16.mxu1 %v38695_v61 }
 0x5f8   : > { %29006 = vmatpush3.bf16.msra.mxu1 %v34316_v11 }
 0x5f9   : > { %29007 = vmatprep.subr.bf16.mxu1 %v38695_v61 }
 0x5fc   : > { %29009 = vmatpush3.bf16.msra.mxu1 %v34320_v20 }
 0x5fd   : > { %29010 = vmatprep.subr.bf16.mxu1 %v38695_v61 }
 0x600   : > { %29012 = vmatpush3.bf16.msra.mxu1 %v34324_v49 }
 0x601   : > { %29013 = vmatprep.subr.bf16.mxu1 %v38695_v61 }
 0x604   : > { %29015 = vmatpush3.bf16.msra.mxu1 %v34328_v6 }
 0x605   : > { %29016 = vmatprep.subr.bf16.mxu1 %v38695_v61 }
 0x608   : > { %29018 = vmatpush3.bf16.msra.mxu1 %v34332_v23 }
 0x609   : > { %29019 = vmatprep.subr.bf16.mxu1 %v38695_v61 }
 0x6be   : > { %v3652_v2 = vpop.f32.mrb[2].mxu1 }
 0x6bf   : > { %v3657_v35 = vrot.slane %v3652_v2, 4  ;;  %v23630_v63 = vpop.f32.mrb[3].mxu1  ;;  %v4346_v2 = vld [vmem:[#allocation3 + $0x18] sm:$0xff] }
 0x6c0   : > { %v4331_v63 = vpop.permute.xlu0 %4330 }
 0x6c1   : > { %v34676_v48 = vsub.f32 %v34449_v41, %v3657_v35 }
 0x6c3   : > { %v3660_v45 = vmul.f32 %v34676_v48, %v34676_v48 }
 0x6c5   : > { %v3662_v5 = vrot.slane %v3660_v45, 4  ;;  %v4350_v45 = vsel %vm487_vm1, %v4346_v2, 0 }
 0x6c7   : > { %v34680_v21 = vand.u32 4294901760, %v3662_v5 }
 0x6c9   : > { %v3746_v26 = vsub.f32 %v3662_v5, %v34680_v21 }
 0x6cb   : > { %v3747_v16 = vand.u32 4294901760, %v3746_v26 }
 0x6cd   : > { %v3748_v15 = vsub.f32 %v3746_v26, %v3747_v16 }
 0x6cf   : > { %v3749_v62 = vand.u32 4294901760, %v3748_v15  ;;  %v4362_v15 = vand.u32 4294901760, %v34550_v38 }
 0x6d1   : > { %23664 = vmatmul.mubr.f32.vlgmr.msra.gmra.mrb[4].mxu1 %v3749_v62 }
 0x6d2   : > { %29021 = vmatpush3.bf16.msra.mxu1 %v34487_v3  ;;  %23698 = vmatprep.mubr.msk.f32.mxu1 %vm32853_vm0, %v34550_v38 }
 0x6d3   : > { %29022 = vmatprep.subr.bf16.mxu1 %v38695_v61 }
 0x6d6   : > { %29024 = vmatpush3.bf16.msra.mxu1 %v34496_v33 }
 0x6d7   : > { %29025 = vmatprep.subr.bf16.mxu1 %v38695_v61 }
 0x6da   : > { %29027 = vmatpush3.bf16.msra.mxu1 %v34502_v55 }
 0x6db   : > { %29028 = vmatprep.subr.bf16.mxu1 %v38695_v61 }
 0x6de   : > { %29030 = vmatpush3.bf16.msra.mxu1 %v34364_v17 }
 0x6df   : > { %29031 = vmatprep.subr.bf16.mxu1 %v38695_v61 }
 0x6e2   : > { %29033 = vmatpush3.bf16.msra.mxu1 %v34368_v8 }
 0x6e3   : > { %29034 = vmatprep.subr.bf16.mxu1 %v38695_v61 }
 0x6e6   : > { %29036 = vmatpush3.bf16.msra.mxu1 %v34382_v43 }
 0x6e7   : > { %29037 = vmatprep.subr.bf16.mxu1 %v38695_v61 }
 0x6ea   : > { %29039 = vmatpush3.bf16.msra.mxu1 %v34402_v32 }
 0x6eb   : > { %29040 = vmatprep.subr.bf16.mxu1 %v38695_v61 }
 0x6ee   : > { %29042 = vmatpush3.bf16.msra.mxu1 %v34404_v4 }
 0x6ef   : > { %29043 = vmatprep.subr.bf16.mxu1 %v38695_v61 }
 0x6f1   : > { %23699 = vmatmul.mubr.f32.vlgmr.msra.gmra.mrb[4].mxu1 %v34680_v21 }
 0x6f2   : > { %29045 = vmatpush3.bf16.msra.mxu1 %v34518_v51  ;;  %23733 = vmatprep.mubr.msk.f32.mxu1 %vm32853_vm0, %v34550_v38 }
 0x6f3   : > { %29046 = vmatprep.subr.bf16.mxu1 %v38695_v61 }
 0x6f6   : > { %29048 = vmatpush3.bf16.msra.mxu1 %v34525_v10 }
 0x6f7   : > { %29049 = vmatprep.subr.bf16.mxu1 %v38695_v61 }
 0x6fa   : > { %29051 = vmatpush3.bf16.msra.mxu1 %v34533_v12 }
 0x6fb   : > { %29052 = vmatprep.subr.bf16.mxu1 %v38695_v61 }
 0x6fe   : > { %29054 = vmatpush3.bf16.msra.mxu1 %v34408_v27 }
 0x6ff   : > { %29055 = vmatprep.subr.bf16.mxu1 %v38695_v61 }
 0x702   : > { %29057 = vmatpush3.bf16.msra.mxu1 %v34412_v50 }
 0x703   : > { %29058 = vmatprep.subr.bf16.mxu1 %v38695_v61 }
 0x706   : > { %29060 = vmatpush3.bf16.msra.mxu1 %v34416_v24 }
 0x707   : > { %29061 = vmatprep.subr.bf16.mxu1 %v38695_v61 }
 0x70a   : > { %29063 = vmatpush3.bf16.msra.mxu1 %v34420_v0 }
 0x70b   : > { %29064 = vmatprep.subr.bf16.mxu1 %v38695_v61 }
 0x70e   : > { %29066 = vmatpush3.bf16.msra.mxu1 %v34424_v1 }
 0x70f   : > { %29067 = vmatprep.subr.bf16.mxu1 %v38695_v61 }
 0x711   : > { %23734 = vmatmul.mubr.f32.vlgmr.msra.gmra.mrb[4].mxu1 %v3746_v26 }
 0x712   : > { %29069 = vmatpush3.bf16.msra.mxu1 %v34294_v31  ;;  %23768 = vmatprep.mubr.msk.f32.mxu1 %vm32853_vm0, %v34550_v38 }
 0x713   : > { %29070 = vmatprep.subr.bf16.mxu1 %v38695_v61 }
 0x716   : > { %29072 = vmatpush3.bf16.msra.mxu1 %v34301_v9 }
 0x717   : > { %29073 = vmatprep.subr.bf16.mxu1 %v38695_v61 }
 0x71a   : > { %29075 = vmatpush3.bf16.msra.mxu1 %v34311_v30 }
 0x71b   : > { %29076 = vmatprep.subr.bf16.mxu1 %v38695_v61 }
 0x71e   : > { %29078 = vmatpush3.bf16.msra.mxu1 %v34316_v11 }
 0x71f   : > { %29079 = vmatprep.subr.bf16.mxu1 %v38695_v61 }
 0x722   : > { %29081 = vmatpush3.bf16.msra.mxu1 %v34320_v20 }
 0x723   : > { %29082 = vmatprep.subr.bf16.mxu1 %v38695_v61 }
 0x726   : > { %29084 = vmatpush3.bf16.msra.mxu1 %v34324_v49 }
 0x727   : > { %29085 = vmatprep.subr.bf16.mxu1 %v38695_v61 }
 0x72a   : > { %29087 = vmatpush3.bf16.msra.mxu1 %v34328_v6 }
 0x72b   : > { %29088 = vmatprep.subr.bf16.mxu1 %v38695_v61 }
 0x72e   : > { %29090 = vmatpush3.bf16.msra.mxu1 %v34332_v23 }
 0x72f   : > { %29091 = vmatprep.subr.bf16.mxu1 %v38695_v61 }
 0x731   : > { %23769 = vmatmul.mubr.f32.vlgmr.msra.gmra.mrb[4].mxu1 %v3747_v16  ;;  %v34786_v16 = vand.u32 4294901760, %v4350_v45 }
 0x732   : > { %29093 = vmatpush3.bf16.msra.mxu1 %v34572_v39  ;;  %23803 = vmatprep.mubr.msk.f32.mxu1 %vm32853_vm0, %v34550_v38 }
 0x733   : > { %29094 = vmatprep.subr.bf16.mxu1 %v38695_v61 }
 0x736   : > { %29096 = vmatpush3.bf16.msra.mxu1 %v34582_v14 }
 0x737   : > { %29097 = vmatprep.subr.bf16.mxu1 %v38695_v61 }
 0x73a   : > { %29099 = vmatpush3.bf16.msra.mxu1 %v34592_v28 }
 0x73b   : > { %29100 = vmatprep.subr.bf16.mxu1 %v38695_v61 }
 0x73e   : > { %29102 = vmatpush3.bf16.msra.mxu1 %v34600_v13 }
 0x73f   : > { %29103 = vmatprep.subr.bf16.mxu1 %v38695_v61 }
 0x742   : > { %29105 = vmatpush3.bf16.msra.mxu1 %v34608_v40 }
 0x743   : > { %29106 = vmatprep.subr.bf16.mxu1 %v38695_v61 }
 0x746   : > { %29108 = vmatpush3.bf16.msra.mxu1 %v34616_v54 }
 0x747   : > { %29109 = vmatprep.subr.bf16.mxu1 %v38695_v61 }
 0x74a   : > { %29111 = vmatpush3.bf16.msra.mxu1 %v34624_v36 }
 0x74b   : > { %29112 = vmatprep.subr.bf16.mxu1 %v38695_v61 }
 0x74e   : > { %29114 = vmatpush3.bf16.msra.mxu1 %v34632_v56 }
 0x74f   : > { %29115 = vmatprep.subr.bf16.mxu1 %v38695_v61 }
 0x751   : > { %23804 = vmatmul.mubr.f32.vlgmr.msra.gmra.mrb[4].mxu1 %v34680_v21 }
 0x752   : > { %29117 = vmatpush3.bf16.msra.mxu1 %v34294_v31  ;;  %23838 = vmatprep.mubr.msk.f32.mxu1 %vm32853_vm0, %v34550_v38 }
 0x753   : > { %29118 = vmatprep.subr.bf16.mxu1 %v38695_v61 }
 0x756   : > { %29120 = vmatpush3.bf16.msra.mxu1 %v34301_v9 }
 0x757   : > { %29121 = vmatprep.subr.bf16.mxu1 %v38695_v61 }
 0x75a   : > { %29123 = vmatpush3.bf16.msra.mxu1 %v34311_v30 }
 0x75b   : > { %29124 = vmatprep.subr.bf16.mxu1 %v38695_v61 }
 0x75e   : > { %29126 = vmatpush3.bf16.msra.mxu1 %v34316_v11 }
 0x75f   : > { %29127 = vmatprep.subr.bf16.mxu1 %v38695_v61 }
 0x762   : > { %29129 = vmatpush3.bf16.msra.mxu1 %v34320_v20 }
 0x763   : > { %29130 = vmatprep.subr.bf16.mxu1 %v38695_v61 }
 0x766   : > { %29132 = vmatpush3.bf16.msra.mxu1 %v34324_v49 }
 0x767   : > { %29133 = vmatprep.subr.bf16.mxu1 %v38695_v61 }
 0x76a   : > { %29135 = vmatpush3.bf16.msra.mxu1 %v34328_v6 }
 0x76b   : > { %29136 = vmatprep.subr.bf16.mxu1 %v38695_v61 }
 0x76e   : > { %29138 = vmatpush3.bf16.msra.mxu1 %v34332_v23 }
 0x76f   : > { %29445 = vmatprep.subr.bf16.mxu1 %v38695_v61 }
 0x771   : > { %23839 = vmatmul.mubr.f32.vlgmr.msra.gmra.mrb[4].mxu1 %v34680_v21  ;;  %v4347_v21 = vld [vmem:[#allocation3 + $0x20] sm:$0xff] }
 0x772   : > { %24383 = vmatprep.mubr.msk.f32.mxu1 %vm32853_vm0, %v34550_v38 }
 0x844   : > { %v4301_v41 = vpop.f32.mrb[4].mxu1 }
 0x845   : > { %v32092_v59 = vadd.f32 1e-05, %v4301_v41  ;;  %v23840_v34 = vpop.f32.mrb[5].mxu1  ;;  %v4348_v41 = vld [vmem:[#allocation3 + $0x28] sm:$0xff] }
 0x846   : > { %v34791_v34 = vsub.f32 %v4350_v45, %v34786_v16 }
 0x847   : > { %32613 = vrsqrt.f32 %v32092_v59  ;;  %v4344_v59 = vld [vmem:[#allocation2 + $0x10] sm:$0xf] }
 0x851   : > { %v32614_v7 = vpop.eup %32613 }
 0x852   : > { %v4307_v22 = vrot.slane %v32614_v7, 4 }
 0x854   : > { %v4309_v29 = vmul.f32 %v4307_v22, %v34676_v48  ;;  %v4353_v48 = vsel %vm487_vm1, %v4347_v21, 0  ;;  %v34796_v22 = vsub.f32 %v34550_v38, %v4362_v15 }
 0x855   : > { %v34793_v7 = vand.u32 4294901760, %v4353_v48 }
 0x856   : > { %v4317_v25 = vmul.f32 %v19941_v53, %v4309_v29  ;;  %v4356_v53 = vsel %vm487_vm1, %v4348_v41, 0  ;;  %v4359_v29 = vsel %vm497_vm2, %v4344_v59, 0 }
 0x857   : > { %v34806_v2 = vand.u32 4294901760, %v4359_v29 }
 0x858   : > { %v4325_v19 = vadd.f32 %v19942_v58, %v4317_v25  ;;  %v38432_v58 = vand.u32 4294901760, %v34791_v34  ;;  %v34802_v25 = vsub.f32 %v4353_v48, %v34793_v7 }
 0x85a   : > { %v4334_v35 = vrot.slane %v4325_v19, 4  ;;  %vm4326_vm3 = vcmp.ge.f32.partialorder %v4325_v19, 0.0  ;;  %v4432_v21 = vsub.f32 %v34791_v34, %v38432_v58 }
 0x85c   : > { %v4336_v5 = vmul.f32 %v4334_v35, %v4331_v63  ;;  %v4462_v35 = vand.u32 4294901760, %v34796_v22 }
 0x85e   : > { %v4338_v26 = vrot.slane %v4336_v5, 4  ;;  %v34810_v5 = vsub.f32 %v4359_v29, %v34806_v2  ;;  %v4463_v59 = vsub.f32 %v34796_v22, %v4462_v35  ;;  %v4433_v29 = vand.u32 4294901760, %v4432_v21 }
 0x860   : > { %v4340_v62 = vsel %vm4326_vm3, %v4325_v19, %v4338_v26  ;;  %v34804_v19 = vand.u32 4294901760, %v4356_v53  ;;  %v4441_v26 = vand.u32 4294901760, %v34802_v25  ;;  %v4476_v36 = vand.u32 4294901760, %v34810_v5 }
 0x861   : > { %4341 = vst [vmem:[#allocation2 + $0x8] sm:$0xf0] %v4340_v62  ;;  %v4464_v40 = vand.u32 4294901760, %v4463_v59  ;;  %v38815_v59 = vld [vmem:[#allocation32_spill] sm:$0xff] }
 0x862   : > { %v4450_v48 = vsub.f32 %v4356_v53, %v34804_v19  ;;  %v4442_v54 = vsub.f32 %v34802_v25, %v4441_v26  ;;  %v4477_v53 = vsub.f32 %v34810_v5, %v4476_v36 }
 0x864   : > { %v4451_v58 = vand.u32 4294901760, %v4450_v48  ;;  %v4478_v21 = vand.u32 4294901760, %v4477_v53  ;;  %v38818_v53 = vld [vmem:[#allocation43_spill] sm:$0xff] }
 0x868   : > { %v4343_v63 = vld [vmem:[#allocation2 + $0x8] sm:$0xff] }
 0x869   : > { %v4365_v45 = vand.u32 4294901760, %v4343_v63 }
 0x86b   : > { %v34817_v62 = vpack.c.bf16 %v4365_v45, %v4362_v15  ;;  %v4468_v41 = vsub.f32 %v4343_v63, %v4365_v45  ;;  %v4443_v63 = vand.u32 4294901760, %v4442_v54  ;;  %v4452_v45 = vsub.f32 %v4450_v48, %v4451_v58  ;;  %v38807_v54 = vld [vmem:[#allocation30_spill] sm:$0xff] }
 0x86d   : > { %29141 = vmatpush3.bf16.msra.mxu0 %v34817_v62  ;;  %v4469_v56 = vand.u32 4294901760, %v4468_v41  ;;  %v4453_v14 = vand.u32 4294901760, %v4452_v45  ;;  %v38820_v45 = vld [vmem:[#allocation45_spill] sm:$0xff] }
 0x86e   : > { %23845 = vmatprep.subr.mxu0 %v34550_v38 }
 0x86f   : > { %v4470_v13 = vsub.f32 %v4468_v41, %v4469_v56 }
 0x871   : > { %23846 = vmatpush3.msra.mxu0 %v34806_v2  ;;  %v4471_v15 = vand.u32 4294901760, %v4470_v13  ;;  %v29146_v13 = vpack.c.bf16 %v4468_v41, %v34796_v22  ;;  %v38814_v41 = vld [vmem:[#allocation31_spill] sm:$0xff] }
 0x872   : > { %23848 = vmatmul.mubr.f32.vlgmr.msra.gmra.mrb[8].mxu0 %v4433_v29  ;;  %29142 = vmatprep.subr.bf16.mxu0 %v38695_v61  ;;  %v38816_v29 = vld [vmem:[#allocation41_spill] sm:$0xff] }
 0x873   : > { %23850 = vmatprep.mubr.msk.f32.mxu0 %vm32853_vm0, %v34550_v38  ;;  %v29143_v28 = vpack.c.bf16 %v4471_v15, %v4464_v40  ;;  %v38806_v40 = vld [vmem:[#allocation29_spill] sm:$0xff]  ;;  %v38817_v15 = vld [vmem:[#allocation42_spill] sm:$0xff] }
 0x875   : > { %29144 = vmatpush3.bf16.msra.mxu0 %v29143_v28  ;;  %v38805_v28 = vand.u32 4294901760, %v34791_v34 }
 0x876   : > { %23851 = vmatmul.mubr.f32.gmra.mrb[10].mxu0 %v4443_v63  ;;  %23860 = vmatprep.subr.mxu0 %v34550_v38  ;;  %v38819_v63 = vld [vmem:[#allocation44_spill] sm:$0xff] }
 0x877   : > { %23853 = vmatprep.mubr.msk.f32.mxu0 %vm32853_vm0, %v34550_v38 }
 0x879   : > { %23861 = vmatpush3.msra.mxu0 %v4478_v21  ;;  %v38821_v21 = vld [vmem:[#allocation46_spill] sm:$0xff] }
 0x87a   : > { %23854 = vmatmul.mubr.f32.gmra.mrb[12].mxu0 %v4453_v14  ;;  %29145 = vmatprep.subr.bf16.mxu0 %v38695_v61  ;;  %v29152_v14 = vpack.c.bf16 %v4469_v56, %v4462_v35  ;;  %v38809_v35 = vld [vmem:[#allocation36_spill] sm:$0xff] }
 0x87b   : > { %23862 = vmatprep.mubr.msk.f32.mxu0 %vm32853_vm0, %v34550_v38 }
 0x87e   : > { %23863 = vmatmul.mubr.f32.vlgmr.msra.gmra.mrb[8].mxu0 %v34786_v16 }
 0x87f   : > { %29147 = vmatpush3.bf16.msra.mxu0 %v29146_v13  ;;  %23865 = vmatprep.mubr.msk.f32.mxu0 %vm32853_vm0, %v34550_v38  ;;  %v38822_v13 = vld [vmem:[#allocation33_spill] sm:$0xff] }
 0x880   : > { %23875 = vmatprep.subr.mxu0 %v34550_v38 }
 0x882   : > { %23866 = vmatmul.mubr.f32.gmra.mrb[10].mxu0 %v34793_v7 }
 0x883   : > { %23868 = vmatprep.mubr.msk.f32.mxu0 %vm32853_vm0, %v34550_v38  ;;  %23876 = vmatpush3.msra.mxu0 %v34810_v5  ;;  %v38810_v5 = vld [vmem:[#allocation37_spill] sm:$0xff] }
 0x884   : > { %29148 = vmatprep.subr.bf16.mxu0 %v38695_v61 }
 0x886   : > { %23869 = vmatmul.mubr.f32.gmra.mrb[12].mxu0 %v34804_v19 }
 0x887   : > { %23877 = vmatprep.mubr.msk.f32.mxu0 %vm32853_vm0, %v34550_v38 }
 0x88a   : > { %23878 = vmatmul.mubr.f32.vlgmr.msra.gmra.mrb[8].mxu0 %v34791_v34 }
 0x88b   : > { %29150 = vmatpush3.bf16.msra.mxu0 %v34817_v62  ;;  %23880 = vmatprep.mubr.msk.f32.mxu0 %vm32853_vm0, %v34550_v38 }
 0x88c   : > { %23890 = vmatprep.subr.mxu0 %v34550_v38 }
 0x88e   : > { %23881 = vmatmul.mubr.f32.gmra.mrb[10].mxu0 %v34802_v25 }
 0x88f   : > { %23883 = vmatprep.mubr.msk.f32.mxu0 %vm32853_vm0, %v34550_v38  ;;  %23891 = vmatpush3.msra.mxu0 %v34806_v2 }
 0x890   : > { %29151 = vmatprep.subr.bf16.mxu0 %v38695_v61 }
 0x892   : > { %23884 = vmatmul.mubr.f32.gmra.mrb[12].mxu0 %v4450_v48  ;;  %v38812_v48 = vld [vmem:[#allocation39_spill] sm:$0xff] }
 0x893   : > { %23892 = vmatprep.mubr.msk.f32.mxu0 %vm32853_vm0, %v34550_v38 }
 0x896   : > { %23893 = vmatmul.mubr.f32.vlgmr.msra.gmra.mrb[8].mxu0 %v38805_v28  ;;  %v38824_v28 = vld [vmem:[#allocation47_spill] sm:$0xff] }
 0x897   : > { %29153 = vmatpush3.bf16.msra.mxu0 %v29152_v14  ;;  %23895 = vmatprep.mubr.msk.f32.mxu0 %vm32853_vm0, %v34550_v38  ;;  %v38823_v14 = vld [vmem:[#allocation34_spill] sm:$0xff] }
 0x898   : > { %23905 = vmatprep.subr.mxu0 %v34550_v38 }
 0x89a   : > { %23896 = vmatmul.mubr.f32.gmra.mrb[10].mxu0 %v4441_v26  ;;  %v38811_v26 = vld [vmem:[#allocation38_spill] sm:$0xff] }
 0x89b   : > { %23898 = vmatprep.mubr.msk.f32.mxu0 %vm32853_vm0, %v34550_v38  ;;  %23906 = vmatpush3.msra.mxu0 %v4476_v36 }
 0x89c   : > { %29154 = vmatprep.subr.bf16.mxu0 %v38695_v61 }
 0x89e   : > { %23899 = vmatmul.mubr.f32.gmra.mrb[12].mxu0 %v4451_v58 }
 0x89f   : > { %23907 = vmatprep.mubr.msk.f32.mxu0 %vm32853_vm0, %v34550_v38 }
 0x8a2   : > { %23908 = vmatmul.mubr.f32.vlgmr.msra.gmra.mrb[8].mxu0 %v34786_v16 }
 0x8a3   : > { %29156 = vmatpush3.bf16.msra.mxu0 %v34817_v62  ;;  %23910 = vmatprep.mubr.msk.f32.mxu0 %vm32853_vm0, %v34550_v38  ;;  %v38813_v62 = vld [vmem:[#allocation40_spill] sm:$0xff] }
 0x8a4   : > { %23920 = vmatprep.subr.mxu0 %v34550_v38 }
 0x8a6   : > { %23911 = vmatmul.mubr.f32.gmra.mrb[10].mxu0 %v34793_v7 }
 0x8a7   : > { %23913 = vmatprep.mubr.msk.f32.mxu0 %vm32853_vm0, %v34550_v38  ;;  %23921 = vmatpush3.msra.mxu0 %v34806_v2  ;;  %v38808_v2 = vld [vmem:[#allocation35_spill] sm:$0xff] }
 0x8a8   : > { %29157 = vmatprep.subr.bf16.mxu0 %v38695_v61 }
 0x8aa   : > { %23914 = vmatmul.mubr.f32.gmra.mrb[12].mxu0 %v34804_v19 }
 0x8ab   : > { %23922 = vmatprep.mubr.msk.f32.mxu0 %vm32853_vm0, %v34550_v38 }
 0x8ae   : > { %23923 = vmatmul.mubr.f32.vlgmr.msra.gmra.mrb[8].mxu0 %v34786_v16 }
 0x8af   : > { %23925 = vmatprep.mubr.msk.f32.mxu0 %vm32853_vm0, %v34550_v38  ;;  %29159 = vmatpush3.bf16.msra.mxu0 %v33209_v37 }
 0x8b0   : > { %29160 = vmatprep.subr.bf16.mxu0 %v38695_v61 }
 0x8b2   : > { %23926 = vmatmul.mubr.f32.gmra.mrb[10].mxu0 %v34793_v7 }
 0x8b3   : > { %23928 = vmatprep.mubr.msk.f32.mxu0 %vm32853_vm0, %v34550_v38  ;;  %29162 = vmatpush3.bf16.msra.mxu0 %v33225_v42 }
 0x8b4   : > { %29163 = vmatprep.subr.bf16.mxu0 %v38695_v61 }
 0x8b6   : > { %23929 = vmatmul.mubr.f32.gmra.mrb[12].mxu0 %v34804_v19 }
 0x8b7   : > { %29165 = vmatpush3.bf16.msra.mxu0 %v33242_v47  ;;  %23963 = vmatprep.mubr.msk.f32.mxu0 %vm32853_vm0, %v34550_v38 }
 0x8b8   : > { %29166 = vmatprep.subr.bf16.mxu0 %v38695_v61 }
 0x8bb   : > { %29168 = vmatpush3.bf16.msra.mxu0 %v33257_v52 }
 0x8bc   : > { %29169 = vmatprep.subr.bf16.mxu0 %v38695_v61 }
 0x8bf   : > { %29171 = vmatpush3.bf16.msra.mxu0 %v33273_v57 }
 0x8c0   : > { %29172 = vmatprep.subr.bf16.mxu0 %v38695_v61 }
 0x8c3   : > { %29174 = vmatpush3.bf16.msra.mxu0 %v33283_v60 }
 0x8c4   : > { %29175 = vmatprep.subr.bf16.mxu0 %v38695_v61 }
 0x8c7   : > { %29177 = vmatpush3.bf16.msra.mxu0 %v38806_v40 }
 0x8c8   : > { %29178 = vmatprep.subr.bf16.mxu0 %v38695_v61 }
 0x8cb   : > { %29180 = vmatpush3.bf16.msra.mxu0 %v38807_v54 }
 0x8cc   : > { %29181 = vmatprep.subr.bf16.mxu0 %v38695_v61 }
 0x981   : > { %v4903_v36 = vpop.f32.mrb[8].mxu0 }
 0x982   : > { %v34908_v56 = vand.u32 4294901760, %v4903_v36  ;;  %v23924_v16 = vpop.f32.mrb[9].mxu0 }
 0x983   : > { %v38826_v16 = vld [vmem:[#allocation49_spill] sm:$0xff] }
 0x984   : > { %v5001_v34 = vsub.f32 %v4903_v36, %v34908_v56  ;;  %v38825_v36 = vld [vmem:[#allocation48_spill] sm:$0xff] }
 0x986   : > { %v5002_v7 = vand.u32 4294901760, %v5001_v34 }
 0x988   : > { %v5003_v22 = vsub.f32 %v5001_v34, %v5002_v7 }
 0x989   : > { %v34911_v58 = vpop.f32.mrb[12].mxu0 }
 0x98a   : > { %v5004_v25 = vand.u32 4294901760, %v5003_v22  ;;  %v23930_v19 = vpop.f32.mrb[13].mxu0  ;;  %v38829_v22 = vld [vmem:[#allocation52_spill] sm:$0xff] }
 0x98b   : > { %v38831_v19 = vld [vmem:[#allocation54_spill] sm:$0xff] }
 0x98c   : > { %23964 = vmatmul.mubr.f32.vlgmr.msra.gmra.mrb[10].mxu0 %v5004_v25  ;;  %v38830_v25 = vld [vmem:[#allocation53_spill] sm:$0xff] }
 0x98d   : > { %29183 = vmatpush3.bf16.msra.mxu0 %v38808_v2  ;;  %23998 = vmatprep.mubr.msk.f32.mxu0 %vm32853_vm0, %v34550_v38  ;;  %v6213_v2 = vld [vmem:[#allocation6 + $0xc8] sm:$0xff] }
 0x98e   : > { %29184 = vmatprep.subr.bf16.mxu0 %v38695_v61 }
 0x991   : > { %29186 = vmatpush3.bf16.msra.mxu0 %v38809_v35 }
 0x992   : > { %29187 = vmatprep.subr.bf16.mxu0 %v38695_v61 }
 0x995   : > { %29189 = vmatpush3.bf16.msra.mxu0 %v38810_v5 }
 0x996   : > { %29190 = vmatprep.subr.bf16.mxu0 %v38695_v61 }
 0x999   : > { %29192 = vmatpush3.bf16.msra.mxu0 %v38811_v26  ;;  %v6212_v26 = vld [vmem:[#allocation6 + $0xc0] sm:$0xff] }
 0x99a   : > { %29193 = vmatprep.subr.bf16.mxu0 %v38695_v61 }
 0x99d   : > { %29195 = vmatpush3.bf16.msra.mxu0 %v38812_v48  ;;  %v6211_v48 = vld [vmem:[#allocation6 + $0xb8] sm:$0xff] }
 0x99e   : > { %29196 = vmatprep.subr.bf16.mxu0 %v38695_v61 }
 0x9a1   : > { %29198 = vmatpush3.bf16.msra.mxu0 %v38813_v62  ;;  %v6210_v62 = vld [vmem:[#allocation6 + $0xb0] sm:$0xff] }
 0x9a2   : > { %29199 = vmatprep.subr.bf16.mxu0 %v38695_v61 }
 0x9a5   : > { %29201 = vmatpush3.bf16.msra.mxu0 %v38814_v41 }
 0x9a6   : > { %29202 = vmatprep.subr.bf16.mxu0 %v38695_v61 }
 0x9a9   : > { %29204 = vmatpush3.bf16.msra.mxu0 %v38815_v59 }
 0x9aa   : > { %29205 = vmatprep.subr.bf16.mxu0 %v38695_v61 }
 0x9ac   : > { %23999 = vmatmul.mubr.f32.vlgmr.msra.gmra.mrb[10].mxu0 %v34908_v56 }
 0x9ad   : > { %29207 = vmatpush3.bf16.msra.mxu0 %v38816_v29  ;;  %24033 = vmatprep.mubr.msk.f32.mxu0 %vm32853_vm0, %v34550_v38  ;;  %v6209_v29 = vld [vmem:[#allocation6 + $0xa8] sm:$0xff] }
 0x9ae   : > { %29208 = vmatprep.subr.bf16.mxu0 %v38695_v61  ;;  %v6236_v41 = vand.u32 4294901760, %v6209_v29 }
 0x9b1   : > { %29210 = vmatpush3.bf16.msra.mxu0 %v38817_v15  ;;  %v6208_v15 = vld [vmem:[#allocation6 + $0xa0] sm:$0xff] }
 0x9b2   : > { %29211 = vmatprep.subr.bf16.mxu0 %v38695_v61  ;;  %v6233_v59 = vand.u32 4294901760, %v6208_v15 }
 0x9b4   : > { %v35090_v39 = vpack.c.bf16 %v6236_v41, %v6233_v59 }
 0x9b5   : > { %29213 = vmatpush3.bf16.msra.mxu0 %v38818_v53  ;;  %v6207_v53 = vld [vmem:[#allocation6 + $0x98] sm:$0xff] }
 0x9b6   : > { %29214 = vmatprep.subr.bf16.mxu0 %v38695_v61 }
 0x9b9   : > { %29216 = vmatpush3.bf16.msra.mxu0 %v38819_v63 }
 0x9ba   : > { %29217 = vmatprep.subr.bf16.mxu0 %v38695_v61 }
 0x9bd   : > { %29219 = vmatpush3.bf16.msra.mxu0 %v38820_v45  ;;  %v6206_v45 = vld [vmem:[#allocation6 + $0x90] sm:$0xff] }
 0x9be   : > { %29220 = vmatprep.subr.bf16.mxu0 %v38695_v61 }
 0x9c1   : > { %29222 = vmatpush3.bf16.msra.mxu0 %v38821_v21  ;;  %v38840_v21 = vld [vmem:[#allocation66_spill] sm:$0xff] }
 0x9c2   : > { %29223 = vmatprep.subr.bf16.mxu0 %v38695_v61 }
 0x9c5   : > { %29225 = vmatpush3.bf16.msra.mxu0 %v38822_v13  ;;  %v38838_v13 = vld [vmem:[#allocation64_spill] sm:$0xff] }
 0x9c6   : > { %29226 = vmatprep.subr.bf16.mxu0 %v38695_v61 }
 0x9c9   : > { %29228 = vmatpush3.bf16.msra.mxu0 %v38823_v14  ;;  %v38837_v14 = vld [vmem:[#allocation63_spill] sm:$0xff] }
 0x9ca   : > { %29229 = vmatprep.subr.bf16.mxu0 %v38695_v61 }
 0x9cc   : > { %24034 = vmatmul.mubr.f32.vlgmr.msra.gmra.mrb[10].mxu0 %v5001_v34  ;;  %v38827_v34 = vld [vmem:[#allocation50_spill] sm:$0xff] }
 0x9cd   : > { %29231 = vmatpush3.bf16.msra.mxu0 %v33209_v37  ;;  %24068 = vmatprep.mubr.msk.f32.mxu0 %vm32853_vm0, %v34550_v38 }
 0x9ce   : > { %29232 = vmatprep.subr.bf16.mxu0 %v38695_v61 }
 0x9d1   : > { %29234 = vmatpush3.bf16.msra.mxu0 %v33225_v42 }
 0x9d2   : > { %29235 = vmatprep.subr.bf16.mxu0 %v38695_v61 }
 0x9d5   : > { %29237 = vmatpush3.bf16.msra.mxu0 %v33242_v47 }
 0x9d6   : > { %29238 = vmatprep.subr.bf16.mxu0 %v38695_v61 }
 0x9d9   : > { %29240 = vmatpush3.bf16.msra.mxu0 %v33257_v52 }
 0x9da   : > { %29241 = vmatprep.subr.bf16.mxu0 %v38695_v61 }
 0x9dd   : > { %29243 = vmatpush3.bf16.msra.mxu0 %v33273_v57 }
 0x9de   : > { %29244 = vmatprep.subr.bf16.mxu0 %v38695_v61 }
 0x9e1   : > { %29246 = vmatpush3.bf16.msra.mxu0 %v33283_v60 }
 0x9e2   : > { %29247 = vmatprep.subr.bf16.mxu0 %v38695_v61 }
 0x9e5   : > { %29249 = vmatpush3.bf16.msra.mxu0 %v38806_v40 }
 0x9e6   : > { %29250 = vmatprep.subr.bf16.mxu0 %v38695_v61 }
 0x9e9   : > { %29252 = vmatpush3.bf16.msra.mxu0 %v38807_v54 }
 0x9ea   : > { %29253 = vmatprep.subr.bf16.mxu0 %v38695_v61 }
 0x9ec   : > { %24069 = vmatmul.mubr.f32.vlgmr.msra.gmra.mrb[10].mxu0 %v5002_v7  ;;  %v38828_v7 = vld [vmem:[#allocation51_spill] sm:$0xff] }
 0x9ed   : > { %29255 = vmatpush3.bf16.msra.mxu0 %v38824_v28  ;;  %24103 = vmatprep.mubr.msk.f32.mxu0 %vm32853_vm0, %v34550_v38  ;;  %v38836_v28 = vld [vmem:[#allocation62_spill] sm:$0xff] }
 0x9ee   : > { %29256 = vmatprep.subr.bf16.mxu0 %v38695_v61 }
 0x9f1   : > { %29258 = vmatpush3.bf16.msra.mxu0 %v38825_v36 }
 0x9f2   : > { %29259 = vmatprep.subr.bf16.mxu0 %v38695_v61 }
 0x9f5   : > { %29261 = vmatpush3.bf16.msra.mxu0 %v38826_v16  ;;  %v38835_v16 = vld [vmem:[#allocation61_spill] sm:$0xff] }
 0x9f6   : > { %29262 = vmatprep.subr.bf16.mxu0 %v38695_v61 }
 0x9f9   : > { %29264 = vmatpush3.bf16.msra.mxu0 %v38827_v34 }
 0x9fa   : > { %29265 = vmatprep.subr.bf16.mxu0 %v38695_v61 }
 0x9fd   : > { %29267 = vmatpush3.bf16.msra.mxu0 %v38828_v7  ;;  %v38834_v7 = vld [vmem:[#allocation60_spill] sm:$0xff] }
 0x9fe   : > { %29268 = vmatprep.subr.bf16.mxu0 %v38695_v61 }
 0xa01   : > { %29270 = vmatpush3.bf16.msra.mxu0 %v38829_v22 }
 0xa02   : > { %29271 = vmatprep.subr.bf16.mxu0 %v38695_v61 }
 0xa05   : > { %29273 = vmatpush3.bf16.msra.mxu0 %v38830_v25  ;;  %v35016_v25 = vand.u32 4294901760, %v34911_v58 }
 0xa06   : > { %29274 = vmatprep.subr.bf16.mxu0 %v38695_v61 }
 0xa07   : > { %v35022_v22 = vsub.f32 %v34911_v58, %v35016_v25 }
 0xa09   : > { %29276 = vmatpush3.bf16.msra.mxu0 %v38831_v19  ;;  %v38832_v19 = vld [vmem:[#allocation58_spill] sm:$0xff]  ;;  %v38441_v34 = vand.u32 4294901760, %v35022_v22 }
 0xa0a   : > { %29277 = vmatprep.subr.bf16.mxu0 %v38695_v61 }
 0xa0b   : > { %v5645_v36 = vsub.f32 %v35022_v22, %v38441_v34  ;;  %v38839_v34 = vld [vmem:[#allocation65_spill] sm:$0xff] }
 0xa0c   : > { %24104 = vmatmul.mubr.f32.vlgmr.msra.gmra.mrb[10].mxu0 %v34908_v56 }
 0xa0d   : > { %29279 = vmatpush3.bf16.msra.mxu0 %v33209_v37  ;;  %24138 = vmatprep.mubr.msk.f32.mxu0 %vm32853_vm0, %v34550_v38  ;;  %v5646_v58 = vand.u32 4294901760, %v5645_v36  ;;  %v38841_v36 = vld [vmem:[#allocation67_spill] sm:$0xff]  ;;  %v38847_v37 = vld [vmem:[#allocation73_spill] sm:$0xff] }
 0xa0e   : > { %29280 = vmatprep.subr.bf16.mxu0 %v38695_v61 }
 0xa11   : > { %29282 = vmatpush3.bf16.msra.mxu0 %v33225_v42  ;;  %v35074_v42 = vsub.f32 %v6209_v29, %v6236_v41  ;;  %v38851_v41 = vld [vmem:[#allocation77_spill] sm:$0xff] }
 0xa12   : > { %29283 = vmatprep.subr.bf16.mxu0 %v38695_v61 }
 0xa15   : > { %29285 = vmatpush3.bf16.msra.mxu0 %v33242_v47  ;;  %v38846_v47 = vld [vmem:[#allocation72_spill] sm:$0xff] }
 0xa16   : > { %29286 = vmatprep.subr.bf16.mxu0 %v38695_v61 }
 0xa19   : > { %29288 = vmatpush3.bf16.msra.mxu0 %v33257_v52  ;;  %v6215_v52 = vld [vmem:[#allocation6 + $0xd8] sm:$0xff] }
 0xa1a   : > { %29289 = vmatprep.subr.bf16.mxu0 %v38695_v61 }
 0xa1d   : > { %29291 = vmatpush3.bf16.msra.mxu0 %v33273_v57  ;;  %v35070_v57 = vsub.f32 %v6208_v15, %v6233_v59  ;;  %v38852_v59 = vld [vmem:[#allocation78_spill] sm:$0xff] }
 0xa1e   : > { %29292 = vmatprep.subr.bf16.mxu0 %v38695_v61 }
 0xa21   : > { %29294 = vmatpush3.bf16.msra.mxu0 %v33283_v60 }
 0xa22   : > { %29295 = vmatprep.subr.bf16.mxu0 %v38695_v61 }
 0xa25   : > { %29297 = vmatpush3.bf16.msra.mxu0 %v38806_v40 }
 0xa26   : > { %29298 = vmatprep.subr.bf16.mxu0 %v38695_v61 }
 0xa29   : > { %29300 = vmatpush3.bf16.msra.mxu0 %v38807_v54  ;;  %v6214_v54 = vld [vmem:[#allocation6 + $0xd0] sm:$0xff] }
 0xa2a   : > { %29301 = vmatprep.subr.bf16.mxu0 %v38695_v61 }
 0xa2c   : > { %24139 = vmatmul.mubr.f32.vlgmr.msra.gmra.mrb[10].mxu0 %v34908_v56  ;;  %v38833_v56 = vld [vmem:[#allocation59_spill] sm:$0xff] }
 0xa2d   : > { %29303 = vmatpush3.bf16.msra.mxu0 %v33629_v18  ;;  %24173 = vmatprep.mubr.msk.f32.mxu0 %vm32853_vm0, %v34550_v38 }
 0xa2e   : > { %29304 = vmatprep.subr.bf16.mxu0 %v38695_v61 }
 0xa31   : > { %29306 = vmatpush3.bf16.msra.mxu0 %v33634_v44 }
 0xa32   : > { %29307 = vmatprep.subr.bf16.mxu0 %v38695_v61 }
 0xa35   : > { %29309 = vmatpush3.bf16.msra.mxu0 %v33640_v46 }
 0xa36   : > { %29310 = vmatprep.subr.bf16.mxu0 %v38695_v61 }
 0xa39   : > { %29312 = vmatpush3.bf16.msra.mxu0 %v38832_v19 }
 0xa3a   : > { %29313 = vmatprep.subr.bf16.mxu0 %v38695_v61 }
 0xa3d   : > { %29315 = vmatpush3.bf16.msra.mxu0 %v38833_v56 }
 0xa3e   : > { %29316 = vmatprep.subr.bf16.mxu0 %v38695_v61 }
 0xa41   : > { %29318 = vmatpush3.bf16.msra.mxu0 %v38834_v7 }
 0xa42   : > { %29319 = vmatprep.subr.bf16.mxu0 %v38695_v61 }
 0xa45   : > { %29321 = vmatpush3.bf16.msra.mxu0 %v38835_v16 }
 0xa46   : > { %29322 = vmatprep.subr.bf16.mxu0 %v38695_v61 }
 0xa49   : > { %29324 = vmatpush3.bf16.msra.mxu0 %v38836_v28 }
 0xa4a   : > { %29325 = vmatprep.subr.bf16.mxu0 %v38695_v61 }
 0xa4c   : > { %24174 = vmatmul.mubr.f32.vlgmr.msra.gmra.mrb[10].mxu0 %v5646_v58  ;;  %v38842_v58 = vld [vmem:[#allocation68_spill] sm:$0xff] }
 0xa4d   : > { %29327 = vmatpush3.bf16.msra.mxu0 %v38837_v14  ;;  %24208 = vmatprep.mubr.msk.f32.mxu0 %vm32853_vm0, %v34550_v38  ;;  %v38843_v14 = vld [vmem:[#allocation69_spill] sm:$0xff] }
 0xa4e   : > { %29328 = vmatprep.subr.bf16.mxu0 %v38695_v61 }
 0xa51   : > { %29330 = vmatpush3.bf16.msra.mxu0 %v38838_v13  ;;  %v38844_v13 = vld [vmem:[#allocation70_spill] sm:$0xff] }
 0xa52   : > { %29331 = vmatprep.subr.bf16.mxu0 %v38695_v61 }
 0xa55   : > { %29333 = vmatpush3.bf16.msra.mxu0 %v38839_v34  ;;  %v6205_v34 = vld [vmem:[#allocation6 + $0x88] sm:$0xff] }
 0xa56   : > { %29334 = vmatprep.subr.bf16.mxu0 %v38695_v61  ;;  %v6224_v63 = vand.u32 4294901760, %v6205_v34 }
 0xa58   : > { %v35062_v35 = vsub.f32 %v6205_v34, %v6224_v63  ;;  %v6245_v34 = vand.u32 4294901760, %v6212_v26 }
 0xa59   : > { %29336 = vmatpush3.bf16.msra.mxu0 %v38840_v21  ;;  %v6204_v21 = vld [vmem:[#allocation6 + $0x80] sm:$0xff] }
 0xa5a   : > { %29337 = vmatprep.subr.bf16.mxu0 %v38695_v61 }
 0xa5d   : > { %29339 = vmatpush3.bf16.msra.mxu0 %v38841_v36  ;;  %v38845_v36 = vld [vmem:[#allocation71_spill] sm:$0xff] }
 0xa5e   : > { %29340 = vmatprep.subr.bf16.mxu0 %v38695_v61 }
 0xa61   : > { %29342 = vmatpush3.bf16.msra.mxu0 %v38842_v58  ;;  %v6221_v58 = vand.u32 4294901760, %v6204_v21 }
 0xa62   : > { %29343 = vmatprep.subr.bf16.mxu0 %v38695_v61 }
 0xa63   : > { %v35058_v5 = vpack.c.bf16 %v6224_v63, %v6221_v58  ;;  %v6242_v63 = vand.u32 4294901760, %v6211_v48 }
 0xa65   : > { %29345 = vmatpush3.bf16.msra.mxu0 %v38843_v14  ;;  %v6227_v14 = vand.u32 4294901760, %v6206_v45  ;;  %29447 = vmatpush3.bf16.msra.mxu1 %v35058_v5  ;;  %v35080_v15 = vsub.f32 %v6211_v48, %v6242_v63  ;;  %v38848_v48 = vld [vmem:[#allocation74_spill] sm:$0xff] }
 0xa66   : > { %29346 = vmatprep.subr.bf16.mxu0 %v38695_v61  ;;  %29448 = vmatprep.subr.bf16.mxu1 %v38695_v61 }
 0xa69   : > { %29348 = vmatpush3.bf16.msra.mxu0 %v38844_v13  ;;  %v6230_v13 = vand.u32 4294901760, %v6207_v53 }
 0xa6a   : > { %29349 = vmatprep.subr.bf16.mxu0 %v38695_v61 }
 0xa6b   : > { %v35066_v40 = vpack.c.bf16 %v6230_v13, %v6227_v14  ;;  %v35068_v60 = vsub.f32 %v6207_v53, %v6230_v13  ;;  %v35082_v13 = vsub.f32 %v6212_v26, %v6245_v34  ;;  %v38850_v26 = vld [vmem:[#allocation76_spill] sm:$0xff] }
 0xa6c   : > { %24209 = vmatmul.mubr.f32.vlgmr.msra.gmra.mrb[10].mxu0 %v35016_v25 }
 0xa6d   : > { %29351 = vmatpush3.bf16.msra.mxu0 %v38845_v36  ;;  %24243 = vmatprep.mubr.msk.f32.mxu0 %vm32853_vm0, %v34550_v38  ;;  %v35060_v36 = vsub.f32 %v6204_v21, %v6221_v58  ;;  %v35064_v38 = vsub.f32 %v6206_v45, %v6227_v14  ;;  %v6239_v21 = vand.u32 4294901760, %v6210_v62  ;;  %v6248_v45 = vand.u32 4294901760, %v6213_v2 }
 0xa6e   : > { %29352 = vmatprep.subr.bf16.mxu0 %v38695_v61  ;;  %v6251_v14 = vand.u32 4294901760, %v6214_v54  ;;  %v6254_v58 = vand.u32 4294901760, %v6215_v52  ;;  %29450 = vmatpush3.bf16.msra.mxu1 %v35066_v40 }
 0xa6f   : > { %v35078_v53 = vsub.f32 %v6210_v62, %v6239_v21  ;;  %29451 = vmatprep.subr.bf16.mxu1 %v38695_v61 }
 0xa70   : > { %v35086_v29 = vsub.f32 %v6214_v54, %v6251_v14  ;;  %v35092_v1 = vsub.f32 %v6215_v52, %v6254_v58  ;;  %v38849_v54 = vld [vmem:[#allocation75_spill] sm:$0xff]  ;;  %v35104_v52 = vpack.c.bf16 %v6248_v45, %v6245_v34  ;;  %v35110_v62 = vpack.c.bf16 %v6254_v58, %v6251_v14  ;;  %v38856_v14 = vld [vmem:[#allocation81_spill] sm:$0xff]  ;;  %v38857_v58 = vld [vmem:[#allocation82_spill] sm:$0xff] }
 0xa71   : > { %29354 = vmatpush3.bf16.msra.mxu0 %v38846_v47  ;;  %v35084_v47 = vsub.f32 %v6213_v2, %v6248_v45  ;;  %v35098_v2 = vpack.c.bf16 %v6242_v63, %v6239_v21  ;;  %v35122_v21 = vld [vmem:[#allocation2] sm:$0xff]  ;;  %v38853_v63 = vand.u32 4294901760, %v35022_v22  ;;  %v38854_v34 = vld [vmem:[#allocation79_spill] sm:$0xff] }
 0xa72   : > { %29355 = vmatprep.subr.bf16.mxu0 %v38695_v61  ;;  %29453 = vmatpush3.bf16.msra.mxu1 %v35090_v39  ;;  %v38855_v45 = vld [vmem:[#allocation80_spill] sm:$0xff]  ;;  %v38485_v0 = vand.u32 4294901760, %v35086_v29 }
 0xa73   : > { %29454 = vmatprep.subr.bf16.mxu1 %v38695_v61 }
 0xa75   : > { %29357 = vmatpush3.bf16.msra.mxu0 %v38847_v37 }
 0xa76   : > { %29358 = vmatprep.subr.bf16.mxu0 %v38695_v61  ;;  %29456 = vmatpush3.bf16.msra.mxu1 %v35098_v2 }
 0xa77   : > { %29457 = vmatprep.subr.bf16.mxu1 %v38695_v61 }
 0xa79   : > { %29360 = vmatpush3.bf16.msra.mxu0 %v38848_v48 }
 0xa7a   : > { %29361 = vmatprep.subr.bf16.mxu0 %v38695_v61  ;;  %29459 = vmatpush3.bf16.msra.mxu1 %v35104_v52 }
 0xa7b   : > { %29460 = vmatprep.subr.bf16.mxu1 %v38695_v61 }
 0xa7d   : > { %29363 = vmatpush3.bf16.msra.mxu0 %v38849_v54  ;;  %v38465_v54 = vand.u32 4294901760, %v35062_v35 }
 0xa7e   : > { %29364 = vmatprep.subr.bf16.mxu0 %v38695_v61  ;;  %29462 = vmatpush3.bf16.msra.mxu1 %v35110_v62 }
 0xa7f   : > { %29463 = vmatprep.subr.bf16.mxu1 %v38695_v61 }
 0xa81   : > { %29366 = vmatpush3.bf16.msra.mxu0 %v38850_v26  ;;  %v38466_v26 = vand.u32 4294901760, %v35060_v36 }
 0xa82   : > { %29367 = vmatprep.subr.bf16.mxu0 %v38695_v61 }
 0xa85   : > { %29369 = vmatpush3.bf16.msra.mxu0 %v38851_v41 }
 0xa86   : > { %29370 = vmatprep.subr.bf16.mxu0 %v38695_v61 }
 0xa89   : > { %29372 = vmatpush3.bf16.msra.mxu0 %v38852_v59 }
 0xa8a   : > { %29373 = vmatprep.subr.bf16.mxu0 %v38695_v61 }
 0xa8c   : > { %24244 = vmatmul.mubr.f32.vlgmr.msra.gmra.mrb[10].mxu0 %v35022_v22  ;;  %v38858_v22 = vld [vmem:[#allocation83_spill] sm:$0xff] }
 0xa8d   : > { %29375 = vmatpush3.bf16.msra.mxu0 %v33629_v18  ;;  %24278 = vmatprep.mubr.msk.f32.mxu0 %vm32853_vm0, %v35122_v21 }
 0xa8e   : > { %29376 = vmatprep.subr.bf16.mxu0 %v38695_v61 }
 0xa91   : > { %29378 = vmatpush3.bf16.msra.mxu0 %v33634_v44 }
 0xa92   : > { %29379 = vmatprep.subr.bf16.mxu0 %v38695_v61 }
 0xa95   : > { %29381 = vmatpush3.bf16.msra.mxu0 %v33640_v46 }
 0xa96   : > { %29382 = vmatprep.subr.bf16.mxu0 %v38695_v61 }
 0xa99   : > { %29384 = vmatpush3.bf16.msra.mxu0 %v38832_v19 }
 0xa9a   : > { %29385 = vmatprep.subr.bf16.mxu0 %v38695_v61 }
 0xa9d   : > { %29387 = vmatpush3.bf16.msra.mxu0 %v38833_v56 }
 0xa9e   : > { %29388 = vmatprep.subr.bf16.mxu0 %v38695_v61 }
 0xaa1   : > { %29390 = vmatpush3.bf16.msra.mxu0 %v38834_v7 }
 0xaa2   : > { %29391 = vmatprep.subr.bf16.mxu0 %v38695_v61 }
 0xaa5   : > { %29393 = vmatpush3.bf16.msra.mxu0 %v38835_v16 }
 0xaa6   : > { %29394 = vmatprep.subr.bf16.mxu0 %v38695_v61 }
 0xaa9   : > { %29396 = vmatpush3.bf16.msra.mxu0 %v38836_v28 }
 0xaaa   : > { %29397 = vmatprep.subr.bf16.mxu0 %v38695_v61 }
 0xaac   : > { %24279 = vmatmul.mubr.f32.vlgmr.msra.gmra.mrb[10].mxu0 %v38853_v63  ;;  %v38859_v63 = vld [vmem:[#allocation84_spill] sm:$0xff] }
 0xaad   : > { %29399 = vmatpush3.bf16.msra.mxu0 %v38854_v34  ;;  %24313 = vmatprep.mubr.msk.f32.mxu0 %vm32853_vm0, %v35122_v21  ;;  %v38860_v34 = vld [vmem:[#allocation85_spill] sm:$0xff] }
 0xaae   : > { %29400 = vmatprep.subr.bf16.mxu0 %v38695_v61 }
 0xab1   : > { %29402 = vmatpush3.bf16.msra.mxu0 %v38855_v45  ;;  %v38861_v45 = vld [vmem:[#allocation86_spill] sm:$0xff] }
 0xab2   : > { %29403 = vmatprep.subr.bf16.mxu0 %v38695_v61 }
 0xab5   : > { %29405 = vmatpush3.bf16.msra.mxu0 %v38856_v14  ;;  %v6219_v14 = vld [vmem:[#allocation6 + $0xf8] sm:$0xff] }
 0xab6   : > { %29406 = vmatprep.subr.bf16.mxu0 %v38695_v61  ;;  %v6266_v41 = vand.u32 4294901760, %v6219_v14 }
 0xab9   : > { %29408 = vmatpush3.bf16.msra.mxu0 %v38857_v58  ;;  %v6218_v58 = vld [vmem:[#allocation6 + $0xf0] sm:$0xff] }
 0xaba   : > { %29409 = vmatprep.subr.bf16.mxu0 %v38695_v61  ;;  %v6263_v59 = vand.u32 4294901760, %v6218_v58 }
 0xabd   : > { %29411 = vmatpush3.bf16.msra.mxu0 %v38858_v22 }
 0xabe   : > { %29412 = vmatprep.subr.bf16.mxu0 %v38695_v61 }
 0xac1   : > { %29414 = vmatpush3.bf16.msra.mxu0 %v38859_v63 }
 0xac2   : > { %29415 = vmatprep.subr.bf16.mxu0 %v38695_v61 }
 0xac5   : > { %29417 = vmatpush3.bf16.msra.mxu0 %v38860_v34 }
 0xac6   : > { %29418 = vmatprep.subr.bf16.mxu0 %v38695_v61 }
 0xac9   : > { %29420 = vmatpush3.bf16.msra.mxu0 %v38861_v45  ;;  %v6217_v45 = vld [vmem:[#allocation6 + $0xe8] sm:$0xff] }
 0xaca   : > { %29421 = vmatprep.subr.bf16.mxu0 %v38695_v61  ;;  %v6260_v63 = vand.u32 4294901760, %v6217_v45 }
 0xacc   : > { %24314 = vmatmul.mubr.f32.vlgmr.msra.gmra.mrb[10].mxu0 %v35016_v25  ;;  %v35207_v37 = vsub.f32 %v6217_v45, %v6260_v63 }
 0xacd   : > { %29423 = vmatpush3.bf16.msra.mxu0 %v33629_v18  ;;  %24348 = vmatprep.mubr.msk.f32.mxu0 %vm32853_vm0, %v35122_v21  ;;  %v38481_v18 = vand.u32 4294901760, %v35082_v13 }
 0xace   : > { %29424 = vmatprep.subr.bf16.mxu0 %v38695_v61 }
 0xad1   : > { %29426 = vmatpush3.bf16.msra.mxu0 %v33634_v44  ;;  %v38477_v44 = vand.u32 4294901760, %v35078_v53 }
 0xad2   : > { %29427 = vmatprep.subr.bf16.mxu0 %v38695_v61 }
 0xad5   : > { %29429 = vmatpush3.bf16.msra.mxu0 %v33640_v46 }
 0xad6   : > { %29430 = vmatprep.subr.bf16.mxu0 %v38695_v61 }
 0xad9   : > { %29432 = vmatpush3.bf16.msra.mxu0 %v38832_v19  ;;  %v6322_v19 = vsub.f32 %v35062_v35, %v38465_v54 }
 0xada   : > { %29433 = vmatprep.subr.bf16.mxu0 %v38695_v61 }
 0xadb   : > { %v6323_v45 = vand.u32 4294901760, %v6322_v19  ;;  %v38476_v19 = vand.u32 4294901760, %v35074_v42 }
 0xadd   : > { %29435 = vmatpush3.bf16.msra.mxu0 %v38833_v56  ;;  %v6315_v56 = vsub.f32 %v35060_v36, %v38466_v26  ;;  %v38473_v26 = vand.u32 4294901760, %v35070_v57 }
 0xade   : > { %29436 = vmatprep.subr.bf16.mxu0 %v38695_v61 }
 0xae1   : > { %29438 = vmatpush3.bf16.msra.mxu0 %v38834_v7  ;;  %v35213_v7 = vsub.f32 %v6219_v14, %v6266_v41 }
 0xae2   : > { %29439 = vmatprep.subr.bf16.mxu0 %v38695_v61 }
 0xae5   : > { %29441 = vmatpush3.bf16.msra.mxu0 %v38835_v16  ;;  %v35211_v16 = vsub.f32 %v6218_v58, %v6263_v59 }
 0xae6   : > { %29442 = vmatprep.subr.bf16.mxu0 %v38695_v61 }
 0xae7   : > { %v38492_v50 = vand.u32 4294901760, %v35211_v16 }
 0xae9   : > { %29444 = vmatpush3.bf16.msra.mxu0 %v38836_v28  ;;  %v35209_v28 = vpack.c.bf16 %v6266_v41, %v6263_v59  ;;  %v38472_v59 = vand.u32 4294901760, %v35068_v60 }
 0xaea   : > { %29733 = vmatprep.subr.bf16.mxu0 %v38695_v61 }
 0xaeb   : > { %v6336_v58 = vsub.f32 %v35068_v60, %v38472_v59  ;;  %v6357_v59 = vsub.f32 %v35078_v53, %v38477_v44 }
 0xaec   : > { %24349 = vmatmul.mubr.f32.vlgmr.msra.gmra.mrb[10].mxu0 %v35016_v25  ;;  %v6216_v25 = vld [vmem:[#allocation6 + $0xe0] sm:$0xff] }
 0xaed   : > { %29735 = vmatpush3.bf16.msra.mxu0 %v34294_v31  ;;  %24803 = vmatprep.mubr.msk.f32.mxu0 %vm32853_vm0, %v35122_v21  ;;  %v6257_v34 = vand.u32 4294901760, %v6216_v25  ;;  %v6337_v54 = vand.u32 4294901760, %v6336_v58 }
 0xaee   : > { %29736 = vmatprep.subr.bf16.mxu0 %v38695_v61 }
 0xaef   : > { %v35199_v22 = vpack.c.bf16 %v6260_v63, %v6257_v34  ;;  %v35205_v48 = vsub.f32 %v6216_v25, %v6257_v34  ;;  %v6316_v34 = vand.u32 4294901760, %v6315_v56  ;;  %v38467_v63 = vand.u32 4294901760, %v35064_v38 }
 0xaf1   : > { %29738 = vmatpush3.bf16.msra.mxu0 %v34301_v9  ;;  %29465 = vmatpush3.bf16.msra.mxu1 %v35199_v22  ;;  %v35225_v41 = vpack.c.bf16 %v6323_v45, %v6316_v34  ;;  %v6329_v14 = vsub.f32 %v35064_v38, %v38467_v63  ;;  %v6343_v34 = vsub.f32 %v35070_v57, %v38473_v26  ;;  %v38489_v24 = vand.u32 4294901760, %v35205_v48 }
 0xaf2   : > { %29739 = vmatprep.subr.bf16.mxu0 %v38695_v61  ;;  %29466 = vmatprep.subr.bf16.mxu1 %v38695_v61  ;;  %v6350_v45 = vsub.f32 %v35074_v42, %v38476_v19  ;;  %v6371_v19 = vsub.f32 %v35082_v13, %v38481_v18 }
 0xaf3   : > { %v6330_v25 = vand.u32 4294901760, %v6329_v14  ;;  %v6344_v63 = vand.u32 4294901760, %v6343_v34  ;;  %v38480_v14 = vand.u32 4294901760, %v35080_v15  ;;  %v38484_v34 = vand.u32 4294901760, %v35084_v47 }
 0xaf4   : > { %v6351_v46 = vand.u32 4294901760, %v6350_v45 }
 0xaf5   : > { %29741 = vmatpush3.bf16.msra.mxu0 %v34311_v30  ;;  %29468 = vmatpush3.bf16.msra.mxu1 %v35209_v28  ;;  %v29473_v56 = vpack.c.bf16 %v6337_v54, %v6330_v25  ;;  %v6364_v54 = vsub.f32 %v35080_v15, %v38480_v14  ;;  %v6358_v25 = vand.u32 4294901760, %v6357_v59  ;;  %v38488_v59 = vand.u32 4294901760, %v35092_v1 }
 0xaf6   : > { %29742 = vmatprep.subr.bf16.mxu0 %v38695_v61  ;;  %29469 = vmatprep.subr.bf16.mxu1 %v38695_v61  ;;  %v29476_v58 = vpack.c.bf16 %v6351_v46, %v6344_v63  ;;  %v6378_v46 = vsub.f32 %v35084_v47, %v38484_v34  ;;  %v6372_v63 = vand.u32 4294901760, %v6371_v19  ;;  %v6385_v14 = vsub.f32 %v35086_v29, %v38485_v0 }
 0xaf7   : > { %v6365_v26 = vand.u32 4294901760, %v6364_v54  ;;  %v38494_v19 = vand.u32 4294901760, %v35207_v37  ;;  %v6399_v34 = vsub.f32 %v35205_v48, %v38489_v24 }
 0xaf8   : > { %v6379_v44 = vand.u32 4294901760, %v6378_v46 }
 0xaf9   : > { %29744 = vmatpush3.bf16.msra.mxu0 %v34316_v11  ;;  %v29479_v45 = vpack.c.bf16 %v6365_v26, %v6358_v25  ;;  %v6392_v26 = vsub.f32 %v35092_v1, %v38488_v59  ;;  %v6386_v25 = vand.u32 4294901760, %v6385_v14  ;;  %v38493_v14 = vand.u32 4294901760, %v35213_v7 }
 0xafa   : > { %29745 = vmatprep.subr.bf16.mxu0 %v38695_v61  ;;  %v29482_v54 = vpack.c.bf16 %v6379_v44, %v6372_v63  ;;  %v6406_v44 = vsub.f32 %v35207_v37, %v38494_v19  ;;  %v6400_v63 = vand.u32 4294901760, %v6399_v34  ;;  %v6413_v59 = vsub.f32 %v35211_v16, %v38492_v50 }
 0xafb   : > { %v6393_v18 = vand.u32 4294901760, %v6392_v26  ;;  %v29494_v34 = vpack.c.bf16 %v35062_v35, %v35060_v36  ;;  %v29506_v50 = vpack.c.bf16 %v35084_v47, %v35082_v13 }
 0xafc   : > { %v6407_v0 = vand.u32 4294901760, %v6406_v44  ;;  %v29497_v44 = vpack.c.bf16 %v35068_v60, %v35064_v38 }
 0xafd   : > { %29747 = vmatpush3.bf16.msra.mxu0 %v34320_v20  ;;  %v29485_v46 = vpack.c.bf16 %v6393_v18, %v6386_v25  ;;  %v6420_v18 = vsub.f32 %v35213_v7, %v38493_v14  ;;  %v6414_v25 = vand.u32 4294901760, %v6413_v59  ;;  %v29509_v59 = vpack.c.bf16 %v35092_v1, %v35086_v29 }
 0xafe   : > { %29748 = vmatprep.subr.bf16.mxu0 %v38695_v61  ;;  %v29488_v26 = vpack.c.bf16 %v6407_v0, %v6400_v63  ;;  %v29500_v0 = vpack.c.bf16 %v35074_v42, %v35070_v57  ;;  %v29503_v63 = vpack.c.bf16 %v35080_v15, %v35078_v53 }
 0xaff   : > { %v6421_v24 = vand.u32 4294901760, %v6420_v18  ;;  %v29515_v18 = vpack.c.bf16 %v35213_v7, %v35211_v16 }
 0xb01   : > { %29750 = vmatpush3.bf16.msra.mxu0 %v34324_v49  ;;  %v29491_v27 = vpack.c.bf16 %v6421_v24, %v6414_v25  ;;  %v29512_v24 = vpack.c.bf16 %v35207_v37, %v35205_v48 }
 0xb02   : > { %29751 = vmatprep.subr.bf16.mxu0 %v38695_v61 }
 0xb05   : > { %29753 = vmatpush3.bf16.msra.mxu0 %v34328_v6 }
 0xb06   : > { %29754 = vmatprep.subr.bf16.mxu0 %v38695_v61 }
 0xb09   : > { %29756 = vmatpush3.bf16.msra.mxu0 %v34332_v23 }
 0xb0a   : > { %29757 = vmatprep.subr.bf16.mxu0 %v38695_v61 }
 0xbbf   : > { %v35297_v25 = vpop.f32.mrb[10].mxu0 }
 0xbc0   : > { %v35300_v14 = vand.u32 4294901760, %v35297_v25  ;;  %v24350_v19 = vpop.f32.mrb[11].mxu0 }
 0xbc1   : > { %v38865_v19 = vand.u32 4294901760, %v35068_v60 }
 0xbc2   : > { %v35304_v12 = vsub.f32 %v35297_v25, %v35300_v14 }
 0xbc4   : > { %v6303_v10 = vand.u32 4294901760, %v35304_v12 }
 0xbc6   : > { %v6304_v51 = vsub.f32 %v35304_v12, %v6303_v10 }
 0xbc8   : > { %v6305_v4 = vand.u32 4294901760, %v6304_v51  ;;  %v19948_v51 = vld [vmem:[%s38253_s5 + $0x4] sm:$0xf] }
 0xbca   : > { %24384 = vmatmul.mubr.f32.vlgmr.msra.gmra.mrb[6].mxu1 %v6305_v4  ;;  %v19943_v4 = vld [vmem:[%s38250_s2 + $0x4] sm:$0xf] }
 0xbcb   : > { %29471 = vmatpush3.bf16.msra.mxu1 %v35225_v41  ;;  %24418 = vmatprep.mubr.msk.f32.mxu1 %vm32853_vm0, %v35122_v21  ;;  %v19960_v41 = vld [vmem:[%s38253_s5 + $0xc] sm:$0xf] }
 0xbcc   : > { %29472 = vmatprep.subr.bf16.mxu1 %v38695_v61  ;;  %6869 = vperm.xlu1 %32612, %v19943_v4   ;;  %v38883_v4 = vld [vmem:[#allocation89_spill] sm:$0xff] }
 0xbcf   : > { %29474 = vmatpush3.bf16.msra.mxu1 %v29473_v56  ;;  %v19966_v56 = vld [vmem:[%s38253_s5 + $0x10] sm:$0xf] }
 0xbd0   : > { %29475 = vmatprep.subr.bf16.mxu1 %v38695_v61  ;;  %8195 = vperm.xlu1 %32612, %v19948_v51   ;;  %v38884_v51 = vld [vmem:[#allocation90_spill] sm:$0xff] }
 0xbd3   : > { %29477 = vmatpush3.bf16.msra.mxu1 %v29476_v58  ;;  %v38863_v58 = vand.u32 4294901760, %v35062_v35  ;;  %v38866_v35 = vand.u32 4294901760, %v35070_v57  ;;  %v38873_v57 = vand.u32 4294901760, %v35092_v1 }
 0xbd4   : > { %29478 = vmatprep.subr.bf16.mxu1 %v38695_v61 }
 0xbd7   : > { %29480 = vmatpush3.bf16.msra.mxu1 %v29479_v45 }
 0xbd8   : > { %29481 = vmatprep.subr.bf16.mxu1 %v38695_v61 }
 0xbdb   : > { %29483 = vmatpush3.bf16.msra.mxu1 %v29482_v54  ;;  %v38864_v54 = vand.u32 4294901760, %v35064_v38  ;;  %v38870_v38 = vand.u32 4294901760, %v35082_v13  ;;  %v38877_v13 = vand.u32 4294901760, %v35213_v7 }
 0xbdc   : > { %29484 = vmatprep.subr.bf16.mxu1 %v38695_v61 }
 0xbdf   : > { %29486 = vmatpush3.bf16.msra.mxu1 %v29485_v46  ;;  %v29545_v46 = vpack.c.bf16 %v38865_v19, %v38864_v54  ;;  %v38891_v54 = vld [vmem:[#allocation100_spill] sm:$0xff]  ;;  %v38892_v19 = vld [vmem:[#allocation101_spill] sm:$0xff] }
 0xbe0   : > { %29487 = vmatprep.subr.bf16.mxu1 %v38695_v61 }
 0xbe3   : > { %29489 = vmatpush3.bf16.msra.mxu1 %v29488_v26 }
 0xbe4   : > { %29490 = vmatprep.subr.bf16.mxu1 %v38695_v61 }
 0xbe7   : > { %29492 = vmatpush3.bf16.msra.mxu1 %v29491_v27  ;;  %v19954_v27 = vld [vmem:[%s38253_s5 + $0x8] sm:$0xf] }
 0xbe8   : > { %29493 = vmatprep.subr.bf16.mxu1 %v38695_v61  ;;  %12060 = vperm.xlu1 %32612, %v19954_v27   ;;  %v38885_v27 = vld [vmem:[#allocation91_spill] sm:$0xff] }
 0xbea   : > { %24419 = vmatmul.mubr.f32.vlgmr.msra.gmra.mrb[6].mxu1 %v35300_v14 }
 0xbeb   : > { %29495 = vmatpush3.bf16.msra.mxu1 %v29494_v34  ;;  %24453 = vmatprep.mubr.msk.f32.mxu1 %vm32853_vm0, %v35122_v21  ;;  %v38871_v34 = vand.u32 4294901760, %v35084_v47  ;;  %v38876_v47 = vand.u32 4294901760, %v35211_v16 }
 0xbec   : > { %29496 = vmatprep.subr.bf16.mxu1 %v38695_v61  ;;  %15925 = vperm.xlu1 %32612, %v19960_v41   ;;  %v38886_v41 = vld [vmem:[#allocation92_spill] sm:$0xff] }
 0xbef   : > { %29498 = vmatpush3.bf16.msra.mxu1 %v29497_v44  ;;  %v29554_v44 = vpack.c.bf16 %v38871_v34, %v38870_v38 }
 0xbf0   : > { %29499 = vmatprep.subr.bf16.mxu1 %v38695_v61  ;;  %19790 = vperm.xlu1 %32612, %v19966_v56   ;;  %v38887_v56 = vld [vmem:[#allocation96_spill] sm:$0xff] }
 0xbf3   : > { %29501 = vmatpush3.bf16.msra.mxu1 %v29500_v0 }
 0xbf4   : > { %29502 = vmatprep.subr.bf16.mxu1 %v38695_v61 }
 0xbf7   : > { %29504 = vmatpush3.bf16.msra.mxu1 %v29503_v63 }
 0xbf8   : > { %29505 = vmatprep.subr.bf16.mxu1 %v38695_v61 }
 0xbfb   : > { %29507 = vmatpush3.bf16.msra.mxu1 %v29506_v50  ;;  %v38862_v50 = vand.u32 4294901760, %v35060_v36  ;;  %v38867_v36 = vand.u32 4294901760, %v35074_v42  ;;  %v38872_v42 = vand.u32 4294901760, %v35086_v29 }
 0xbfc   : > { %29508 = vmatprep.subr.bf16.mxu1 %v38695_v61 }
 0xbfd   : > { %v29542_v45 = vpack.c.bf16 %v38863_v58, %v38862_v50  ;;  %v29548_v26 = vpack.c.bf16 %v38867_v36, %v38866_v35  ;;  %v29557_v0 = vpack.c.bf16 %v38873_v57, %v38872_v42  ;;  %v38888_v50 = vld [vmem:[#allocation97_spill] sm:$0xff]  ;;  %v38889_v58 = vld [vmem:[#allocation98_spill] sm:$0xff]  ;;  %v38894_v35 = vld [vmem:[#allocation103_spill] sm:$0xff] }
 0xbff   : > { %29510 = vmatpush3.bf16.msra.mxu1 %v29509_v59  ;;  %v29563_v59 = vpack.c.bf16 %v38877_v13, %v38876_v47 }
 0xc00   : > { %29511 = vmatprep.subr.bf16.mxu1 %v38695_v61 }
 0xc03   : > { %29513 = vmatpush3.bf16.msra.mxu1 %v29512_v24  ;;  %v38880_v24 = vld [vmem:[#allocation94_spill] sm:$0xff] }
 0xc04   : > { %29514 = vmatprep.subr.bf16.mxu1 %v38695_v61 }
 0xc07   : > { %29516 = vmatpush3.bf16.msra.mxu1 %v29515_v18  ;;  %v38881_v18 = vld [vmem:[#allocation95_spill] sm:$0xff] }
 0xc08   : > { %29517 = vmatprep.subr.bf16.mxu1 %v38695_v61 }
 0xc0a   : > { %24454 = vmatmul.mubr.f32.vlgmr.msra.gmra.mrb[6].mxu1 %v35304_v12  ;;  %v38869_v12 = vand.u32 4294901760, %v35080_v15  ;;  %v38875_v15 = vand.u32 4294901760, %v35207_v37 }
 0xc0b   : > { %29519 = vmatpush3.bf16.msra.mxu1 %v35058_v5  ;;  %24488 = vmatprep.mubr.msk.f32.mxu1 %vm32853_vm0, %v35122_v21 }
 0xc0c   : > { %29520 = vmatprep.subr.bf16.mxu1 %v38695_v61 }
 0xc0f   : > { %29522 = vmatpush3.bf16.msra.mxu1 %v35066_v40 }
 0xc10   : > { %29523 = vmatprep.subr.bf16.mxu1 %v38695_v61 }
 0xc13   : > { %29525 = vmatpush3.bf16.msra.mxu1 %v35090_v39 }
 0xc14   : > { %29526 = vmatprep.subr.bf16.mxu1 %v38695_v61 }
 0xc17   : > { %29528 = vmatpush3.bf16.msra.mxu1 %v35098_v2 }
 0xc18   : > { %29529 = vmatprep.subr.bf16.mxu1 %v38695_v61 }
 0xc1b   : > { %29531 = vmatpush3.bf16.msra.mxu1 %v35104_v52 }
 0xc1c   : > { %29532 = vmatprep.subr.bf16.mxu1 %v38695_v61 }
 0xc1f   : > { %29534 = vmatpush3.bf16.msra.mxu1 %v35110_v62 }
 0xc20   : > { %29535 = vmatprep.subr.bf16.mxu1 %v38695_v61 }
 0xc23   : > { %29537 = vmatpush3.bf16.msra.mxu1 %v35199_v22 }
 0xc24   : > { %29538 = vmatprep.subr.bf16.mxu1 %v38695_v61 }
 0xc27   : > { %29540 = vmatpush3.bf16.msra.mxu1 %v35209_v28 }
 0xc28   : > { %29541 = vmatprep.subr.bf16.mxu1 %v38695_v61 }
 0xc2a   : > { %24489 = vmatmul.mubr.f32.vlgmr.msra.gmra.mrb[6].mxu1 %v6303_v10  ;;  %v38868_v10 = vand.u32 4294901760, %v35078_v53  ;;  %v38874_v53 = vand.u32 4294901760, %v35205_v48 }
 0xc2b   : > { %29543 = vmatpush3.bf16.msra.mxu1 %v29542_v45  ;;  %24523 = vmatprep.mubr.msk.f32.mxu1 %vm32853_vm0, %v35122_v21  ;;  %v38890_v45 = vld [vmem:[#allocation99_spill] sm:$0xff] }
 0xc2c   : > { %29544 = vmatprep.subr.bf16.mxu1 %v38695_v61  ;;  %v29551_v60 = vpack.c.bf16 %v38869_v12, %v38868_v10  ;;  %v29560_v63 = vpack.c.bf16 %v38875_v15, %v38874_v53 }
 0xc2f   : > { %29546 = vmatpush3.bf16.msra.mxu1 %v29545_v46  ;;  %v38893_v46 = vld [vmem:[#allocation102_spill] sm:$0xff] }
 0xc30   : > { %29547 = vmatprep.subr.bf16.mxu1 %v38695_v61 }
 0xc33   : > { %29549 = vmatpush3.bf16.msra.mxu1 %v29548_v26 }
 0xc34   : > { %29550 = vmatprep.subr.bf16.mxu1 %v38695_v61 }
 0xc37   : > { %29552 = vmatpush3.bf16.msra.mxu1 %v29551_v60 }
 0xc38   : > { %29553 = vmatprep.subr.bf16.mxu1 %v38695_v61 }
 0xc3b   : > { %29555 = vmatpush3.bf16.msra.mxu1 %v29554_v44 }
 0xc3c   : > { %29556 = vmatprep.subr.bf16.mxu1 %v38695_v61 }
 0xc3f   : > { %29558 = vmatpush3.bf16.msra.mxu1 %v29557_v0 }
 0xc40   : > { %29559 = vmatprep.subr.bf16.mxu1 %v38695_v61 }
 0xc43   : > { %29561 = vmatpush3.bf16.msra.mxu1 %v29560_v63 }
 0xc44   : > { %29562 = vmatprep.subr.bf16.mxu1 %v38695_v61 }
 0xc47   : > { %29564 = vmatpush3.bf16.msra.mxu1 %v29563_v59  ;;  %v19945_v59 = vld [vmem:[%s38251_s3 + $0x1] ss:$0 sm:$0xff] }
 0xc48   : > { %29565 = vmatprep.subr.bf16.mxu1 %v38695_v61 }
 0xc4a   : > { %24524 = vmatmul.mubr.f32.vlgmr.msra.gmra.mrb[6].mxu1 %v35300_v14 }
 0xc4b   : > { %29567 = vmatpush3.bf16.msra.mxu1 %v35058_v5  ;;  %24558 = vmatprep.mubr.msk.f32.mxu1 %vm32853_vm0, %v35122_v21  ;;  %v6870_v37 = vpop.permute.xlu1 %6869 }
 0xc4c   : > { %29568 = vmatprep.subr.bf16.mxu1 %v38695_v61 }
 0xc4f   : > { %29570 = vmatpush3.bf16.msra.mxu1 %v35066_v40 }
 0xc50   : > { %29571 = vmatprep.subr.bf16.mxu1 %v38695_v61 }
 0xc53   : > { %29573 = vmatpush3.bf16.msra.mxu1 %v35090_v39  ;;  %v6871_v39 = vrot.slane %v6870_v37, 4 }
 0xc54   : > { %29574 = vmatprep.subr.bf16.mxu1 %v38695_v61 }
 0xc57   : > { %29576 = vmatpush3.bf16.msra.mxu1 %v35098_v2 }
 0xc58   : > { %29577 = vmatprep.subr.bf16.mxu1 %v38695_v61 }
 0xc5b   : > { %29579 = vmatpush3.bf16.msra.mxu1 %v35104_v52 }
 0xc5c   : > { %29580 = vmatprep.subr.bf16.mxu1 %v38695_v61 }
 0xc5f   : > { %29582 = vmatpush3.bf16.msra.mxu1 %v35110_v62 }
 0xc60   : > { %29583 = vmatprep.subr.bf16.mxu1 %v38695_v61 }
 0xc63   : > { %29585 = vmatpush3.bf16.msra.mxu1 %v35199_v22  ;;  %v38878_v22 = vld [vmem:[#allocation87_spill] sm:$0xff] }
 0xc64   : > { %29586 = vmatprep.subr.bf16.mxu1 %v38695_v61 }
 0xc67   : > { %29588 = vmatpush3.bf16.msra.mxu1 %v35209_v28 }
 0xc68   : > { %29589 = vmatprep.subr.bf16.mxu1 %v38695_v61 }
 0xc6a   : > { %24559 = vmatmul.mubr.f32.vlgmr.msra.gmra.mrb[6].mxu1 %v35300_v14  ;;  %v38879_v14 = vld [vmem:[#allocation93_spill] sm:$0xff] }
 0xc6b   : > { %29591 = vmatpush3.bf16.msra.mxu1 %v34294_v31  ;;  %24593 = vmatprep.mubr.msk.f32.mxu1 %vm32853_vm0, %v35122_v21 }
 0xc6c   : > { %29592 = vmatprep.subr.bf16.mxu1 %v38695_v61 }
 0xc6f   : > { %29594 = vmatpush3.bf16.msra.mxu1 %v34301_v9 }
 0xc70   : > { %29595 = vmatprep.subr.bf16.mxu1 %v38695_v61 }
 0xc73   : > { %29597 = vmatpush3.bf16.msra.mxu1 %v34311_v30 }
 0xc74   : > { %29598 = vmatprep.subr.bf16.mxu1 %v38695_v61 }
 0xc77   : > { %29600 = vmatpush3.bf16.msra.mxu1 %v34316_v11 }
 0xc78   : > { %29601 = vmatprep.subr.bf16.mxu1 %v38695_v61 }
 0xc7b   : > { %29603 = vmatpush3.bf16.msra.mxu1 %v34320_v20 }
 0xc7c   : > { %29604 = vmatprep.subr.bf16.mxu1 %v38695_v61 }
 0xc7f   : > { %29606 = vmatpush3.bf16.msra.mxu1 %v34324_v49 }
 0xc80   : > { %29607 = vmatprep.subr.bf16.mxu1 %v38695_v61 }
 0xc83   : > { %29609 = vmatpush3.bf16.msra.mxu1 %v34328_v6 }
 0xc84   : > { %29610 = vmatprep.subr.bf16.mxu1 %v38695_v61 }
 0xc87   : > { %29612 = vmatpush3.bf16.msra.mxu1 %v34332_v23 }
 0xc88   : > { %29613 = vmatprep.subr.bf16.mxu1 %v38695_v61 }
 0xd3d   : > { %v6857_v1 = vpop.f32.mrb[6].mxu1 }
 0xd3e   : > { %v6862_v40 = vrot.slane %v6857_v1, 4  ;;  %v24560_v5 = vpop.f32.mrb[7].mxu1  ;;  %v19947_v1 = vld [vmem:[%s38252_s4 + $0x1] ss:$0 sm:$0xff] }
 0xd3f   : > { %v8211_v5 = vld [vmem:[#allocation3 + $0x30] sm:$0xff] }
 0xd40   : > { %v6864_v28 = vadd.f32 %v6862_v40, %v35297_v25  ;;  %v38882_v25 = vld [vmem:[#allocation88_spill] sm:$0xff] }
 0xd42   : > { %v35449_v16 = vadd.f32 %v6871_v39, %v6864_v28  ;;  %v8196_v28 = vpop.permute.xlu1 %8195 }
 0xd44   : > { %v6875_v7 = vrot.slane %v35449_v16, 4 }
 0xd46   : > { %v35452_v29 = vand.u32 4294901760, %v6875_v7 }
 0xd48   : > { %v6959_v48 = vsub.f32 %v6875_v7, %v35452_v29 }
 0xd4a   : > { %v6960_v2 = vand.u32 4294901760, %v6959_v48 }
 0xd4c   : > { %v6961_v52 = vsub.f32 %v6959_v48, %v6960_v2 }
 0xd4e   : > { %v6962_v62 = vand.u32 4294901760, %v6961_v52  ;;  %v35663_v52 = vld [vmem:[#allocation2] sm:$0xff] }
 0xd50   : > { %24594 = vmatmul.mubr.f32.vlgmr.msra.gmra.mrb[8].mxu1 %v6962_v62  ;;  %v8227_v62 = vand.u32 4294901760, %v35663_v52 }
 0xd51   : > { %29615 = vmatpush3.bf16.msra.mxu1 %v34487_v3  ;;  %24628 = vmatprep.mubr.msk.f32.mxu1 %vm32853_vm0, %v35122_v21 }
 0xd52   : > { %29616 = vmatprep.subr.bf16.mxu1 %v38695_v61 }
 0xd55   : > { %29618 = vmatpush3.bf16.msra.mxu1 %v34496_v33 }
 0xd56   : > { %29619 = vmatprep.subr.bf16.mxu1 %v38695_v61 }
 0xd59   : > { %29621 = vmatpush3.bf16.msra.mxu1 %v34502_v55 }
 0xd5a   : > { %29622 = vmatprep.subr.bf16.mxu1 %v38695_v61 }
 0xd5d   : > { %29624 = vmatpush3.bf16.msra.mxu1 %v34364_v17 }
 0xd5e   : > { %29625 = vmatprep.subr.bf16.mxu1 %v38695_v61 }
 0xd61   : > { %29627 = vmatpush3.bf16.msra.mxu1 %v34368_v8 }
 0xd62   : > { %29628 = vmatprep.subr.bf16.mxu1 %v38695_v61 }
 0xd65   : > { %29630 = vmatpush3.bf16.msra.mxu1 %v34382_v43 }
 0xd66   : > { %29631 = vmatprep.subr.bf16.mxu1 %v38695_v61 }
 0xd69   : > { %29633 = vmatpush3.bf16.msra.mxu1 %v34402_v32 }
 0xd6a   : > { %29634 = vmatprep.subr.bf16.mxu1 %v38695_v61 }
 0xd6d   : > { %29636 = vmatpush3.bf16.msra.mxu1 %v38878_v22 }
 0xd6e   : > { %29637 = vmatprep.subr.bf16.mxu1 %v38695_v61 }
 0xd70   : > { %24629 = vmatmul.mubr.f32.vlgmr.msra.gmra.mrb[8].mxu1 %v35452_v29 }
 0xd71   : > { %29639 = vmatpush3.bf16.msra.mxu1 %v38879_v14  ;;  %24663 = vmatprep.mubr.msk.f32.mxu1 %vm32853_vm0, %v35122_v21 }
 0xd72   : > { %29640 = vmatprep.subr.bf16.mxu1 %v38695_v61 }
 0xd75   : > { %29642 = vmatpush3.bf16.msra.mxu1 %v38880_v24 }
 0xd76   : > { %29643 = vmatprep.subr.bf16.mxu1 %v38695_v61 }
 0xd79   : > { %29645 = vmatpush3.bf16.msra.mxu1 %v38881_v18 }
 0xd7a   : > { %29646 = vmatprep.subr.bf16.mxu1 %v38695_v61 }
 0xd7d   : > { %29648 = vmatpush3.bf16.msra.mxu1 %v38882_v25 }
 0xd7e   : > { %29649 = vmatprep.subr.bf16.mxu1 %v38695_v61 }
 0xd81   : > { %29651 = vmatpush3.bf16.msra.mxu1 %v38883_v4 }
 0xd82   : > { %29652 = vmatprep.subr.bf16.mxu1 %v38695_v61 }
 0xd85   : > { %29654 = vmatpush3.bf16.msra.mxu1 %v38884_v51 }
 0xd86   : > { %29655 = vmatprep.subr.bf16.mxu1 %v38695_v61 }
 0xd89   : > { %29657 = vmatpush3.bf16.msra.mxu1 %v38885_v27 }
 0xd8a   : > { %29658 = vmatprep.subr.bf16.mxu1 %v38695_v61 }
 0xd8d   : > { %29660 = vmatpush3.bf16.msra.mxu1 %v38886_v41 }
 0xd8e   : > { %29661 = vmatprep.subr.bf16.mxu1 %v38695_v61 }
 0xd90   : > { %24664 = vmatmul.mubr.f32.vlgmr.msra.gmra.mrb[8].mxu1 %v6959_v48 }
 0xd91   : > { %29663 = vmatpush3.bf16.msra.mxu1 %v34294_v31  ;;  %24698 = vmatprep.mubr.msk.f32.mxu1 %vm32853_vm0, %v35122_v21 }
 0xd92   : > { %29664 = vmatprep.subr.bf16.mxu1 %v38695_v61 }
 0xd95   : > { %29666 = vmatpush3.bf16.msra.mxu1 %v34301_v9 }
 0xd96   : > { %29667 = vmatprep.subr.bf16.mxu1 %v38695_v61 }
 0xd99   : > { %29669 = vmatpush3.bf16.msra.mxu1 %v34311_v30 }
 0xd9a   : > { %29670 = vmatprep.subr.bf16.mxu1 %v38695_v61 }
 0xd9d   : > { %29672 = vmatpush3.bf16.msra.mxu1 %v34316_v11 }
 0xd9e   : > { %29673 = vmatprep.subr.bf16.mxu1 %v38695_v61 }
 0xda1   : > { %29675 = vmatpush3.bf16.msra.mxu1 %v34320_v20 }
 0xda2   : > { %29676 = vmatprep.subr.bf16.mxu1 %v38695_v61 }
 0xda5   : > { %29678 = vmatpush3.bf16.msra.mxu1 %v34324_v49 }
 0xda6   : > { %29679 = vmatprep.subr.bf16.mxu1 %v38695_v61 }
 0xda9   : > { %29681 = vmatpush3.bf16.msra.mxu1 %v34328_v6 }
 0xdaa   : > { %29682 = vmatprep.subr.bf16.mxu1 %v38695_v61 }
 0xdad   : > { %29684 = vmatpush3.bf16.msra.mxu1 %v34332_v23 }
 0xdae   : > { %29685 = vmatprep.subr.bf16.mxu1 %v38695_v61 }
 0xdb0   : > { %24699 = vmatmul.mubr.f32.vlgmr.msra.gmra.mrb[8].mxu1 %v6960_v2 }
 0xdb1   : > { %29687 = vmatpush3.bf16.msra.mxu1 %v38887_v56  ;;  %24733 = vmatprep.mubr.msk.f32.mxu1 %vm32853_vm0, %v35122_v21 }
 0xdb2   : > { %29688 = vmatprep.subr.bf16.mxu1 %v38695_v61 }
 0xdb5   : > { %29690 = vmatpush3.bf16.msra.mxu1 %v38888_v50 }
 0xdb6   : > { %29691 = vmatprep.subr.bf16.mxu1 %v38695_v61 }
 0xdb9   : > { %29693 = vmatpush3.bf16.msra.mxu1 %v38889_v58 }
 0xdba   : > { %29694 = vmatprep.subr.bf16.mxu1 %v38695_v61 }
 0xdbd   : > { %29696 = vmatpush3.bf16.msra.mxu1 %v38890_v45 }
 0xdbe   : > { %29697 = vmatprep.subr.bf16.mxu1 %v38695_v61 }
 0xdc1   : > { %29699 = vmatpush3.bf16.msra.mxu1 %v38891_v54 }
 0xdc2   : > { %29700 = vmatprep.subr.bf16.mxu1 %v38695_v61 }
 0xdc5   : > { %29702 = vmatpush3.bf16.msra.mxu1 %v38892_v19 }
 0xdc6   : > { %29703 = vmatprep.subr.bf16.mxu1 %v38695_v61 }
 0xdc9   : > { %29705 = vmatpush3.bf16.msra.mxu1 %v38893_v46 }
 0xdca   : > { %29706 = vmatprep.subr.bf16.mxu1 %v38695_v61 }
 0xdcd   : > { %29708 = vmatpush3.bf16.msra.mxu1 %v38894_v35 }
 0xdce   : > { %29709 = vmatprep.subr.bf16.mxu1 %v38695_v61 }
 0xdd0   : > { %24734 = vmatmul.mubr.f32.vlgmr.msra.gmra.mrb[8].mxu1 %v35452_v29 }
 0xdd1   : > { %29711 = vmatpush3.bf16.msra.mxu1 %v34294_v31  ;;  %24768 = vmatprep.mubr.msk.f32.mxu1 %vm32853_vm0, %v35122_v21 }
 0xdd2   : > { %29712 = vmatprep.subr.bf16.mxu1 %v38695_v61 }
 0xdd5   : > { %29714 = vmatpush3.bf16.msra.mxu1 %v34301_v9 }
 0xdd6   : > { %29715 = vmatprep.subr.bf16.mxu1 %v38695_v61 }
 0xdd9   : > { %29717 = vmatpush3.bf16.msra.mxu1 %v34311_v30 }
 0xdda   : > { %29718 = vmatprep.subr.bf16.mxu1 %v38695_v61 }
 0xddd   : > { %29720 = vmatpush3.bf16.msra.mxu1 %v34316_v11 }
 0xdde   : > { %29721 = vmatprep.subr.bf16.mxu1 %v38695_v61 }
 0xde1   : > { %29723 = vmatpush3.bf16.msra.mxu1 %v34320_v20 }
 0xde2   : > { %29724 = vmatprep.subr.bf16.mxu1 %v38695_v61 }
 0xde5   : > { %29726 = vmatpush3.bf16.msra.mxu1 %v34324_v49 }
 0xde6   : > { %29727 = vmatprep.subr.bf16.mxu1 %v38695_v61 }
 0xde9   : > { %29729 = vmatpush3.bf16.msra.mxu1 %v34328_v6 }
 0xdea   : > { %29730 = vmatprep.subr.bf16.mxu1 %v38695_v61 }
 0xded   : > { %29732 = vmatpush3.bf16.msra.mxu1 %v34332_v23 }
 0xdee   : > { %29877 = vmatprep.subr.bf16.mxu1 %v38695_v61 }
 0xdf0   : > { %24769 = vmatmul.mubr.f32.vlgmr.msra.gmra.mrb[8].mxu1 %v35452_v29  ;;  %v8212_v29 = vld [vmem:[#allocation3 + $0x38] sm:$0xff] }
 0xdf1   : > { %24987 = vmatprep.mubr.msk.f32.mxu1 %vm32853_vm0, %v35122_v21 }
 0xec3   : > { %v7514_v36 = vpop.f32.mrb[8].mxu1 }
 0xec4   : > { %v7519_v26 = vrot.slane %v7514_v36, 4  ;;  %v24770_v10 = vpop.f32.mrb[9].mxu1  ;;  %v8218_v36 = vsel %vm487_vm1, %v8212_v29, 0 }
 0xec5   : > { %v8213_v10 = vld [vmem:[#allocation3 + $0x40] sm:$0xff] }
 0xec6   : > { %v35551_v12 = vsub.f32 %v35449_v16, %v7519_v26  ;;  %v8215_v16 = vsel %vm487_vm1, %v8211_v5, 0 }
 0xec7   : > { %v35661_v2 = vand.u32 4294901760, %v8215_v16 }
 0xec8   : > { %v7522_v60 = vmul.f32 %v35551_v12, %v35551_v12 }
 0xeca   : > { %v7524_v38 = vrot.slane %v7522_v60, 4  ;;  %v35668_v60 = vsub.f32 %v8215_v16, %v35661_v2 }
 0xecc   : > { %v35555_v34 = vand.u32 4294901760, %v7524_v38 }
 0xece   : > { %v7608_v44 = vsub.f32 %v7524_v38, %v35555_v34  ;;  %v35670_v38 = vand.u32 4294901760, %v8218_v36 }
 0xed0   : > { %v7609_v42 = vand.u32 4294901760, %v7608_v44 }
 0xed2   : > { %v7610_v57 = vsub.f32 %v7608_v44, %v7609_v42 }
 0xed4   : > { %v7611_v0 = vand.u32 4294901760, %v7610_v57  ;;  %v8296_v57 = vand.u32 4294901760, %v35668_v60 }
 0xed6   : > { %24804 = vmatmul.mubr.f32.vlgmr.msra.gmra.mrb[14].mxu0 %v7611_v0  ;;  %v35679_v0 = vsub.f32 %v8218_v36, %v35670_v38 }
 0xed7   : > { %29759 = vmatpush3.bf16.msra.mxu0 %v34487_v3  ;;  %24838 = vmatprep.mubr.msk.f32.mxu0 %vm32853_vm0, %v35122_v21 }
 0xed8   : > { %29760 = vmatprep.subr.bf16.mxu0 %v38695_v61 }
 0xedb   : > { %29762 = vmatpush3.bf16.msra.mxu0 %v34496_v33 }
 0xedc   : > { %29763 = vmatprep.subr.bf16.mxu0 %v38695_v61 }
 0xedf   : > { %29765 = vmatpush3.bf16.msra.mxu0 %v34502_v55 }
 0xee0   : > { %29766 = vmatprep.subr.bf16.mxu0 %v38695_v61 }
 0xee3   : > { %29768 = vmatpush3.bf16.msra.mxu0 %v34364_v17 }
 0xee4   : > { %29769 = vmatprep.subr.bf16.mxu0 %v38695_v61 }
 0xee7   : > { %29771 = vmatpush3.bf16.msra.mxu0 %v34368_v8 }
 0xee8   : > { %29772 = vmatprep.subr.bf16.mxu0 %v38695_v61 }
 0xeeb   : > { %29774 = vmatpush3.bf16.msra.mxu0 %v34382_v43 }
 0xeec   : > { %29775 = vmatprep.subr.bf16.mxu0 %v38695_v61 }
 0xeef   : > { %29777 = vmatpush3.bf16.msra.mxu0 %v34402_v32 }
 0xef0   : > { %29778 = vmatprep.subr.bf16.mxu0 %v38695_v61 }
 0xef3   : > { %29780 = vmatpush3.bf16.msra.mxu0 %v38878_v22 }
 0xef4   : > { %29781 = vmatprep.subr.bf16.mxu0 %v38695_v61 }
 0xef6   : > { %24839 = vmatmul.mubr.f32.vlgmr.msra.gmra.mrb[14].mxu0 %v35555_v34 }
 0xef7   : > { %29783 = vmatpush3.bf16.msra.mxu0 %v38879_v14  ;;  %24873 = vmatprep.mubr.msk.f32.mxu0 %vm32853_vm0, %v35122_v21 }
 0xef8   : > { %29784 = vmatprep.subr.bf16.mxu0 %v38695_v61 }
 0xefb   : > { %29786 = vmatpush3.bf16.msra.mxu0 %v38880_v24 }
 0xefc   : > { %29787 = vmatprep.subr.bf16.mxu0 %v38695_v61 }
 0xeff   : > { %29789 = vmatpush3.bf16.msra.mxu0 %v38881_v18 }
 0xf00   : > { %29790 = vmatprep.subr.bf16.mxu0 %v38695_v61 }
 0xf03   : > { %29792 = vmatpush3.bf16.msra.mxu0 %v38882_v25 }
 0xf04   : > { %29793 = vmatprep.subr.bf16.mxu0 %v38695_v61 }
 0xf07   : > { %29795 = vmatpush3.bf16.msra.mxu0 %v38883_v4 }
 0xf08   : > { %29796 = vmatprep.subr.bf16.mxu0 %v38695_v61 }
 0xf0b   : > { %29798 = vmatpush3.bf16.msra.mxu0 %v38884_v51 }
 0xf0c   : > { %29799 = vmatprep.subr.bf16.mxu0 %v38695_v61 }
 0xf0f   : > { %29801 = vmatpush3.bf16.msra.mxu0 %v38885_v27 }
 0xf10   : > { %29802 = vmatprep.subr.bf16.mxu0 %v38695_v61 }
 0xf13   : > { %29804 = vmatpush3.bf16.msra.mxu0 %v38886_v41 }
 0xf14   : > { %29805 = vmatprep.subr.bf16.mxu0 %v38695_v61 }
 0xf16   : > { %24874 = vmatmul.mubr.f32.vlgmr.msra.gmra.mrb[14].mxu0 %v7608_v44  ;;  %v8221_v44 = vsel %vm487_vm1, %v8213_v10, 0 }
 0xf17   : > { %29807 = vmatpush3.bf16.msra.mxu0 %v34294_v31  ;;  %24908 = vmatprep.mubr.msk.f32.mxu0 %vm32853_vm0, %v35122_v21 }
 0xf18   : > { %29808 = vmatprep.subr.bf16.mxu0 %v38695_v61 }
 0xf1b   : > { %29810 = vmatpush3.bf16.msra.mxu0 %v34301_v9 }
 0xf1c   : > { %29811 = vmatprep.subr.bf16.mxu0 %v38695_v61 }
 0xf1f   : > { %29813 = vmatpush3.bf16.msra.mxu0 %v34311_v30 }
 0xf20   : > { %29814 = vmatprep.subr.bf16.mxu0 %v38695_v61 }
 0xf23   : > { %29816 = vmatpush3.bf16.msra.mxu0 %v34316_v11 }
 0xf24   : > { %29817 = vmatprep.subr.bf16.mxu0 %v38695_v61 }
 0xf27   : > { %29819 = vmatpush3.bf16.msra.mxu0 %v34320_v20 }
 0xf28   : > { %29820 = vmatprep.subr.bf16.mxu0 %v38695_v61 }
 0xf2b   : > { %29822 = vmatpush3.bf16.msra.mxu0 %v34324_v49 }
 0xf2c   : > { %29823 = vmatprep.subr.bf16.mxu0 %v38695_v61 }
 0xf2f   : > { %29825 = vmatpush3.bf16.msra.mxu0 %v34328_v6 }
 0xf30   : > { %29826 = vmatprep.subr.bf16.mxu0 %v38695_v61 }
 0xf33   : > { %29828 = vmatpush3.bf16.msra.mxu0 %v34332_v23 }
 0xf34   : > { %29829 = vmatprep.subr.bf16.mxu0 %v38695_v61 }
 0xf36   : > { %24909 = vmatmul.mubr.f32.vlgmr.msra.gmra.mrb[14].mxu0 %v7609_v42 }
 0xf37   : > { %29831 = vmatpush3.bf16.msra.mxu0 %v38887_v56  ;;  %24943 = vmatprep.mubr.msk.f32.mxu0 %vm32853_vm0, %v35122_v21  ;;  %v38945_v56 = vld [vmem:[#allocation73_spill] sm:$0xff] }
 0xf38   : > { %29832 = vmatprep.subr.bf16.mxu0 %v38695_v61 }
 0xf3b   : > { %29834 = vmatpush3.bf16.msra.mxu0 %v38888_v50 }
 0xf3c   : > { %29835 = vmatprep.subr.bf16.mxu0 %v38695_v61 }
 0xf3f   : > { %29837 = vmatpush3.bf16.msra.mxu0 %v38889_v58  ;;  %v38944_v58 = vld [vmem:[#allocation72_spill] sm:$0xff] }
 0xf40   : > { %29838 = vmatprep.subr.bf16.mxu0 %v38695_v61 }
 0xf43   : > { %29840 = vmatpush3.bf16.msra.mxu0 %v38890_v45  ;;  %v10080_v45 = vld [vmem:[#allocation6 + $0x158] sm:$0xff] }
 0xf44   : > { %29841 = vmatprep.subr.bf16.mxu0 %v38695_v61 }
 0xf47   : > { %29843 = vmatpush3.bf16.msra.mxu0 %v38891_v54 }
 0xf48   : > { %29844 = vmatprep.subr.bf16.mxu0 %v38695_v61 }
 0xf4b   : > { %29846 = vmatpush3.bf16.msra.mxu0 %v38892_v19 }
 0xf4c   : > { %29847 = vmatprep.subr.bf16.mxu0 %v38695_v61 }
 0xf4f   : > { %29849 = vmatpush3.bf16.msra.mxu0 %v38893_v46 }
 0xf50   : > { %29850 = vmatprep.subr.bf16.mxu0 %v38695_v61 }
 0xf53   : > { %29852 = vmatpush3.bf16.msra.mxu0 %v38894_v35  ;;  %v10079_v35 = vld [vmem:[#allocation6 + $0x150] sm:$0xff] }
 0xf54   : > { %29853 = vmatprep.subr.bf16.mxu0 %v38695_v61 }
 0xf56   : > { %24944 = vmatmul.mubr.f32.vlgmr.msra.gmra.mrb[14].mxu0 %v35555_v34 }
 0xf57   : > { %29855 = vmatpush3.bf16.msra.mxu0 %v34294_v31  ;;  %24978 = vmatprep.mubr.msk.f32.mxu0 %vm32853_vm0, %v35122_v21 }
 0xf58   : > { %29856 = vmatprep.subr.bf16.mxu0 %v38695_v61 }
 0xf5b   : > { %29858 = vmatpush3.bf16.msra.mxu0 %v34301_v9 }
 0xf5c   : > { %29859 = vmatprep.subr.bf16.mxu0 %v38695_v61 }
 0xf5f   : > { %29861 = vmatpush3.bf16.msra.mxu0 %v34311_v30 }
 0xf60   : > { %29862 = vmatprep.subr.bf16.mxu0 %v38695_v61 }
 0xf63   : > { %29864 = vmatpush3.bf16.msra.mxu0 %v34316_v11 }
 0xf64   : > { %29865 = vmatprep.subr.bf16.mxu0 %v38695_v61 }
 0xf67   : > { %29867 = vmatpush3.bf16.msra.mxu0 %v34320_v20 }
 0xf68   : > { %29868 = vmatprep.subr.bf16.mxu0 %v38695_v61 }
 0xf6b   : > { %29870 = vmatpush3.bf16.msra.mxu0 %v34324_v49 }
 0xf6c   : > { %29871 = vmatprep.subr.bf16.mxu0 %v38695_v61 }
 0xf6f   : > { %29873 = vmatpush3.bf16.msra.mxu0 %v34328_v6 }
 0xf70   : > { %29874 = vmatprep.subr.bf16.mxu0 %v38695_v61 }
 0xf73   : > { %29876 = vmatpush3.bf16.msra.mxu0 %v34332_v23 }
 0xf74   : > { %30183 = vmatprep.subr.bf16.mxu0 %v38695_v61 }
 0xf76   : > { %24979 = vmatmul.mubr.f32.vlgmr.msra.gmra.mrb[14].mxu0 %v35555_v34  ;;  %v35673_v34 = vsub.f32 %v35663_v52, %v8227_v62 }
 0xf77   : > { %25523 = vmatprep.mubr.msk.f32.mxu0 %vm32853_vm0, %v35122_v21 }
0x1049   : > { %v8163_v53 = vpop.f32.mrb[14].mxu0 }
0x104a   : > { %v32093_v15 = vadd.f32 1e-05, %v8163_v53  ;;  %v24980_v63 = vpop.f32.mrb[15].mxu0  ;;  %v35681_v53 = vand.u32 4294901760, %v8221_v44 }
0x104b   : > { %v8327_v63 = vand.u32 4294901760, %v35673_v34 }
0x104c   : > { %32615 = vrsqrt.f32 %v32093_v15 }
0x1056   : > { %v32616_v47 = vpop.eup %32615 }
0x1057   : > { %v8169_v13 = vrot.slane %v32616_v47, 4 }
0x1059   : > { %v8171_v37 = vmul.f32 %v8169_v13, %v35551_v12  ;;  %v8209_v12 = vld [vmem:[#allocation2 + $0x10] sm:$0xf] }
0x105a   : > { %v8224_v42 = vsel %vm497_vm2, %v8209_v12, 0 }
0x105b   : > { %v8180_v39 = vmul.f32 %v19945_v59, %v8171_v37  ;;  %v35683_v15 = vand.u32 4294901760, %v8224_v42  ;;  %v8297_v37 = vsub.f32 %v35668_v60, %v8296_v57 }
0x105d   : > { %v8189_v40 = vadd.f32 %v19947_v1, %v8180_v39  ;;  %v35687_v59 = vsub.f32 %v8224_v42, %v35683_v15  ;;  %v8306_v1 = vand.u32 4294901760, %v35679_v0  ;;  %v8315_v39 = vsub.f32 %v8221_v44, %v35681_v53 }
0x105f   : > { %v8199_v21 = vrot.slane %v8189_v40, 4  ;;  %vm8190_vm4 = vcmp.ge.f32.partialorder %v8189_v40, 0.0  ;;  %v8341_v16 = vand.u32 4294901760, %v35687_v59  ;;  %v8307_v29 = vsub.f32 %v35679_v0, %v8306_v1 }
0x1061   : > { %v8201_v7 = vmul.f32 %v8199_v21, %v8196_v28  ;;  %v8328_v21 = vsub.f32 %v35673_v34, %v8327_v63  ;;  %v8342_v10 = vsub.f32 %v35687_v59, %v8341_v16  ;;  %v8308_v12 = vand.u32 4294901760, %v8307_v29  ;;  %v38903_v29 = vld [vmem:[#allocation35_spill] sm:$0xff] }
0x1063   : > { %v8203_v48 = vrot.slane %v8201_v7, 4  ;;  %v8298_v7 = vand.u32 4294901760, %v8297_v37  ;;  %v8329_v36 = vand.u32 4294901760, %v8328_v21 }
0x1065   : > { %v8205_v26 = vsel %vm8190_vm4, %v8189_v40, %v8203_v48  ;;  %v8316_v48 = vand.u32 4294901760, %v8315_v39 }
0x1066   : > { %8206 = vst [vmem:[#allocation2 + $0x4] sm:$0xf0] %v8205_v26 }
0x1067   : > { %v8317_v44 = vsub.f32 %v8315_v39, %v8316_v48 }
0x106d   : > { %v8208_v47 = vld [vmem:[#allocation2 + $0x8] sm:$0xff] }
0x106e   : > { %v8230_v13 = vand.u32 4294901760, %v8208_v47 }
0x1070   : > { %v35694_v40 = vpack.c.bf16 %v8230_v13, %v8227_v62  ;;  %v8333_v5 = vsub.f32 %v8208_v47, %v8230_v13  ;;  %v8343_v47 = vand.u32 4294901760, %v8342_v10  ;;  %v8318_v13 = vand.u32 4294901760, %v8317_v44  ;;  %v38908_v10 = vld [vmem:[#allocation40_spill] sm:$0xff] }
0x1071   : > { %v38910_v44 = vld [vmem:[#allocation32_spill] sm:$0xff] }
0x1072   : > { %29879 = vmatpush3.bf16.msra.mxu1 %v35694_v40  ;;  %v8334_v28 = vand.u32 4294901760, %v8333_v5  ;;  %v29884_v37 = vpack.c.bf16 %v8333_v5, %v35673_v34 }
0x1073   : > { %24985 = vmatprep.subr.mxu1 %v35663_v52 }
0x1074   : > { %v8335_v26 = vsub.f32 %v8333_v5, %v8334_v28  ;;  %v29890_v34 = vpack.c.bf16 %v8334_v28, %v8327_v63  ;;  %v38902_v63 = vld [vmem:[#allocation30_spill] sm:$0xff] }
0x1076   : > { %24986 = vmatpush3.msra.mxu1 %v35683_v15  ;;  %v8336_v62 = vand.u32 4294901760, %v8335_v26  ;;  %v38906_v26 = vld [vmem:[#allocation38_spill] sm:$0xff] }
0x1077   : > { %24988 = vmatmul.mubr.f32.vlgmr.msra.gmra.mrb[10].mxu1 %v8298_v7  ;;  %29880 = vmatprep.subr.bf16.mxu1 %v38695_v61 }
0x1078   : > { %24990 = vmatprep.mubr.msk.f32.mxu1 %vm32853_vm0, %v35663_v52  ;;  %v29881_v42 = vpack.c.bf16 %v8336_v62, %v8329_v36  ;;  %v38905_v36 = vld [vmem:[#allocation37_spill] sm:$0xff]  ;;  %v38907_v62 = vld [vmem:[#allocation39_spill] sm:$0xff] }
0x107a   : > { %29882 = vmatpush3.bf16.msra.mxu1 %v29881_v42  ;;  %v38911_v42 = vld [vmem:[#allocation41_spill] sm:$0xff] }
0x107b   : > { %24991 = vmatmul.mubr.f32.gmra.mrb[12].mxu1 %v8308_v12  ;;  %25000 = vmatprep.subr.mxu1 %v35663_v52  ;;  %v38909_v12 = vld [vmem:[#allocation31_spill] sm:$0xff] }
0x107c   : > { %24993 = vmatprep.mubr.msk.f32.mxu1 %vm32853_vm0, %v35663_v52 }
0x107e   : > { %25001 = vmatpush3.msra.mxu1 %v8343_v47  ;;  %v38912_v47 = vld [vmem:[#allocation42_spill] sm:$0xff] }
0x107f   : > { %24994 = vmatmul.mubr.f32.gmra.mrb[14].mxu1 %v8318_v13  ;;  %29883 = vmatprep.subr.bf16.mxu1 %v38695_v61  ;;  %v38913_v13 = vld [vmem:[#allocation43_spill] sm:$0xff] }
0x1080   : > { %25002 = vmatprep.mubr.msk.f32.mxu1 %vm32853_vm0, %v35663_v52 }
0x1083   : > { %25003 = vmatmul.mubr.f32.vlgmr.msra.gmra.mrb[10].mxu1 %v35661_v2 }
0x1084   : > { %29885 = vmatpush3.bf16.msra.mxu1 %v29884_v37  ;;  %25005 = vmatprep.mubr.msk.f32.mxu1 %vm32853_vm0, %v35663_v52  ;;  %v38914_v37 = vld [vmem:[#allocation44_spill] sm:$0xff] }
0x1085   : > { %25015 = vmatprep.subr.mxu1 %v35663_v52 }
0x1087   : > { %25006 = vmatmul.mubr.f32.gmra.mrb[12].mxu1 %v35670_v38 }
0x1088   : > { %25008 = vmatprep.mubr.msk.f32.mxu1 %vm32853_vm0, %v35663_v52  ;;  %25016 = vmatpush3.msra.mxu1 %v35687_v59 }
0x1089   : > { %29886 = vmatprep.subr.bf16.mxu1 %v38695_v61 }
0x108b   : > { %25009 = vmatmul.mubr.f32.gmra.mrb[14].mxu1 %v35681_v53 }
0x108c   : > { %25017 = vmatprep.mubr.msk.f32.mxu1 %vm32853_vm0, %v35663_v52 }
0x108f   : > { %25018 = vmatmul.mubr.f32.vlgmr.msra.gmra.mrb[10].mxu1 %v35668_v60  ;;  %v38895_v60 = vld [vmem:[#allocation23_spill] sm:$0xff] }
0x1090   : > { %29888 = vmatpush3.bf16.msra.mxu1 %v35694_v40  ;;  %25020 = vmatprep.mubr.msk.f32.mxu1 %vm32853_vm0, %v35663_v52 }
0x1091   : > { %25030 = vmatprep.subr.mxu1 %v35663_v52 }
0x1093   : > { %25021 = vmatmul.mubr.f32.gmra.mrb[12].mxu1 %v35679_v0  ;;  %v38897_v0 = vld [vmem:[#allocation25_spill] sm:$0xff] }
0x1094   : > { %25023 = vmatprep.mubr.msk.f32.mxu1 %vm32853_vm0, %v35663_v52  ;;  %25031 = vmatpush3.msra.mxu1 %v35683_v15 }
0x1095   : > { %29889 = vmatprep.subr.bf16.mxu1 %v38695_v61 }
0x1097   : > { %25024 = vmatmul.mubr.f32.gmra.mrb[14].mxu1 %v8315_v39 }
0x1098   : > { %25032 = vmatprep.mubr.msk.f32.mxu1 %vm32853_vm0, %v35663_v52 }
0x109b   : > { %25033 = vmatmul.mubr.f32.vlgmr.msra.gmra.mrb[10].mxu1 %v8296_v57  ;;  %v38896_v57 = vld [vmem:[#allocation24_spill] sm:$0xff] }
0x109c   : > { %29891 = vmatpush3.bf16.msra.mxu1 %v29890_v34  ;;  %25035 = vmatprep.mubr.msk.f32.mxu1 %vm32853_vm0, %v35663_v52  ;;  %v38915_v34 = vld [vmem:[#allocation45_spill] sm:$0xff] }
0x109d   : > { %25045 = vmatprep.subr.mxu1 %v35663_v52 }
0x109f   : > { %25036 = vmatmul.mubr.f32.gmra.mrb[12].mxu1 %v8306_v1 }
0x10a0   : > { %25038 = vmatprep.mubr.msk.f32.mxu1 %vm32853_vm0, %v35663_v52  ;;  %25046 = vmatpush3.msra.mxu1 %v8341_v16 }
0x10a1   : > { %29892 = vmatprep.subr.bf16.mxu1 %v38695_v61 }
0x10a3   : > { %25039 = vmatmul.mubr.f32.gmra.mrb[14].mxu1 %v8316_v48  ;;  %v38904_v48 = vld [vmem:[#allocation36_spill] sm:$0xff] }
0x10a4   : > { %25047 = vmatprep.mubr.msk.f32.mxu1 %vm32853_vm0, %v35663_v52 }
0x10a7   : > { %25048 = vmatmul.mubr.f32.vlgmr.msra.gmra.mrb[10].mxu1 %v35661_v2 }
0x10a8   : > { %29894 = vmatpush3.bf16.msra.mxu1 %v35694_v40  ;;  %25050 = vmatprep.mubr.msk.f32.mxu1 %vm32853_vm0, %v35663_v52 }
0x10a9   : > { %25060 = vmatprep.subr.mxu1 %v35663_v52 }
0x10ab   : > { %25051 = vmatmul.mubr.f32.gmra.mrb[12].mxu1 %v35670_v38 }
0x10ac   : > { %25053 = vmatprep.mubr.msk.f32.mxu1 %vm32853_vm0, %v35663_v52  ;;  %25061 = vmatpush3.msra.mxu1 %v35683_v15  ;;  %v38900_v15 = vld [vmem:[#allocation28_spill] sm:$0xff] }
0x10ad   : > { %29895 = vmatprep.subr.bf16.mxu1 %v38695_v61 }
0x10af   : > { %25054 = vmatmul.mubr.f32.gmra.mrb[14].mxu1 %v35681_v53 }
0x10b0   : > { %25062 = vmatprep.mubr.msk.f32.mxu1 %vm32853_vm0, %v35663_v52 }
0x10b3   : > { %25063 = vmatmul.mubr.f32.vlgmr.msra.gmra.mrb[10].mxu1 %v35661_v2  ;;  %v38898_v2 = vld [vmem:[#allocation26_spill] sm:$0xff] }
0x10b4   : > { %25065 = vmatprep.mubr.msk.f32.mxu1 %vm32853_vm0, %v35663_v52  ;;  %29897 = vmatpush3.bf16.msra.mxu1 %v38895_v60 }
0x10b5   : > { %29898 = vmatprep.subr.bf16.mxu1 %v38695_v61 }
0x10b7   : > { %25066 = vmatmul.mubr.f32.gmra.mrb[12].mxu1 %v35670_v38  ;;  %v38899_v38 = vld [vmem:[#allocation27_spill] sm:$0xff] }
0x10b8   : > { %25068 = vmatprep.mubr.msk.f32.mxu1 %vm32853_vm0, %v35663_v52  ;;  %29900 = vmatpush3.bf16.msra.mxu1 %v38896_v57 }
0x10b9   : > { %29901 = vmatprep.subr.bf16.mxu1 %v38695_v61 }
0x10bb   : > { %25069 = vmatmul.mubr.f32.gmra.mrb[14].mxu1 %v35681_v53  ;;  %v38901_v53 = vld [vmem:[#allocation29_spill] sm:$0xff] }
0x10bc   : > { %29903 = vmatpush3.bf16.msra.mxu1 %v38897_v0  ;;  %25103 = vmatprep.mubr.msk.f32.mxu1 %vm32853_vm0, %v35663_v52 }
0x10bd   : > { %29904 = vmatprep.subr.bf16.mxu1 %v38695_v61 }
0x10c0   : > { %29906 = vmatpush3.bf16.msra.mxu1 %v38898_v2 }
0x10c1   : > { %29907 = vmatprep.subr.bf16.mxu1 %v38695_v61 }
0x10c4   : > { %29909 = vmatpush3.bf16.msra.mxu1 %v38899_v38 }
0x10c5   : > { %29910 = vmatprep.subr.bf16.mxu1 %v38695_v61 }
0x10c8   : > { %29912 = vmatpush3.bf16.msra.mxu1 %v38900_v15 }
0x10c9   : > { %29913 = vmatprep.subr.bf16.mxu1 %v38695_v61 }
0x10cc   : > { %29915 = vmatpush3.bf16.msra.mxu1 %v38901_v53 }
0x10cd   : > { %29916 = vmatprep.subr.bf16.mxu1 %v38695_v61 }
0x10d0   : > { %29918 = vmatpush3.bf16.msra.mxu1 %v38902_v63 }
0x10d1   : > { %29919 = vmatprep.subr.bf16.mxu1 %v38695_v61 }
0x1186   : > { %v8768_v59 = vpop.f32.mrb[10].mxu1 }
0x1187   : > { %v35785_v1 = vand.u32 4294901760, %v8768_v59  ;;  %v25064_v39 = vpop.f32.mrb[11].mxu1 }
0x1188   : > { %v38917_v39 = vld [vmem:[#allocation33_spill] sm:$0xff] }
0x1189   : > { %v8866_v40 = vsub.f32 %v8768_v59, %v35785_v1  ;;  %v38916_v59 = vld [vmem:[#allocation46_spill] sm:$0xff] }
0x118b   : > { %v8867_v5 = vand.u32 4294901760, %v8866_v40 }
0x118d   : > { %v8868_v21 = vsub.f32 %v8866_v40, %v8867_v5 }
0x118e   : > { %v35788_v28 = vpop.f32.mrb[14].mxu1 }
0x118f   : > { %v8869_v16 = vand.u32 4294901760, %v8868_v21  ;;  %v25070_v7 = vpop.f32.mrb[15].mxu1  ;;  %v38918_v21 = vld [vmem:[#allocation34_spill] sm:$0xff] }
0x1190   : > { %v38921_v7 = vld [vmem:[#allocation49_spill] sm:$0xff] }
0x1191   : > { %25104 = vmatmul.mubr.f32.vlgmr.msra.gmra.mrb[12].mxu1 %v8869_v16  ;;  %v38920_v16 = vld [vmem:[#allocation48_spill] sm:$0xff] }
0x1192   : > { %29921 = vmatpush3.bf16.msra.mxu1 %v38903_v29  ;;  %25138 = vmatprep.mubr.msk.f32.mxu1 %vm32853_vm0, %v35663_v52 }
0x1193   : > { %29922 = vmatprep.subr.bf16.mxu1 %v38695_v61 }
0x1196   : > { %29924 = vmatpush3.bf16.msra.mxu1 %v38904_v48  ;;  %v10074_v48 = vld [vmem:[#allocation6 + $0x128] sm:$0xff] }
0x1197   : > { %29925 = vmatprep.subr.bf16.mxu1 %v38695_v61 }
0x119a   : > { %29927 = vmatpush3.bf16.msra.mxu1 %v38905_v36  ;;  %v10073_v36 = vld [vmem:[#allocation6 + $0x120] sm:$0xff] }
0x119b   : > { %29928 = vmatprep.subr.bf16.mxu1 %v38695_v61  ;;  %v10098_v29 = vand.u32 4294901760, %v10073_v36 }
0x119d   : > { %v35947_v54 = vsub.f32 %v10073_v36, %v10098_v29 }
0x119e   : > { %29930 = vmatpush3.bf16.msra.mxu1 %v38906_v26  ;;  %v10072_v26 = vld [vmem:[#allocation6 + $0x118] sm:$0xff] }
0x119f   : > { %29931 = vmatprep.subr.bf16.mxu1 %v38695_v61 }
0x11a2   : > { %29933 = vmatpush3.bf16.msra.mxu1 %v38907_v62 }
0x11a3   : > { %29934 = vmatprep.subr.bf16.mxu1 %v38695_v61 }
0x11a6   : > { %29936 = vmatpush3.bf16.msra.mxu1 %v38908_v10  ;;  %v10071_v10 = vld [vmem:[#allocation6 + $0x110] sm:$0xff] }
0x11a7   : > { %29937 = vmatprep.subr.bf16.mxu1 %v38695_v61 }
0x11aa   : > { %29939 = vmatpush3.bf16.msra.mxu1 %v38909_v12  ;;  %v38938_v12 = vld [vmem:[#allocation66_spill] sm:$0xff] }
0x11ab   : > { %29940 = vmatprep.subr.bf16.mxu1 %v38695_v61 }
0x11ae   : > { %29942 = vmatpush3.bf16.msra.mxu1 %v38910_v44  ;;  %v38936_v44 = vld [vmem:[#allocation64_spill] sm:$0xff] }
0x11af   : > { %29943 = vmatprep.subr.bf16.mxu1 %v38695_v61 }
0x11b1   : > { %25139 = vmatmul.mubr.f32.vlgmr.msra.gmra.mrb[12].mxu1 %v35785_v1 }
0x11b2   : > { %29945 = vmatpush3.bf16.msra.mxu1 %v38911_v42  ;;  %25173 = vmatprep.mubr.msk.f32.mxu1 %vm32853_vm0, %v35663_v52  ;;  %v38935_v42 = vld [vmem:[#allocation63_spill] sm:$0xff] }
0x11b3   : > { %29946 = vmatprep.subr.bf16.mxu1 %v38695_v61 }
0x11b6   : > { %29948 = vmatpush3.bf16.msra.mxu1 %v38912_v47  ;;  %v38934_v47 = vld [vmem:[#allocation62_spill] sm:$0xff] }
0x11b7   : > { %29949 = vmatprep.subr.bf16.mxu1 %v38695_v61 }
0x11ba   : > { %29951 = vmatpush3.bf16.msra.mxu1 %v38913_v13 }
0x11bb   : > { %29952 = vmatprep.subr.bf16.mxu1 %v38695_v61 }
0x11be   : > { %29954 = vmatpush3.bf16.msra.mxu1 %v38914_v37  ;;  %v38933_v37 = vld [vmem:[#allocation61_spill] sm:$0xff] }
0x11bf   : > { %29955 = vmatprep.subr.bf16.mxu1 %v38695_v61 }
0x11c2   : > { %29957 = vmatpush3.bf16.msra.mxu1 %v38915_v34 }
0x11c3   : > { %29958 = vmatprep.subr.bf16.mxu1 %v38695_v61 }
0x11c6   : > { %29960 = vmatpush3.bf16.msra.mxu1 %v38916_v59  ;;  %v38932_v59 = vld [vmem:[#allocation60_spill] sm:$0xff] }
0x11c7   : > { %29961 = vmatprep.subr.bf16.mxu1 %v38695_v61 }
0x11ca   : > { %29963 = vmatpush3.bf16.msra.mxu1 %v38917_v39  ;;  %v38925_v39 = vld [vmem:[#allocation53_spill] sm:$0xff] }
0x11cb   : > { %29964 = vmatprep.subr.bf16.mxu1 %v38695_v61 }
0x11ce   : > { %29966 = vmatpush3.bf16.msra.mxu1 %v38918_v21  ;;  %v38922_v21 = vld [vmem:[#allocation50_spill] sm:$0xff] }
0x11cf   : > { %29967 = vmatprep.subr.bf16.mxu1 %v38695_v61 }
0x11d1   : > { %25174 = vmatmul.mubr.f32.vlgmr.msra.gmra.mrb[12].mxu1 %v8866_v40  ;;  %v38919_v40 = vld [vmem:[#allocation47_spill] sm:$0xff] }
0x11d2   : > { %29969 = vmatpush3.bf16.msra.mxu1 %v38895_v60  ;;  %25208 = vmatprep.mubr.msk.f32.mxu1 %vm32853_vm0, %v35663_v52 }
0x11d3   : > { %29970 = vmatprep.subr.bf16.mxu1 %v38695_v61 }
0x11d6   : > { %29972 = vmatpush3.bf16.msra.mxu1 %v38896_v57 }
0x11d7   : > { %29973 = vmatprep.subr.bf16.mxu1 %v38695_v61 }
0x11da   : > { %29975 = vmatpush3.bf16.msra.mxu1 %v38897_v0 }
0x11db   : > { %29976 = vmatprep.subr.bf16.mxu1 %v38695_v61 }
0x11de   : > { %29978 = vmatpush3.bf16.msra.mxu1 %v38898_v2 }
0x11df   : > { %29979 = vmatprep.subr.bf16.mxu1 %v38695_v61 }
0x11e2   : > { %29981 = vmatpush3.bf16.msra.mxu1 %v38899_v38 }
0x11e3   : > { %29982 = vmatprep.subr.bf16.mxu1 %v38695_v61 }
0x11e6   : > { %29984 = vmatpush3.bf16.msra.mxu1 %v38900_v15 }
0x11e7   : > { %29985 = vmatprep.subr.bf16.mxu1 %v38695_v61 }
0x11ea   : > { %29987 = vmatpush3.bf16.msra.mxu1 %v38901_v53 }
0x11eb   : > { %29988 = vmatprep.subr.bf16.mxu1 %v38695_v61 }
0x11ee   : > { %29990 = vmatpush3.bf16.msra.mxu1 %v38902_v63 }
0x11ef   : > { %29991 = vmatprep.subr.bf16.mxu1 %v38695_v61 }
0x11f1   : > { %25209 = vmatmul.mubr.f32.vlgmr.msra.gmra.mrb[12].mxu1 %v8867_v5  ;;  %v38923_v5 = vld [vmem:[#allocation51_spill] sm:$0xff] }
0x11f2   : > { %29993 = vmatpush3.bf16.msra.mxu1 %v38919_v40  ;;  %25243 = vmatprep.mubr.msk.f32.mxu1 %vm32853_vm0, %v35663_v52  ;;  %v38924_v40 = vld [vmem:[#allocation52_spill] sm:$0xff] }
0x11f3   : > { %29994 = vmatprep.subr.bf16.mxu1 %v38695_v61 }
0x11f6   : > { %29996 = vmatpush3.bf16.msra.mxu1 %v38920_v16  ;;  %v38926_v16 = vld [vmem:[#allocation54_spill] sm:$0xff] }
0x11f7   : > { %29997 = vmatprep.subr.bf16.mxu1 %v38695_v61 }
0x11fa   : > { %29999 = vmatpush3.bf16.msra.mxu1 %v38921_v7 }
0x11fb   : > { %30000 = vmatprep.subr.bf16.mxu1 %v38695_v61 }
0x11fe   : > { %30002 = vmatpush3.bf16.msra.mxu1 %v38922_v21  ;;  %v35893_v21 = vand.u32 4294901760, %v35788_v28 }
0x11ff   : > { %30003 = vmatprep.subr.bf16.mxu1 %v38695_v61 }
0x1200   : > { %v35899_v7 = vsub.f32 %v35788_v28, %v35893_v21 }
0x1202   : > { %30005 = vmatpush3.bf16.msra.mxu1 %v38923_v5  ;;  %v38930_v5 = vld [vmem:[#allocation58_spill] sm:$0xff]  ;;  %v38503_v34 = vand.u32 4294901760, %v35899_v7 }
0x1203   : > { %30006 = vmatprep.subr.bf16.mxu1 %v38695_v61 }
0x1204   : > { %v9510_v13 = vsub.f32 %v35899_v7, %v38503_v34  ;;  %v38937_v34 = vld [vmem:[#allocation65_spill] sm:$0xff] }
0x1206   : > { %30008 = vmatpush3.bf16.msra.mxu1 %v38924_v40  ;;  %v38929_v40 = vld [vmem:[#allocation57_spill] sm:$0xff]  ;;  %v9511_v28 = vand.u32 4294901760, %v9510_v13  ;;  %v38939_v13 = vld [vmem:[#allocation67_spill] sm:$0xff] }
0x1207   : > { %30009 = vmatprep.subr.bf16.mxu1 %v38695_v61 }
0x120a   : > { %30011 = vmatpush3.bf16.msra.mxu1 %v38925_v39  ;;  %v38928_v39 = vld [vmem:[#allocation56_spill] sm:$0xff] }
0x120b   : > { %30012 = vmatprep.subr.bf16.mxu1 %v38695_v61 }
0x120e   : > { %30014 = vmatpush3.bf16.msra.mxu1 %v38926_v16  ;;  %v38927_v16 = vld [vmem:[#allocation55_spill] sm:$0xff] }
0x120f   : > { %30015 = vmatprep.subr.bf16.mxu1 %v38695_v61 }
0x1211   : > { %25244 = vmatmul.mubr.f32.vlgmr.msra.gmra.mrb[12].mxu1 %v35785_v1 }
0x1212   : > { %30017 = vmatpush3.bf16.msra.mxu1 %v38895_v60  ;;  %25278 = vmatprep.mubr.msk.f32.mxu1 %vm32853_vm0, %v35663_v52  ;;  %v10078_v60 = vld [vmem:[#allocation6 + $0x148] sm:$0xff] }
0x1213   : > { %30018 = vmatprep.subr.bf16.mxu1 %v38695_v61 }
0x1216   : > { %30020 = vmatpush3.bf16.msra.mxu1 %v38896_v57 }
0x1217   : > { %30021 = vmatprep.subr.bf16.mxu1 %v38695_v61 }
0x121a   : > { %30023 = vmatpush3.bf16.msra.mxu1 %v38897_v0 }
0x121b   : > { %30024 = vmatprep.subr.bf16.mxu1 %v38695_v61 }
0x121e   : > { %30026 = vmatpush3.bf16.msra.mxu1 %v38898_v2 }
0x121f   : > { %30027 = vmatprep.subr.bf16.mxu1 %v38695_v61 }
0x1222   : > { %30029 = vmatpush3.bf16.msra.mxu1 %v38899_v38  ;;  %v10077_v38 = vld [vmem:[#allocation6 + $0x140] sm:$0xff] }
0x1223   : > { %30030 = vmatprep.subr.bf16.mxu1 %v38695_v61 }
0x1226   : > { %30032 = vmatpush3.bf16.msra.mxu1 %v38900_v15  ;;  %v10076_v15 = vld [vmem:[#allocation6 + $0x138] sm:$0xff] }
0x1227   : > { %30033 = vmatprep.subr.bf16.mxu1 %v38695_v61 }
0x122a   : > { %30035 = vmatpush3.bf16.msra.mxu1 %v38901_v53  ;;  %v10075_v53 = vld [vmem:[#allocation6 + $0x130] sm:$0xff] }
0x122b   : > { %30036 = vmatprep.subr.bf16.mxu1 %v38695_v61 }
0x122e   : > { %30038 = vmatpush3.bf16.msra.mxu1 %v38902_v63  ;;  %v10101_v63 = vand.u32 4294901760, %v10074_v48 }
0x122f   : > { %30039 = vmatprep.subr.bf16.mxu1 %v38695_v61 }
0x1230   : > { %v35951_v50 = vsub.f32 %v10074_v48, %v10101_v63  ;;  %v35967_v41 = vpack.c.bf16 %v10101_v63, %v10098_v29  ;;  %v38949_v63 = vld [vmem:[#allocation77_spill] sm:$0xff]  ;;  %v38950_v29 = vld [vmem:[#allocation78_spill] sm:$0xff] }
0x1231   : > { %25279 = vmatmul.mubr.f32.vlgmr.msra.gmra.mrb[12].mxu1 %v35785_v1  ;;  %v38931_v1 = vld [vmem:[#allocation59_spill] sm:$0xff] }
0x1232   : > { %30041 = vmatpush3.bf16.msra.mxu1 %v38927_v16  ;;  %25313 = vmatprep.mubr.msk.f32.mxu1 %vm32853_vm0, %v35663_v52 }
0x1233   : > { %30042 = vmatprep.subr.bf16.mxu1 %v38695_v61 }
0x1236   : > { %30044 = vmatpush3.bf16.msra.mxu1 %v38928_v39 }
0x1237   : > { %30045 = vmatprep.subr.bf16.mxu1 %v38695_v61 }
0x123a   : > { %30047 = vmatpush3.bf16.msra.mxu1 %v38929_v40 }
0x123b   : > { %30048 = vmatprep.subr.bf16.mxu1 %v38695_v61 }
0x123e   : > { %30050 = vmatpush3.bf16.msra.mxu1 %v38930_v5 }
0x123f   : > { %30051 = vmatprep.subr.bf16.mxu1 %v38695_v61 }
0x1242   : > { %30053 = vmatpush3.bf16.msra.mxu1 %v38931_v1 }
0x1243   : > { %30054 = vmatprep.subr.bf16.mxu1 %v38695_v61 }
0x1246   : > { %30056 = vmatpush3.bf16.msra.mxu1 %v38932_v59 }
0x1247   : > { %30057 = vmatprep.subr.bf16.mxu1 %v38695_v61 }
0x124a   : > { %30059 = vmatpush3.bf16.msra.mxu1 %v38933_v37 }
0x124b   : > { %30060 = vmatprep.subr.bf16.mxu1 %v38695_v61 }
0x124e   : > { %30062 = vmatpush3.bf16.msra.mxu1 %v38934_v47 }
0x124f   : > { %30063 = vmatprep.subr.bf16.mxu1 %v38695_v61 }
0x1251   : > { %25314 = vmatmul.mubr.f32.vlgmr.msra.gmra.mrb[12].mxu1 %v9511_v28  ;;  %v38940_v28 = vld [vmem:[#allocation68_spill] sm:$0xff] }
0x1252   : > { %30065 = vmatpush3.bf16.msra.mxu1 %v38935_v42  ;;  %25348 = vmatprep.mubr.msk.f32.mxu1 %vm32853_vm0, %v35663_v52  ;;  %v38941_v42 = vld [vmem:[#allocation69_spill] sm:$0xff] }
0x1253   : > { %30066 = vmatprep.subr.bf16.mxu1 %v38695_v61 }
0x1256   : > { %30068 = vmatpush3.bf16.msra.mxu1 %v38936_v44  ;;  %v38942_v44 = vld [vmem:[#allocation70_spill] sm:$0xff] }
0x1257   : > { %30069 = vmatprep.subr.bf16.mxu1 %v38695_v61 }
0x125a   : > { %30071 = vmatpush3.bf16.msra.mxu1 %v38937_v34  ;;  %v10070_v34 = vld [vmem:[#allocation6 + $0x108] sm:$0xff] }
0x125b   : > { %30072 = vmatprep.subr.bf16.mxu1 %v38695_v61  ;;  %v10089_v62 = vand.u32 4294901760, %v10070_v34 }
0x125d   : > { %v35939_v0 = vsub.f32 %v10070_v34, %v10089_v62  ;;  %v10110_v34 = vand.u32 4294901760, %v10077_v38 }
0x125e   : > { %30074 = vmatpush3.bf16.msra.mxu1 %v38938_v12  ;;  %v10069_v12 = vld [vmem:[#allocation6 + $0x100] sm:$0xff] }
0x125f   : > { %30075 = vmatprep.subr.bf16.mxu1 %v38695_v61 }
0x1262   : > { %30077 = vmatpush3.bf16.msra.mxu1 %v38939_v13  ;;  %v38943_v13 = vld [vmem:[#allocation71_spill] sm:$0xff] }
0x1263   : > { %30078 = vmatprep.subr.bf16.mxu1 %v38695_v61 }
0x1266   : > { %30080 = vmatpush3.bf16.msra.mxu1 %v38940_v28  ;;  %v10086_v28 = vand.u32 4294901760, %v10069_v12 }
0x1267   : > { %30081 = vmatprep.subr.bf16.mxu1 %v38695_v61 }
0x1268   : > { %v35935_v2 = vpack.c.bf16 %v10089_v62, %v10086_v28  ;;  %v10107_v62 = vand.u32 4294901760, %v10076_v15 }
0x126a   : > { %30083 = vmatpush3.bf16.msra.mxu1 %v38941_v42  ;;  %v10092_v42 = vand.u32 4294901760, %v10071_v10  ;;  %30185 = vmatpush3.bf16.msra.mxu0 %v35935_v2  ;;  %v35957_v36 = vsub.f32 %v10076_v15, %v10107_v62  ;;  %v38946_v15 = vld [vmem:[#allocation74_spill] sm:$0xff] }
0x126b   : > { %30084 = vmatprep.subr.bf16.mxu1 %v38695_v61  ;;  %30186 = vmatprep.subr.bf16.mxu0 %v38695_v61 }
0x126c   : > { %v35941_v57 = vsub.f32 %v10071_v10, %v10092_v42  ;;  %v10113_v10 = vand.u32 4294901760, %v10078_v60 }
0x126e   : > { %30086 = vmatpush3.bf16.msra.mxu1 %v38942_v44  ;;  %v10095_v44 = vand.u32 4294901760, %v10072_v26 }
0x126f   : > { %30087 = vmatprep.subr.bf16.mxu1 %v38695_v61 }
0x1270   : > { %v35943_v46 = vpack.c.bf16 %v10095_v44, %v10092_v42  ;;  %v35945_v19 = vsub.f32 %v10072_v26, %v10095_v44  ;;  %v10116_v42 = vand.u32 4294901760, %v10079_v35  ;;  %v35959_v44 = vsub.f32 %v10077_v38, %v10110_v34  ;;  %v38948_v38 = vld [vmem:[#allocation76_spill] sm:$0xff] }
0x1271   : > { %25349 = vmatmul.mubr.f32.vlgmr.msra.gmra.mrb[12].mxu1 %v35893_v21 }
0x1272   : > { %30089 = vmatpush3.bf16.msra.mxu1 %v38943_v13  ;;  %25383 = vmatprep.mubr.msk.f32.mxu1 %vm32853_vm0, %v35663_v52  ;;  %v35937_v13 = vsub.f32 %v10069_v12, %v10086_v28  ;;  %v10104_v12 = vand.u32 4294901760, %v10075_v53  ;;  %v10119_v28 = vand.u32 4294901760, %v10080_v45  ;;  %v35963_v48 = vsub.f32 %v10079_v35, %v10116_v42  ;;  %v38947_v35 = vld [vmem:[#allocation75_spill] sm:$0xff] }
0x1273   : > { %30090 = vmatprep.subr.bf16.mxu1 %v38695_v61  ;;  %30188 = vmatpush3.bf16.msra.mxu0 %v35943_v46 }
0x1274   : > { %v35955_v26 = vsub.f32 %v10075_v53, %v10104_v12  ;;  %v35969_v27 = vsub.f32 %v10080_v45, %v10119_v28  ;;  %30189 = vmatprep.subr.bf16.mxu0 %v38695_v61  ;;  %v35981_v45 = vpack.c.bf16 %v10113_v10, %v10110_v34  ;;  %v35987_v53 = vpack.c.bf16 %v10119_v28, %v10116_v42  ;;  %v38953_v34 = vld [vmem:[#allocation80_spill] sm:$0xff]  ;;  %v38955_v42 = vld [vmem:[#allocation82_spill] sm:$0xff] }
0x1275   : > { %v38957_v28 = vld [vmem:[#allocation84_spill] sm:$0xff] }
0x1276   : > { %30092 = vmatpush3.bf16.msra.mxu1 %v38944_v58  ;;  %v35961_v58 = vsub.f32 %v10078_v60, %v10113_v10  ;;  %v35975_v60 = vpack.c.bf16 %v10107_v62, %v10104_v12  ;;  %v38951_v12 = vand.u32 4294901760, %v35899_v7  ;;  %v38952_v62 = vld [vmem:[#allocation79_spill] sm:$0xff]  ;;  %v38954_v10 = vld [vmem:[#allocation81_spill] sm:$0xff] }
0x1277   : > { %30093 = vmatprep.subr.bf16.mxu1 %v38695_v61  ;;  %30191 = vmatpush3.bf16.msra.mxu0 %v35967_v41 }
0x1278   : > { %30192 = vmatprep.subr.bf16.mxu0 %v38695_v61 }
0x127a   : > { %30095 = vmatpush3.bf16.msra.mxu1 %v38945_v56 }
0x127b   : > { %30096 = vmatprep.subr.bf16.mxu1 %v38695_v61  ;;  %30194 = vmatpush3.bf16.msra.mxu0 %v35975_v60 }
0x127c   : > { %30195 = vmatprep.subr.bf16.mxu0 %v38695_v61 }
0x127e   : > { %30098 = vmatpush3.bf16.msra.mxu1 %v38946_v15 }
0x127f   : > { %30099 = vmatprep.subr.bf16.mxu1 %v38695_v61  ;;  %30197 = vmatpush3.bf16.msra.mxu0 %v35981_v45 }
0x1280   : > { %30198 = vmatprep.subr.bf16.mxu0 %v38695_v61 }
0x1282   : > { %30101 = vmatpush3.bf16.msra.mxu1 %v38947_v35 }
0x1283   : > { %30102 = vmatprep.subr.bf16.mxu1 %v38695_v61  ;;  %30200 = vmatpush3.bf16.msra.mxu0 %v35987_v53 }
0x1284   : > { %30201 = vmatprep.subr.bf16.mxu0 %v38695_v61 }
0x1286   : > { %30104 = vmatpush3.bf16.msra.mxu1 %v38948_v38  ;;  %v38526_v38 = vand.u32 4294901760, %v35939_v0 }
0x1287   : > { %30105 = vmatprep.subr.bf16.mxu1 %v38695_v61 }
0x128a   : > { %30107 = vmatpush3.bf16.msra.mxu1 %v38949_v63  ;;  %v38527_v63 = vand.u32 4294901760, %v35937_v13 }
0x128b   : > { %30108 = vmatprep.subr.bf16.mxu1 %v38695_v61 }
0x128e   : > { %30110 = vmatpush3.bf16.msra.mxu1 %v38950_v29 }
0x128f   : > { %30111 = vmatprep.subr.bf16.mxu1 %v38695_v61 }
0x1291   : > { %25384 = vmatmul.mubr.f32.vlgmr.msra.gmra.mrb[12].mxu1 %v35899_v7  ;;  %v38956_v7 = vld [vmem:[#allocation83_spill] sm:$0xff] }
0x1292   : > { %30113 = vmatpush3.bf16.msra.mxu1 %v38927_v16  ;;  %25418 = vmatprep.mubr.msk.f32.mxu1 %vm32853_vm0, %v35663_v52 }
0x1293   : > { %30114 = vmatprep.subr.bf16.mxu1 %v38695_v61 }
0x1296   : > { %30116 = vmatpush3.bf16.msra.mxu1 %v38928_v39 }
0x1297   : > { %30117 = vmatprep.subr.bf16.mxu1 %v38695_v61 }
0x129a   : > { %30119 = vmatpush3.bf16.msra.mxu1 %v38929_v40 }
0x129b   : > { %30120 = vmatprep.subr.bf16.mxu1 %v38695_v61 }
0x129e   : > { %30122 = vmatpush3.bf16.msra.mxu1 %v38930_v5 }
0x129f   : > { %30123 = vmatprep.subr.bf16.mxu1 %v38695_v61 }
0x12a2   : > { %30125 = vmatpush3.bf16.msra.mxu1 %v38931_v1 }
0x12a3   : > { %30126 = vmatprep.subr.bf16.mxu1 %v38695_v61 }
0x12a6   : > { %30128 = vmatpush3.bf16.msra.mxu1 %v38932_v59 }
0x12a7   : > { %30129 = vmatprep.subr.bf16.mxu1 %v38695_v61 }
0x12aa   : > { %30131 = vmatpush3.bf16.msra.mxu1 %v38933_v37 }
0x12ab   : > { %30132 = vmatprep.subr.bf16.mxu1 %v38695_v61 }
0x12ae   : > { %30134 = vmatpush3.bf16.msra.mxu1 %v38934_v47 }
0x12af   : > { %30135 = vmatprep.subr.bf16.mxu1 %v38695_v61 }
0x12b1   : > { %25419 = vmatmul.mubr.f32.vlgmr.msra.gmra.mrb[12].mxu1 %v38951_v12  ;;  %v38958_v12 = vld [vmem:[#allocation85_spill] sm:$0xff] }
0x12b2   : > { %30137 = vmatpush3.bf16.msra.mxu1 %v38952_v62  ;;  %25453 = vmatprep.mubr.msk.f32.mxu1 %vm32853_vm0, %v35663_v52 }
0x12b3   : > { %30138 = vmatprep.subr.bf16.mxu1 %v38695_v61 }
0x12b6   : > { %30140 = vmatpush3.bf16.msra.mxu1 %v38953_v34  ;;  %v38959_v34 = vld [vmem:[#allocation86_spill] sm:$0xff] }
0x12b7   : > { %30141 = vmatprep.subr.bf16.mxu1 %v38695_v61 }
0x12ba   : > { %30143 = vmatpush3.bf16.msra.mxu1 %v38954_v10  ;;  %v10084_v10 = vld [vmem:[#allocation6 + $0x178] sm:$0xff] }
0x12bb   : > { %30144 = vmatprep.subr.bf16.mxu1 %v38695_v61  ;;  %v10131_v29 = vand.u32 4294901760, %v10084_v10 }
0x12be   : > { %30146 = vmatpush3.bf16.msra.mxu1 %v38955_v42  ;;  %v10083_v42 = vld [vmem:[#allocation6 + $0x170] sm:$0xff] }
0x12bf   : > { %30147 = vmatprep.subr.bf16.mxu1 %v38695_v61  ;;  %v10128_v62 = vand.u32 4294901760, %v10083_v42 }
0x12c1   : > { %v36084_v56 = vpack.c.bf16 %v10131_v29, %v10128_v62 }
0x12c2   : > { %30149 = vmatpush3.bf16.msra.mxu1 %v38956_v7 }
0x12c3   : > { %30150 = vmatprep.subr.bf16.mxu1 %v38695_v61 }
0x12c6   : > { %30152 = vmatpush3.bf16.msra.mxu1 %v38957_v28 }
0x12c7   : > { %30153 = vmatprep.subr.bf16.mxu1 %v38695_v61 }
0x12ca   : > { %30155 = vmatpush3.bf16.msra.mxu1 %v38958_v12 }
0x12cb   : > { %30156 = vmatprep.subr.bf16.mxu1 %v38695_v61 }
0x12ce   : > { %30158 = vmatpush3.bf16.msra.mxu1 %v38959_v34  ;;  %v10082_v34 = vld [vmem:[#allocation6 + $0x168] sm:$0xff] }
0x12cf   : > { %30159 = vmatprep.subr.bf16.mxu1 %v38695_v61  ;;  %v10125_v28 = vand.u32 4294901760, %v10082_v34 }
0x12d1   : > { %25454 = vmatmul.mubr.f32.vlgmr.msra.gmra.mrb[12].mxu1 %v35893_v21  ;;  %v36082_v15 = vsub.f32 %v10082_v34, %v10125_v28 }
0x12d2   : > { %30161 = vmatpush3.bf16.msra.mxu1 %v38927_v16  ;;  %25488 = vmatprep.mubr.msk.f32.mxu1 %vm32853_vm0, %v35663_v52  ;;  %v38541_v16 = vand.u32 4294901760, %v35963_v48 }
0x12d3   : > { %30162 = vmatprep.subr.bf16.mxu1 %v38695_v61 }
0x12d6   : > { %30164 = vmatpush3.bf16.msra.mxu1 %v38928_v39  ;;  %v38538_v39 = vand.u32 4294901760, %v35959_v44 }
0x12d7   : > { %30165 = vmatprep.subr.bf16.mxu1 %v38695_v61 }
0x12da   : > { %30167 = vmatpush3.bf16.msra.mxu1 %v38929_v40  ;;  %v38535_v40 = vand.u32 4294901760, %v35955_v26 }
0x12db   : > { %30168 = vmatprep.subr.bf16.mxu1 %v38695_v61 }
0x12de   : > { %30170 = vmatpush3.bf16.msra.mxu1 %v38930_v5 }
0x12df   : > { %30171 = vmatprep.subr.bf16.mxu1 %v38695_v61 }
0x12e2   : > { %30173 = vmatpush3.bf16.msra.mxu1 %v38931_v1  ;;  %v10187_v1 = vsub.f32 %v35939_v0, %v38526_v38 }
0x12e3   : > { %30174 = vmatprep.subr.bf16.mxu1 %v38695_v61 }
0x12e6   : > { %30176 = vmatpush3.bf16.msra.mxu1 %v38932_v59  ;;  %v10180_v59 = vsub.f32 %v35937_v13, %v38527_v63  ;;  %v38532_v63 = vand.u32 4294901760, %v35947_v54 }
0x12e7   : > { %30177 = vmatprep.subr.bf16.mxu1 %v38695_v61 }
0x12e8   : > { %v10181_v34 = vand.u32 4294901760, %v10180_v59  ;;  %v38534_v59 = vand.u32 4294901760, %v35951_v50 }
0x12ea   : > { %30179 = vmatpush3.bf16.msra.mxu1 %v38933_v37  ;;  %v36088_v37 = vsub.f32 %v10084_v10, %v10131_v29 }
0x12eb   : > { %30180 = vmatprep.subr.bf16.mxu1 %v38695_v61 }
0x12ee   : > { %30182 = vmatpush3.bf16.msra.mxu1 %v38934_v47  ;;  %v36086_v47 = vsub.f32 %v10083_v42, %v10128_v62  ;;  %v38531_v62 = vand.u32 4294901760, %v35945_v19 }
0x12ef   : > { %30471 = vmatprep.subr.bf16.mxu1 %v38695_v61 }
0x12f0   : > { %v10201_v42 = vsub.f32 %v35945_v19, %v38531_v62  ;;  %v10222_v62 = vsub.f32 %v35955_v26, %v38535_v40  ;;  %v38546_v4 = vand.u32 4294901760, %v36086_v47 }
0x12f1   : > { %25489 = vmatmul.mubr.f32.vlgmr.msra.gmra.mrb[12].mxu1 %v35893_v21  ;;  %v10081_v21 = vld [vmem:[#allocation6 + $0x160] sm:$0xff] }
0x12f2   : > { %30473 = vmatpush3.bf16.msra.mxu1 %v34294_v31  ;;  %25943 = vmatprep.mubr.msk.f32.mxu1 %vm32853_vm0, %v35663_v52  ;;  %v10122_v12 = vand.u32 4294901760, %v10081_v21  ;;  %v10202_v38 = vand.u32 4294901760, %v10201_v42 }
0x12f3   : > { %30474 = vmatprep.subr.bf16.mxu1 %v38695_v61 }
0x12f4   : > { %v36074_v7 = vpack.c.bf16 %v10125_v28, %v10122_v12  ;;  %v36080_v35 = vsub.f32 %v10081_v21, %v10122_v12  ;;  %v10188_v28 = vand.u32 4294901760, %v10187_v1  ;;  %v38528_v12 = vand.u32 4294901760, %v35941_v57 }
0x12f6   : > { %30476 = vmatpush3.bf16.msra.mxu1 %v34301_v9  ;;  %30203 = vmatpush3.bf16.msra.mxu0 %v36074_v7  ;;  %v36100_v29 = vpack.c.bf16 %v10188_v28, %v10181_v34  ;;  %v10194_v10 = vsub.f32 %v35941_v57, %v38528_v12  ;;  %v10208_v34 = vsub.f32 %v35947_v54, %v38532_v63  ;;  %v38544_v51 = vand.u32 4294901760, %v36080_v35 }
0x12f7   : > { %30477 = vmatprep.subr.bf16.mxu1 %v38695_v61  ;;  %30204 = vmatprep.subr.bf16.mxu0 %v38695_v61  ;;  %v10215_v28 = vsub.f32 %v35951_v50, %v38534_v59  ;;  %v10236_v59 = vsub.f32 %v35959_v44, %v38538_v39 }
0x12f8   : > { %v10195_v21 = vand.u32 4294901760, %v10194_v10  ;;  %v10209_v12 = vand.u32 4294901760, %v10208_v34  ;;  %v38537_v10 = vand.u32 4294901760, %v35957_v36  ;;  %v38540_v34 = vand.u32 4294901760, %v35961_v58 }
0x12f9   : > { %v10216_v5 = vand.u32 4294901760, %v10215_v28 }
0x12fa   : > { %30479 = vmatpush3.bf16.msra.mxu1 %v34311_v30  ;;  %30206 = vmatpush3.bf16.msra.mxu0 %v36084_v56  ;;  %v30211_v1 = vpack.c.bf16 %v10202_v38, %v10195_v21  ;;  %v10229_v38 = vsub.f32 %v35957_v36, %v38537_v10  ;;  %v10223_v21 = vand.u32 4294901760, %v10222_v62  ;;  %v38543_v62 = vand.u32 4294901760, %v35969_v27 }
0x12fb   : > { %30480 = vmatprep.subr.bf16.mxu1 %v38695_v61  ;;  %30207 = vmatprep.subr.bf16.mxu0 %v38695_v61  ;;  %v30214_v42 = vpack.c.bf16 %v10216_v5, %v10209_v12  ;;  %v10243_v5 = vsub.f32 %v35961_v58, %v38540_v34  ;;  %v10237_v12 = vand.u32 4294901760, %v10236_v59  ;;  %v10250_v10 = vsub.f32 %v35963_v48, %v38541_v16 }
0x12fc   : > { %v10230_v63 = vand.u32 4294901760, %v10229_v38  ;;  %v38548_v59 = vand.u32 4294901760, %v36082_v15  ;;  %v10264_v34 = vsub.f32 %v36080_v35, %v38544_v51 }
0x12fd   : > { %v10244_v40 = vand.u32 4294901760, %v10243_v5 }
0x12fe   : > { %30482 = vmatpush3.bf16.msra.mxu1 %v34316_v11  ;;  %v30217_v28 = vpack.c.bf16 %v10230_v63, %v10223_v21  ;;  %v10257_v63 = vsub.f32 %v35969_v27, %v38543_v62  ;;  %v10251_v21 = vand.u32 4294901760, %v10250_v10  ;;  %v38547_v10 = vand.u32 4294901760, %v36088_v37 }
0x12ff   : > { %30483 = vmatprep.subr.bf16.mxu1 %v38695_v61  ;;  %v30220_v38 = vpack.c.bf16 %v10244_v40, %v10237_v12  ;;  %v10271_v40 = vsub.f32 %v36082_v15, %v38548_v59  ;;  %v10265_v12 = vand.u32 4294901760, %v10264_v34  ;;  %v10278_v62 = vsub.f32 %v36086_v47, %v38546_v4 }
0x1300   : > { %v10258_v39 = vand.u32 4294901760, %v10257_v63  ;;  %v30232_v34 = vpack.c.bf16 %v35939_v0, %v35937_v13  ;;  %v30244_v4 = vpack.c.bf16 %v35961_v58, %v35959_v44 }
0x1301   : > { %v10272_v16 = vand.u32 4294901760, %v10271_v40  ;;  %v30235_v40 = vpack.c.bf16 %v35945_v19, %v35941_v57 }
0x1302   : > { %30485 = vmatpush3.bf16.msra.mxu1 %v34320_v20  ;;  %v30223_v5 = vpack.c.bf16 %v10258_v39, %v10251_v21  ;;  %v10285_v39 = vsub.f32 %v36088_v37, %v38547_v10  ;;  %v10279_v21 = vand.u32 4294901760, %v10278_v62  ;;  %v30247_v62 = vpack.c.bf16 %v35969_v27, %v35963_v48 }
0x1303   : > { %30486 = vmatprep.subr.bf16.mxu1 %v38695_v61  ;;  %v30226_v63 = vpack.c.bf16 %v10272_v16, %v10265_v12  ;;  %v30238_v16 = vpack.c.bf16 %v35951_v50, %v35947_v54  ;;  %v30241_v12 = vpack.c.bf16 %v35957_v36, %v35955_v26 }
0x1304   : > { %v10286_v51 = vand.u32 4294901760, %v10285_v39  ;;  %v30253_v39 = vpack.c.bf16 %v36088_v37, %v36086_v47 }
0x1306   : > { %30488 = vmatpush3.bf16.msra.mxu1 %v34324_v49  ;;  %v30229_v25 = vpack.c.bf16 %v10286_v51, %v10279_v21  ;;  %v30250_v51 = vpack.c.bf16 %v36082_v15, %v36080_v35 }
0x1307   : > { %30489 = vmatprep.subr.bf16.mxu1 %v38695_v61 }
0x130a   : > { %30491 = vmatpush3.bf16.msra.mxu1 %v34328_v6 }
0x130b   : > { %30492 = vmatprep.subr.bf16.mxu1 %v38695_v61 }
0x130e   : > { %30494 = vmatpush3.bf16.msra.mxu1 %v34332_v23 }
0x130f   : > { %30495 = vmatprep.subr.bf16.mxu1 %v38695_v61 }
0x13c4   : > { %v36172_v21 = vpop.f32.mrb[12].mxu1 }
0x13c5   : > { %v36175_v10 = vand.u32 4294901760, %v36172_v21  ;;  %v25490_v59 = vpop.f32.mrb[13].mxu1 }
0x13c7   : > { %v10167_v18 = vsub.f32 %v36172_v21, %v36175_v10 }
0x13c9   : > { %v10168_v24 = vand.u32 4294901760, %v10167_v18 }
0x13cb   : > { %v10169_v14 = vsub.f32 %v10167_v18, %v10168_v24 }
0x13cd   : > { %v10170_v22 = vand.u32 4294901760, %v10169_v14  ;;  %v38960_v14 = vand.u32 4294901760, %v35937_v13  ;;  %v38964_v13 = vand.u32 4294901760, %v35947_v54  ;;  %v38971_v54 = vand.u32 4294901760, %v35969_v27 }
0x13cf   : > { %25524 = vmatmul.mubr.f32.vlgmr.msra.gmra.mrb[16].mxu0 %v10170_v22  ;;  %v36202_v22 = vld [vmem:[#allocation2] sm:$0xff] }
0x13d0   : > { %30209 = vmatpush3.bf16.msra.mxu0 %v36100_v29  ;;  %25558 = vmatprep.mubr.msk.f32.mxu0 %vm32853_vm0, %v35663_v52 }
0x13d1   : > { %30210 = vmatprep.subr.bf16.mxu0 %v38695_v61 }
0x13d4   : > { %30212 = vmatpush3.bf16.msra.mxu0 %v30211_v1 }
0x13d5   : > { %30213 = vmatprep.subr.bf16.mxu0 %v38695_v61 }
0x13d8   : > { %30215 = vmatpush3.bf16.msra.mxu0 %v30214_v42  ;;  %v38968_v42 = vand.u32 4294901760, %v35959_v44  ;;  %v38975_v44 = vand.u32 4294901760, %v36088_v37 }
0x13d9   : > { %30216 = vmatprep.subr.bf16.mxu0 %v38695_v61 }
0x13dc   : > { %30218 = vmatpush3.bf16.msra.mxu0 %v30217_v28  ;;  %v38969_v28 = vand.u32 4294901760, %v35961_v58  ;;  %v38974_v58 = vand.u32 4294901760, %v36086_v47 }
0x13dd   : > { %30219 = vmatprep.subr.bf16.mxu0 %v38695_v61 }
0x13e0   : > { %30221 = vmatpush3.bf16.msra.mxu0 %v30220_v38  ;;  %v30292_v38 = vpack.c.bf16 %v38969_v28, %v38968_v42 }
0x13e1   : > { %30222 = vmatprep.subr.bf16.mxu0 %v38695_v61 }
0x13e4   : > { %30224 = vmatpush3.bf16.msra.mxu0 %v30223_v5 }
0x13e5   : > { %30225 = vmatprep.subr.bf16.mxu0 %v38695_v61 }
0x13e8   : > { %30227 = vmatpush3.bf16.msra.mxu0 %v30226_v63  ;;  %v30301_v63 = vpack.c.bf16 %v38975_v44, %v38974_v58 }
0x13e9   : > { %30228 = vmatprep.subr.bf16.mxu0 %v38695_v61 }
0x13ec   : > { %30230 = vmatpush3.bf16.msra.mxu0 %v30229_v25 }
0x13ed   : > { %30231 = vmatprep.subr.bf16.mxu0 %v38695_v61 }
0x13ef   : > { %25559 = vmatmul.mubr.f32.vlgmr.msra.gmra.mrb[16].mxu0 %v36175_v10 }
0x13f0   : > { %30233 = vmatpush3.bf16.msra.mxu0 %v30232_v34  ;;  %25593 = vmatprep.mubr.msk.f32.mxu0 %vm32853_vm0, %v35663_v52  ;;  %v38963_v52 = vand.u32 4294901760, %v35945_v19  ;;  %v38978_v34 = vld [vmem:[#allocation94_spill] sm:$0xff] }
0x13f1   : > { %30234 = vmatprep.subr.bf16.mxu0 %v38695_v61 }
0x13f4   : > { %30236 = vmatpush3.bf16.msra.mxu0 %v30235_v40  ;;  %v38979_v40 = vld [vmem:[#allocation95_spill] sm:$0xff] }
0x13f5   : > { %30237 = vmatprep.subr.bf16.mxu0 %v38695_v61 }
0x13f8   : > { %30239 = vmatpush3.bf16.msra.mxu0 %v30238_v16  ;;  %v38980_v16 = vld [vmem:[#allocation88_spill] sm:$0xff] }
0x13f9   : > { %30240 = vmatprep.subr.bf16.mxu0 %v38695_v61 }
0x13fc   : > { %30242 = vmatpush3.bf16.msra.mxu0 %v30241_v12  ;;  %v38981_v12 = vld [vmem:[#allocation89_spill] sm:$0xff] }
0x13fd   : > { %30243 = vmatprep.subr.bf16.mxu0 %v38695_v61 }
0x1400   : > { %30245 = vmatpush3.bf16.msra.mxu0 %v30244_v4  ;;  %v38962_v4 = vand.u32 4294901760, %v35941_v57  ;;  %v38967_v57 = vand.u32 4294901760, %v35957_v36  ;;  %v38973_v36 = vand.u32 4294901760, %v36082_v15 }
0x1401   : > { %30246 = vmatprep.subr.bf16.mxu0 %v38695_v61 }
0x1402   : > { %v30283_v29 = vpack.c.bf16 %v38963_v52, %v38962_v4  ;;  %v38989_v4 = vld [vmem:[#allocation100_spill] sm:$0xff]  ;;  %v38990_v52 = vld [vmem:[#allocation101_spill] sm:$0xff] }
0x1404   : > { %30248 = vmatpush3.bf16.msra.mxu0 %v30247_v62  ;;  %v38982_v62 = vld [vmem:[#allocation90_spill] sm:$0xff] }
0x1405   : > { %30249 = vmatprep.subr.bf16.mxu0 %v38695_v61 }
0x1408   : > { %30251 = vmatpush3.bf16.msra.mxu0 %v30250_v51  ;;  %v38983_v51 = vld [vmem:[#allocation91_spill] sm:$0xff] }
0x1409   : > { %30252 = vmatprep.subr.bf16.mxu0 %v38695_v61 }
0x140c   : > { %30254 = vmatpush3.bf16.msra.mxu0 %v30253_v39  ;;  %v38984_v39 = vld [vmem:[#allocation92_spill] sm:$0xff] }
0x140d   : > { %30255 = vmatprep.subr.bf16.mxu0 %v38695_v61 }
0x140f   : > { %25594 = vmatmul.mubr.f32.vlgmr.msra.gmra.mrb[16].mxu0 %v10167_v18  ;;  %v38961_v18 = vand.u32 4294901760, %v35939_v0  ;;  %v38965_v0 = vand.u32 4294901760, %v35951_v50  ;;  %v38970_v50 = vand.u32 4294901760, %v35963_v48 }
0x1410   : > { %30257 = vmatpush3.bf16.msra.mxu0 %v35935_v2  ;;  %25628 = vmatprep.mubr.msk.f32.mxu0 %vm32853_vm0, %v36202_v22 }
0x1411   : > { %30258 = vmatprep.subr.bf16.mxu0 %v38695_v61  ;;  %v30280_v25 = vpack.c.bf16 %v38961_v18, %v38960_v14  ;;  %v30286_v1 = vpack.c.bf16 %v38965_v0, %v38964_v13  ;;  %v30295_v59 = vpack.c.bf16 %v38971_v54, %v38970_v50  ;;  %v38986_v14 = vld [vmem:[#allocation97_spill] sm:$0xff]  ;;  %v38987_v18 = vld [vmem:[#allocation98_spill] sm:$0xff]  ;;  %v38992_v13 = vld [vmem:[#allocation103_spill] sm:$0xff] }
0x1414   : > { %30260 = vmatpush3.bf16.msra.mxu0 %v35943_v46 }
0x1415   : > { %30261 = vmatprep.subr.bf16.mxu0 %v38695_v61 }
0x1418   : > { %30263 = vmatpush3.bf16.msra.mxu0 %v35967_v41 }
0x1419   : > { %30264 = vmatprep.subr.bf16.mxu0 %v38695_v61 }
0x141c   : > { %30266 = vmatpush3.bf16.msra.mxu0 %v35975_v60 }
0x141d   : > { %30267 = vmatprep.subr.bf16.mxu0 %v38695_v61 }
0x1420   : > { %30269 = vmatpush3.bf16.msra.mxu0 %v35981_v45 }
0x1421   : > { %30270 = vmatprep.subr.bf16.mxu0 %v38695_v61 }
0x1424   : > { %30272 = vmatpush3.bf16.msra.mxu0 %v35987_v53 }
0x1425   : > { %30273 = vmatprep.subr.bf16.mxu0 %v38695_v61 }
0x1428   : > { %30275 = vmatpush3.bf16.msra.mxu0 %v36074_v7 }
0x1429   : > { %30276 = vmatprep.subr.bf16.mxu0 %v38695_v61 }
0x142c   : > { %30278 = vmatpush3.bf16.msra.mxu0 %v36084_v56 }
0x142d   : > { %30279 = vmatprep.subr.bf16.mxu0 %v38695_v61 }
0x142f   : > { %25629 = vmatmul.mubr.f32.vlgmr.msra.gmra.mrb[16].mxu0 %v10168_v24  ;;  %v38966_v24 = vand.u32 4294901760, %v35955_v26  ;;  %v38972_v26 = vand.u32 4294901760, %v36080_v35 }
0x1430   : > { %30281 = vmatpush3.bf16.msra.mxu0 %v30280_v25  ;;  %25663 = vmatprep.mubr.msk.f32.mxu0 %vm32853_vm0, %v36202_v22  ;;  %v38988_v25 = vld [vmem:[#allocation99_spill] sm:$0xff] }
0x1431   : > { %30282 = vmatprep.subr.bf16.mxu0 %v38695_v61  ;;  %v30289_v19 = vpack.c.bf16 %v38967_v57, %v38966_v24  ;;  %v30298_v5 = vpack.c.bf16 %v38973_v36, %v38972_v26 }
0x1434   : > { %30284 = vmatpush3.bf16.msra.mxu0 %v30283_v29  ;;  %v38991_v29 = vld [vmem:[#allocation102_spill] sm:$0xff] }
0x1435   : > { %30285 = vmatprep.subr.bf16.mxu0 %v38695_v61 }
0x1438   : > { %30287 = vmatpush3.bf16.msra.mxu0 %v30286_v1 }
0x1439   : > { %30288 = vmatprep.subr.bf16.mxu0 %v38695_v61 }
0x143c   : > { %30290 = vmatpush3.bf16.msra.mxu0 %v30289_v19 }
0x143d   : > { %30291 = vmatprep.subr.bf16.mxu0 %v38695_v61 }
0x1440   : > { %30293 = vmatpush3.bf16.msra.mxu0 %v30292_v38 }
0x1441   : > { %30294 = vmatprep.subr.bf16.mxu0 %v38695_v61 }
0x1444   : > { %30296 = vmatpush3.bf16.msra.mxu0 %v30295_v59 }
0x1445   : > { %30297 = vmatprep.subr.bf16.mxu0 %v38695_v61 }
0x1448   : > { %30299 = vmatpush3.bf16.msra.mxu0 %v30298_v5 }
0x1449   : > { %30300 = vmatprep.subr.bf16.mxu0 %v38695_v61 }
0x144c   : > { %30302 = vmatpush3.bf16.msra.mxu0 %v30301_v63  ;;  %v19951_v63 = vld [vmem:[%s38251_s3 + $0x2] ss:$0 sm:$0xff] }
0x144d   : > { %30303 = vmatprep.subr.bf16.mxu0 %v38695_v61 }
0x144f   : > { %25664 = vmatmul.mubr.f32.vlgmr.msra.gmra.mrb[16].mxu0 %v36175_v10 }
0x1450   : > { %30305 = vmatpush3.bf16.msra.mxu0 %v35935_v2  ;;  %25698 = vmatprep.mubr.msk.f32.mxu0 %vm32853_vm0, %v36202_v22 }
0x1451   : > { %30306 = vmatprep.subr.bf16.mxu0 %v38695_v61 }
0x1454   : > { %30308 = vmatpush3.bf16.msra.mxu0 %v35943_v46  ;;  %v10735_v46 = vpop.permute.xlu0 %10734 }
0x1455   : > { %30309 = vmatprep.subr.bf16.mxu0 %v38695_v61  ;;  %v10736_v2 = vrot.slane %v10735_v46, 4 }
0x1458   : > { %30311 = vmatpush3.bf16.msra.mxu0 %v35967_v41 }
0x1459   : > { %30312 = vmatprep.subr.bf16.mxu0 %v38695_v61 }
0x145c   : > { %30314 = vmatpush3.bf16.msra.mxu0 %v35975_v60 }
0x145d   : > { %30315 = vmatprep.subr.bf16.mxu0 %v38695_v61 }
0x1460   : > { %30317 = vmatpush3.bf16.msra.mxu0 %v35981_v45 }
0x1461   : > { %30318 = vmatprep.subr.bf16.mxu0 %v38695_v61 }
0x1464   : > { %30320 = vmatpush3.bf16.msra.mxu0 %v35987_v53 }
0x1465   : > { %30321 = vmatprep.subr.bf16.mxu0 %v38695_v61 }
0x1468   : > { %30323 = vmatpush3.bf16.msra.mxu0 %v36074_v7  ;;  %v38976_v7 = vld [vmem:[#allocation87_spill] sm:$0xff] }
0x1469   : > { %30324 = vmatprep.subr.bf16.mxu0 %v38695_v61 }
0x146c   : > { %30326 = vmatpush3.bf16.msra.mxu0 %v36084_v56 }
0x146d   : > { %30327 = vmatprep.subr.bf16.mxu0 %v38695_v61 }
0x146f   : > { %25699 = vmatmul.mubr.f32.vlgmr.msra.gmra.mrb[16].mxu0 %v36175_v10  ;;  %v38977_v10 = vld [vmem:[#allocation93_spill] sm:$0xff] }
0x1470   : > { %30329 = vmatpush3.bf16.msra.mxu0 %v34294_v31  ;;  %25733 = vmatprep.mubr.msk.f32.mxu0 %vm32853_vm0, %v36202_v22 }
0x1471   : > { %30330 = vmatprep.subr.bf16.mxu0 %v38695_v61 }
0x1474   : > { %30332 = vmatpush3.bf16.msra.mxu0 %v34301_v9 }
0x1475   : > { %30333 = vmatprep.subr.bf16.mxu0 %v38695_v61 }
0x1478   : > { %30335 = vmatpush3.bf16.msra.mxu0 %v34311_v30 }
0x1479   : > { %30336 = vmatprep.subr.bf16.mxu0 %v38695_v61 }
0x147c   : > { %30338 = vmatpush3.bf16.msra.mxu0 %v34316_v11 }
0x147d   : > { %30339 = vmatprep.subr.bf16.mxu0 %v38695_v61 }
0x1480   : > { %30341 = vmatpush3.bf16.msra.mxu0 %v34320_v20 }
0x1481   : > { %30342 = vmatprep.subr.bf16.mxu0 %v38695_v61 }
0x1484   : > { %30344 = vmatpush3.bf16.msra.mxu0 %v34324_v49 }
0x1485   : > { %30345 = vmatprep.subr.bf16.mxu0 %v38695_v61 }
0x1488   : > { %30347 = vmatpush3.bf16.msra.mxu0 %v34328_v6 }
0x1489   : > { %30348 = vmatprep.subr.bf16.mxu0 %v38695_v61 }
0x148c   : > { %30350 = vmatpush3.bf16.msra.mxu0 %v34332_v23 }
0x148d   : > { %30351 = vmatprep.subr.bf16.mxu0 %v38695_v61 }
0x1542   : > { %v10722_v27 = vpop.f32.mrb[16].mxu0 }
0x1543   : > { %v10727_v41 = vrot.slane %v10722_v27, 4  ;;  %v25700_v56 = vpop.f32.mrb[17].mxu0 }
0x1545   : > { %v10729_v47 = vadd.f32 %v10727_v41, %v36172_v21  ;;  %v38985_v21 = vld [vmem:[#allocation96_spill] sm:$0xff] }
0x1546   : > { %v19953_v41 = vld [vmem:[%s38252_s4 + $0x2] ss:$0 sm:$0xff] }
0x1547   : > { %v36302_v37 = vadd.f32 %v10736_v2, %v10729_v47  ;;  %v12076_v2 = vld [vmem:[#allocation3 + $0x48] sm:$0xff] }
0x1549   : > { %v10740_v48 = vrot.slane %v36302_v37, 4 }
0x154b   : > { %v36305_v15 = vand.u32 4294901760, %v10740_v48 }
0x154d   : > { %v10824_v60 = vsub.f32 %v10740_v48, %v36305_v15  ;;  %v12080_v48 = vsel %vm487_vm1, %v12076_v2, 0 }
0x154f   : > { %v10825_v35 = vand.u32 4294901760, %v10824_v60 }
0x1551   : > { %v10826_v45 = vsub.f32 %v10824_v60, %v10825_v35 }
0x1553   : > { %v10827_v53 = vand.u32 4294901760, %v10826_v45  ;;  %v12073_v45 = vld [vmem:[#allocation2 + $0x8] sm:$0xff] }
0x1555   : > { %25734 = vmatmul.mubr.f32.vlgmr.msra.gmra.mrb[18].mxu0 %v10827_v53  ;;  %v36514_v53 = vand.u32 4294901760, %v12080_v48 }
0x1556   : > { %30353 = vmatpush3.bf16.msra.mxu0 %v34487_v3  ;;  %25768 = vmatprep.mubr.msk.f32.mxu0 %vm32853_vm0, %v36202_v22 }
0x1557   : > { %30354 = vmatprep.subr.bf16.mxu0 %v38695_v61 }
0x155a   : > { %30356 = vmatpush3.bf16.msra.mxu0 %v34496_v33 }
0x155b   : > { %30357 = vmatprep.subr.bf16.mxu0 %v38695_v61 }
0x155e   : > { %30359 = vmatpush3.bf16.msra.mxu0 %v34502_v55 }
0x155f   : > { %30360 = vmatprep.subr.bf16.mxu0 %v38695_v61 }
0x1562   : > { %30362 = vmatpush3.bf16.msra.mxu0 %v34364_v17 }
0x1563   : > { %30363 = vmatprep.subr.bf16.mxu0 %v38695_v61 }
0x1566   : > { %30365 = vmatpush3.bf16.msra.mxu0 %v34368_v8 }
0x1567   : > { %30366 = vmatprep.subr.bf16.mxu0 %v38695_v61 }
0x156a   : > { %30368 = vmatpush3.bf16.msra.mxu0 %v34382_v43 }
0x156b   : > { %30369 = vmatprep.subr.bf16.mxu0 %v38695_v61 }
0x156e   : > { %30371 = vmatpush3.bf16.msra.mxu0 %v34402_v32 }
0x156f   : > { %30372 = vmatprep.subr.bf16.mxu0 %v38695_v61 }
0x1572   : > { %30374 = vmatpush3.bf16.msra.mxu0 %v38976_v7 }
0x1573   : > { %30375 = vmatprep.subr.bf16.mxu0 %v38695_v61 }
0x1575   : > { %25769 = vmatmul.mubr.f32.vlgmr.msra.gmra.mrb[18].mxu0 %v36305_v15 }
0x1576   : > { %30377 = vmatpush3.bf16.msra.mxu0 %v38977_v10  ;;  %25803 = vmatprep.mubr.msk.f32.mxu0 %vm32853_vm0, %v36202_v22 }
0x1577   : > { %30378 = vmatprep.subr.bf16.mxu0 %v38695_v61 }
0x157a   : > { %30380 = vmatpush3.bf16.msra.mxu0 %v38978_v34 }
0x157b   : > { %30381 = vmatprep.subr.bf16.mxu0 %v38695_v61 }
0x157e   : > { %30383 = vmatpush3.bf16.msra.mxu0 %v38979_v40 }
0x157f   : > { %30384 = vmatprep.subr.bf16.mxu0 %v38695_v61 }
0x1582   : > { %30386 = vmatpush3.bf16.msra.mxu0 %v38980_v16 }
0x1583   : > { %30387 = vmatprep.subr.bf16.mxu0 %v38695_v61 }
0x1586   : > { %30389 = vmatpush3.bf16.msra.mxu0 %v38981_v12 }
0x1587   : > { %30390 = vmatprep.subr.bf16.mxu0 %v38695_v61 }
0x158a   : > { %30392 = vmatpush3.bf16.msra.mxu0 %v38982_v62 }
0x158b   : > { %30393 = vmatprep.subr.bf16.mxu0 %v38695_v61 }
0x158e   : > { %30395 = vmatpush3.bf16.msra.mxu0 %v38983_v51 }
0x158f   : > { %30396 = vmatprep.subr.bf16.mxu0 %v38695_v61 }
0x1592   : > { %30398 = vmatpush3.bf16.msra.mxu0 %v38984_v39 }
0x1593   : > { %30399 = vmatprep.subr.bf16.mxu0 %v38695_v61 }
0x1595   : > { %25804 = vmatmul.mubr.f32.vlgmr.msra.gmra.mrb[18].mxu0 %v10824_v60  ;;  %v12077_v60 = vld [vmem:[#allocation3 + $0x50] sm:$0xff] }
0x1596   : > { %30401 = vmatpush3.bf16.msra.mxu0 %v34294_v31  ;;  %25838 = vmatprep.mubr.msk.f32.mxu0 %vm32853_vm0, %v36202_v22 }
0x1597   : > { %30402 = vmatprep.subr.bf16.mxu0 %v38695_v61 }
0x159a   : > { %30404 = vmatpush3.bf16.msra.mxu0 %v34301_v9 }
0x159b   : > { %30405 = vmatprep.subr.bf16.mxu0 %v38695_v61 }
0x159e   : > { %30407 = vmatpush3.bf16.msra.mxu0 %v34311_v30 }
0x159f   : > { %30408 = vmatprep.subr.bf16.mxu0 %v38695_v61 }
0x15a2   : > { %30410 = vmatpush3.bf16.msra.mxu0 %v34316_v11 }
0x15a3   : > { %30411 = vmatprep.subr.bf16.mxu0 %v38695_v61 }
0x15a6   : > { %30413 = vmatpush3.bf16.msra.mxu0 %v34320_v20 }
0x15a7   : > { %30414 = vmatprep.subr.bf16.mxu0 %v38695_v61 }
0x15aa   : > { %30416 = vmatpush3.bf16.msra.mxu0 %v34324_v49 }
0x15ab   : > { %30417 = vmatprep.subr.bf16.mxu0 %v38695_v61 }
0x15ae   : > { %30419 = vmatpush3.bf16.msra.mxu0 %v34328_v6 }
0x15af   : > { %30420 = vmatprep.subr.bf16.mxu0 %v38695_v61 }
0x15b2   : > { %30422 = vmatpush3.bf16.msra.mxu0 %v34332_v23 }
0x15b3   : > { %30423 = vmatprep.subr.bf16.mxu0 %v38695_v61 }
0x15b5   : > { %25839 = vmatmul.mubr.f32.vlgmr.msra.gmra.mrb[18].mxu0 %v10825_v35 }
0x15b6   : > { %30425 = vmatpush3.bf16.msra.mxu0 %v38985_v21  ;;  %25873 = vmatprep.mubr.msk.f32.mxu0 %vm32853_vm0, %v36202_v22 }
0x15b7   : > { %30426 = vmatprep.subr.bf16.mxu0 %v38695_v61 }
0x15ba   : > { %30428 = vmatpush3.bf16.msra.mxu0 %v38986_v14 }
0x15bb   : > { %30429 = vmatprep.subr.bf16.mxu0 %v38695_v61 }
0x15be   : > { %30431 = vmatpush3.bf16.msra.mxu0 %v38987_v18 }
0x15bf   : > { %30432 = vmatprep.subr.bf16.mxu0 %v38695_v61 }
0x15c2   : > { %30434 = vmatpush3.bf16.msra.mxu0 %v38988_v25 }
0x15c3   : > { %30435 = vmatprep.subr.bf16.mxu0 %v38695_v61 }
0x15c6   : > { %30437 = vmatpush3.bf16.msra.mxu0 %v38989_v4 }
0x15c7   : > { %30438 = vmatprep.subr.bf16.mxu0 %v38695_v61 }
0x15ca   : > { %30440 = vmatpush3.bf16.msra.mxu0 %v38990_v52 }
0x15cb   : > { %30441 = vmatprep.subr.bf16.mxu0 %v38695_v61 }
0x15ce   : > { %30443 = vmatpush3.bf16.msra.mxu0 %v38991_v29 }
0x15cf   : > { %30444 = vmatprep.subr.bf16.mxu0 %v38695_v61 }
0x15d2   : > { %30446 = vmatpush3.bf16.msra.mxu0 %v38992_v13 }
0x15d3   : > { %30447 = vmatprep.subr.bf16.mxu0 %v38695_v61 }
0x15d5   : > { %25874 = vmatmul.mubr.f32.vlgmr.msra.gmra.mrb[18].mxu0 %v36305_v15 }
0x15d6   : > { %30449 = vmatpush3.bf16.msra.mxu0 %v34294_v31  ;;  %25908 = vmatprep.mubr.msk.f32.mxu0 %vm32853_vm0, %v36202_v22 }
0x15d7   : > { %30450 = vmatprep.subr.bf16.mxu0 %v38695_v61 }
0x15da   : > { %30452 = vmatpush3.bf16.msra.mxu0 %v34301_v9 }
0x15db   : > { %30453 = vmatprep.subr.bf16.mxu0 %v38695_v61 }
0x15de   : > { %30455 = vmatpush3.bf16.msra.mxu0 %v34311_v30 }
0x15df   : > { %30456 = vmatprep.subr.bf16.mxu0 %v38695_v61 }
0x15e2   : > { %30458 = vmatpush3.bf16.msra.mxu0 %v34316_v11 }
0x15e3   : > { %30459 = vmatprep.subr.bf16.mxu0 %v38695_v61 }
0x15e6   : > { %30461 = vmatpush3.bf16.msra.mxu0 %v34320_v20 }
0x15e7   : > { %30462 = vmatprep.subr.bf16.mxu0 %v38695_v61 }
0x15ea   : > { %30464 = vmatpush3.bf16.msra.mxu0 %v34324_v49 }
0x15eb   : > { %30465 = vmatprep.subr.bf16.mxu0 %v38695_v61 }
0x15ee   : > { %30467 = vmatpush3.bf16.msra.mxu0 %v34328_v6 }
0x15ef   : > { %30468 = vmatprep.subr.bf16.mxu0 %v38695_v61 }
0x15f2   : > { %30470 = vmatpush3.bf16.msra.mxu0 %v34332_v23 }
0x15f3   : > { %30615 = vmatprep.subr.bf16.mxu0 %v38695_v61 }
0x15f5   : > { %25909 = vmatmul.mubr.f32.vlgmr.msra.gmra.mrb[18].mxu0 %v36305_v15 }
0x15f6   : > { %26127 = vmatprep.mubr.msk.f32.mxu0 %vm32853_vm0, %v36202_v22 }
0x16c8   : > { %v11379_v0 = vpop.f32.mrb[18].mxu0 }
0x16c9   : > { %v11384_v1 = vrot.slane %v11379_v0, 4  ;;  %v25910_v24 = vpop.f32.mrb[19].mxu0  ;;  %v12083_v0 = vsel %vm487_vm1, %v12077_v60, 0 }
0x16ca   : > { %v12078_v24 = vld [vmem:[#allocation3 + $0x58] sm:$0xff] }
0x16cb   : > { %v36404_v57 = vsub.f32 %v36302_v37, %v11384_v1  ;;  %v12061_v37 = vpop.permute.xlu1 %12060 }
0x16cd   : > { %v11387_v19 = vmul.f32 %v36404_v57, %v36404_v57 }
0x16cf   : > { %v11389_v42 = vrot.slane %v11387_v19, 4  ;;  %v12074_v19 = vld [vmem:[#allocation2 + $0x10] sm:$0xf] }
0x16d1   : > { %v36408_v28 = vand.u32 4294901760, %v11389_v42 }
0x16d3   : > { %v11473_v38 = vsub.f32 %v11389_v42, %v36408_v28  ;;  %v36518_v42 = vsub.f32 %v12080_v48, %v36514_v53 }
0x16d5   : > { %v11474_v50 = vand.u32 4294901760, %v11473_v38 }
0x16d7   : > { %v11475_v54 = vsub.f32 %v11473_v38, %v11474_v50 }
0x16d9   : > { %v11476_v59 = vand.u32 4294901760, %v11475_v54 }
0x16db   : > { %25944 = vmatmul.mubr.f32.vlgmr.msra.gmra.mrb[16].mxu1 %v11476_v59  ;;  %v12161_v59 = vand.u32 4294901760, %v36518_v42 }
0x16dc   : > { %30497 = vmatpush3.bf16.msra.mxu1 %v34487_v3  ;;  %25978 = vmatprep.mubr.msk.f32.mxu1 %vm32853_vm0, %v36202_v22 }
0x16dd   : > { %30498 = vmatprep.subr.bf16.mxu1 %v38695_v61 }
0x16e0   : > { %30500 = vmatpush3.bf16.msra.mxu1 %v34496_v33 }
0x16e1   : > { %30501 = vmatprep.subr.bf16.mxu1 %v38695_v61 }
0x16e4   : > { %30503 = vmatpush3.bf16.msra.mxu1 %v34502_v55 }
0x16e5   : > { %30504 = vmatprep.subr.bf16.mxu1 %v38695_v61 }
0x16e8   : > { %30506 = vmatpush3.bf16.msra.mxu1 %v34364_v17 }
0x16e9   : > { %30507 = vmatprep.subr.bf16.mxu1 %v38695_v61 }
0x16ec   : > { %30509 = vmatpush3.bf16.msra.mxu1 %v34368_v8 }
0x16ed   : > { %30510 = vmatprep.subr.bf16.mxu1 %v38695_v61 }
0x16f0   : > { %30512 = vmatpush3.bf16.msra.mxu1 %v34382_v43 }
0x16f1   : > { %30513 = vmatprep.subr.bf16.mxu1 %v38695_v61 }
0x16f4   : > { %30515 = vmatpush3.bf16.msra.mxu1 %v34402_v32 }
0x16f5   : > { %30516 = vmatprep.subr.bf16.mxu1 %v38695_v61 }
0x16f8   : > { %30518 = vmatpush3.bf16.msra.mxu1 %v38976_v7 }
0x16f9   : > { %30519 = vmatprep.subr.bf16.mxu1 %v38695_v61 }
0x16fb   : > { %25979 = vmatmul.mubr.f32.vlgmr.msra.gmra.mrb[16].mxu1 %v36408_v28 }
0x16fc   : > { %30521 = vmatpush3.bf16.msra.mxu1 %v38977_v10  ;;  %26013 = vmatprep.mubr.msk.f32.mxu1 %vm32853_vm0, %v36202_v22 }
0x16fd   : > { %30522 = vmatprep.subr.bf16.mxu1 %v38695_v61 }
0x1700   : > { %30524 = vmatpush3.bf16.msra.mxu1 %v38978_v34 }
0x1701   : > { %30525 = vmatprep.subr.bf16.mxu1 %v38695_v61 }
0x1704   : > { %30527 = vmatpush3.bf16.msra.mxu1 %v38979_v40 }
0x1705   : > { %30528 = vmatprep.subr.bf16.mxu1 %v38695_v61 }
0x1708   : > { %30530 = vmatpush3.bf16.msra.mxu1 %v38980_v16 }
0x1709   : > { %30531 = vmatprep.subr.bf16.mxu1 %v38695_v61 }
0x170c   : > { %30533 = vmatpush3.bf16.msra.mxu1 %v38981_v12 }
0x170d   : > { %30534 = vmatprep.subr.bf16.mxu1 %v38695_v61 }
0x1710   : > { %30536 = vmatpush3.bf16.msra.mxu1 %v38982_v62 }
0x1711   : > { %30537 = vmatprep.subr.bf16.mxu1 %v38695_v61 }
0x1714   : > { %30539 = vmatpush3.bf16.msra.mxu1 %v38983_v51 }
0x1715   : > { %30540 = vmatprep.subr.bf16.mxu1 %v38695_v61 }
0x1718   : > { %30542 = vmatpush3.bf16.msra.mxu1 %v38984_v39 }
0x1719   : > { %30543 = vmatprep.subr.bf16.mxu1 %v38695_v61 }
0x171b   : > { %26014 = vmatmul.mubr.f32.vlgmr.msra.gmra.mrb[16].mxu1 %v11473_v38  ;;  %v12086_v38 = vsel %vm487_vm1, %v12078_v24, 0 }
0x171c   : > { %30545 = vmatpush3.bf16.msra.mxu1 %v34294_v31  ;;  %26048 = vmatprep.mubr.msk.f32.mxu1 %vm32853_vm0, %v36202_v22 }
0x171d   : > { %30546 = vmatprep.subr.bf16.mxu1 %v38695_v61 }
0x1720   : > { %30548 = vmatpush3.bf16.msra.mxu1 %v34301_v9 }
0x1721   : > { %30549 = vmatprep.subr.bf16.mxu1 %v38695_v61 }
0x1724   : > { %30551 = vmatpush3.bf16.msra.mxu1 %v34311_v30 }
0x1725   : > { %30552 = vmatprep.subr.bf16.mxu1 %v38695_v61 }
0x1728   : > { %30554 = vmatpush3.bf16.msra.mxu1 %v34316_v11 }
0x1729   : > { %30555 = vmatprep.subr.bf16.mxu1 %v38695_v61 }
0x172c   : > { %30557 = vmatpush3.bf16.msra.mxu1 %v34320_v20 }
0x172d   : > { %30558 = vmatprep.subr.bf16.mxu1 %v38695_v61 }
0x1730   : > { %30560 = vmatpush3.bf16.msra.mxu1 %v34324_v49 }
0x1731   : > { %30561 = vmatprep.subr.bf16.mxu1 %v38695_v61 }
0x1734   : > { %30563 = vmatpush3.bf16.msra.mxu1 %v34328_v6 }
0x1735   : > { %30564 = vmatprep.subr.bf16.mxu1 %v38695_v61 }
0x1738   : > { %30566 = vmatpush3.bf16.msra.mxu1 %v34332_v23 }
0x1739   : > { %30567 = vmatprep.subr.bf16.mxu1 %v38695_v61 }
0x173b   : > { %26049 = vmatmul.mubr.f32.vlgmr.msra.gmra.mrb[16].mxu1 %v11474_v50  ;;  %v12089_v50 = vsel %vm497_vm2, %v12074_v19, 0 }
0x173c   : > { %30569 = vmatpush3.bf16.msra.mxu1 %v38985_v21  ;;  %26083 = vmatprep.mubr.msk.f32.mxu1 %vm32853_vm0, %v36202_v22  ;;  %v39043_v21 = vld [vmem:[#allocation73_spill] sm:$0xff] }
0x173d   : > { %30570 = vmatprep.subr.bf16.mxu1 %v38695_v61 }
0x1740   : > { %30572 = vmatpush3.bf16.msra.mxu1 %v38986_v14 }
0x1741   : > { %30573 = vmatprep.subr.bf16.mxu1 %v38695_v61 }
0x1744   : > { %30575 = vmatpush3.bf16.msra.mxu1 %v38987_v18  ;;  %v39042_v18 = vld [vmem:[#allocation72_spill] sm:$0xff] }
0x1745   : > { %30576 = vmatprep.subr.bf16.mxu1 %v38695_v61 }
0x1748   : > { %30578 = vmatpush3.bf16.msra.mxu1 %v38988_v25  ;;  %v13945_v25 = vld [vmem:[#allocation6 + $0x1d8] sm:$0xff] }
0x1749   : > { %30579 = vmatprep.subr.bf16.mxu1 %v38695_v61 }
0x174c   : > { %30581 = vmatpush3.bf16.msra.mxu1 %v38989_v4 }
0x174d   : > { %30582 = vmatprep.subr.bf16.mxu1 %v38695_v61 }
0x1750   : > { %30584 = vmatpush3.bf16.msra.mxu1 %v38990_v52 }
0x1751   : > { %30585 = vmatprep.subr.bf16.mxu1 %v38695_v61 }
0x1754   : > { %30587 = vmatpush3.bf16.msra.mxu1 %v38991_v29 }
0x1755   : > { %30588 = vmatprep.subr.bf16.mxu1 %v38695_v61 }
0x1758   : > { %30590 = vmatpush3.bf16.msra.mxu1 %v38992_v13  ;;  %v13944_v13 = vld [vmem:[#allocation6 + $0x1d0] sm:$0xff] }
0x1759   : > { %30591 = vmatprep.subr.bf16.mxu1 %v38695_v61 }
0x175b   : > { %26084 = vmatmul.mubr.f32.vlgmr.msra.gmra.mrb[16].mxu1 %v36408_v28 }
0x175c   : > { %30593 = vmatpush3.bf16.msra.mxu1 %v34294_v31  ;;  %26118 = vmatprep.mubr.msk.f32.mxu1 %vm32853_vm0, %v36202_v22 }
0x175d   : > { %30594 = vmatprep.subr.bf16.mxu1 %v38695_v61 }
0x1760   : > { %30596 = vmatpush3.bf16.msra.mxu1 %v34301_v9 }
0x1761   : > { %30597 = vmatprep.subr.bf16.mxu1 %v38695_v61 }
0x1764   : > { %30599 = vmatpush3.bf16.msra.mxu1 %v34311_v30 }
0x1765   : > { %30600 = vmatprep.subr.bf16.mxu1 %v38695_v61 }
0x1768   : > { %30602 = vmatpush3.bf16.msra.mxu1 %v34316_v11 }
0x1769   : > { %30603 = vmatprep.subr.bf16.mxu1 %v38695_v61 }
0x176c   : > { %30605 = vmatpush3.bf16.msra.mxu1 %v34320_v20 }
0x176d   : > { %30606 = vmatprep.subr.bf16.mxu1 %v38695_v61 }
0x1770   : > { %30608 = vmatpush3.bf16.msra.mxu1 %v34324_v49 }
0x1771   : > { %30609 = vmatprep.subr.bf16.mxu1 %v38695_v61 }
0x1774   : > { %30611 = vmatpush3.bf16.msra.mxu1 %v34328_v6 }
0x1775   : > { %30612 = vmatprep.subr.bf16.mxu1 %v38695_v61 }
0x1778   : > { %30614 = vmatpush3.bf16.msra.mxu1 %v34332_v23 }
0x1779   : > { %30921 = vmatprep.subr.bf16.mxu1 %v38695_v61 }
0x177b   : > { %26119 = vmatmul.mubr.f32.vlgmr.msra.gmra.mrb[16].mxu1 %v36408_v28  ;;  %v36520_v28 = vand.u32 4294901760, %v12083_v0 }
0x177c   : > { %26663 = vmatprep.mubr.msk.f32.mxu1 %vm32853_vm0, %v36202_v22 }
0x184e   : > { %v12028_v26 = vpop.f32.mrb[16].mxu1 }
0x184f   : > { %v32094_v36 = vadd.f32 1e-05, %v12028_v26  ;;  %v26120_v5 = vpop.f32.mrb[17].mxu1  ;;  %v36528_v26 = vsub.f32 %v12083_v0, %v36520_v28 }
0x1850   : > { %v36532_v5 = vand.u32 4294901760, %v12089_v50 }
0x1851   : > { %32617 = vrsqrt.f32 %v32094_v36  ;;  %v36530_v36 = vand.u32 4294901760, %v12086_v38 }
0x185b   : > { %v32618_v58 = vpop.eup %32617 }
0x185c   : > { %v12034_v44 = vrot.slane %v32618_v58, 4 }
0x185e   : > { %v12036_v27 = vmul.f32 %v12034_v44, %v36404_v57  ;;  %v12095_v57 = vand.u32 4294901760, %v12073_v45 }
0x1860   : > { %v12045_v56 = vmul.f32 %v19951_v63, %v12036_v27  ;;  %v36524_v54 = vsub.f32 %v12073_v45, %v12095_v57  ;;  %v36535_v63 = vsub.f32 %v12089_v50, %v36532_v5 }
0x1862   : > { %v12054_v46 = vadd.f32 %v19953_v41, %v12045_v56  ;;  %v12199_v27 = vand.u32 4294901760, %v36524_v54  ;;  %v12162_v41 = vsub.f32 %v36518_v42, %v12161_v59  ;;  %v12171_v56 = vand.u32 4294901760, %v36528_v26 }
0x1864   : > { %v12064_v47 = vrot.slane %v12054_v46, 4  ;;  %vm12055_vm5 = vcmp.ge.f32.partialorder %v12054_v46, 0.0  ;;  %v12200_v48 = vsub.f32 %v36524_v54, %v12199_v27  ;;  %v12163_v60 = vand.u32 4294901760, %v12162_v41 }
0x1866   : > { %v12066_v15 = vmul.f32 %v12064_v47, %v12061_v37  ;;  %v12201_v24 = vand.u32 4294901760, %v12200_v48 }
0x1868   : > { %v12068_v35 = vrot.slane %v12066_v15, 4  ;;  %v12206_v15 = vand.u32 4294901760, %v36535_v63 }
0x186a   : > { %v12070_v1 = vsel %vm12055_vm5, %v12054_v46, %v12068_v35  ;;  %v12180_v46 = vsub.f32 %v12086_v38, %v36530_v36  ;;  %v12172_v35 = vsub.f32 %v36528_v26, %v12171_v56 }
0x186b   : > { %12071 = vst [vmem:[#allocation2] sm:$0xf0] %v12070_v1 }
0x186c   : > { %v12181_v45 = vand.u32 4294901760, %v12180_v46  ;;  %v12173_v19 = vand.u32 4294901760, %v12172_v35  ;;  %v39001_v35 = vld [vmem:[#allocation35_spill] sm:$0xff] }
0x186e   : > { %v12182_v38 = vsub.f32 %v12180_v46, %v12181_v45 }
0x1872   : > { %v12072_v58 = vld [vmem:[#allocation2] sm:$0xff] }
0x1873   : > { %v12092_v44 = vand.u32 4294901760, %v12072_v58 }
0x1875   : > { %v36543_v2 = vpack.c.bf16 %v12095_v57, %v12092_v44  ;;  %v12191_v47 = vsub.f32 %v12072_v58, %v12092_v44  ;;  %v12207_v57 = vsub.f32 %v36535_v63, %v12206_v15  ;;  %v12183_v44 = vand.u32 4294901760, %v12182_v38  ;;  %v39008_v38 = vld [vmem:[#allocation32_spill] sm:$0xff] }
0x1877   : > { %30617 = vmatpush3.bf16.msra.mxu0 %v36543_v2  ;;  %v12192_v37 = vand.u32 4294901760, %v12191_v47  ;;  %v12208_v58 = vand.u32 4294901760, %v12207_v57  ;;  %v30622_v41 = vpack.c.bf16 %v36524_v54, %v12191_v47  ;;  %v39006_v57 = vld [vmem:[#allocation40_spill] sm:$0xff] }
0x1878   : > { %26125 = vmatprep.subr.mxu0 %v36202_v22 }
0x1879   : > { %v12193_v0 = vsub.f32 %v12191_v47, %v12192_v37  ;;  %v30628_v54 = vpack.c.bf16 %v12199_v27, %v12192_v37 }
0x187b   : > { %26126 = vmatpush3.msra.mxu0 %v36532_v5  ;;  %v12194_v1 = vand.u32 4294901760, %v12193_v0  ;;  %v39003_v0 = vld [vmem:[#allocation37_spill] sm:$0xff] }
0x187c   : > { %26128 = vmatmul.mubr.f32.vlgmr.msra.gmra.mrb[20].mxu0 %v12163_v60  ;;  %30618 = vmatprep.subr.bf16.mxu0 %v38695_v61 }
0x187d   : > { %26130 = vmatprep.mubr.msk.f32.mxu0 %vm32853_vm0, %v36202_v22  ;;  %v30619_v50 = vpack.c.bf16 %v12201_v24, %v12194_v1  ;;  %v39004_v1 = vld [vmem:[#allocation38_spill] sm:$0xff]  ;;  %v39005_v24 = vld [vmem:[#allocation39_spill] sm:$0xff] }
0x187f   : > { %30620 = vmatpush3.bf16.msra.mxu0 %v30619_v50  ;;  %v39009_v50 = vld [vmem:[#allocation41_spill] sm:$0xff] }
0x1880   : > { %26131 = vmatmul.mubr.f32.gmra.mrb[22].mxu0 %v12173_v19  ;;  %26140 = vmatprep.subr.mxu0 %v36202_v22  ;;  %v39007_v19 = vld [vmem:[#allocation31_spill] sm:$0xff] }
0x1881   : > { %26133 = vmatprep.mubr.msk.f32.mxu0 %vm32853_vm0, %v36202_v22 }
0x1883   : > { %26141 = vmatpush3.msra.mxu0 %v12208_v58  ;;  %v39010_v58 = vld [vmem:[#allocation42_spill] sm:$0xff] }
0x1884   : > { %26134 = vmatmul.mubr.f32.gmra.mrb[24].mxu0 %v12183_v44  ;;  %30621 = vmatprep.subr.bf16.mxu0 %v38695_v61  ;;  %v39011_v44 = vld [vmem:[#allocation43_spill] sm:$0xff] }
0x1885   : > { %26142 = vmatprep.mubr.msk.f32.mxu0 %vm32853_vm0, %v36202_v22 }
0x1888   : > { %26143 = vmatmul.mubr.f32.vlgmr.msra.gmra.mrb[20].mxu0 %v36514_v53 }
0x1889   : > { %30623 = vmatpush3.bf16.msra.mxu0 %v30622_v41  ;;  %26145 = vmatprep.mubr.msk.f32.mxu0 %vm32853_vm0, %v36202_v22  ;;  %v39012_v41 = vld [vmem:[#allocation44_spill] sm:$0xff] }
0x188a   : > { %26155 = vmatprep.subr.mxu0 %v36202_v22 }
0x188c   : > { %26146 = vmatmul.mubr.f32.gmra.mrb[22].mxu0 %v36520_v28 }
0x188d   : > { %26148 = vmatprep.mubr.msk.f32.mxu0 %vm32853_vm0, %v36202_v22  ;;  %26156 = vmatpush3.msra.mxu0 %v36535_v63  ;;  %v39000_v63 = vld [vmem:[#allocation30_spill] sm:$0xff] }
0x188e   : > { %30624 = vmatprep.subr.bf16.mxu0 %v38695_v61 }
0x1890   : > { %26149 = vmatmul.mubr.f32.gmra.mrb[24].mxu0 %v36530_v36 }
0x1891   : > { %26157 = vmatprep.mubr.msk.f32.mxu0 %vm32853_vm0, %v36202_v22 }
0x1894   : > { %26158 = vmatmul.mubr.f32.vlgmr.msra.gmra.mrb[20].mxu0 %v36518_v42  ;;  %v38993_v42 = vld [vmem:[#allocation23_spill] sm:$0xff] }
0x1895   : > { %30626 = vmatpush3.bf16.msra.mxu0 %v36543_v2  ;;  %26160 = vmatprep.mubr.msk.f32.mxu0 %vm32853_vm0, %v36202_v22 }
0x1896   : > { %26170 = vmatprep.subr.mxu0 %v36202_v22 }
0x1898   : > { %26161 = vmatmul.mubr.f32.gmra.mrb[22].mxu0 %v36528_v26  ;;  %v38995_v26 = vld [vmem:[#allocation25_spill] sm:$0xff] }
0x1899   : > { %26163 = vmatprep.mubr.msk.f32.mxu0 %vm32853_vm0, %v36202_v22  ;;  %26171 = vmatpush3.msra.mxu0 %v36532_v5 }
0x189a   : > { %30627 = vmatprep.subr.bf16.mxu0 %v38695_v61 }
0x189c   : > { %26164 = vmatmul.mubr.f32.gmra.mrb[24].mxu0 %v12180_v46 }
0x189d   : > { %26172 = vmatprep.mubr.msk.f32.mxu0 %vm32853_vm0, %v36202_v22 }
0x18a0   : > { %26173 = vmatmul.mubr.f32.vlgmr.msra.gmra.mrb[20].mxu0 %v12161_v59  ;;  %v38994_v59 = vld [vmem:[#allocation24_spill] sm:$0xff] }
0x18a1   : > { %30629 = vmatpush3.bf16.msra.mxu0 %v30628_v54  ;;  %26175 = vmatprep.mubr.msk.f32.mxu0 %vm32853_vm0, %v36202_v22  ;;  %v39013_v54 = vld [vmem:[#allocation45_spill] sm:$0xff] }
0x18a2   : > { %26185 = vmatprep.subr.mxu0 %v36202_v22 }
0x18a4   : > { %26176 = vmatmul.mubr.f32.gmra.mrb[22].mxu0 %v12171_v56 }
0x18a5   : > { %26178 = vmatprep.mubr.msk.f32.mxu0 %vm32853_vm0, %v36202_v22  ;;  %26186 = vmatpush3.msra.mxu0 %v12206_v15 }
0x18a6   : > { %30630 = vmatprep.subr.bf16.mxu0 %v38695_v61 }
0x18a8   : > { %26179 = vmatmul.mubr.f32.gmra.mrb[24].mxu0 %v12181_v45  ;;  %v39002_v45 = vld [vmem:[#allocation36_spill] sm:$0xff] }
0x18a9   : > { %26187 = vmatprep.mubr.msk.f32.mxu0 %vm32853_vm0, %v36202_v22 }
0x18ac   : > { %26188 = vmatmul.mubr.f32.vlgmr.msra.gmra.mrb[20].mxu0 %v36514_v53 }
0x18ad   : > { %30632 = vmatpush3.bf16.msra.mxu0 %v36543_v2  ;;  %26190 = vmatprep.mubr.msk.f32.mxu0 %vm32853_vm0, %v36202_v22 }
0x18ae   : > { %26200 = vmatprep.subr.mxu0 %v36202_v22 }
0x18b0   : > { %26191 = vmatmul.mubr.f32.gmra.mrb[22].mxu0 %v36520_v28 }
0x18b1   : > { %26193 = vmatprep.mubr.msk.f32.mxu0 %vm32853_vm0, %v36202_v22  ;;  %26201 = vmatpush3.msra.mxu0 %v36532_v5  ;;  %v38998_v5 = vld [vmem:[#allocation28_spill] sm:$0xff] }
0x18b2   : > { %30633 = vmatprep.subr.bf16.mxu0 %v38695_v61 }
0x18b4   : > { %26194 = vmatmul.mubr.f32.gmra.mrb[24].mxu0 %v36530_v36 }
0x18b5   : > { %26202 = vmatprep.mubr.msk.f32.mxu0 %vm32853_vm0, %v36202_v22 }
0x18b8   : > { %26203 = vmatmul.mubr.f32.vlgmr.msra.gmra.mrb[20].mxu0 %v36514_v53  ;;  %v38996_v53 = vld [vmem:[#allocation26_spill] sm:$0xff] }
0x18b9   : > { %26205 = vmatprep.mubr.msk.f32.mxu0 %vm32853_vm0, %v36202_v22  ;;  %30635 = vmatpush3.bf16.msra.mxu0 %v38993_v42 }
0x18ba   : > { %30636 = vmatprep.subr.bf16.mxu0 %v38695_v61 }
0x18bc   : > { %26206 = vmatmul.mubr.f32.gmra.mrb[22].mxu0 %v36520_v28  ;;  %v38997_v28 = vld [vmem:[#allocation27_spill] sm:$0xff] }
0x18bd   : > { %26208 = vmatprep.mubr.msk.f32.mxu0 %vm32853_vm0, %v36202_v22  ;;  %30638 = vmatpush3.bf16.msra.mxu0 %v38994_v59 }
0x18be   : > { %30639 = vmatprep.subr.bf16.mxu0 %v38695_v61 }
0x18c0   : > { %26209 = vmatmul.mubr.f32.gmra.mrb[24].mxu0 %v36530_v36  ;;  %v38999_v36 = vld [vmem:[#allocation29_spill] sm:$0xff] }
0x18c1   : > { %30641 = vmatpush3.bf16.msra.mxu0 %v38995_v26  ;;  %26243 = vmatprep.mubr.msk.f32.mxu0 %vm32853_vm0, %v36202_v22 }
0x18c2   : > { %30642 = vmatprep.subr.bf16.mxu0 %v38695_v61 }
0x18c5   : > { %30644 = vmatpush3.bf16.msra.mxu0 %v38996_v53 }
0x18c6   : > { %30645 = vmatprep.subr.bf16.mxu0 %v38695_v61 }
0x18c9   : > { %30647 = vmatpush3.bf16.msra.mxu0 %v38997_v28 }
0x18ca   : > { %30648 = vmatprep.subr.bf16.mxu0 %v38695_v61 }
0x18cd   : > { %30650 = vmatpush3.bf16.msra.mxu0 %v38998_v5 }
0x18ce   : > { %30651 = vmatprep.subr.bf16.mxu0 %v38695_v61 }
0x18d1   : > { %30653 = vmatpush3.bf16.msra.mxu0 %v38999_v36 }
0x18d2   : > { %30654 = vmatprep.subr.bf16.mxu0 %v38695_v61 }
0x18d5   : > { %30656 = vmatpush3.bf16.msra.mxu0 %v39000_v63 }
0x18d6   : > { %30657 = vmatprep.subr.bf16.mxu0 %v38695_v61 }
0x198b   : > { %v12633_v27 = vpop.f32.mrb[20].mxu0 }
0x198c   : > { %v36634_v56 = vand.u32 4294901760, %v12633_v27  ;;  %v26204_v46 = vpop.f32.mrb[21].mxu0 }
0x198d   : > { %v39015_v46 = vld [vmem:[#allocation33_spill] sm:$0xff] }
0x198e   : > { %v12731_v2 = vsub.f32 %v12633_v27, %v36634_v56  ;;  %v39014_v27 = vld [vmem:[#allocation46_spill] sm:$0xff] }
0x1990   : > { %v12732_v47 = vand.u32 4294901760, %v12731_v2 }
0x1992   : > { %v12733_v37 = vsub.f32 %v12731_v2, %v12732_v47 }
0x1993   : > { %v36637_v48 = vpop.f32.mrb[24].mxu0 }
0x1994   : > { %v12734_v15 = vand.u32 4294901760, %v12733_v37  ;;  %v26210_v60 = vpop.f32.mrb[25].mxu0  ;;  %v39016_v37 = vld [vmem:[#allocation34_spill] sm:$0xff] }
0x1995   : > { %v39019_v60 = vld [vmem:[#allocation49_spill] sm:$0xff] }
0x1996   : > { %26244 = vmatmul.mubr.f32.vlgmr.msra.gmra.mrb[22].mxu0 %v12734_v15  ;;  %v39018_v15 = vld [vmem:[#allocation48_spill] sm:$0xff] }
0x1997   : > { %30659 = vmatpush3.bf16.msra.mxu0 %v39001_v35  ;;  %26278 = vmatprep.mubr.msk.f32.mxu0 %vm32853_vm0, %v36202_v22 }
0x1998   : > { %30660 = vmatprep.subr.bf16.mxu0 %v38695_v61 }
0x199b   : > { %30662 = vmatpush3.bf16.msra.mxu0 %v39002_v45  ;;  %v13939_v45 = vld [vmem:[#allocation6 + $0x1a8] sm:$0xff] }
0x199c   : > { %30663 = vmatprep.subr.bf16.mxu0 %v38695_v61 }
0x199f   : > { %30665 = vmatpush3.bf16.msra.mxu0 %v39003_v0  ;;  %v13938_v0 = vld [vmem:[#allocation6 + $0x1a0] sm:$0xff] }
0x19a0   : > { %30666 = vmatprep.subr.bf16.mxu0 %v38695_v61  ;;  %v13963_v35 = vand.u32 4294901760, %v13938_v0 }
0x19a2   : > { %v36796_v4 = vsub.f32 %v13938_v0, %v13963_v35 }
0x19a3   : > { %30668 = vmatpush3.bf16.msra.mxu0 %v39004_v1  ;;  %v13937_v1 = vld [vmem:[#allocation6 + $0x198] sm:$0xff] }
0x19a4   : > { %30669 = vmatprep.subr.bf16.mxu0 %v38695_v61 }
0x19a7   : > { %30671 = vmatpush3.bf16.msra.mxu0 %v39005_v24 }
0x19a8   : > { %30672 = vmatprep.subr.bf16.mxu0 %v38695_v61 }
0x19ab   : > { %30674 = vmatpush3.bf16.msra.mxu0 %v39006_v57  ;;  %v13936_v57 = vld [vmem:[#allocation6 + $0x190] sm:$0xff] }
0x19ac   : > { %30675 = vmatprep.subr.bf16.mxu0 %v38695_v61 }
0x19af   : > { %30677 = vmatpush3.bf16.msra.mxu0 %v39007_v19  ;;  %v39036_v19 = vld [vmem:[#allocation66_spill] sm:$0xff] }
0x19b0   : > { %30678 = vmatprep.subr.bf16.mxu0 %v38695_v61 }
0x19b3   : > { %30680 = vmatpush3.bf16.msra.mxu0 %v39008_v38  ;;  %v39034_v38 = vld [vmem:[#allocation64_spill] sm:$0xff] }
0x19b4   : > { %30681 = vmatprep.subr.bf16.mxu0 %v38695_v61 }
0x19b6   : > { %26279 = vmatmul.mubr.f32.vlgmr.msra.gmra.mrb[22].mxu0 %v36634_v56 }
0x19b7   : > { %30683 = vmatpush3.bf16.msra.mxu0 %v39009_v50  ;;  %26313 = vmatprep.mubr.msk.f32.mxu0 %vm32853_vm0, %v36202_v22  ;;  %v39033_v50 = vld [vmem:[#allocation63_spill] sm:$0xff] }
0x19b8   : > { %30684 = vmatprep.subr.bf16.mxu0 %v38695_v61 }
0x19bb   : > { %30686 = vmatpush3.bf16.msra.mxu0 %v39010_v58  ;;  %v39032_v58 = vld [vmem:[#allocation62_spill] sm:$0xff] }
0x19bc   : > { %30687 = vmatprep.subr.bf16.mxu0 %v38695_v61 }
0x19bf   : > { %30689 = vmatpush3.bf16.msra.mxu0 %v39011_v44 }
0x19c0   : > { %30690 = vmatprep.subr.bf16.mxu0 %v38695_v61 }
0x19c3   : > { %30692 = vmatpush3.bf16.msra.mxu0 %v39012_v41  ;;  %v39031_v41 = vld [vmem:[#allocation61_spill] sm:$0xff] }
0x19c4   : > { %30693 = vmatprep.subr.bf16.mxu0 %v38695_v61 }
0x19c7   : > { %30695 = vmatpush3.bf16.msra.mxu0 %v39013_v54 }
0x19c8   : > { %30696 = vmatprep.subr.bf16.mxu0 %v38695_v61 }
0x19cb   : > { %30698 = vmatpush3.bf16.msra.mxu0 %v39014_v27  ;;  %v39030_v27 = vld [vmem:[#allocation60_spill] sm:$0xff] }
0x19cc   : > { %30699 = vmatprep.subr.bf16.mxu0 %v38695_v61 }
0x19cf   : > { %30701 = vmatpush3.bf16.msra.mxu0 %v39015_v46  ;;  %v39023_v46 = vld [vmem:[#allocation53_spill] sm:$0xff] }
0x19d0   : > { %30702 = vmatprep.subr.bf16.mxu0 %v38695_v61 }
0x19d3   : > { %30704 = vmatpush3.bf16.msra.mxu0 %v39016_v37  ;;  %v39020_v37 = vld [vmem:[#allocation50_spill] sm:$0xff] }
0x19d4   : > { %30705 = vmatprep.subr.bf16.mxu0 %v38695_v61 }
0x19d6   : > { %26314 = vmatmul.mubr.f32.vlgmr.msra.gmra.mrb[22].mxu0 %v12731_v2  ;;  %v39017_v2 = vld [vmem:[#allocation47_spill] sm:$0xff] }
0x19d7   : > { %30707 = vmatpush3.bf16.msra.mxu0 %v38993_v42  ;;  %26348 = vmatprep.mubr.msk.f32.mxu0 %vm32853_vm0, %v36202_v22 }
0x19d8   : > { %30708 = vmatprep.subr.bf16.mxu0 %v38695_v61 }
0x19db   : > { %30710 = vmatpush3.bf16.msra.mxu0 %v38994_v59 }
0x19dc   : > { %30711 = vmatprep.subr.bf16.mxu0 %v38695_v61 }
0x19df   : > { %30713 = vmatpush3.bf16.msra.mxu0 %v38995_v26 }
0x19e0   : > { %30714 = vmatprep.subr.bf16.mxu0 %v38695_v61 }
0x19e3   : > { %30716 = vmatpush3.bf16.msra.mxu0 %v38996_v53 }
0x19e4   : > { %30717 = vmatprep.subr.bf16.mxu0 %v38695_v61 }
0x19e7   : > { %30719 = vmatpush3.bf16.msra.mxu0 %v38997_v28 }
0x19e8   : > { %30720 = vmatprep.subr.bf16.mxu0 %v38695_v61 }
0x19eb   : > { %30722 = vmatpush3.bf16.msra.mxu0 %v38998_v5 }
0x19ec   : > { %30723 = vmatprep.subr.bf16.mxu0 %v38695_v61 }
0x19ef   : > { %30725 = vmatpush3.bf16.msra.mxu0 %v38999_v36 }
0x19f0   : > { %30726 = vmatprep.subr.bf16.mxu0 %v38695_v61 }
0x19f3   : > { %30728 = vmatpush3.bf16.msra.mxu0 %v39000_v63 }
0x19f4   : > { %30729 = vmatprep.subr.bf16.mxu0 %v38695_v61 }
0x19f6   : > { %26349 = vmatmul.mubr.f32.vlgmr.msra.gmra.mrb[22].mxu0 %v12732_v47  ;;  %v39021_v47 = vld [vmem:[#allocation51_spill] sm:$0xff] }
0x19f7   : > { %30731 = vmatpush3.bf16.msra.mxu0 %v39017_v2  ;;  %26383 = vmatprep.mubr.msk.f32.mxu0 %vm32853_vm0, %v36202_v22  ;;  %v39022_v2 = vld [vmem:[#allocation52_spill] sm:$0xff] }
0x19f8   : > { %30732 = vmatprep.subr.bf16.mxu0 %v38695_v61 }
0x19fb   : > { %30734 = vmatpush3.bf16.msra.mxu0 %v39018_v15  ;;  %v39024_v15 = vld [vmem:[#allocation54_spill] sm:$0xff] }
0x19fc   : > { %30735 = vmatprep.subr.bf16.mxu0 %v38695_v61 }
0x19ff   : > { %30737 = vmatpush3.bf16.msra.mxu0 %v39019_v60 }
0x1a00   : > { %30738 = vmatprep.subr.bf16.mxu0 %v38695_v61 }
0x1a03   : > { %30740 = vmatpush3.bf16.msra.mxu0 %v39020_v37  ;;  %v36742_v37 = vand.u32 4294901760, %v36637_v48 }
0x1a04   : > { %30741 = vmatprep.subr.bf16.mxu0 %v38695_v61 }
0x1a05   : > { %v36748_v60 = vsub.f32 %v36637_v48, %v36742_v37 }
0x1a07   : > { %30743 = vmatpush3.bf16.msra.mxu0 %v39021_v47  ;;  %v39028_v47 = vld [vmem:[#allocation58_spill] sm:$0xff]  ;;  %v38553_v54 = vand.u32 4294901760, %v36748_v60 }
0x1a08   : > { %30744 = vmatprep.subr.bf16.mxu0 %v38695_v61 }
0x1a09   : > { %v13375_v44 = vsub.f32 %v36748_v60, %v38553_v54  ;;  %v39035_v54 = vld [vmem:[#allocation65_spill] sm:$0xff] }
0x1a0b   : > { %30746 = vmatpush3.bf16.msra.mxu0 %v39022_v2  ;;  %v39027_v2 = vld [vmem:[#allocation57_spill] sm:$0xff]  ;;  %v13376_v48 = vand.u32 4294901760, %v13375_v44  ;;  %v39037_v44 = vld [vmem:[#allocation67_spill] sm:$0xff] }
0x1a0c   : > { %30747 = vmatprep.subr.bf16.mxu0 %v38695_v61 }
0x1a0f   : > { %30749 = vmatpush3.bf16.msra.mxu0 %v39023_v46  ;;  %v39026_v46 = vld [vmem:[#allocation56_spill] sm:$0xff] }
0x1a10   : > { %30750 = vmatprep.subr.bf16.mxu0 %v38695_v61 }
0x1a13   : > { %30752 = vmatpush3.bf16.msra.mxu0 %v39024_v15  ;;  %v39025_v15 = vld [vmem:[#allocation55_spill] sm:$0xff] }
0x1a14   : > { %30753 = vmatprep.subr.bf16.mxu0 %v38695_v61 }
0x1a16   : > { %26384 = vmatmul.mubr.f32.vlgmr.msra.gmra.mrb[22].mxu0 %v36634_v56 }
0x1a17   : > { %30755 = vmatpush3.bf16.msra.mxu0 %v38993_v42  ;;  %26418 = vmatprep.mubr.msk.f32.mxu0 %vm32853_vm0, %v36202_v22  ;;  %v13943_v42 = vld [vmem:[#allocation6 + $0x1c8] sm:$0xff] }
0x1a18   : > { %30756 = vmatprep.subr.bf16.mxu0 %v38695_v61 }
0x1a1b   : > { %30758 = vmatpush3.bf16.msra.mxu0 %v38994_v59 }
0x1a1c   : > { %30759 = vmatprep.subr.bf16.mxu0 %v38695_v61 }
0x1a1f   : > { %30761 = vmatpush3.bf16.msra.mxu0 %v38995_v26 }
0x1a20   : > { %30762 = vmatprep.subr.bf16.mxu0 %v38695_v61 }
0x1a23   : > { %30764 = vmatpush3.bf16.msra.mxu0 %v38996_v53 }
0x1a24   : > { %30765 = vmatprep.subr.bf16.mxu0 %v38695_v61 }
0x1a27   : > { %30767 = vmatpush3.bf16.msra.mxu0 %v38997_v28  ;;  %v13942_v28 = vld [vmem:[#allocation6 + $0x1c0] sm:$0xff] }
0x1a28   : > { %30768 = vmatprep.subr.bf16.mxu0 %v38695_v61 }
0x1a2b   : > { %30770 = vmatpush3.bf16.msra.mxu0 %v38998_v5  ;;  %v13941_v5 = vld [vmem:[#allocation6 + $0x1b8] sm:$0xff] }
0x1a2c   : > { %30771 = vmatprep.subr.bf16.mxu0 %v38695_v61 }
0x1a2f   : > { %30773 = vmatpush3.bf16.msra.mxu0 %v38999_v36  ;;  %v13940_v36 = vld [vmem:[#allocation6 + $0x1b0] sm:$0xff] }
0x1a30   : > { %30774 = vmatprep.subr.bf16.mxu0 %v38695_v61 }
0x1a33   : > { %30776 = vmatpush3.bf16.msra.mxu0 %v39000_v63  ;;  %v13966_v63 = vand.u32 4294901760, %v13939_v45 }
0x1a34   : > { %30777 = vmatprep.subr.bf16.mxu0 %v38695_v61 }
0x1a35   : > { %v36800_v14 = vsub.f32 %v13939_v45, %v13966_v63  ;;  %v36816_v39 = vpack.c.bf16 %v13966_v63, %v13963_v35  ;;  %v39047_v63 = vld [vmem:[#allocation77_spill] sm:$0xff]  ;;  %v39048_v35 = vld [vmem:[#allocation78_spill] sm:$0xff] }
0x1a36   : > { %26419 = vmatmul.mubr.f32.vlgmr.msra.gmra.mrb[22].mxu0 %v36634_v56  ;;  %v39029_v56 = vld [vmem:[#allocation59_spill] sm:$0xff] }
0x1a37   : > { %30779 = vmatpush3.bf16.msra.mxu0 %v39025_v15  ;;  %26453 = vmatprep.mubr.msk.f32.mxu0 %vm32853_vm0, %v36202_v22 }
0x1a38   : > { %30780 = vmatprep.subr.bf16.mxu0 %v38695_v61 }
0x1a3b   : > { %30782 = vmatpush3.bf16.msra.mxu0 %v39026_v46 }
0x1a3c   : > { %30783 = vmatprep.subr.bf16.mxu0 %v38695_v61 }
0x1a3f   : > { %30785 = vmatpush3.bf16.msra.mxu0 %v39027_v2 }
0x1a40   : > { %30786 = vmatprep.subr.bf16.mxu0 %v38695_v61 }
0x1a43   : > { %30788 = vmatpush3.bf16.msra.mxu0 %v39028_v47 }
0x1a44   : > { %30789 = vmatprep.subr.bf16.mxu0 %v38695_v61 }
0x1a47   : > { %30791 = vmatpush3.bf16.msra.mxu0 %v39029_v56 }
0x1a48   : > { %30792 = vmatprep.subr.bf16.mxu0 %v38695_v61 }
0x1a4b   : > { %30794 = vmatpush3.bf16.msra.mxu0 %v39030_v27 }
0x1a4c   : > { %30795 = vmatprep.subr.bf16.mxu0 %v38695_v61 }
0x1a4f   : > { %30797 = vmatpush3.bf16.msra.mxu0 %v39031_v41 }
0x1a50   : > { %30798 = vmatprep.subr.bf16.mxu0 %v38695_v61 }
0x1a53   : > { %30800 = vmatpush3.bf16.msra.mxu0 %v39032_v58 }
0x1a54   : > { %30801 = vmatprep.subr.bf16.mxu0 %v38695_v61 }
0x1a56   : > { %26454 = vmatmul.mubr.f32.vlgmr.msra.gmra.mrb[22].mxu0 %v13376_v48  ;;  %v39038_v48 = vld [vmem:[#allocation68_spill] sm:$0xff] }
0x1a57   : > { %30803 = vmatpush3.bf16.msra.mxu0 %v39033_v50  ;;  %26488 = vmatprep.mubr.msk.f32.mxu0 %vm32853_vm0, %v36202_v22  ;;  %v39039_v50 = vld [vmem:[#allocation69_spill] sm:$0xff] }
0x1a58   : > { %30804 = vmatprep.subr.bf16.mxu0 %v38695_v61 }
0x1a5b   : > { %30806 = vmatpush3.bf16.msra.mxu0 %v39034_v38  ;;  %v39040_v38 = vld [vmem:[#allocation70_spill] sm:$0xff] }
0x1a5c   : > { %30807 = vmatprep.subr.bf16.mxu0 %v38695_v61 }
0x1a5f   : > { %30809 = vmatpush3.bf16.msra.mxu0 %v39035_v54  ;;  %v13935_v54 = vld [vmem:[#allocation6 + $0x188] sm:$0xff] }
0x1a60   : > { %30810 = vmatprep.subr.bf16.mxu0 %v38695_v61  ;;  %v13954_v24 = vand.u32 4294901760, %v13935_v54 }
0x1a62   : > { %v36788_v26 = vsub.f32 %v13935_v54, %v13954_v24  ;;  %v13975_v54 = vand.u32 4294901760, %v13942_v28 }
0x1a63   : > { %30812 = vmatpush3.bf16.msra.mxu0 %v39036_v19  ;;  %v13934_v19 = vld [vmem:[#allocation6 + $0x180] sm:$0xff] }
0x1a64   : > { %30813 = vmatprep.subr.bf16.mxu0 %v38695_v61 }
0x1a67   : > { %30815 = vmatpush3.bf16.msra.mxu0 %v39037_v44  ;;  %v39041_v44 = vld [vmem:[#allocation71_spill] sm:$0xff] }
0x1a68   : > { %30816 = vmatprep.subr.bf16.mxu0 %v38695_v61 }
0x1a6b   : > { %30818 = vmatpush3.bf16.msra.mxu0 %v39038_v48  ;;  %v13951_v48 = vand.u32 4294901760, %v13934_v19 }
0x1a6c   : > { %30819 = vmatprep.subr.bf16.mxu0 %v38695_v61 }
0x1a6d   : > { %v36784_v53 = vpack.c.bf16 %v13954_v24, %v13951_v48  ;;  %v13972_v24 = vand.u32 4294901760, %v13941_v5 }
0x1a6f   : > { %30821 = vmatpush3.bf16.msra.mxu0 %v39039_v50  ;;  %v13957_v50 = vand.u32 4294901760, %v13936_v57  ;;  %30923 = vmatpush3.bf16.msra.mxu1 %v36784_v53  ;;  %v36806_v0 = vsub.f32 %v13941_v5, %v13972_v24  ;;  %v39044_v5 = vld [vmem:[#allocation74_spill] sm:$0xff] }
0x1a70   : > { %30822 = vmatprep.subr.bf16.mxu0 %v38695_v61  ;;  %30924 = vmatprep.subr.bf16.mxu1 %v38695_v61 }
0x1a71   : > { %v36790_v59 = vsub.f32 %v13936_v57, %v13957_v50  ;;  %v13978_v57 = vand.u32 4294901760, %v13943_v42 }
0x1a73   : > { %30824 = vmatpush3.bf16.msra.mxu0 %v39040_v38  ;;  %v13960_v38 = vand.u32 4294901760, %v13937_v1 }
0x1a74   : > { %30825 = vmatprep.subr.bf16.mxu0 %v38695_v61 }
0x1a75   : > { %v36792_v29 = vpack.c.bf16 %v13960_v38, %v13957_v50  ;;  %v36794_v52 = vsub.f32 %v13937_v1, %v13960_v38  ;;  %v13981_v50 = vand.u32 4294901760, %v13944_v13  ;;  %v36808_v38 = vsub.f32 %v13942_v28, %v13975_v54  ;;  %v39046_v28 = vld [vmem:[#allocation76_spill] sm:$0xff] }
0x1a76   : > { %26489 = vmatmul.mubr.f32.vlgmr.msra.gmra.mrb[22].mxu0 %v36742_v37 }
0x1a77   : > { %30827 = vmatpush3.bf16.msra.mxu0 %v39041_v44  ;;  %26523 = vmatprep.mubr.msk.f32.mxu0 %vm32853_vm0, %v36202_v22  ;;  %v36786_v44 = vsub.f32 %v13934_v19, %v13951_v48  ;;  %v13969_v19 = vand.u32 4294901760, %v13940_v36  ;;  %v13984_v48 = vand.u32 4294901760, %v13945_v25  ;;  %v36812_v45 = vsub.f32 %v13944_v13, %v13981_v50  ;;  %v39045_v13 = vld [vmem:[#allocation75_spill] sm:$0xff] }
0x1a78   : > { %30828 = vmatprep.subr.bf16.mxu0 %v38695_v61  ;;  %30926 = vmatpush3.bf16.msra.mxu1 %v36792_v29 }
0x1a79   : > { %v36804_v1 = vsub.f32 %v13940_v36, %v13969_v19  ;;  %v36818_v51 = vsub.f32 %v13945_v25, %v13984_v48  ;;  %30927 = vmatprep.subr.bf16.mxu1 %v38695_v61  ;;  %v36830_v25 = vpack.c.bf16 %v13978_v57, %v13975_v54  ;;  %v36836_v36 = vpack.c.bf16 %v13984_v48, %v13981_v50  ;;  %v39051_v54 = vld [vmem:[#allocation80_spill] sm:$0xff]  ;;  %v39053_v50 = vld [vmem:[#allocation82_spill] sm:$0xff] }
0x1a7a   : > { %v39055_v48 = vld [vmem:[#allocation84_spill] sm:$0xff] }
0x1a7b   : > { %30830 = vmatpush3.bf16.msra.mxu0 %v39042_v18  ;;  %v36810_v18 = vsub.f32 %v13943_v42, %v13978_v57  ;;  %v36824_v42 = vpack.c.bf16 %v13972_v24, %v13969_v19  ;;  %v39049_v19 = vand.u32 4294901760, %v36748_v60  ;;  %v39050_v24 = vld [vmem:[#allocation79_spill] sm:$0xff]  ;;  %v39052_v57 = vld [vmem:[#allocation81_spill] sm:$0xff] }
0x1a7c   : > { %30831 = vmatprep.subr.bf16.mxu0 %v38695_v61  ;;  %30929 = vmatpush3.bf16.msra.mxu1 %v36816_v39 }
0x1a7d   : > { %30930 = vmatprep.subr.bf16.mxu1 %v38695_v61 }
0x1a7f   : > { %30833 = vmatpush3.bf16.msra.mxu0 %v39043_v21 }
0x1a80   : > { %30834 = vmatprep.subr.bf16.mxu0 %v38695_v61  ;;  %30932 = vmatpush3.bf16.msra.mxu1 %v36824_v42 }
0x1a81   : > { %30933 = vmatprep.subr.bf16.mxu1 %v38695_v61 }
0x1a83   : > { %30836 = vmatpush3.bf16.msra.mxu0 %v39044_v5 }
0x1a84   : > { %30837 = vmatprep.subr.bf16.mxu0 %v38695_v61  ;;  %30935 = vmatpush3.bf16.msra.mxu1 %v36830_v25 }
0x1a85   : > { %30936 = vmatprep.subr.bf16.mxu1 %v38695_v61 }
0x1a87   : > { %30839 = vmatpush3.bf16.msra.mxu0 %v39045_v13 }
0x1a88   : > { %30840 = vmatprep.subr.bf16.mxu0 %v38695_v61  ;;  %30938 = vmatpush3.bf16.msra.mxu1 %v36836_v36 }
0x1a89   : > { %30939 = vmatprep.subr.bf16.mxu1 %v38695_v61 }
0x1a8b   : > { %30842 = vmatpush3.bf16.msra.mxu0 %v39046_v28  ;;  %v38576_v28 = vand.u32 4294901760, %v36788_v26 }
0x1a8c   : > { %30843 = vmatprep.subr.bf16.mxu0 %v38695_v61 }
0x1a8f   : > { %30845 = vmatpush3.bf16.msra.mxu0 %v39047_v63  ;;  %v38577_v63 = vand.u32 4294901760, %v36786_v44 }
0x1a90   : > { %30846 = vmatprep.subr.bf16.mxu0 %v38695_v61 }
0x1a93   : > { %30848 = vmatpush3.bf16.msra.mxu0 %v39048_v35 }
0x1a94   : > { %30849 = vmatprep.subr.bf16.mxu0 %v38695_v61 }
0x1a96   : > { %26524 = vmatmul.mubr.f32.vlgmr.msra.gmra.mrb[22].mxu0 %v36748_v60  ;;  %v39054_v60 = vld [vmem:[#allocation83_spill] sm:$0xff] }
0x1a97   : > { %30851 = vmatpush3.bf16.msra.mxu0 %v39025_v15  ;;  %26558 = vmatprep.mubr.msk.f32.mxu0 %vm32853_vm0, %v36202_v22 }
0x1a98   : > { %30852 = vmatprep.subr.bf16.mxu0 %v38695_v61 }
0x1a9b   : > { %30854 = vmatpush3.bf16.msra.mxu0 %v39026_v46 }
0x1a9c   : > { %30855 = vmatprep.subr.bf16.mxu0 %v38695_v61 }
0x1a9f   : > { %30857 = vmatpush3.bf16.msra.mxu0 %v39027_v2 }
0x1aa0   : > { %30858 = vmatprep.subr.bf16.mxu0 %v38695_v61 }
0x1aa3   : > { %30860 = vmatpush3.bf16.msra.mxu0 %v39028_v47 }
0x1aa4   : > { %30861 = vmatprep.subr.bf16.mxu0 %v38695_v61 }
0x1aa7   : > { %30863 = vmatpush3.bf16.msra.mxu0 %v39029_v56 }
0x1aa8   : > { %30864 = vmatprep.subr.bf16.mxu0 %v38695_v61 }
0x1aab   : > { %30866 = vmatpush3.bf16.msra.mxu0 %v39030_v27 }
0x1aac   : > { %30867 = vmatprep.subr.bf16.mxu0 %v38695_v61 }
0x1aaf   : > { %30869 = vmatpush3.bf16.msra.mxu0 %v39031_v41 }
0x1ab0   : > { %30870 = vmatprep.subr.bf16.mxu0 %v38695_v61 }
0x1ab3   : > { %30872 = vmatpush3.bf16.msra.mxu0 %v39032_v58 }
0x1ab4   : > { %30873 = vmatprep.subr.bf16.mxu0 %v38695_v61 }
0x1ab6   : > { %26559 = vmatmul.mubr.f32.vlgmr.msra.gmra.mrb[22].mxu0 %v39049_v19  ;;  %v39056_v19 = vld [vmem:[#allocation85_spill] sm:$0xff] }
0x1ab7   : > { %30875 = vmatpush3.bf16.msra.mxu0 %v39050_v24  ;;  %26593 = vmatprep.mubr.msk.f32.mxu0 %vm32853_vm0, %v36202_v22 }
0x1ab8   : > { %30876 = vmatprep.subr.bf16.mxu0 %v38695_v61 }
0x1abb   : > { %30878 = vmatpush3.bf16.msra.mxu0 %v39051_v54  ;;  %v39057_v54 = vld [vmem:[#allocation86_spill] sm:$0xff] }
0x1abc   : > { %30879 = vmatprep.subr.bf16.mxu0 %v38695_v61 }
0x1abf   : > { %30881 = vmatpush3.bf16.msra.mxu0 %v39052_v57  ;;  %v13949_v57 = vld [vmem:[#allocation6 + $0x1f8] sm:$0xff] }
0x1ac0   : > { %30882 = vmatprep.subr.bf16.mxu0 %v38695_v61  ;;  %v13996_v35 = vand.u32 4294901760, %v13949_v57 }
0x1ac3   : > { %30884 = vmatpush3.bf16.msra.mxu0 %v39053_v50  ;;  %v13948_v50 = vld [vmem:[#allocation6 + $0x1f0] sm:$0xff] }
0x1ac4   : > { %30885 = vmatprep.subr.bf16.mxu0 %v38695_v61  ;;  %v13993_v24 = vand.u32 4294901760, %v13948_v50 }
0x1ac6   : > { %v36933_v21 = vpack.c.bf16 %v13996_v35, %v13993_v24 }
0x1ac7   : > { %30887 = vmatpush3.bf16.msra.mxu0 %v39054_v60 }
0x1ac8   : > { %30888 = vmatprep.subr.bf16.mxu0 %v38695_v61 }
0x1acb   : > { %30890 = vmatpush3.bf16.msra.mxu0 %v39055_v48 }
0x1acc   : > { %30891 = vmatprep.subr.bf16.mxu0 %v38695_v61 }
0x1acf   : > { %30893 = vmatpush3.bf16.msra.mxu0 %v39056_v19 }
0x1ad0   : > { %30894 = vmatprep.subr.bf16.mxu0 %v38695_v61 }
0x1ad3   : > { %30896 = vmatpush3.bf16.msra.mxu0 %v39057_v54  ;;  %v13947_v54 = vld [vmem:[#allocation6 + $0x1e8] sm:$0xff] }
0x1ad4   : > { %30897 = vmatprep.subr.bf16.mxu0 %v38695_v61  ;;  %v13990_v48 = vand.u32 4294901760, %v13947_v54 }
0x1ad6   : > { %26594 = vmatmul.mubr.f32.vlgmr.msra.gmra.mrb[22].mxu0 %v36742_v37  ;;  %v36931_v5 = vsub.f32 %v13947_v54, %v13990_v48 }
0x1ad7   : > { %30899 = vmatpush3.bf16.msra.mxu0 %v39025_v15  ;;  %26628 = vmatprep.mubr.msk.f32.mxu0 %vm32853_vm0, %v36202_v22  ;;  %v38591_v15 = vand.u32 4294901760, %v36812_v45 }
0x1ad8   : > { %30900 = vmatprep.subr.bf16.mxu0 %v38695_v61 }
0x1adb   : > { %30902 = vmatpush3.bf16.msra.mxu0 %v39026_v46  ;;  %v38588_v46 = vand.u32 4294901760, %v36808_v38 }
0x1adc   : > { %30903 = vmatprep.subr.bf16.mxu0 %v38695_v61 }
0x1adf   : > { %30905 = vmatpush3.bf16.msra.mxu0 %v39027_v2  ;;  %v38585_v2 = vand.u32 4294901760, %v36804_v1 }
0x1ae0   : > { %30906 = vmatprep.subr.bf16.mxu0 %v38695_v61 }
0x1ae3   : > { %30908 = vmatpush3.bf16.msra.mxu0 %v39028_v47 }
0x1ae4   : > { %30909 = vmatprep.subr.bf16.mxu0 %v38695_v61 }
0x1ae7   : > { %30911 = vmatpush3.bf16.msra.mxu0 %v39029_v56  ;;  %v14052_v56 = vsub.f32 %v36788_v26, %v38576_v28 }
0x1ae8   : > { %30912 = vmatprep.subr.bf16.mxu0 %v38695_v61 }
0x1aeb   : > { %30914 = vmatpush3.bf16.msra.mxu0 %v39030_v27  ;;  %v14045_v27 = vsub.f32 %v36786_v44, %v38577_v63  ;;  %v38582_v63 = vand.u32 4294901760, %v36796_v4 }
0x1aec   : > { %30915 = vmatprep.subr.bf16.mxu0 %v38695_v61 }
0x1aed   : > { %v14046_v54 = vand.u32 4294901760, %v14045_v27  ;;  %v38584_v27 = vand.u32 4294901760, %v36800_v14 }
0x1aef   : > { %30917 = vmatpush3.bf16.msra.mxu0 %v39031_v41  ;;  %v36937_v41 = vsub.f32 %v13949_v57, %v13996_v35 }
0x1af0   : > { %30918 = vmatprep.subr.bf16.mxu0 %v38695_v61 }
0x1af3   : > { %30920 = vmatpush3.bf16.msra.mxu0 %v39032_v58  ;;  %v36935_v58 = vsub.f32 %v13948_v50, %v13993_v24  ;;  %v38581_v24 = vand.u32 4294901760, %v36794_v52 }
0x1af4   : > { %31209 = vmatprep.subr.bf16.mxu0 %v38695_v61 }
0x1af5   : > { %v14066_v50 = vsub.f32 %v36794_v52, %v38581_v24  ;;  %v14087_v24 = vsub.f32 %v36804_v1, %v38585_v2  ;;  %v38596_v12 = vand.u32 4294901760, %v36935_v58 }
0x1af6   : > { %26629 = vmatmul.mubr.f32.vlgmr.msra.gmra.mrb[22].mxu0 %v36742_v37  ;;  %v13946_v37 = vld [vmem:[#allocation6 + $0x1e0] sm:$0xff] }
0x1af7   : > { %31211 = vmatpush3.bf16.msra.mxu0 %v34294_v31  ;;  %27083 = vmatprep.mubr.msk.f32.mxu0 %vm32853_vm0, %v36202_v22  ;;  %v13987_v19 = vand.u32 4294901760, %v13946_v37  ;;  %v14067_v28 = vand.u32 4294901760, %v14066_v50 }
0x1af8   : > { %31212 = vmatprep.subr.bf16.mxu0 %v38695_v61 }
0x1af9   : > { %v36923_v60 = vpack.c.bf16 %v13990_v48, %v13987_v19  ;;  %v36929_v13 = vsub.f32 %v13946_v37, %v13987_v19  ;;  %v14053_v48 = vand.u32 4294901760, %v14052_v56  ;;  %v38578_v19 = vand.u32 4294901760, %v36790_v59 }
0x1afb   : > { %31214 = vmatpush3.bf16.msra.mxu0 %v34301_v9  ;;  %30941 = vmatpush3.bf16.msra.mxu1 %v36923_v60  ;;  %v36949_v35 = vpack.c.bf16 %v14053_v48, %v14046_v54  ;;  %v14059_v57 = vsub.f32 %v36790_v59, %v38578_v19  ;;  %v14073_v54 = vsub.f32 %v36796_v4, %v38582_v63  ;;  %v38594_v62 = vand.u32 4294901760, %v36929_v13 }
0x1afc   : > { %31215 = vmatprep.subr.bf16.mxu0 %v38695_v61  ;;  %30942 = vmatprep.subr.bf16.mxu1 %v38695_v61  ;;  %v14080_v48 = vsub.f32 %v36800_v14, %v38584_v27  ;;  %v14101_v27 = vsub.f32 %v36808_v38, %v38588_v46 }
0x1afd   : > { %v14060_v37 = vand.u32 4294901760, %v14059_v57  ;;  %v14074_v19 = vand.u32 4294901760, %v14073_v54  ;;  %v38587_v57 = vand.u32 4294901760, %v36806_v0  ;;  %v38590_v54 = vand.u32 4294901760, %v36810_v18 }
0x1afe   : > { %v14081_v47 = vand.u32 4294901760, %v14080_v48 }
0x1aff   : > { %31217 = vmatpush3.bf16.msra.mxu0 %v34311_v30  ;;  %30944 = vmatpush3.bf16.msra.mxu1 %v36933_v21  ;;  %v30949_v56 = vpack.c.bf16 %v14067_v28, %v14060_v37  ;;  %v14094_v28 = vsub.f32 %v36806_v0, %v38587_v57  ;;  %v14088_v37 = vand.u32 4294901760, %v14087_v24  ;;  %v38593_v24 = vand.u32 4294901760, %v36818_v51 }
0x1b00   : > { %31218 = vmatprep.subr.bf16.mxu0 %v38695_v61  ;;  %30945 = vmatprep.subr.bf16.mxu1 %v38695_v61  ;;  %v30952_v50 = vpack.c.bf16 %v14081_v47, %v14074_v19  ;;  %v14108_v47 = vsub.f32 %v36810_v18, %v38590_v54  ;;  %v14102_v19 = vand.u32 4294901760, %v14101_v27  ;;  %v14115_v57 = vsub.f32 %v36812_v45, %v38591_v15 }
0x1b01   : > { %v14095_v63 = vand.u32 4294901760, %v14094_v28  ;;  %v38598_v27 = vand.u32 4294901760, %v36931_v5  ;;  %v14129_v54 = vsub.f32 %v36929_v13, %v38594_v62 }
0x1b02   : > { %v14109_v2 = vand.u32 4294901760, %v14108_v47 }
0x1b03   : > { %31220 = vmatpush3.bf16.msra.mxu0 %v34316_v11  ;;  %v30955_v48 = vpack.c.bf16 %v14095_v63, %v14088_v37  ;;  %v14122_v63 = vsub.f32 %v36818_v51, %v38593_v24  ;;  %v14116_v37 = vand.u32 4294901760, %v14115_v57  ;;  %v38597_v57 = vand.u32 4294901760, %v36937_v41 }
0x1b04   : > { %31221 = vmatprep.subr.bf16.mxu0 %v38695_v61  ;;  %v30958_v28 = vpack.c.bf16 %v14109_v2, %v14102_v19  ;;  %v14136_v2 = vsub.f32 %v36931_v5, %v38598_v27  ;;  %v14130_v19 = vand.u32 4294901760, %v14129_v54  ;;  %v14143_v24 = vsub.f32 %v36935_v58, %v38596_v12 }
0x1b05   : > { %v14123_v46 = vand.u32 4294901760, %v14122_v63  ;;  %v30970_v54 = vpack.c.bf16 %v36788_v26, %v36786_v44  ;;  %v30982_v12 = vpack.c.bf16 %v36810_v18, %v36808_v38 }
0x1b06   : > { %v14137_v15 = vand.u32 4294901760, %v14136_v2  ;;  %v30973_v2 = vpack.c.bf16 %v36794_v52, %v36790_v59 }
0x1b07   : > { %31223 = vmatpush3.bf16.msra.mxu0 %v34320_v20  ;;  %v30961_v47 = vpack.c.bf16 %v14123_v46, %v14116_v37  ;;  %v14150_v46 = vsub.f32 %v36937_v41, %v38597_v57  ;;  %v14144_v37 = vand.u32 4294901760, %v14143_v24  ;;  %v30985_v24 = vpack.c.bf16 %v36818_v51, %v36812_v45 }
0x1b08   : > { %31224 = vmatprep.subr.bf16.mxu0 %v38695_v61  ;;  %v30964_v63 = vpack.c.bf16 %v14137_v15, %v14130_v19  ;;  %v30976_v15 = vpack.c.bf16 %v36800_v14, %v36796_v4  ;;  %v30979_v19 = vpack.c.bf16 %v36806_v0, %v36804_v1 }
0x1b09   : > { %v14151_v62 = vand.u32 4294901760, %v14150_v46  ;;  %v30991_v46 = vpack.c.bf16 %v36937_v41, %v36935_v58 }
0x1b0b   : > { %31226 = vmatpush3.bf16.msra.mxu0 %v34324_v49  ;;  %v30967_v16 = vpack.c.bf16 %v14151_v62, %v14144_v37  ;;  %v30988_v62 = vpack.c.bf16 %v36931_v5, %v36929_v13 }
0x1b0c   : > { %31227 = vmatprep.subr.bf16.mxu0 %v38695_v61 }
0x1b0f   : > { %31229 = vmatpush3.bf16.msra.mxu0 %v34328_v6 }
0x1b10   : > { %31230 = vmatprep.subr.bf16.mxu0 %v38695_v61 }
0x1b13   : > { %31232 = vmatpush3.bf16.msra.mxu0 %v34332_v23 }
0x1b14   : > { %31233 = vmatprep.subr.bf16.mxu0 %v38695_v61 }
0x1bc9   : > { %v37021_v37 = vpop.f32.mrb[22].mxu0 }
0x1bca   : > { %v37024_v57 = vand.u32 4294901760, %v37021_v37  ;;  %v26630_v27 = vpop.f32.mrb[23].mxu0 }
0x1bcc   : > { %v14032_v40 = vsub.f32 %v37021_v37, %v37024_v57 }
0x1bce   : > { %v14033_v34 = vand.u32 4294901760, %v14032_v40 }
0x1bd0   : > { %v14034_v10 = vsub.f32 %v14032_v40, %v14033_v34 }
0x1bd2   : > { %v14035_v7 = vand.u32 4294901760, %v14034_v10  ;;  %v39059_v10 = vand.u32 4294901760, %v36788_v26  ;;  %v39063_v26 = vand.u32 4294901760, %v36800_v14  ;;  %v39068_v14 = vand.u32 4294901760, %v36812_v45 }
0x1bd4   : > { %26664 = vmatmul.mubr.f32.vlgmr.msra.gmra.mrb[18].mxu1 %v14035_v7  ;;  %v39058_v7 = vand.u32 4294901760, %v36786_v44  ;;  %v39062_v44 = vand.u32 4294901760, %v36796_v4  ;;  %v39069_v4 = vand.u32 4294901760, %v36818_v51 }
0x1bd5   : > { %30947 = vmatpush3.bf16.msra.mxu1 %v36949_v35  ;;  %26698 = vmatprep.mubr.msk.f32.mxu1 %vm32853_vm0, %v36202_v22 }
0x1bd6   : > { %30948 = vmatprep.subr.bf16.mxu1 %v38695_v61  ;;  %v31033_v27 = vpack.c.bf16 %v39069_v4, %v39068_v14 }
0x1bd9   : > { %30950 = vmatpush3.bf16.msra.mxu1 %v30949_v56  ;;  %v31024_v56 = vpack.c.bf16 %v39063_v26, %v39062_v44  ;;  %v39090_v44 = vld [vmem:[#allocation103_spill] sm:$0xff] }
0x1bda   : > { %30951 = vmatprep.subr.bf16.mxu1 %v38695_v61 }
0x1bdd   : > { %30953 = vmatpush3.bf16.msra.mxu1 %v30952_v50  ;;  %v39066_v50 = vand.u32 4294901760, %v36808_v38  ;;  %v39073_v38 = vand.u32 4294901760, %v36937_v41 }
0x1bde   : > { %30954 = vmatprep.subr.bf16.mxu1 %v38695_v61 }
0x1be1   : > { %30956 = vmatpush3.bf16.msra.mxu1 %v30955_v48  ;;  %v39067_v48 = vand.u32 4294901760, %v36810_v18  ;;  %v39072_v18 = vand.u32 4294901760, %v36935_v58 }
0x1be2   : > { %30957 = vmatprep.subr.bf16.mxu1 %v38695_v61 }
0x1be5   : > { %30959 = vmatpush3.bf16.msra.mxu1 %v30958_v28  ;;  %v31030_v28 = vpack.c.bf16 %v39067_v48, %v39066_v50 }
0x1be6   : > { %30960 = vmatprep.subr.bf16.mxu1 %v38695_v61 }
0x1be9   : > { %30962 = vmatpush3.bf16.msra.mxu1 %v30961_v47 }
0x1bea   : > { %30963 = vmatprep.subr.bf16.mxu1 %v38695_v61 }
0x1bed   : > { %30965 = vmatpush3.bf16.msra.mxu1 %v30964_v63  ;;  %v31039_v63 = vpack.c.bf16 %v39073_v38, %v39072_v18 }
0x1bee   : > { %30966 = vmatprep.subr.bf16.mxu1 %v38695_v61 }
0x1bf1   : > { %30968 = vmatpush3.bf16.msra.mxu1 %v30967_v16  ;;  %v39060_v16 = vand.u32 4294901760, %v36790_v59  ;;  %v39065_v59 = vand.u32 4294901760, %v36806_v0  ;;  %v39071_v0 = vand.u32 4294901760, %v36931_v5 }
0x1bf2   : > { %30969 = vmatprep.subr.bf16.mxu1 %v38695_v61 }
0x1bf4   : > { %26699 = vmatmul.mubr.f32.vlgmr.msra.gmra.mrb[18].mxu1 %v37024_v57 }
0x1bf5   : > { %30971 = vmatpush3.bf16.msra.mxu1 %v30970_v54  ;;  %26733 = vmatprep.mubr.msk.f32.mxu1 %vm32853_vm0, %v36202_v22  ;;  %v39076_v54 = vld [vmem:[#allocation94_spill] sm:$0xff] }
0x1bf6   : > { %30972 = vmatprep.subr.bf16.mxu1 %v38695_v61 }
0x1bf9   : > { %30974 = vmatpush3.bf16.msra.mxu1 %v30973_v2  ;;  %v39077_v2 = vld [vmem:[#allocation95_spill] sm:$0xff] }
0x1bfa   : > { %30975 = vmatprep.subr.bf16.mxu1 %v38695_v61 }
0x1bfd   : > { %30977 = vmatpush3.bf16.msra.mxu1 %v30976_v15  ;;  %v39078_v15 = vld [vmem:[#allocation88_spill] sm:$0xff] }
0x1bfe   : > { %30978 = vmatprep.subr.bf16.mxu1 %v38695_v61 }
0x1c01   : > { %30980 = vmatpush3.bf16.msra.mxu1 %v30979_v19  ;;  %v39079_v19 = vld [vmem:[#allocation89_spill] sm:$0xff] }
0x1c02   : > { %30981 = vmatprep.subr.bf16.mxu1 %v38695_v61 }
0x1c05   : > { %30983 = vmatpush3.bf16.msra.mxu1 %v30982_v12  ;;  %v39061_v12 = vand.u32 4294901760, %v36794_v52 }
0x1c06   : > { %30984 = vmatprep.subr.bf16.mxu1 %v38695_v61 }
0x1c07   : > { %v31021_v35 = vpack.c.bf16 %v39061_v12, %v39060_v16  ;;  %v39087_v16 = vld [vmem:[#allocation100_spill] sm:$0xff]  ;;  %v39088_v12 = vld [vmem:[#allocation101_spill] sm:$0xff] }
0x1c09   : > { %30986 = vmatpush3.bf16.msra.mxu1 %v30985_v24  ;;  %v39080_v24 = vld [vmem:[#allocation90_spill] sm:$0xff] }
0x1c0a   : > { %30987 = vmatprep.subr.bf16.mxu1 %v38695_v61 }
0x1c0d   : > { %30989 = vmatpush3.bf16.msra.mxu1 %v30988_v62  ;;  %v39081_v62 = vld [vmem:[#allocation91_spill] sm:$0xff] }
0x1c0e   : > { %30990 = vmatprep.subr.bf16.mxu1 %v38695_v61 }
0x1c11   : > { %30992 = vmatpush3.bf16.msra.mxu1 %v30991_v46  ;;  %v39082_v46 = vld [vmem:[#allocation92_spill] sm:$0xff] }
0x1c12   : > { %30993 = vmatprep.subr.bf16.mxu1 %v38695_v61 }
0x1c14   : > { %26734 = vmatmul.mubr.f32.vlgmr.msra.gmra.mrb[18].mxu1 %v14032_v40  ;;  %v31018_v40 = vpack.c.bf16 %v39059_v10, %v39058_v7  ;;  %v39084_v7 = vld [vmem:[#allocation97_spill] sm:$0xff]  ;;  %v39085_v10 = vld [vmem:[#allocation98_spill] sm:$0xff] }
0x1c15   : > { %30995 = vmatpush3.bf16.msra.mxu1 %v36784_v53  ;;  %26768 = vmatprep.mubr.msk.f32.mxu1 %vm32853_vm0, %v36202_v22 }
0x1c16   : > { %30996 = vmatprep.subr.bf16.mxu1 %v38695_v61 }
0x1c19   : > { %30998 = vmatpush3.bf16.msra.mxu1 %v36792_v29 }
0x1c1a   : > { %30999 = vmatprep.subr.bf16.mxu1 %v38695_v61 }
0x1c1d   : > { %31001 = vmatpush3.bf16.msra.mxu1 %v36816_v39 }
0x1c1e   : > { %31002 = vmatprep.subr.bf16.mxu1 %v38695_v61 }
0x1c21   : > { %31004 = vmatpush3.bf16.msra.mxu1 %v36824_v42 }
0x1c22   : > { %31005 = vmatprep.subr.bf16.mxu1 %v38695_v61 }
0x1c25   : > { %31007 = vmatpush3.bf16.msra.mxu1 %v36830_v25 }
0x1c26   : > { %31008 = vmatprep.subr.bf16.mxu1 %v38695_v61 }
0x1c29   : > { %31010 = vmatpush3.bf16.msra.mxu1 %v36836_v36 }
0x1c2a   : > { %31011 = vmatprep.subr.bf16.mxu1 %v38695_v61 }
0x1c2d   : > { %31013 = vmatpush3.bf16.msra.mxu1 %v36923_v60 }
0x1c2e   : > { %31014 = vmatprep.subr.bf16.mxu1 %v38695_v61 }
0x1c31   : > { %31016 = vmatpush3.bf16.msra.mxu1 %v36933_v21 }
0x1c32   : > { %31017 = vmatprep.subr.bf16.mxu1 %v38695_v61 }
0x1c34   : > { %26769 = vmatmul.mubr.f32.vlgmr.msra.gmra.mrb[18].mxu1 %v14033_v34  ;;  %v39064_v34 = vand.u32 4294901760, %v36804_v1  ;;  %v39070_v1 = vand.u32 4294901760, %v36929_v13 }
0x1c35   : > { %31019 = vmatpush3.bf16.msra.mxu1 %v31018_v40  ;;  %26803 = vmatprep.mubr.msk.f32.mxu1 %vm32853_vm0, %v36202_v22  ;;  %v39086_v40 = vld [vmem:[#allocation99_spill] sm:$0xff] }
0x1c36   : > { %31020 = vmatprep.subr.bf16.mxu1 %v38695_v61  ;;  %v31027_v52 = vpack.c.bf16 %v39065_v59, %v39064_v34  ;;  %v31036_v47 = vpack.c.bf16 %v39071_v0, %v39070_v1 }
0x1c39   : > { %31022 = vmatpush3.bf16.msra.mxu1 %v31021_v35  ;;  %v39089_v35 = vld [vmem:[#allocation102_spill] sm:$0xff] }
0x1c3a   : > { %31023 = vmatprep.subr.bf16.mxu1 %v38695_v61 }
0x1c3d   : > { %31025 = vmatpush3.bf16.msra.mxu1 %v31024_v56 }
0x1c3e   : > { %31026 = vmatprep.subr.bf16.mxu1 %v38695_v61 }
0x1c41   : > { %31028 = vmatpush3.bf16.msra.mxu1 %v31027_v52 }
0x1c42   : > { %31029 = vmatprep.subr.bf16.mxu1 %v38695_v61 }
0x1c45   : > { %31031 = vmatpush3.bf16.msra.mxu1 %v31030_v28 }
0x1c46   : > { %31032 = vmatprep.subr.bf16.mxu1 %v38695_v61 }
0x1c49   : > { %31034 = vmatpush3.bf16.msra.mxu1 %v31033_v27 }
0x1c4a   : > { %31035 = vmatprep.subr.bf16.mxu1 %v38695_v61 }
0x1c4d   : > { %31037 = vmatpush3.bf16.msra.mxu1 %v31036_v47 }
0x1c4e   : > { %31038 = vmatprep.subr.bf16.mxu1 %v38695_v61 }
0x1c51   : > { %31040 = vmatpush3.bf16.msra.mxu1 %v31039_v63  ;;  %v19957_v63 = vld [vmem:[%s38251_s3 + $0x3] ss:$0 sm:$0xff] }
0x1c52   : > { %31041 = vmatprep.subr.bf16.mxu1 %v38695_v61 }
0x1c54   : > { %26804 = vmatmul.mubr.f32.vlgmr.msra.gmra.mrb[18].mxu1 %v37024_v57 }
0x1c55   : > { %31043 = vmatpush3.bf16.msra.mxu1 %v36784_v53  ;;  %26838 = vmatprep.mubr.msk.f32.mxu1 %vm32853_vm0, %v36202_v22 }
0x1c56   : > { %31044 = vmatprep.subr.bf16.mxu1 %v38695_v61 }
0x1c59   : > { %31046 = vmatpush3.bf16.msra.mxu1 %v36792_v29  ;;  %v14600_v29 = vpop.permute.xlu0 %14599 }
0x1c5a   : > { %31047 = vmatprep.subr.bf16.mxu1 %v38695_v61  ;;  %v14601_v53 = vrot.slane %v14600_v29, 4 }
0x1c5d   : > { %31049 = vmatpush3.bf16.msra.mxu1 %v36816_v39 }
0x1c5e   : > { %31050 = vmatprep.subr.bf16.mxu1 %v38695_v61 }
0x1c61   : > { %31052 = vmatpush3.bf16.msra.mxu1 %v36824_v42 }
0x1c62   : > { %31053 = vmatprep.subr.bf16.mxu1 %v38695_v61 }
0x1c65   : > { %31055 = vmatpush3.bf16.msra.mxu1 %v36830_v25 }
0x1c66   : > { %31056 = vmatprep.subr.bf16.mxu1 %v38695_v61 }
0x1c69   : > { %31058 = vmatpush3.bf16.msra.mxu1 %v36836_v36 }
0x1c6a   : > { %31059 = vmatprep.subr.bf16.mxu1 %v38695_v61 }
0x1c6d   : > { %31061 = vmatpush3.bf16.msra.mxu1 %v36923_v60  ;;  %v39074_v60 = vld [vmem:[#allocation87_spill] sm:$0xff] }
0x1c6e   : > { %31062 = vmatprep.subr.bf16.mxu1 %v38695_v61 }
0x1c71   : > { %31064 = vmatpush3.bf16.msra.mxu1 %v36933_v21 }
0x1c72   : > { %31065 = vmatprep.subr.bf16.mxu1 %v38695_v61 }
0x1c74   : > { %26839 = vmatmul.mubr.f32.vlgmr.msra.gmra.mrb[18].mxu1 %v37024_v57  ;;  %v39075_v57 = vld [vmem:[#allocation93_spill] sm:$0xff] }
0x1c75   : > { %31067 = vmatpush3.bf16.msra.mxu1 %v34294_v31  ;;  %26873 = vmatprep.mubr.msk.f32.mxu1 %vm32853_vm0, %v36202_v22 }
0x1c76   : > { %31068 = vmatprep.subr.bf16.mxu1 %v38695_v61 }
0x1c79   : > { %31070 = vmatpush3.bf16.msra.mxu1 %v34301_v9 }
0x1c7a   : > { %31071 = vmatprep.subr.bf16.mxu1 %v38695_v61 }
0x1c7d   : > { %31073 = vmatpush3.bf16.msra.mxu1 %v34311_v30 }
0x1c7e   : > { %31074 = vmatprep.subr.bf16.mxu1 %v38695_v61 }
0x1c81   : > { %31076 = vmatpush3.bf16.msra.mxu1 %v34316_v11 }
0x1c82   : > { %31077 = vmatprep.subr.bf16.mxu1 %v38695_v61 }
0x1c85   : > { %31079 = vmatpush3.bf16.msra.mxu1 %v34320_v20 }
0x1c86   : > { %31080 = vmatprep.subr.bf16.mxu1 %v38695_v61 }
0x1c89   : > { %31082 = vmatpush3.bf16.msra.mxu1 %v34324_v49 }
0x1c8a   : > { %31083 = vmatprep.subr.bf16.mxu1 %v38695_v61 }
0x1c8d   : > { %31085 = vmatpush3.bf16.msra.mxu1 %v34328_v6 }
0x1c8e   : > { %31086 = vmatprep.subr.bf16.mxu1 %v38695_v61 }
0x1c91   : > { %31088 = vmatpush3.bf16.msra.mxu1 %v34332_v23 }
0x1c92   : > { %31089 = vmatprep.subr.bf16.mxu1 %v38695_v61 }
0x1d47   : > { %v14587_v51 = vpop.f32.mrb[18].mxu1 }
0x1d48   : > { %v14592_v39 = vrot.slane %v14587_v51, 4  ;;  %v26840_v21 = vpop.f32.mrb[19].mxu1 }
0x1d4a   : > { %v14594_v58 = vadd.f32 %v14592_v39, %v37021_v37  ;;  %v39083_v37 = vld [vmem:[#allocation96_spill] sm:$0xff] }
0x1d4b   : > { %v19959_v39 = vld [vmem:[%s38252_s4 + $0x3] ss:$0 sm:$0xff] }
0x1d4c   : > { %v37149_v41 = vadd.f32 %v14601_v53, %v14594_v58  ;;  %v15941_v53 = vld [vmem:[#allocation3 + $0x60] sm:$0xff] }
0x1d4e   : > { %v14605_v45 = vrot.slane %v37149_v41, 4 }
0x1d50   : > { %v37152_v5 = vand.u32 4294901760, %v14605_v45 }
0x1d52   : > { %v14689_v42 = vsub.f32 %v14605_v45, %v37152_v5  ;;  %v15945_v45 = vsel %vm487_vm1, %v15941_v53, 0 }
0x1d54   : > { %v14690_v13 = vand.u32 4294901760, %v14689_v42 }
0x1d56   : > { %v14691_v25 = vsub.f32 %v14689_v42, %v14690_v13 }
0x1d58   : > { %v14692_v36 = vand.u32 4294901760, %v14691_v25  ;;  %v15938_v25 = vld [vmem:[#allocation2 + $0x8] sm:$0xff] }
0x1d5a   : > { %26874 = vmatmul.mubr.f32.vlgmr.msra.gmra.mrb[20].mxu1 %v14692_v36  ;;  %v37361_v36 = vand.u32 4294901760, %v15945_v45 }
0x1d5b   : > { %31091 = vmatpush3.bf16.msra.mxu1 %v34487_v3  ;;  %26908 = vmatprep.mubr.msk.f32.mxu1 %vm32853_vm0, %v36202_v22 }
0x1d5c   : > { %31092 = vmatprep.subr.bf16.mxu1 %v38695_v61 }
0x1d5f   : > { %31094 = vmatpush3.bf16.msra.mxu1 %v34496_v33 }
0x1d60   : > { %31095 = vmatprep.subr.bf16.mxu1 %v38695_v61 }
0x1d63   : > { %31097 = vmatpush3.bf16.msra.mxu1 %v34502_v55 }
0x1d64   : > { %31098 = vmatprep.subr.bf16.mxu1 %v38695_v61 }
0x1d67   : > { %31100 = vmatpush3.bf16.msra.mxu1 %v34364_v17 }
0x1d68   : > { %31101 = vmatprep.subr.bf16.mxu1 %v38695_v61 }
0x1d6b   : > { %31103 = vmatpush3.bf16.msra.mxu1 %v34368_v8 }
0x1d6c   : > { %31104 = vmatprep.subr.bf16.mxu1 %v38695_v61 }
0x1d6f   : > { %31106 = vmatpush3.bf16.msra.mxu1 %v34382_v43 }
0x1d70   : > { %31107 = vmatprep.subr.bf16.mxu1 %v38695_v61 }
0x1d73   : > { %31109 = vmatpush3.bf16.msra.mxu1 %v34402_v32 }
0x1d74   : > { %31110 = vmatprep.subr.bf16.mxu1 %v38695_v61 }
0x1d77   : > { %31112 = vmatpush3.bf16.msra.mxu1 %v39074_v60 }
0x1d78   : > { %31113 = vmatprep.subr.bf16.mxu1 %v38695_v61 }
0x1d7a   : > { %26909 = vmatmul.mubr.f32.vlgmr.msra.gmra.mrb[20].mxu1 %v37152_v5 }
0x1d7b   : > { %31115 = vmatpush3.bf16.msra.mxu1 %v39075_v57  ;;  %26943 = vmatprep.mubr.msk.f32.mxu1 %vm32853_vm0, %v36202_v22 }
0x1d7c   : > { %31116 = vmatprep.subr.bf16.mxu1 %v38695_v61 }
0x1d7f   : > { %31118 = vmatpush3.bf16.msra.mxu1 %v39076_v54 }
0x1d80   : > { %31119 = vmatprep.subr.bf16.mxu1 %v38695_v61 }
0x1d83   : > { %31121 = vmatpush3.bf16.msra.mxu1 %v39077_v2 }
0x1d84   : > { %31122 = vmatprep.subr.bf16.mxu1 %v38695_v61 }
0x1d87   : > { %31124 = vmatpush3.bf16.msra.mxu1 %v39078_v15 }
0x1d88   : > { %31125 = vmatprep.subr.bf16.mxu1 %v38695_v61 }
0x1d8b   : > { %31127 = vmatpush3.bf16.msra.mxu1 %v39079_v19 }
0x1d8c   : > { %31128 = vmatprep.subr.bf16.mxu1 %v38695_v61 }
0x1d8f   : > { %31130 = vmatpush3.bf16.msra.mxu1 %v39080_v24 }
0x1d90   : > { %31131 = vmatprep.subr.bf16.mxu1 %v38695_v61 }
0x1d93   : > { %31133 = vmatpush3.bf16.msra.mxu1 %v39081_v62 }
0x1d94   : > { %31134 = vmatprep.subr.bf16.mxu1 %v38695_v61 }
0x1d97   : > { %31136 = vmatpush3.bf16.msra.mxu1 %v39082_v46 }
0x1d98   : > { %31137 = vmatprep.subr.bf16.mxu1 %v38695_v61 }
0x1d9a   : > { %26944 = vmatmul.mubr.f32.vlgmr.msra.gmra.mrb[20].mxu1 %v14689_v42  ;;  %v15942_v42 = vld [vmem:[#allocation3 + $0x68] sm:$0xff] }
0x1d9b   : > { %31139 = vmatpush3.bf16.msra.mxu1 %v34294_v31  ;;  %26978 = vmatprep.mubr.msk.f32.mxu1 %vm32853_vm0, %v36202_v22 }
0x1d9c   : > { %31140 = vmatprep.subr.bf16.mxu1 %v38695_v61 }
0x1d9f   : > { %31142 = vmatpush3.bf16.msra.mxu1 %v34301_v9 }
0x1da0   : > { %31143 = vmatprep.subr.bf16.mxu1 %v38695_v61 }
0x1da3   : > { %31145 = vmatpush3.bf16.msra.mxu1 %v34311_v30 }
0x1da4   : > { %31146 = vmatprep.subr.bf16.mxu1 %v38695_v61 }
0x1da7   : > { %31148 = vmatpush3.bf16.msra.mxu1 %v34316_v11 }
0x1da8   : > { %31149 = vmatprep.subr.bf16.mxu1 %v38695_v61 }
0x1dab   : > { %31151 = vmatpush3.bf16.msra.mxu1 %v34320_v20 }
0x1dac   : > { %31152 = vmatprep.subr.bf16.mxu1 %v38695_v61 }
0x1daf   : > { %31154 = vmatpush3.bf16.msra.mxu1 %v34324_v49 }
0x1db0   : > { %31155 = vmatprep.subr.bf16.mxu1 %v38695_v61 }
0x1db3   : > { %31157 = vmatpush3.bf16.msra.mxu1 %v34328_v6 }
0x1db4   : > { %31158 = vmatprep.subr.bf16.mxu1 %v38695_v61 }
0x1db7   : > { %31160 = vmatpush3.bf16.msra.mxu1 %v34332_v23 }
0x1db8   : > { %31161 = vmatprep.subr.bf16.mxu1 %v38695_v61 }
0x1dba   : > { %26979 = vmatmul.mubr.f32.vlgmr.msra.gmra.mrb[20].mxu1 %v14690_v13 }
0x1dbb   : > { %31163 = vmatpush3.bf16.msra.mxu1 %v39083_v37  ;;  %27013 = vmatprep.mubr.msk.f32.mxu1 %vm32853_vm0, %v36202_v22 }
0x1dbc   : > { %31164 = vmatprep.subr.bf16.mxu1 %v38695_v61 }
0x1dbf   : > { %31166 = vmatpush3.bf16.msra.mxu1 %v39084_v7 }
0x1dc0   : > { %31167 = vmatprep.subr.bf16.mxu1 %v38695_v61 }
0x1dc3   : > { %31169 = vmatpush3.bf16.msra.mxu1 %v39085_v10 }
0x1dc4   : > { %31170 = vmatprep.subr.bf16.mxu1 %v38695_v61 }
0x1dc7   : > { %31172 = vmatpush3.bf16.msra.mxu1 %v39086_v40 }
0x1dc8   : > { %31173 = vmatprep.subr.bf16.mxu1 %v38695_v61 }
0x1dcb   : > { %31175 = vmatpush3.bf16.msra.mxu1 %v39087_v16 }
0x1dcc   : > { %31176 = vmatprep.subr.bf16.mxu1 %v38695_v61 }
0x1dcf   : > { %31178 = vmatpush3.bf16.msra.mxu1 %v39088_v12 }
0x1dd0   : > { %31179 = vmatprep.subr.bf16.mxu1 %v38695_v61 }
0x1dd3   : > { %31181 = vmatpush3.bf16.msra.mxu1 %v39089_v35 }
0x1dd4   : > { %31182 = vmatprep.subr.bf16.mxu1 %v38695_v61 }
0x1dd7   : > { %31184 = vmatpush3.bf16.msra.mxu1 %v39090_v44 }
0x1dd8   : > { %31185 = vmatprep.subr.bf16.mxu1 %v38695_v61 }
0x1dda   : > { %27014 = vmatmul.mubr.f32.vlgmr.msra.gmra.mrb[20].mxu1 %v37152_v5 }
0x1ddb   : > { %31187 = vmatpush3.bf16.msra.mxu1 %v34294_v31  ;;  %27048 = vmatprep.mubr.msk.f32.mxu1 %vm32853_vm0, %v36202_v22 }
0x1ddc   : > { %31188 = vmatprep.subr.bf16.mxu1 %v38695_v61 }
0x1ddf   : > { %31190 = vmatpush3.bf16.msra.mxu1 %v34301_v9 }
0x1de0   : > { %31191 = vmatprep.subr.bf16.mxu1 %v38695_v61 }
0x1de3   : > { %31193 = vmatpush3.bf16.msra.mxu1 %v34311_v30 }
0x1de4   : > { %31194 = vmatprep.subr.bf16.mxu1 %v38695_v61 }
0x1de7   : > { %31196 = vmatpush3.bf16.msra.mxu1 %v34316_v11 }
0x1de8   : > { %31197 = vmatprep.subr.bf16.mxu1 %v38695_v61 }
0x1deb   : > { %31199 = vmatpush3.bf16.msra.mxu1 %v34320_v20 }
0x1dec   : > { %31200 = vmatprep.subr.bf16.mxu1 %v38695_v61 }
0x1def   : > { %31202 = vmatpush3.bf16.msra.mxu1 %v34324_v49 }
0x1df0   : > { %31203 = vmatprep.subr.bf16.mxu1 %v38695_v61 }
0x1df3   : > { %31205 = vmatpush3.bf16.msra.mxu1 %v34328_v6 }
0x1df4   : > { %31206 = vmatprep.subr.bf16.mxu1 %v38695_v61 }
0x1df7   : > { %31208 = vmatpush3.bf16.msra.mxu1 %v34332_v23 }
0x1df8   : > { %31353 = vmatprep.subr.bf16.mxu1 %v38695_v61 }
0x1dfa   : > { %27049 = vmatmul.mubr.f32.vlgmr.msra.gmra.mrb[20].mxu1 %v37152_v5 }
0x1dfb   : > { %27267 = vmatprep.mubr.msk.f32.mxu1 %vm32853_vm0, %v36202_v22 }
0x1ecd   : > { %v15244_v26 = vpop.f32.mrb[20].mxu1 }
0x1ece   : > { %v15249_v56 = vrot.slane %v15244_v26, 4  ;;  %v27050_v34 = vpop.f32.mrb[21].mxu1  ;;  %v15948_v26 = vsel %vm487_vm1, %v15942_v42, 0 }
0x1ecf   : > { %v15943_v34 = vld [vmem:[#allocation3 + $0x70] sm:$0xff] }
0x1ed0   : > { %v37251_v59 = vsub.f32 %v37149_v41, %v15249_v56  ;;  %v15926_v41 = vpop.permute.xlu1 %15925 }
0x1ed2   : > { %v15252_v52 = vmul.f32 %v37251_v59, %v37251_v59 }
0x1ed4   : > { %v15254_v50 = vrot.slane %v15252_v52, 4  ;;  %v15939_v52 = vld [vmem:[#allocation2 + $0x10] sm:$0xf] }
0x1ed6   : > { %v37255_v48 = vand.u32 4294901760, %v15254_v50 }
0x1ed8   : > { %v15338_v28 = vsub.f32 %v15254_v50, %v37255_v48  ;;  %v37365_v50 = vsub.f32 %v15945_v45, %v37361_v36 }
0x1eda   : > { %v15339_v14 = vand.u32 4294901760, %v15338_v28 }
0x1edc   : > { %v15340_v4 = vsub.f32 %v15338_v28, %v15339_v14 }
0x1ede   : > { %v15341_v27 = vand.u32 4294901760, %v15340_v4 }
0x1ee0   : > { %27084 = vmatmul.mubr.f32.vlgmr.msra.gmra.mrb[26].mxu0 %v15341_v27  ;;  %v16026_v27 = vand.u32 4294901760, %v37365_v50 }
0x1ee1   : > { %31235 = vmatpush3.bf16.msra.mxu0 %v34487_v3  ;;  %27118 = vmatprep.mubr.msk.f32.mxu0 %vm32853_vm0, %v36202_v22 }
0x1ee2   : > { %31236 = vmatprep.subr.bf16.mxu0 %v38695_v61 }
0x1ee5   : > { %31238 = vmatpush3.bf16.msra.mxu0 %v34496_v33 }
0x1ee6   : > { %31239 = vmatprep.subr.bf16.mxu0 %v38695_v61 }
0x1ee9   : > { %31241 = vmatpush3.bf16.msra.mxu0 %v34502_v55 }
0x1eea   : > { %31242 = vmatprep.subr.bf16.mxu0 %v38695_v61 }
0x1eed   : > { %31244 = vmatpush3.bf16.msra.mxu0 %v34364_v17 }
0x1eee   : > { %31245 = vmatprep.subr.bf16.mxu0 %v38695_v61 }
0x1ef1   : > { %31247 = vmatpush3.bf16.msra.mxu0 %v34368_v8 }
0x1ef2   : > { %31248 = vmatprep.subr.bf16.mxu0 %v38695_v61 }
0x1ef5   : > { %31250 = vmatpush3.bf16.msra.mxu0 %v34382_v43 }
0x1ef6   : > { %31251 = vmatprep.subr.bf16.mxu0 %v38695_v61 }
0x1ef9   : > { %31253 = vmatpush3.bf16.msra.mxu0 %v34402_v32 }
0x1efa   : > { %31254 = vmatprep.subr.bf16.mxu0 %v38695_v61 }
0x1efd   : > { %31256 = vmatpush3.bf16.msra.mxu0 %v39074_v60 }
0x1efe   : > { %31257 = vmatprep.subr.bf16.mxu0 %v38695_v61 }
0x1f00   : > { %27119 = vmatmul.mubr.f32.vlgmr.msra.gmra.mrb[26].mxu0 %v37255_v48 }
0x1f01   : > { %31259 = vmatpush3.bf16.msra.mxu0 %v39075_v57  ;;  %27153 = vmatprep.mubr.msk.f32.mxu0 %vm32853_vm0, %v36202_v22 }
0x1f02   : > { %31260 = vmatprep.subr.bf16.mxu0 %v38695_v61 }
0x1f05   : > { %31262 = vmatpush3.bf16.msra.mxu0 %v39076_v54 }
0x1f06   : > { %31263 = vmatprep.subr.bf16.mxu0 %v38695_v61 }
0x1f09   : > { %31265 = vmatpush3.bf16.msra.mxu0 %v39077_v2 }
0x1f0a   : > { %31266 = vmatprep.subr.bf16.mxu0 %v38695_v61 }
0x1f0d   : > { %31268 = vmatpush3.bf16.msra.mxu0 %v39078_v15 }
0x1f0e   : > { %31269 = vmatprep.subr.bf16.mxu0 %v38695_v61 }
0x1f11   : > { %31271 = vmatpush3.bf16.msra.mxu0 %v39079_v19 }
0x1f12   : > { %31272 = vmatprep.subr.bf16.mxu0 %v38695_v61 }
0x1f15   : > { %31274 = vmatpush3.bf16.msra.mxu0 %v39080_v24 }
0x1f16   : > { %31275 = vmatprep.subr.bf16.mxu0 %v38695_v61 }
0x1f19   : > { %31277 = vmatpush3.bf16.msra.mxu0 %v39081_v62 }
0x1f1a   : > { %31278 = vmatprep.subr.bf16.mxu0 %v38695_v61 }
0x1f1d   : > { %31280 = vmatpush3.bf16.msra.mxu0 %v39082_v46 }
0x1f1e   : > { %31281 = vmatprep.subr.bf16.mxu0 %v38695_v61 }
0x1f20   : > { %27154 = vmatmul.mubr.f32.vlgmr.msra.gmra.mrb[26].mxu0 %v15338_v28  ;;  %v15951_v28 = vsel %vm487_vm1, %v15943_v34, 0 }
0x1f21   : > { %31283 = vmatpush3.bf16.msra.mxu0 %v34294_v31  ;;  %27188 = vmatprep.mubr.msk.f32.mxu0 %vm32853_vm0, %v36202_v22 }
0x1f22   : > { %31284 = vmatprep.subr.bf16.mxu0 %v38695_v61 }
0x1f25   : > { %31286 = vmatpush3.bf16.msra.mxu0 %v34301_v9 }
0x1f26   : > { %31287 = vmatprep.subr.bf16.mxu0 %v38695_v61 }
0x1f29   : > { %31289 = vmatpush3.bf16.msra.mxu0 %v34311_v30 }
0x1f2a   : > { %31290 = vmatprep.subr.bf16.mxu0 %v38695_v61 }
0x1f2d   : > { %31292 = vmatpush3.bf16.msra.mxu0 %v34316_v11 }
0x1f2e   : > { %31293 = vmatprep.subr.bf16.mxu0 %v38695_v61 }
0x1f31   : > { %31295 = vmatpush3.bf16.msra.mxu0 %v34320_v20 }
0x1f32   : > { %31296 = vmatprep.subr.bf16.mxu0 %v38695_v61 }
0x1f35   : > { %31298 = vmatpush3.bf16.msra.mxu0 %v34324_v49 }
0x1f36   : > { %31299 = vmatprep.subr.bf16.mxu0 %v38695_v61 }
0x1f39   : > { %31301 = vmatpush3.bf16.msra.mxu0 %v34328_v6 }
0x1f3a   : > { %31302 = vmatprep.subr.bf16.mxu0 %v38695_v61 }
0x1f3d   : > { %31304 = vmatpush3.bf16.msra.mxu0 %v34332_v23 }
0x1f3e   : > { %31305 = vmatprep.subr.bf16.mxu0 %v38695_v61 }
0x1f40   : > { %27189 = vmatmul.mubr.f32.vlgmr.msra.gmra.mrb[26].mxu0 %v15339_v14  ;;  %v15954_v14 = vsel %vm497_vm2, %v15939_v52, 0 }
0x1f41   : > { %31307 = vmatpush3.bf16.msra.mxu0 %v39083_v37  ;;  %27223 = vmatprep.mubr.msk.f32.mxu0 %vm32853_vm0, %v36202_v22  ;;  %v39141_v37 = vld [vmem:[#allocation73_spill] sm:$0xff] }
0x1f42   : > { %31308 = vmatprep.subr.bf16.mxu0 %v38695_v61 }
0x1f45   : > { %31310 = vmatpush3.bf16.msra.mxu0 %v39084_v7 }
0x1f46   : > { %31311 = vmatprep.subr.bf16.mxu0 %v38695_v61 }
0x1f49   : > { %31313 = vmatpush3.bf16.msra.mxu0 %v39085_v10  ;;  %v39140_v10 = vld [vmem:[#allocation72_spill] sm:$0xff] }
0x1f4a   : > { %31314 = vmatprep.subr.bf16.mxu0 %v38695_v61 }
0x1f4d   : > { %31316 = vmatpush3.bf16.msra.mxu0 %v39086_v40  ;;  %v17810_v40 = vld [vmem:[#allocation6 + $0x258] sm:$0xff] }
0x1f4e   : > { %31317 = vmatprep.subr.bf16.mxu0 %v38695_v61 }
0x1f51   : > { %31319 = vmatpush3.bf16.msra.mxu0 %v39087_v16 }
0x1f52   : > { %31320 = vmatprep.subr.bf16.mxu0 %v38695_v61 }
0x1f55   : > { %31322 = vmatpush3.bf16.msra.mxu0 %v39088_v12 }
0x1f56   : > { %31323 = vmatprep.subr.bf16.mxu0 %v38695_v61 }
0x1f59   : > { %31325 = vmatpush3.bf16.msra.mxu0 %v39089_v35 }
0x1f5a   : > { %31326 = vmatprep.subr.bf16.mxu0 %v38695_v61 }
0x1f5d   : > { %31328 = vmatpush3.bf16.msra.mxu0 %v39090_v44  ;;  %v17809_v44 = vld [vmem:[#allocation6 + $0x250] sm:$0xff] }
0x1f5e   : > { %31329 = vmatprep.subr.bf16.mxu0 %v38695_v61 }
0x1f60   : > { %27224 = vmatmul.mubr.f32.vlgmr.msra.gmra.mrb[26].mxu0 %v37255_v48 }
0x1f61   : > { %31331 = vmatpush3.bf16.msra.mxu0 %v34294_v31  ;;  %27258 = vmatprep.mubr.msk.f32.mxu0 %vm32853_vm0, %v36202_v22 }
0x1f62   : > { %31332 = vmatprep.subr.bf16.mxu0 %v38695_v61 }
0x1f65   : > { %31334 = vmatpush3.bf16.msra.mxu0 %v34301_v9 }
0x1f66   : > { %31335 = vmatprep.subr.bf16.mxu0 %v38695_v61 }
0x1f69   : > { %31337 = vmatpush3.bf16.msra.mxu0 %v34311_v30 }
0x1f6a   : > { %31338 = vmatprep.subr.bf16.mxu0 %v38695_v61 }
0x1f6d   : > { %31340 = vmatpush3.bf16.msra.mxu0 %v34316_v11 }
0x1f6e   : > { %31341 = vmatprep.subr.bf16.mxu0 %v38695_v61 }
0x1f71   : > { %31343 = vmatpush3.bf16.msra.mxu0 %v34320_v20 }
0x1f72   : > { %31344 = vmatprep.subr.bf16.mxu0 %v38695_v61 }
0x1f75   : > { %31346 = vmatpush3.bf16.msra.mxu0 %v34324_v49 }
0x1f76   : > { %31347 = vmatprep.subr.bf16.mxu0 %v38695_v61 }
0x1f79   : > { %31349 = vmatpush3.bf16.msra.mxu0 %v34328_v6 }
0x1f7a   : > { %31350 = vmatprep.subr.bf16.mxu0 %v38695_v61 }
0x1f7d   : > { %31352 = vmatpush3.bf16.msra.mxu0 %v34332_v23 }
0x1f7e   : > { %31659 = vmatprep.subr.bf16.mxu0 %v38695_v61 }
0x1f80   : > { %27259 = vmatmul.mubr.f32.vlgmr.msra.gmra.mrb[26].mxu0 %v37255_v48  ;;  %v37367_v48 = vand.u32 4294901760, %v15948_v26 }
0x1f81   : > { %27803 = vmatprep.mubr.msk.f32.mxu0 %vm32853_vm0, %v36202_v22 }
0x2053   : > { %v15893_v1 = vpop.f32.mrb[26].mxu0 }
0x2054   : > { %v32095_v0 = vadd.f32 1e-05, %v15893_v1  ;;  %v27260_v47 = vpop.f32.mrb[27].mxu0  ;;  %v37375_v1 = vsub.f32 %v15948_v26, %v37367_v48 }
0x2055   : > { %v37379_v47 = vand.u32 4294901760, %v15954_v14 }
0x2056   : > { %32619 = vrsqrt.f32 %v32095_v0  ;;  %v37377_v0 = vand.u32 4294901760, %v15951_v28 }
0x2060   : > { %v32620_v18 = vpop.eup %32619 }
0x2061   : > { %v15899_v38 = vrot.slane %v32620_v18, 4 }
0x2063   : > { %v15901_v51 = vmul.f32 %v15899_v38, %v37251_v59  ;;  %v15960_v59 = vand.u32 4294901760, %v15938_v25 }
0x2065   : > { %v15910_v21 = vmul.f32 %v19957_v63, %v15901_v51  ;;  %v37371_v4 = vsub.f32 %v15938_v25, %v15960_v59  ;;  %v37382_v63 = vsub.f32 %v15954_v14, %v37379_v47 }
0x2067   : > { %v15919_v29 = vadd.f32 %v19959_v39, %v15910_v21  ;;  %v16064_v51 = vand.u32 4294901760, %v37371_v4  ;;  %v16027_v39 = vsub.f32 %v37365_v50, %v16026_v27  ;;  %v16036_v21 = vand.u32 4294901760, %v37375_v1 }
0x2069   : > { %v15929_v58 = vrot.slane %v15919_v29, 4  ;;  %vm15920_vm6 = vcmp.ge.f32.partialorder %v15919_v29, 0.0  ;;  %v16065_v45 = vsub.f32 %v37371_v4, %v16064_v51  ;;  %v16028_v42 = vand.u32 4294901760, %v16027_v39 }
0x206b   : > { %v15931_v5 = vmul.f32 %v15929_v58, %v15926_v41  ;;  %v16066_v34 = vand.u32 4294901760, %v16065_v45 }
0x206d   : > { %v15933_v13 = vrot.slane %v15931_v5, 4  ;;  %v16071_v5 = vand.u32 4294901760, %v37382_v63 }
0x206f   : > { %v15935_v56 = vsel %vm15920_vm6, %v15919_v29, %v15933_v13  ;;  %v16045_v29 = vsub.f32 %v15951_v28, %v37377_v0  ;;  %v16037_v13 = vsub.f32 %v37375_v1, %v16036_v21 }
0x2070   : > { %15936 = vst [vmem:[#allocation2 - $0x4] sm:$0xf0] %v15935_v56 }
0x2071   : > { %v16046_v25 = vand.u32 4294901760, %v16045_v29  ;;  %v16038_v52 = vand.u32 4294901760, %v16037_v13  ;;  %v39099_v13 = vld [vmem:[#allocation35_spill] sm:$0xff] }
0x2073   : > { %v16047_v28 = vsub.f32 %v16045_v29, %v16046_v25 }
0x2077   : > { %v15937_v18 = vld [vmem:[#allocation2] sm:$0xff] }
0x2078   : > { %v15957_v38 = vand.u32 4294901760, %v15937_v18 }
0x207a   : > { %v37390_v53 = vpack.c.bf16 %v15960_v59, %v15957_v38  ;;  %v16056_v58 = vsub.f32 %v15937_v18, %v15957_v38  ;;  %v16072_v59 = vsub.f32 %v37382_v63, %v16071_v5  ;;  %v16048_v38 = vand.u32 4294901760, %v16047_v28  ;;  %v39106_v28 = vld [vmem:[#allocation32_spill] sm:$0xff] }
0x207c   : > { %31355 = vmatpush3.bf16.msra.mxu1 %v37390_v53  ;;  %v16057_v41 = vand.u32 4294901760, %v16056_v58  ;;  %v16073_v18 = vand.u32 4294901760, %v16072_v59  ;;  %v31360_v39 = vpack.c.bf16 %v37371_v4, %v16056_v58  ;;  %v39104_v59 = vld [vmem:[#allocation40_spill] sm:$0xff] }
0x207d   : > { %27265 = vmatprep.subr.mxu1 %v36202_v22 }
0x207e   : > { %v16058_v26 = vsub.f32 %v16056_v58, %v16057_v41  ;;  %v31366_v4 = vpack.c.bf16 %v16064_v51, %v16057_v41 }
0x2080   : > { %27266 = vmatpush3.msra.mxu1 %v37379_v47  ;;  %v16059_v56 = vand.u32 4294901760, %v16058_v26  ;;  %v39101_v26 = vld [vmem:[#allocation37_spill] sm:$0xff] }
0x2081   : > { %27268 = vmatmul.mubr.f32.vlgmr.msra.gmra.mrb[22].mxu1 %v16028_v42  ;;  %31356 = vmatprep.subr.bf16.mxu1 %v38695_v61 }
0x2082   : > { %27270 = vmatprep.mubr.msk.f32.mxu1 %vm32853_vm0, %v36202_v22  ;;  %v31357_v14 = vpack.c.bf16 %v16066_v34, %v16059_v56  ;;  %v39102_v56 = vld [vmem:[#allocation38_spill] sm:$0xff]  ;;  %v39103_v34 = vld [vmem:[#allocation39_spill] sm:$0xff] }
0x2084   : > { %31358 = vmatpush3.bf16.msra.mxu1 %v31357_v14  ;;  %v39107_v14 = vld [vmem:[#allocation41_spill] sm:$0xff] }
0x2085   : > { %27271 = vmatmul.mubr.f32.gmra.mrb[24].mxu1 %v16038_v52  ;;  %27280 = vmatprep.subr.mxu1 %v36202_v22  ;;  %v39105_v52 = vld [vmem:[#allocation31_spill] sm:$0xff] }
0x2086   : > { %27273 = vmatprep.mubr.msk.f32.mxu1 %vm32853_vm0, %v36202_v22 }
0x2088   : > { %27281 = vmatpush3.msra.mxu1 %v16073_v18  ;;  %v39108_v18 = vld [vmem:[#allocation42_spill] sm:$0xff] }
0x2089   : > { %27274 = vmatmul.mubr.f32.gmra.mrb[26].mxu1 %v16048_v38  ;;  %31359 = vmatprep.subr.bf16.mxu1 %v38695_v61  ;;  %v39109_v38 = vld [vmem:[#allocation43_spill] sm:$0xff] }
0x208a   : > { %27282 = vmatprep.mubr.msk.f32.mxu1 %vm32853_vm0, %v36202_v22 }
0x208d   : > { %27283 = vmatmul.mubr.f32.vlgmr.msra.gmra.mrb[22].mxu1 %v37361_v36 }
0x208e   : > { %31361 = vmatpush3.bf16.msra.mxu1 %v31360_v39  ;;  %27285 = vmatprep.mubr.msk.f32.mxu1 %vm32853_vm0, %v36202_v22  ;;  %v39110_v39 = vld [vmem:[#allocation44_spill] sm:$0xff] }
0x208f   : > { %27295 = vmatprep.subr.mxu1 %v36202_v22 }
0x2091   : > { %27286 = vmatmul.mubr.f32.gmra.mrb[24].mxu1 %v37367_v48 }
0x2092   : > { %27288 = vmatprep.mubr.msk.f32.mxu1 %vm32853_vm0, %v36202_v22  ;;  %27296 = vmatpush3.msra.mxu1 %v37382_v63  ;;  %v39098_v63 = vld [vmem:[#allocation30_spill] sm:$0xff] }
0x2093   : > { %31362 = vmatprep.subr.bf16.mxu1 %v38695_v61 }
0x2095   : > { %27289 = vmatmul.mubr.f32.gmra.mrb[26].mxu1 %v37377_v0 }
0x2096   : > { %27297 = vmatprep.mubr.msk.f32.mxu1 %vm32853_vm0, %v36202_v22 }
0x2099   : > { %27298 = vmatmul.mubr.f32.vlgmr.msra.gmra.mrb[22].mxu1 %v37365_v50  ;;  %v39091_v50 = vld [vmem:[#allocation23_spill] sm:$0xff] }
0x209a   : > { %31364 = vmatpush3.bf16.msra.mxu1 %v37390_v53  ;;  %27300 = vmatprep.mubr.msk.f32.mxu1 %vm32853_vm0, %v36202_v22 }
0x209b   : > { %27310 = vmatprep.subr.mxu1 %v36202_v22 }
0x209d   : > { %27301 = vmatmul.mubr.f32.gmra.mrb[24].mxu1 %v37375_v1  ;;  %v39093_v1 = vld [vmem:[#allocation25_spill] sm:$0xff] }
0x209e   : > { %27303 = vmatprep.mubr.msk.f32.mxu1 %vm32853_vm0, %v36202_v22  ;;  %27311 = vmatpush3.msra.mxu1 %v37379_v47 }
0x209f   : > { %31365 = vmatprep.subr.bf16.mxu1 %v38695_v61 }
0x20a1   : > { %27304 = vmatmul.mubr.f32.gmra.mrb[26].mxu1 %v16045_v29 }
0x20a2   : > { %27312 = vmatprep.mubr.msk.f32.mxu1 %vm32853_vm0, %v36202_v22 }
0x20a5   : > { %27313 = vmatmul.mubr.f32.vlgmr.msra.gmra.mrb[22].mxu1 %v16026_v27  ;;  %v39092_v27 = vld [vmem:[#allocation24_spill] sm:$0xff] }
0x20a6   : > { %31367 = vmatpush3.bf16.msra.mxu1 %v31366_v4  ;;  %27315 = vmatprep.mubr.msk.f32.mxu1 %vm32853_vm0, %v36202_v22  ;;  %v39111_v4 = vld [vmem:[#allocation45_spill] sm:$0xff] }
0x20a7   : > { %27325 = vmatprep.subr.mxu1 %v36202_v22 }
0x20a9   : > { %27316 = vmatmul.mubr.f32.gmra.mrb[24].mxu1 %v16036_v21 }
0x20aa   : > { %27318 = vmatprep.mubr.msk.f32.mxu1 %vm32853_vm0, %v36202_v22  ;;  %27326 = vmatpush3.msra.mxu1 %v16071_v5 }
0x20ab   : > { %31368 = vmatprep.subr.bf16.mxu1 %v38695_v61 }
0x20ad   : > { %27319 = vmatmul.mubr.f32.gmra.mrb[26].mxu1 %v16046_v25  ;;  %v39100_v25 = vld [vmem:[#allocation36_spill] sm:$0xff] }
0x20ae   : > { %27327 = vmatprep.mubr.msk.f32.mxu1 %vm32853_vm0, %v36202_v22 }
0x20b1   : > { %27328 = vmatmul.mubr.f32.vlgmr.msra.gmra.mrb[22].mxu1 %v37361_v36 }
0x20b2   : > { %31370 = vmatpush3.bf16.msra.mxu1 %v37390_v53  ;;  %27330 = vmatprep.mubr.msk.f32.mxu1 %vm32853_vm0, %v36202_v22 }
0x20b3   : > { %27340 = vmatprep.subr.mxu1 %v36202_v22 }
0x20b5   : > { %27331 = vmatmul.mubr.f32.gmra.mrb[24].mxu1 %v37367_v48 }
0x20b6   : > { %27333 = vmatprep.mubr.msk.f32.mxu1 %vm32853_vm0, %v36202_v22  ;;  %27341 = vmatpush3.msra.mxu1 %v37379_v47  ;;  %v39096_v47 = vld [vmem:[#allocation28_spill] sm:$0xff] }
0x20b7   : > { %31371 = vmatprep.subr.bf16.mxu1 %v38695_v61 }
0x20b9   : > { %27334 = vmatmul.mubr.f32.gmra.mrb[26].mxu1 %v37377_v0 }
0x20ba   : > { %27342 = vmatprep.mubr.msk.f32.mxu1 %vm32853_vm0, %v36202_v22 }
0x20bd   : > { %27343 = vmatmul.mubr.f32.vlgmr.msra.gmra.mrb[22].mxu1 %v37361_v36  ;;  %v39094_v36 = vld [vmem:[#allocation26_spill] sm:$0xff] }
0x20be   : > { %27345 = vmatprep.mubr.msk.f32.mxu1 %vm32853_vm0, %v36202_v22  ;;  %31373 = vmatpush3.bf16.msra.mxu1 %v39091_v50 }
0x20bf   : > { %31374 = vmatprep.subr.bf16.mxu1 %v38695_v61 }
0x20c1   : > { %27346 = vmatmul.mubr.f32.gmra.mrb[24].mxu1 %v37367_v48  ;;  %v39095_v48 = vld [vmem:[#allocation27_spill] sm:$0xff] }
0x20c2   : > { %27348 = vmatprep.mubr.msk.f32.mxu1 %vm32853_vm0, %v36202_v22  ;;  %31376 = vmatpush3.bf16.msra.mxu1 %v39092_v27 }
0x20c3   : > { %31377 = vmatprep.subr.bf16.mxu1 %v38695_v61 }
0x20c5   : > { %27349 = vmatmul.mubr.f32.gmra.mrb[26].mxu1 %v37377_v0  ;;  %v39097_v0 = vld [vmem:[#allocation29_spill] sm:$0xff] }
0x20c6   : > { %31379 = vmatpush3.bf16.msra.mxu1 %v39093_v1  ;;  %27383 = vmatprep.mubr.msk.f32.mxu1 %vm32853_vm0, %v36202_v22 }
0x20c7   : > { %31380 = vmatprep.subr.bf16.mxu1 %v38695_v61 }
0x20ca   : > { %31382 = vmatpush3.bf16.msra.mxu1 %v39094_v36 }
0x20cb   : > { %31383 = vmatprep.subr.bf16.mxu1 %v38695_v61 }
0x20ce   : > { %31385 = vmatpush3.bf16.msra.mxu1 %v39095_v48 }
0x20cf   : > { %31386 = vmatprep.subr.bf16.mxu1 %v38695_v61 }
0x20d2   : > { %31388 = vmatpush3.bf16.msra.mxu1 %v39096_v47 }
0x20d3   : > { %31389 = vmatprep.subr.bf16.mxu1 %v38695_v61 }
0x20d6   : > { %31391 = vmatpush3.bf16.msra.mxu1 %v39097_v0 }
0x20d7   : > { %31392 = vmatprep.subr.bf16.mxu1 %v38695_v61 }
0x20da   : > { %31394 = vmatpush3.bf16.msra.mxu1 %v39098_v63 }
0x20db   : > { %31395 = vmatprep.subr.bf16.mxu1 %v38695_v61 }
0x2190   : > { %v16498_v51 = vpop.f32.mrb[22].mxu1 }
0x2191   : > { %v37481_v21 = vand.u32 4294901760, %v16498_v51  ;;  %v27344_v29 = vpop.f32.mrb[23].mxu1 }
0x2192   : > { %v39113_v29 = vld [vmem:[#allocation33_spill] sm:$0xff] }
0x2193   : > { %v16596_v53 = vsub.f32 %v16498_v51, %v37481_v21  ;;  %v39112_v51 = vld [vmem:[#allocation46_spill] sm:$0xff] }
0x2195   : > { %v16597_v58 = vand.u32 4294901760, %v16596_v53 }
0x2197   : > { %v16598_v41 = vsub.f32 %v16596_v53, %v16597_v58 }
0x2198   : > { %v37484_v45 = vpop.f32.mrb[26].mxu1 }
0x2199   : > { %v16599_v5 = vand.u32 4294901760, %v16598_v41  ;;  %v27350_v42 = vpop.f32.mrb[27].mxu1  ;;  %v39114_v41 = vld [vmem:[#allocation34_spill] sm:$0xff] }
0x219a   : > { %v39117_v42 = vld [vmem:[#allocation49_spill] sm:$0xff] }
0x219b   : > { %27384 = vmatmul.mubr.f32.vlgmr.msra.gmra.mrb[24].mxu1 %v16599_v5  ;;  %v39116_v5 = vld [vmem:[#allocation48_spill] sm:$0xff] }
0x219c   : > { %31397 = vmatpush3.bf16.msra.mxu1 %v39099_v13  ;;  %27418 = vmatprep.mubr.msk.f32.mxu1 %vm32853_vm0, %v36202_v22  ;;  %v39118_v13 = vld [vmem:[#allocation50_spill] sm:$0xff] }
0x219d   : > { %31398 = vmatprep.subr.bf16.mxu1 %v38695_v61 }
0x21a0   : > { %31400 = vmatpush3.bf16.msra.mxu1 %v39100_v25  ;;  %v39120_v25 = vld [vmem:[#allocation52_spill] sm:$0xff] }
0x21a1   : > { %31401 = vmatprep.subr.bf16.mxu1 %v38695_v61 }
0x21a4   : > { %31403 = vmatpush3.bf16.msra.mxu1 %v39101_v26  ;;  %v39121_v26 = vld [vmem:[#allocation53_spill] sm:$0xff] }
0x21a5   : > { %31404 = vmatprep.subr.bf16.mxu1 %v38695_v61 }
0x21a8   : > { %31406 = vmatpush3.bf16.msra.mxu1 %v39102_v56  ;;  %v39122_v56 = vld [vmem:[#allocation54_spill] sm:$0xff] }
0x21a9   : > { %31407 = vmatprep.subr.bf16.mxu1 %v38695_v61 }
0x21ac   : > { %31409 = vmatpush3.bf16.msra.mxu1 %v39103_v34  ;;  %v39129_v34 = vld [vmem:[#allocation61_spill] sm:$0xff] }
0x21ad   : > { %31410 = vmatprep.subr.bf16.mxu1 %v38695_v61 }
0x21b0   : > { %31412 = vmatpush3.bf16.msra.mxu1 %v39104_v59 }
0x21b1   : > { %31413 = vmatprep.subr.bf16.mxu1 %v38695_v61 }
0x21b4   : > { %31415 = vmatpush3.bf16.msra.mxu1 %v39105_v52  ;;  %v39130_v52 = vld [vmem:[#allocation62_spill] sm:$0xff] }
0x21b5   : > { %31416 = vmatprep.subr.bf16.mxu1 %v38695_v61 }
0x21b8   : > { %31418 = vmatpush3.bf16.msra.mxu1 %v39106_v28  ;;  %v39131_v28 = vld [vmem:[#allocation63_spill] sm:$0xff] }
0x21b9   : > { %31419 = vmatprep.subr.bf16.mxu1 %v38695_v61 }
0x21bb   : > { %27419 = vmatmul.mubr.f32.vlgmr.msra.gmra.mrb[24].mxu1 %v37481_v21 }
0x21bc   : > { %31421 = vmatpush3.bf16.msra.mxu1 %v39107_v14  ;;  %27453 = vmatprep.mubr.msk.f32.mxu1 %vm32853_vm0, %v36202_v22  ;;  %v39132_v14 = vld [vmem:[#allocation64_spill] sm:$0xff] }
0x21bd   : > { %31422 = vmatprep.subr.bf16.mxu1 %v38695_v61 }
0x21c0   : > { %31424 = vmatpush3.bf16.msra.mxu1 %v39108_v18  ;;  %v39133_v18 = vld [vmem:[#allocation65_spill] sm:$0xff] }
0x21c1   : > { %31425 = vmatprep.subr.bf16.mxu1 %v38695_v61 }
0x21c4   : > { %31427 = vmatpush3.bf16.msra.mxu1 %v39109_v38  ;;  %v39134_v38 = vld [vmem:[#allocation66_spill] sm:$0xff] }
0x21c5   : > { %31428 = vmatprep.subr.bf16.mxu1 %v38695_v61 }
0x21c8   : > { %31430 = vmatpush3.bf16.msra.mxu1 %v39110_v39  ;;  %v39135_v39 = vld [vmem:[#allocation67_spill] sm:$0xff] }
0x21c9   : > { %31431 = vmatprep.subr.bf16.mxu1 %v38695_v61 }
0x21cc   : > { %31433 = vmatpush3.bf16.msra.mxu1 %v39111_v4  ;;  %v39136_v4 = vld [vmem:[#allocation68_spill] sm:$0xff] }
0x21cd   : > { %31434 = vmatprep.subr.bf16.mxu1 %v38695_v61 }
0x21d0   : > { %31436 = vmatpush3.bf16.msra.mxu1 %v39112_v51  ;;  %v39137_v51 = vld [vmem:[#allocation69_spill] sm:$0xff] }
0x21d1   : > { %31437 = vmatprep.subr.bf16.mxu1 %v38695_v61 }
0x21d4   : > { %31439 = vmatpush3.bf16.msra.mxu1 %v39113_v29  ;;  %v39138_v29 = vld [vmem:[#allocation70_spill] sm:$0xff] }
0x21d5   : > { %31440 = vmatprep.subr.bf16.mxu1 %v38695_v61 }
0x21d8   : > { %31442 = vmatpush3.bf16.msra.mxu1 %v39114_v41  ;;  %v17799_v41 = vld [vmem:[#allocation6 + $0x200] sm:$0xff] }
0x21d9   : > { %31443 = vmatprep.subr.bf16.mxu1 %v38695_v61 }
0x21db   : > { %27454 = vmatmul.mubr.f32.vlgmr.msra.gmra.mrb[24].mxu1 %v16596_v53  ;;  %v39115_v53 = vld [vmem:[#allocation47_spill] sm:$0xff] }
0x21dc   : > { %31445 = vmatpush3.bf16.msra.mxu1 %v39091_v50  ;;  %27488 = vmatprep.mubr.msk.f32.mxu1 %vm32853_vm0, %v36202_v22 }
0x21dd   : > { %31446 = vmatprep.subr.bf16.mxu1 %v38695_v61 }
0x21e0   : > { %31448 = vmatpush3.bf16.msra.mxu1 %v39092_v27 }
0x21e1   : > { %31449 = vmatprep.subr.bf16.mxu1 %v38695_v61 }
0x21e4   : > { %31451 = vmatpush3.bf16.msra.mxu1 %v39093_v1 }
0x21e5   : > { %31452 = vmatprep.subr.bf16.mxu1 %v38695_v61 }
0x21e8   : > { %31454 = vmatpush3.bf16.msra.mxu1 %v39094_v36 }
0x21e9   : > { %31455 = vmatprep.subr.bf16.mxu1 %v38695_v61 }
0x21ec   : > { %31457 = vmatpush3.bf16.msra.mxu1 %v39095_v48 }
0x21ed   : > { %31458 = vmatprep.subr.bf16.mxu1 %v38695_v61 }
0x21f0   : > { %31460 = vmatpush3.bf16.msra.mxu1 %v39096_v47 }
0x21f1   : > { %31461 = vmatprep.subr.bf16.mxu1 %v38695_v61 }
0x21f4   : > { %31463 = vmatpush3.bf16.msra.mxu1 %v39097_v0 }
0x21f5   : > { %31464 = vmatprep.subr.bf16.mxu1 %v38695_v61 }
0x21f8   : > { %31466 = vmatpush3.bf16.msra.mxu1 %v39098_v63 }
0x21f9   : > { %31467 = vmatprep.subr.bf16.mxu1 %v38695_v61 }
0x21fb   : > { %27489 = vmatmul.mubr.f32.vlgmr.msra.gmra.mrb[24].mxu1 %v16597_v58  ;;  %v39119_v58 = vld [vmem:[#allocation51_spill] sm:$0xff] }
0x21fc   : > { %31469 = vmatpush3.bf16.msra.mxu1 %v39115_v53  ;;  %27523 = vmatprep.mubr.msk.f32.mxu1 %vm32853_vm0, %v36202_v22  ;;  %v17800_v53 = vld [vmem:[#allocation6 + $0x208] sm:$0xff] }
0x21fd   : > { %31470 = vmatprep.subr.bf16.mxu1 %v38695_v61 }
0x2200   : > { %31472 = vmatpush3.bf16.msra.mxu1 %v39116_v5  ;;  %v17801_v5 = vld [vmem:[#allocation6 + $0x210] sm:$0xff] }
0x2201   : > { %31473 = vmatprep.subr.bf16.mxu1 %v38695_v61 }
0x2204   : > { %31475 = vmatpush3.bf16.msra.mxu1 %v39117_v42  ;;  %v39139_v42 = vld [vmem:[#allocation71_spill] sm:$0xff] }
0x2205   : > { %31476 = vmatprep.subr.bf16.mxu1 %v38695_v61 }
0x2208   : > { %31478 = vmatpush3.bf16.msra.mxu1 %v39118_v13  ;;  %v17816_v13 = vand.u32 4294901760, %v17799_v41 }
0x2209   : > { %31479 = vmatprep.subr.bf16.mxu1 %v38695_v61 }
0x220c   : > { %31481 = vmatpush3.bf16.msra.mxu1 %v39119_v58  ;;  %v17819_v58 = vand.u32 4294901760, %v17800_v53 }
0x220d   : > { %31482 = vmatprep.subr.bf16.mxu1 %v38695_v61 }
0x2210   : > { %31484 = vmatpush3.bf16.msra.mxu1 %v39120_v25  ;;  %v17802_v25 = vld [vmem:[#allocation6 + $0x218] sm:$0xff] }
0x2211   : > { %31485 = vmatprep.subr.bf16.mxu1 %v38695_v61 }
0x2214   : > { %31487 = vmatpush3.bf16.msra.mxu1 %v39121_v26  ;;  %v17822_v26 = vand.u32 4294901760, %v17801_v5 }
0x2215   : > { %31488 = vmatprep.subr.bf16.mxu1 %v38695_v61 }
0x2218   : > { %31490 = vmatpush3.bf16.msra.mxu1 %v39122_v56  ;;  %v17803_v56 = vld [vmem:[#allocation6 + $0x220] sm:$0xff] }
0x2219   : > { %31491 = vmatprep.subr.bf16.mxu1 %v38695_v61 }
0x221b   : > { %27524 = vmatmul.mubr.f32.vlgmr.msra.gmra.mrb[24].mxu1 %v37481_v21 }
0x221c   : > { %31493 = vmatpush3.bf16.msra.mxu1 %v39091_v50  ;;  %27558 = vmatprep.mubr.msk.f32.mxu1 %vm32853_vm0, %v36202_v22  ;;  %v39123_v50 = vld [vmem:[#allocation55_spill] sm:$0xff] }
0x221d   : > { %31494 = vmatprep.subr.bf16.mxu1 %v38695_v61 }
0x2220   : > { %31496 = vmatpush3.bf16.msra.mxu1 %v39092_v27  ;;  %v39124_v27 = vld [vmem:[#allocation56_spill] sm:$0xff] }
0x2221   : > { %31497 = vmatprep.subr.bf16.mxu1 %v38695_v61 }
0x2224   : > { %31499 = vmatpush3.bf16.msra.mxu1 %v39093_v1  ;;  %v39125_v1 = vld [vmem:[#allocation57_spill] sm:$0xff] }
0x2225   : > { %31500 = vmatprep.subr.bf16.mxu1 %v38695_v61 }
0x2228   : > { %31502 = vmatpush3.bf16.msra.mxu1 %v39094_v36  ;;  %v39126_v36 = vld [vmem:[#allocation58_spill] sm:$0xff] }
0x2229   : > { %31503 = vmatprep.subr.bf16.mxu1 %v38695_v61 }
0x222c   : > { %31505 = vmatpush3.bf16.msra.mxu1 %v39095_v48  ;;  %v37589_v48 = vand.u32 4294901760, %v37484_v45 }
0x222d   : > { %31506 = vmatprep.subr.bf16.mxu1 %v38695_v61 }
0x2230   : > { %31508 = vmatpush3.bf16.msra.mxu1 %v39096_v47  ;;  %v39127_v47 = vld [vmem:[#allocation59_spill] sm:$0xff] }
0x2231   : > { %31509 = vmatprep.subr.bf16.mxu1 %v38695_v61 }
0x2234   : > { %31511 = vmatpush3.bf16.msra.mxu1 %v39097_v0  ;;  %v37595_v0 = vsub.f32 %v37484_v45, %v37589_v48 }
0x2235   : > { %31512 = vmatprep.subr.bf16.mxu1 %v38695_v61 }
0x2238   : > { %31514 = vmatpush3.bf16.msra.mxu1 %v39098_v63  ;;  %v39128_v63 = vld [vmem:[#allocation60_spill] sm:$0xff] }
0x2239   : > { %31515 = vmatprep.subr.bf16.mxu1 %v38695_v61 }
0x223b   : > { %27559 = vmatmul.mubr.f32.vlgmr.msra.gmra.mrb[24].mxu1 %v37481_v21  ;;  %v38603_v21 = vand.u32 4294901760, %v37595_v0 }
0x223c   : > { %31517 = vmatpush3.bf16.msra.mxu1 %v39123_v50  ;;  %27593 = vmatprep.mubr.msk.f32.mxu1 %vm32853_vm0, %v36202_v22 }
0x223d   : > { %31518 = vmatprep.subr.bf16.mxu1 %v38695_v61  ;;  %v17240_v59 = vsub.f32 %v37595_v0, %v38603_v21  ;;  %v17808_v21 = vld [vmem:[#allocation6 + $0x248] sm:$0xff] }
0x223f   : > { %v17241_v45 = vand.u32 4294901760, %v17240_v59  ;;  %v17804_v59 = vld [vmem:[#allocation6 + $0x228] sm:$0xff] }
0x2240   : > { %31520 = vmatpush3.bf16.msra.mxu1 %v39124_v27 }
0x2241   : > { %31521 = vmatprep.subr.bf16.mxu1 %v38695_v61 }
0x2244   : > { %31523 = vmatpush3.bf16.msra.mxu1 %v39125_v1 }
0x2245   : > { %31524 = vmatprep.subr.bf16.mxu1 %v38695_v61 }
0x2248   : > { %31526 = vmatpush3.bf16.msra.mxu1 %v39126_v36 }
0x2249   : > { %31527 = vmatprep.subr.bf16.mxu1 %v38695_v61 }
0x224c   : > { %31529 = vmatpush3.bf16.msra.mxu1 %v39127_v47 }
0x224d   : > { %31530 = vmatprep.subr.bf16.mxu1 %v38695_v61 }
0x2250   : > { %31532 = vmatpush3.bf16.msra.mxu1 %v39128_v63 }
0x2251   : > { %31533 = vmatprep.subr.bf16.mxu1 %v38695_v61 }
0x2254   : > { %31535 = vmatpush3.bf16.msra.mxu1 %v39129_v34 }
0x2255   : > { %31536 = vmatprep.subr.bf16.mxu1 %v38695_v61 }
0x2258   : > { %31538 = vmatpush3.bf16.msra.mxu1 %v39130_v52 }
0x2259   : > { %31539 = vmatprep.subr.bf16.mxu1 %v38695_v61 }
0x225b   : > { %27594 = vmatmul.mubr.f32.vlgmr.msra.gmra.mrb[24].mxu1 %v17241_v45  ;;  %v17825_v45 = vand.u32 4294901760, %v17802_v25 }
0x225c   : > { %31541 = vmatpush3.bf16.msra.mxu1 %v39131_v28  ;;  %27628 = vmatprep.mubr.msk.f32.mxu1 %vm32853_vm0, %v36202_v22  ;;  %v17828_v28 = vand.u32 4294901760, %v17803_v56 }
0x225d   : > { %31542 = vmatprep.subr.bf16.mxu1 %v38695_v61  ;;  %v37639_v35 = vpack.c.bf16 %v17825_v45, %v17822_v26  ;;  %v37641_v12 = vsub.f32 %v17802_v25, %v17825_v45 }
0x225e   : > { %v37643_v16 = vsub.f32 %v17803_v56, %v17828_v28 }
0x2260   : > { %31544 = vmatpush3.bf16.msra.mxu1 %v39132_v14  ;;  %v17831_v14 = vand.u32 4294901760, %v17804_v59 }
0x2261   : > { %31545 = vmatprep.subr.bf16.mxu1 %v38695_v61 }
0x2262   : > { %v37647_v7 = vsub.f32 %v17804_v59, %v17831_v14  ;;  %v37663_v46 = vpack.c.bf16 %v17831_v14, %v17828_v28  ;;  %v39145_v14 = vld [vmem:[#allocation77_spill] sm:$0xff] }
0x2264   : > { %31547 = vmatpush3.bf16.msra.mxu1 %v39133_v18  ;;  %v17805_v18 = vld [vmem:[#allocation6 + $0x230] sm:$0xff] }
0x2265   : > { %31548 = vmatprep.subr.bf16.mxu1 %v38695_v61 }
0x2268   : > { %31550 = vmatpush3.bf16.msra.mxu1 %v39134_v38  ;;  %v17806_v38 = vld [vmem:[#allocation6 + $0x238] sm:$0xff] }
0x2269   : > { %31551 = vmatprep.subr.bf16.mxu1 %v38695_v61 }
0x226c   : > { %31553 = vmatpush3.bf16.msra.mxu1 %v39135_v39  ;;  %v17807_v39 = vld [vmem:[#allocation6 + $0x240] sm:$0xff] }
0x226d   : > { %31554 = vmatprep.subr.bf16.mxu1 %v38695_v61 }
0x2270   : > { %31556 = vmatpush3.bf16.msra.mxu1 %v39136_v4  ;;  %v37631_v4 = vpack.c.bf16 %v17819_v58, %v17816_v13 }
0x2271   : > { %31557 = vmatprep.subr.bf16.mxu1 %v38695_v61 }
0x2272   : > { %31661 = vmatpush3.bf16.msra.mxu0 %v37631_v4 }
0x2273   : > { %31662 = vmatprep.subr.bf16.mxu0 %v38695_v61 }
0x2274   : > { %31559 = vmatpush3.bf16.msra.mxu1 %v39137_v51  ;;  %v37633_v51 = vsub.f32 %v17799_v41, %v17816_v13  ;;  %v17834_v41 = vand.u32 4294901760, %v17805_v18  ;;  %v17840_v13 = vand.u32 4294901760, %v17807_v39 }
0x2275   : > { %31560 = vmatprep.subr.bf16.mxu1 %v38695_v61 }
0x2276   : > { %v37651_v25 = vsub.f32 %v17805_v18, %v17834_v41  ;;  %v37655_v56 = vsub.f32 %v17807_v39, %v17840_v13  ;;  %31664 = vmatpush3.bf16.msra.mxu0 %v37639_v35  ;;  %v39142_v18 = vld [vmem:[#allocation74_spill] sm:$0xff]  ;;  %v39147_v39 = vand.u32 4294901760, %v37595_v0 }
0x2277   : > { %31665 = vmatprep.subr.bf16.mxu0 %v38695_v61 }
0x2278   : > { %31562 = vmatpush3.bf16.msra.mxu1 %v39138_v29  ;;  %v37635_v29 = vsub.f32 %v17800_v53, %v17819_v58  ;;  %v17837_v53 = vand.u32 4294901760, %v17806_v38  ;;  %v17846_v58 = vand.u32 4294901760, %v17809_v44 }
0x2279   : > { %31563 = vmatprep.subr.bf16.mxu1 %v38695_v61 }
0x227a   : > { %v37659_v59 = vsub.f32 %v17809_v44, %v17846_v58  ;;  %31667 = vmatpush3.bf16.msra.mxu0 %v37663_v46  ;;  %v39144_v44 = vld [vmem:[#allocation76_spill] sm:$0xff] }
0x227b   : > { %27629 = vmatmul.mubr.f32.vlgmr.msra.gmra.mrb[24].mxu1 %v37589_v48  ;;  %31668 = vmatprep.subr.bf16.mxu0 %v38695_v61 }
0x227c   : > { %31565 = vmatpush3.bf16.msra.mxu1 %v39139_v42  ;;  %27663 = vmatprep.mubr.msk.f32.mxu1 %vm32853_vm0, %v36202_v22  ;;  %v37637_v42 = vsub.f32 %v17801_v5, %v17822_v26  ;;  %v17843_v5 = vand.u32 4294901760, %v17808_v21  ;;  %v37653_v26 = vsub.f32 %v17806_v38, %v17837_v53  ;;  %v39146_v38 = vld [vmem:[#allocation78_spill] sm:$0xff] }
0x227d   : > { %31566 = vmatprep.subr.bf16.mxu1 %v38695_v61 }
0x227e   : > { %v37657_v45 = vsub.f32 %v17808_v21, %v17843_v5  ;;  %v37671_v21 = vpack.c.bf16 %v17837_v53, %v17834_v41  ;;  %v39148_v41 = vld [vmem:[#allocation79_spill] sm:$0xff]  ;;  %v39149_v53 = vld [vmem:[#allocation80_spill] sm:$0xff] }
0x2280   : > { %31568 = vmatpush3.bf16.msra.mxu1 %v39140_v10  ;;  %v17849_v10 = vand.u32 4294901760, %v17810_v40  ;;  %31670 = vmatpush3.bf16.msra.mxu0 %v37671_v21 }
0x2281   : > { %31569 = vmatprep.subr.bf16.mxu1 %v38695_v61  ;;  %31671 = vmatprep.subr.bf16.mxu0 %v38695_v61 }
0x2282   : > { %v37665_v62 = vsub.f32 %v17810_v40, %v17849_v10  ;;  %v37677_v40 = vpack.c.bf16 %v17843_v5, %v17840_v13  ;;  %v37683_v28 = vpack.c.bf16 %v17849_v10, %v17846_v58  ;;  %v39150_v13 = vld [vmem:[#allocation81_spill] sm:$0xff]  ;;  %v39151_v5 = vld [vmem:[#allocation82_spill] sm:$0xff]  ;;  %v39153_v58 = vld [vmem:[#allocation84_spill] sm:$0xff] }
0x2283   : > { %v39154_v10 = vld [vmem:[#allocation85_spill] sm:$0xff] }
0x2284   : > { %31571 = vmatpush3.bf16.msra.mxu1 %v39141_v37  ;;  %v39143_v37 = vld [vmem:[#allocation75_spill] sm:$0xff]  ;;  %31673 = vmatpush3.bf16.msra.mxu0 %v37677_v40 }
0x2285   : > { %31572 = vmatprep.subr.bf16.mxu1 %v38695_v61  ;;  %31674 = vmatprep.subr.bf16.mxu0 %v38695_v61 }
0x2288   : > { %31574 = vmatpush3.bf16.msra.mxu1 %v39142_v18  ;;  %31676 = vmatpush3.bf16.msra.mxu0 %v37683_v28  ;;  %v39155_v18 = vld [vmem:[#allocation86_spill] sm:$0xff] }
0x2289   : > { %31575 = vmatprep.subr.bf16.mxu1 %v38695_v61  ;;  %31677 = vmatprep.subr.bf16.mxu0 %v38695_v61 }
0x228c   : > { %31577 = vmatpush3.bf16.msra.mxu1 %v39143_v37  ;;  %v38620_v37 = vand.u32 4294901760, %v37633_v51 }
0x228d   : > { %31578 = vmatprep.subr.bf16.mxu1 %v38695_v61 }
0x2290   : > { %31580 = vmatpush3.bf16.msra.mxu1 %v39144_v44  ;;  %v38617_v44 = vand.u32 4294901760, %v37635_v29 }
0x2291   : > { %31581 = vmatprep.subr.bf16.mxu1 %v38695_v61 }
0x2294   : > { %31583 = vmatpush3.bf16.msra.mxu1 %v39145_v14 }
0x2295   : > { %31584 = vmatprep.subr.bf16.mxu1 %v38695_v61 }
0x2298   : > { %31586 = vmatpush3.bf16.msra.mxu1 %v39146_v38 }
0x2299   : > { %31587 = vmatprep.subr.bf16.mxu1 %v38695_v61 }
0x229b   : > { %27664 = vmatmul.mubr.f32.vlgmr.msra.gmra.mrb[24].mxu1 %v37595_v0  ;;  %v39152_v0 = vld [vmem:[#allocation83_spill] sm:$0xff] }
0x229c   : > { %31589 = vmatpush3.bf16.msra.mxu1 %v39123_v50  ;;  %27698 = vmatprep.mubr.msk.f32.mxu1 %vm32853_vm0, %v36202_v22 }
0x229d   : > { %31590 = vmatprep.subr.bf16.mxu1 %v38695_v61 }
0x22a0   : > { %31592 = vmatpush3.bf16.msra.mxu1 %v39124_v27 }
0x22a1   : > { %31593 = vmatprep.subr.bf16.mxu1 %v38695_v61 }
0x22a4   : > { %31595 = vmatpush3.bf16.msra.mxu1 %v39125_v1 }
0x22a5   : > { %31596 = vmatprep.subr.bf16.mxu1 %v38695_v61 }
0x22a8   : > { %31598 = vmatpush3.bf16.msra.mxu1 %v39126_v36 }
0x22a9   : > { %31599 = vmatprep.subr.bf16.mxu1 %v38695_v61 }
0x22ac   : > { %31601 = vmatpush3.bf16.msra.mxu1 %v39127_v47 }
0x22ad   : > { %31602 = vmatprep.subr.bf16.mxu1 %v38695_v61 }
0x22b0   : > { %31604 = vmatpush3.bf16.msra.mxu1 %v39128_v63 }
0x22b1   : > { %31605 = vmatprep.subr.bf16.mxu1 %v38695_v61 }
0x22b4   : > { %31607 = vmatpush3.bf16.msra.mxu1 %v39129_v34 }
0x22b5   : > { %31608 = vmatprep.subr.bf16.mxu1 %v38695_v61 }
0x22b8   : > { %31610 = vmatpush3.bf16.msra.mxu1 %v39130_v52 }
0x22b9   : > { %31611 = vmatprep.subr.bf16.mxu1 %v38695_v61 }
0x22bb   : > { %27699 = vmatmul.mubr.f32.vlgmr.msra.gmra.mrb[24].mxu1 %v39147_v39 }
0x22bc   : > { %31613 = vmatpush3.bf16.msra.mxu1 %v39148_v41  ;;  %27733 = vmatprep.mubr.msk.f32.mxu1 %vm32853_vm0, %v36202_v22 }
0x22bd   : > { %31614 = vmatprep.subr.bf16.mxu1 %v38695_v61 }
0x22c0   : > { %31616 = vmatpush3.bf16.msra.mxu1 %v39149_v53 }
0x22c1   : > { %31617 = vmatprep.subr.bf16.mxu1 %v38695_v61 }
0x22c4   : > { %31619 = vmatpush3.bf16.msra.mxu1 %v39150_v13  ;;  %v17910_v13 = vsub.f32 %v37633_v51, %v38620_v37  ;;  %v38625_v37 = vand.u32 4294901760, %v37659_v59 }
0x22c5   : > { %31620 = vmatprep.subr.bf16.mxu1 %v38695_v61 }
0x22c8   : > { %31622 = vmatpush3.bf16.msra.mxu1 %v39151_v5  ;;  %v17917_v5 = vsub.f32 %v37635_v29, %v38617_v44  ;;  %v38622_v44 = vand.u32 4294901760, %v37655_v56 }
0x22c9   : > { %31623 = vmatprep.subr.bf16.mxu1 %v38695_v61 }
0x22cc   : > { %31625 = vmatpush3.bf16.msra.mxu1 %v39152_v0  ;;  %v17911_v0 = vand.u32 4294901760, %v17910_v13 }
0x22cd   : > { %31626 = vmatprep.subr.bf16.mxu1 %v38695_v61 }
0x22d0   : > { %31628 = vmatpush3.bf16.msra.mxu1 %v39153_v58  ;;  %v17918_v58 = vand.u32 4294901760, %v17917_v5 }
0x22d1   : > { %31629 = vmatprep.subr.bf16.mxu1 %v38695_v61 }
0x22d4   : > { %31631 = vmatpush3.bf16.msra.mxu1 %v39154_v10  ;;  %v38614_v10 = vand.u32 4294901760, %v37637_v42 }
0x22d5   : > { %31632 = vmatprep.subr.bf16.mxu1 %v38695_v61 }
0x22d8   : > { %31634 = vmatpush3.bf16.msra.mxu1 %v39155_v18  ;;  %v38615_v18 = vand.u32 4294901760, %v37641_v12 }
0x22d9   : > { %31635 = vmatprep.subr.bf16.mxu1 %v38695_v61 }
0x22db   : > { %27734 = vmatmul.mubr.f32.vlgmr.msra.gmra.mrb[24].mxu1 %v37589_v48 }
0x22dc   : > { %31637 = vmatpush3.bf16.msra.mxu1 %v39123_v50  ;;  %27768 = vmatprep.mubr.msk.f32.mxu1 %vm32853_vm0, %v36202_v22  ;;  %v17811_v50 = vld [vmem:[#allocation6 + $0x260] sm:$0xff] }
0x22dd   : > { %31638 = vmatprep.subr.bf16.mxu1 %v38695_v61 }
0x22e0   : > { %31640 = vmatpush3.bf16.msra.mxu1 %v39124_v27  ;;  %v17812_v27 = vld [vmem:[#allocation6 + $0x268] sm:$0xff] }
0x22e1   : > { %31641 = vmatprep.subr.bf16.mxu1 %v38695_v61 }
0x22e4   : > { %31643 = vmatpush3.bf16.msra.mxu1 %v39125_v1  ;;  %v17852_v1 = vand.u32 4294901760, %v17811_v50 }
0x22e5   : > { %31644 = vmatprep.subr.bf16.mxu1 %v38695_v61 }
0x22e6   : > { %v37776_v14 = vsub.f32 %v17811_v50, %v17852_v1  ;;  %v37796_v50 = vpack.c.bf16 %v17918_v58, %v17911_v0 }
0x22e8   : > { %31646 = vmatpush3.bf16.msra.mxu1 %v39126_v36  ;;  %v17855_v36 = vand.u32 4294901760, %v17812_v27  ;;  %v38628_v24 = vand.u32 4294901760, %v37776_v14 }
0x22e9   : > { %31647 = vmatprep.subr.bf16.mxu1 %v38695_v61 }
0x22ea   : > { %v37778_v38 = vsub.f32 %v17812_v27, %v17855_v36  ;;  %v17924_v27 = vsub.f32 %v37637_v42, %v38614_v10  ;;  %v38619_v10 = vand.u32 4294901760, %v37651_v25 }
0x22ec   : > { %31649 = vmatpush3.bf16.msra.mxu1 %v39127_v47  ;;  %v17813_v47 = vld [vmem:[#allocation6 + $0x270] sm:$0xff] }
0x22ed   : > { %31650 = vmatprep.subr.bf16.mxu1 %v38695_v61 }
0x22f0   : > { %31652 = vmatpush3.bf16.msra.mxu1 %v39128_v63  ;;  %v17814_v63 = vld [vmem:[#allocation6 + $0x278] sm:$0xff] }
0x22f1   : > { %31653 = vmatprep.subr.bf16.mxu1 %v38695_v61 }
0x22f4   : > { %31655 = vmatpush3.bf16.msra.mxu1 %v39129_v34  ;;  %v17858_v34 = vand.u32 4294901760, %v17813_v47 }
0x22f5   : > { %31656 = vmatprep.subr.bf16.mxu1 %v38695_v61 }
0x22f6   : > { %v37782_v41 = vsub.f32 %v17813_v47, %v17858_v34 }
0x22f8   : > { %31658 = vmatpush3.bf16.msra.mxu1 %v39130_v52  ;;  %v17861_v52 = vand.u32 4294901760, %v17814_v63  ;;  %v38630_v19 = vand.u32 4294901760, %v37782_v41 }
0x22f9   : > { %31947 = vmatprep.subr.bf16.mxu1 %v38695_v61 }
0x22fa   : > { %v37780_v39 = vpack.c.bf16 %v17861_v52, %v17858_v34  ;;  %v37784_v53 = vsub.f32 %v17814_v63, %v17861_v52  ;;  %v38616_v63 = vand.u32 4294901760, %v37643_v16  ;;  %v38618_v34 = vand.u32 4294901760, %v37647_v7 }
0x22fb   : > { %27769 = vmatmul.mubr.f32.vlgmr.msra.gmra.mrb[24].mxu1 %v37589_v48  ;;  %v37770_v48 = vpack.c.bf16 %v17855_v36, %v17852_v1  ;;  %v17931_v1 = vsub.f32 %v37641_v12, %v38615_v18  ;;  %v17925_v36 = vand.u32 4294901760, %v17924_v27  ;;  %v38621_v27 = vand.u32 4294901760, %v37653_v26 }
0x22fc   : > { %31949 = vmatpush3.bf16.msra.mxu1 %v34294_v31  ;;  %28223 = vmatprep.mubr.msk.f32.mxu1 %vm32853_vm0, %v36202_v22  ;;  %v17938_v13 = vsub.f32 %v37643_v16, %v38616_v63  ;;  %v17945_v5 = vsub.f32 %v37647_v7, %v38618_v34  ;;  %v17952_v18 = vsub.f32 %v37651_v25, %v38619_v10 }
0x22fd   : > { %31950 = vmatprep.subr.bf16.mxu1 %v38695_v61  ;;  %31679 = vmatpush3.bf16.msra.mxu0 %v37770_v48  ;;  %v17932_v47 = vand.u32 4294901760, %v17931_v1  ;;  %v17966_v34 = vsub.f32 %v37655_v56, %v38622_v44 }
0x22fe   : > { %31680 = vmatprep.subr.bf16.mxu0 %v38695_v61  ;;  %v17939_v0 = vand.u32 4294901760, %v17938_v13  ;;  %v17946_v58 = vand.u32 4294901760, %v17945_v5  ;;  %v38624_v13 = vand.u32 4294901760, %v37657_v45 }
0x22ff   : > { %v31687_v52 = vpack.c.bf16 %v17932_v47, %v17925_v36  ;;  %v17959_v36 = vsub.f32 %v37653_v26, %v38621_v27  ;;  %v17953_v47 = vand.u32 4294901760, %v17952_v18  ;;  %v38627_v18 = vand.u32 4294901760, %v37665_v62 }
0x2300   : > { %31952 = vmatpush3.bf16.msra.mxu1 %v34301_v9  ;;  %v31690_v1 = vpack.c.bf16 %v17946_v58, %v17939_v0  ;;  %v17973_v0 = vsub.f32 %v37657_v45, %v38624_v13  ;;  %v17967_v58 = vand.u32 4294901760, %v17966_v34  ;;  %v17980_v27 = vsub.f32 %v37659_v59, %v38625_v37 }
0x2301   : > { %31953 = vmatprep.subr.bf16.mxu1 %v38695_v61  ;;  %31682 = vmatpush3.bf16.msra.mxu0 %v37780_v39  ;;  %v17960_v63 = vand.u32 4294901760, %v17959_v36  ;;  %v38632_v34 = vand.u32 4294901760, %v37778_v38  ;;  %v17994_v13 = vsub.f32 %v37776_v14, %v38628_v24 }
0x2302   : > { %31683 = vmatprep.subr.bf16.mxu0 %v38695_v61  ;;  %v17974_v10 = vand.u32 4294901760, %v17973_v0 }
0x2303   : > { %v31693_v5 = vpack.c.bf16 %v17960_v63, %v17953_v47  ;;  %v17987_v63 = vsub.f32 %v37665_v62, %v38627_v18  ;;  %v17981_v47 = vand.u32 4294901760, %v17980_v27  ;;  %v38631_v27 = vand.u32 4294901760, %v37784_v53 }
0x2304   : > { %31955 = vmatpush3.bf16.msra.mxu1 %v34311_v30  ;;  %v31696_v36 = vpack.c.bf16 %v17974_v10, %v17967_v58  ;;  %v18001_v10 = vsub.f32 %v37778_v38, %v38632_v34  ;;  %v17995_v58 = vand.u32 4294901760, %v17994_v13  ;;  %v18008_v18 = vsub.f32 %v37782_v41, %v38630_v19 }
0x2305   : > { %31956 = vmatprep.subr.bf16.mxu1 %v38695_v61  ;;  %v17988_v44 = vand.u32 4294901760, %v17987_v63  ;;  %v31708_v13 = vpack.c.bf16 %v37635_v29, %v37633_v51  ;;  %v31720_v19 = vpack.c.bf16 %v37657_v45, %v37655_v56 }
0x2306   : > { %v18002_v37 = vand.u32 4294901760, %v18001_v10  ;;  %v31711_v10 = vpack.c.bf16 %v37641_v12, %v37637_v42 }
0x2307   : > { %v31699_v0 = vpack.c.bf16 %v17988_v44, %v17981_v47  ;;  %v18015_v44 = vsub.f32 %v37784_v53, %v38631_v27  ;;  %v18009_v47 = vand.u32 4294901760, %v18008_v18  ;;  %v31723_v18 = vpack.c.bf16 %v37665_v62, %v37659_v59 }
0x2308   : > { %31958 = vmatpush3.bf16.msra.mxu1 %v34316_v11  ;;  %v31702_v63 = vpack.c.bf16 %v18002_v37, %v17995_v58  ;;  %v31714_v37 = vpack.c.bf16 %v37647_v7, %v37643_v16  ;;  %v31717_v58 = vpack.c.bf16 %v37653_v26, %v37651_v25 }
0x2309   : > { %31959 = vmatprep.subr.bf16.mxu1 %v38695_v61  ;;  %v18016_v24 = vand.u32 4294901760, %v18015_v44  ;;  %v31729_v44 = vpack.c.bf16 %v37784_v53, %v37782_v41 }
0x230b   : > { %v31705_v15 = vpack.c.bf16 %v18016_v24, %v18009_v47  ;;  %v31726_v24 = vpack.c.bf16 %v37778_v38, %v37776_v14 }
0x230c   : > { %31961 = vmatpush3.bf16.msra.mxu1 %v34320_v20 }
0x230d   : > { %31962 = vmatprep.subr.bf16.mxu1 %v38695_v61 }
0x2310   : > { %31964 = vmatpush3.bf16.msra.mxu1 %v34324_v49 }
0x2311   : > { %31965 = vmatprep.subr.bf16.mxu1 %v38695_v61 }
0x2314   : > { %31967 = vmatpush3.bf16.msra.mxu1 %v34328_v6 }
0x2315   : > { %31968 = vmatprep.subr.bf16.mxu1 %v38695_v61 }
0x2318   : > { %31970 = vmatpush3.bf16.msra.mxu1 %v34332_v23 }
0x2319   : > { %31971 = vmatprep.subr.bf16.mxu1 %v38695_v61 }
0x23ce   : > { %v37868_v47 = vpop.f32.mrb[24].mxu1 }
0x23cf   : > { %v37871_v27 = vand.u32 4294901760, %v37868_v47  ;;  %v27770_v34 = vpop.f32.mrb[25].mxu1 }
0x23d1   : > { %v17897_v2 = vsub.f32 %v37868_v47, %v37871_v27 }
0x23d3   : > { %v17898_v54 = vand.u32 4294901760, %v17897_v2 }
0x23d5   : > { %v17899_v57 = vsub.f32 %v17897_v2, %v17898_v54 }
0x23d7   : > { %v17900_v60 = vand.u32 4294901760, %v17899_v57  ;;  %v39157_v57 = vand.u32 4294901760, %v37635_v29  ;;  %v39161_v29 = vand.u32 4294901760, %v37647_v7  ;;  %v39166_v7 = vand.u32 4294901760, %v37659_v59 }
0x23d9   : > { %27804 = vmatmul.mubr.f32.vlgmr.msra.gmra.mrb[28].mxu0 %v17900_v60  ;;  %v39156_v60 = vand.u32 4294901760, %v37633_v51  ;;  %v39160_v51 = vand.u32 4294901760, %v37643_v16  ;;  %v39167_v16 = vand.u32 4294901760, %v37665_v62  ;;  %v18465_v62 = vpop.permute.xlu0 %18464 }
0x23da   : > { %31685 = vmatpush3.bf16.msra.mxu0 %v37796_v50  ;;  %27838 = vmatprep.mubr.msk.f32.mxu0 %vm32853_vm0, %v36202_v22  ;;  %v18466_v59 = vrot.slane %v18465_v62, 4 }
0x23db   : > { %31686 = vmatprep.subr.bf16.mxu0 %v38695_v61  ;;  %v31771_v34 = vpack.c.bf16 %v39167_v16, %v39166_v7 }
0x23de   : > { %31688 = vmatpush3.bf16.msra.mxu0 %v31687_v52  ;;  %v31762_v52 = vpack.c.bf16 %v39161_v29, %v39160_v51  ;;  %v39188_v51 = vld [vmem:[#allocation103_spill] sm:$0xff] }
0x23df   : > { %31689 = vmatprep.subr.bf16.mxu0 %v38695_v61 }
0x23e2   : > { %31691 = vmatpush3.bf16.msra.mxu0 %v31690_v1  ;;  %v39164_v1 = vand.u32 4294901760, %v37655_v56  ;;  %v39170_v56 = vand.u32 4294901760, %v37782_v41 }
0x23e3   : > { %31692 = vmatprep.subr.bf16.mxu0 %v38695_v61 }
0x23e6   : > { %31694 = vmatpush3.bf16.msra.mxu0 %v31693_v5  ;;  %v39165_v5 = vand.u32 4294901760, %v37657_v45  ;;  %v39171_v45 = vand.u32 4294901760, %v37784_v53  ;;  %v39172_v53 = vld [vmem:[#allocation87_spill] sm:$0xff] }
0x23e7   : > { %31695 = vmatprep.subr.bf16.mxu0 %v38695_v61 }
0x23ea   : > { %31697 = vmatpush3.bf16.msra.mxu0 %v31696_v36  ;;  %v31768_v36 = vpack.c.bf16 %v39165_v5, %v39164_v1 }
0x23eb   : > { %31698 = vmatprep.subr.bf16.mxu0 %v38695_v61 }
0x23ee   : > { %31700 = vmatpush3.bf16.msra.mxu0 %v31699_v0 }
0x23ef   : > { %31701 = vmatprep.subr.bf16.mxu0 %v38695_v61 }
0x23f2   : > { %31703 = vmatpush3.bf16.msra.mxu0 %v31702_v63  ;;  %v31777_v63 = vpack.c.bf16 %v39171_v45, %v39170_v56 }
0x23f3   : > { %31704 = vmatprep.subr.bf16.mxu0 %v38695_v61 }
0x23f6   : > { %31706 = vmatpush3.bf16.msra.mxu0 %v31705_v15  ;;  %v39158_v15 = vand.u32 4294901760, %v37637_v42  ;;  %v39163_v42 = vand.u32 4294901760, %v37653_v26  ;;  %v39169_v26 = vand.u32 4294901760, %v37778_v38 }
0x23f7   : > { %31707 = vmatprep.subr.bf16.mxu0 %v38695_v61 }
0x23f9   : > { %27839 = vmatmul.mubr.f32.vlgmr.msra.gmra.mrb[28].mxu0 %v37871_v27 }
0x23fa   : > { %31709 = vmatpush3.bf16.msra.mxu0 %v31708_v13  ;;  %27873 = vmatprep.mubr.msk.f32.mxu0 %vm32853_vm0, %v36202_v22  ;;  %v39174_v13 = vld [vmem:[#allocation94_spill] sm:$0xff] }
0x23fb   : > { %31710 = vmatprep.subr.bf16.mxu0 %v38695_v61 }
0x23fe   : > { %31712 = vmatpush3.bf16.msra.mxu0 %v31711_v10  ;;  %v39175_v10 = vld [vmem:[#allocation95_spill] sm:$0xff] }
0x23ff   : > { %31713 = vmatprep.subr.bf16.mxu0 %v38695_v61 }
0x2402   : > { %31715 = vmatpush3.bf16.msra.mxu0 %v31714_v37  ;;  %v39176_v37 = vld [vmem:[#allocation88_spill] sm:$0xff] }
0x2403   : > { %31716 = vmatprep.subr.bf16.mxu0 %v38695_v61 }
0x2406   : > { %31718 = vmatpush3.bf16.msra.mxu0 %v31717_v58  ;;  %v39177_v58 = vld [vmem:[#allocation89_spill] sm:$0xff] }
0x2407   : > { %31719 = vmatprep.subr.bf16.mxu0 %v38695_v61 }
0x240a   : > { %31721 = vmatpush3.bf16.msra.mxu0 %v31720_v19  ;;  %v39159_v19 = vand.u32 4294901760, %v37641_v12 }
0x240b   : > { %31722 = vmatprep.subr.bf16.mxu0 %v38695_v61 }
0x240c   : > { %v31759_v50 = vpack.c.bf16 %v39159_v19, %v39158_v15  ;;  %v39185_v15 = vld [vmem:[#allocation100_spill] sm:$0xff]  ;;  %v39186_v19 = vld [vmem:[#allocation101_spill] sm:$0xff] }
0x240e   : > { %31724 = vmatpush3.bf16.msra.mxu0 %v31723_v18  ;;  %v39178_v18 = vld [vmem:[#allocation90_spill] sm:$0xff] }
0x240f   : > { %31725 = vmatprep.subr.bf16.mxu0 %v38695_v61 }
0x2412   : > { %31727 = vmatpush3.bf16.msra.mxu0 %v31726_v24  ;;  %v39179_v24 = vld [vmem:[#allocation91_spill] sm:$0xff] }
0x2413   : > { %31728 = vmatprep.subr.bf16.mxu0 %v38695_v61 }
0x2416   : > { %31730 = vmatpush3.bf16.msra.mxu0 %v31729_v44  ;;  %v39180_v44 = vld [vmem:[#allocation92_spill] sm:$0xff] }
0x2417   : > { %31731 = vmatprep.subr.bf16.mxu0 %v38695_v61 }
0x2419   : > { %27874 = vmatmul.mubr.f32.vlgmr.msra.gmra.mrb[28].mxu0 %v17897_v2  ;;  %v31756_v2 = vpack.c.bf16 %v39157_v57, %v39156_v60  ;;  %v39182_v60 = vld [vmem:[#allocation97_spill] sm:$0xff]  ;;  %v39183_v57 = vld [vmem:[#allocation98_spill] sm:$0xff] }
0x241a   : > { %31733 = vmatpush3.bf16.msra.mxu0 %v37631_v4  ;;  %27908 = vmatprep.mubr.msk.f32.mxu0 %vm32853_vm0, %v36202_v22 }
0x241b   : > { %31734 = vmatprep.subr.bf16.mxu0 %v38695_v61 }
0x241e   : > { %31736 = vmatpush3.bf16.msra.mxu0 %v37639_v35 }
0x241f   : > { %31737 = vmatprep.subr.bf16.mxu0 %v38695_v61 }
0x2422   : > { %31739 = vmatpush3.bf16.msra.mxu0 %v37663_v46 }
0x2423   : > { %31740 = vmatprep.subr.bf16.mxu0 %v38695_v61 }
0x2426   : > { %31742 = vmatpush3.bf16.msra.mxu0 %v37671_v21 }
0x2427   : > { %31743 = vmatprep.subr.bf16.mxu0 %v38695_v61 }
0x242a   : > { %31745 = vmatpush3.bf16.msra.mxu0 %v37677_v40 }
0x242b   : > { %31746 = vmatprep.subr.bf16.mxu0 %v38695_v61 }
0x242e   : > { %31748 = vmatpush3.bf16.msra.mxu0 %v37683_v28 }
0x242f   : > { %31749 = vmatprep.subr.bf16.mxu0 %v38695_v61 }
0x2432   : > { %31751 = vmatpush3.bf16.msra.mxu0 %v37770_v48 }
0x2433   : > { %31752 = vmatprep.subr.bf16.mxu0 %v38695_v61 }
0x2436   : > { %31754 = vmatpush3.bf16.msra.mxu0 %v37780_v39 }
0x2437   : > { %31755 = vmatprep.subr.bf16.mxu0 %v38695_v61 }
0x2439   : > { %27909 = vmatmul.mubr.f32.vlgmr.msra.gmra.mrb[28].mxu0 %v17898_v54  ;;  %v39162_v54 = vand.u32 4294901760, %v37651_v25  ;;  %v39168_v25 = vand.u32 4294901760, %v37776_v14 }
0x243a   : > { %31757 = vmatpush3.bf16.msra.mxu0 %v31756_v2  ;;  %27943 = vmatprep.mubr.msk.f32.mxu0 %vm32853_vm0, %v36202_v22  ;;  %v39184_v2 = vld [vmem:[#allocation99_spill] sm:$0xff] }
0x243b   : > { %31758 = vmatprep.subr.bf16.mxu0 %v38695_v61  ;;  %v31765_v12 = vpack.c.bf16 %v39163_v42, %v39162_v54  ;;  %v31774_v0 = vpack.c.bf16 %v39169_v26, %v39168_v25 }
0x243e   : > { %31760 = vmatpush3.bf16.msra.mxu0 %v31759_v50  ;;  %v39187_v50 = vld [vmem:[#allocation102_spill] sm:$0xff] }
0x243f   : > { %31761 = vmatprep.subr.bf16.mxu0 %v38695_v61 }
0x2442   : > { %31763 = vmatpush3.bf16.msra.mxu0 %v31762_v52 }
0x2443   : > { %31764 = vmatprep.subr.bf16.mxu0 %v38695_v61 }
0x2446   : > { %31766 = vmatpush3.bf16.msra.mxu0 %v31765_v12 }
0x2447   : > { %31767 = vmatprep.subr.bf16.mxu0 %v38695_v61 }
0x244a   : > { %31769 = vmatpush3.bf16.msra.mxu0 %v31768_v36 }
0x244b   : > { %31770 = vmatprep.subr.bf16.mxu0 %v38695_v61 }
0x244e   : > { %31772 = vmatpush3.bf16.msra.mxu0 %v31771_v34 }
0x244f   : > { %31773 = vmatprep.subr.bf16.mxu0 %v38695_v61 }
0x2452   : > { %31775 = vmatpush3.bf16.msra.mxu0 %v31774_v0 }
0x2453   : > { %31776 = vmatprep.subr.bf16.mxu0 %v38695_v61 }
0x2456   : > { %31778 = vmatpush3.bf16.msra.mxu0 %v31777_v63 }
0x2457   : > { %31779 = vmatprep.subr.bf16.mxu0 %v38695_v61 }
0x2459   : > { %27944 = vmatmul.mubr.f32.vlgmr.msra.gmra.mrb[28].mxu0 %v37871_v27 }
0x245a   : > { %31781 = vmatpush3.bf16.msra.mxu0 %v37631_v4  ;;  %27978 = vmatprep.mubr.msk.f32.mxu0 %vm32853_vm0, %v36202_v22 }
0x245b   : > { %31782 = vmatprep.subr.bf16.mxu0 %v38695_v61 }
0x245e   : > { %31784 = vmatpush3.bf16.msra.mxu0 %v37639_v35 }
0x245f   : > { %31785 = vmatprep.subr.bf16.mxu0 %v38695_v61 }
0x2462   : > { %31787 = vmatpush3.bf16.msra.mxu0 %v37663_v46 }
0x2463   : > { %31788 = vmatprep.subr.bf16.mxu0 %v38695_v61 }
0x2466   : > { %31790 = vmatpush3.bf16.msra.mxu0 %v37671_v21 }
0x2467   : > { %31791 = vmatprep.subr.bf16.mxu0 %v38695_v61 }
0x246a   : > { %31793 = vmatpush3.bf16.msra.mxu0 %v37677_v40 }
0x246b   : > { %31794 = vmatprep.subr.bf16.mxu0 %v38695_v61 }
0x246e   : > { %31796 = vmatpush3.bf16.msra.mxu0 %v37683_v28 }
0x246f   : > { %31797 = vmatprep.subr.bf16.mxu0 %v38695_v61 }
0x2472   : > { %31799 = vmatpush3.bf16.msra.mxu0 %v37770_v48 }
0x2473   : > { %31800 = vmatprep.subr.bf16.mxu0 %v38695_v61 }
0x2476   : > { %31802 = vmatpush3.bf16.msra.mxu0 %v37780_v39 }
0x2477   : > { %31803 = vmatprep.subr.bf16.mxu0 %v38695_v61 }
0x2479   : > { %27979 = vmatmul.mubr.f32.vlgmr.msra.gmra.mrb[28].mxu0 %v37871_v27  ;;  %v39173_v27 = vld [vmem:[#allocation93_spill] sm:$0xff] }
0x247a   : > { %31805 = vmatpush3.bf16.msra.mxu0 %v34294_v31  ;;  %28013 = vmatprep.mubr.msk.f32.mxu0 %vm32853_vm0, %v36202_v22 }
0x247b   : > { %31806 = vmatprep.subr.bf16.mxu0 %v38695_v61 }
0x247e   : > { %31808 = vmatpush3.bf16.msra.mxu0 %v34301_v9 }
0x247f   : > { %31809 = vmatprep.subr.bf16.mxu0 %v38695_v61 }
0x2482   : > { %31811 = vmatpush3.bf16.msra.mxu0 %v34311_v30 }
0x2483   : > { %31812 = vmatprep.subr.bf16.mxu0 %v38695_v61 }
0x2486   : > { %31814 = vmatpush3.bf16.msra.mxu0 %v34316_v11 }
0x2487   : > { %31815 = vmatprep.subr.bf16.mxu0 %v38695_v61 }
0x248a   : > { %31817 = vmatpush3.bf16.msra.mxu0 %v34320_v20 }
0x248b   : > { %31818 = vmatprep.subr.bf16.mxu0 %v38695_v61 }
0x248e   : > { %31820 = vmatpush3.bf16.msra.mxu0 %v34324_v49 }
0x248f   : > { %31821 = vmatprep.subr.bf16.mxu0 %v38695_v61 }
0x2492   : > { %31823 = vmatpush3.bf16.msra.mxu0 %v34328_v6 }
0x2493   : > { %31824 = vmatprep.subr.bf16.mxu0 %v38695_v61 }
0x2496   : > { %31826 = vmatpush3.bf16.msra.mxu0 %v34332_v23 }
0x2497   : > { %31827 = vmatprep.subr.bf16.mxu0 %v38695_v61 }
0x254c   : > { %v18452_v46 = vpop.f32.mrb[28].mxu0 }
0x254d   : > { %v18457_v35 = vrot.slane %v18452_v46, 4  ;;  %v27980_v4 = vpop.f32.mrb[29].mxu0 }
0x254f   : > { %v18459_v21 = vadd.f32 %v18457_v35, %v37868_v47  ;;  %v39181_v47 = vld [vmem:[#allocation96_spill] sm:$0xff] }
0x2551   : > { %v37996_v40 = vadd.f32 %v18466_v59, %v18459_v21 }
0x2553   : > { %v18470_v28 = vrot.slane %v37996_v40, 4 }
0x2555   : > { %v37999_v48 = vand.u32 4294901760, %v18470_v28 }
0x2557   : > { %v18554_v14 = vsub.f32 %v18470_v28, %v37999_v48 }
0x2559   : > { %v18555_v38 = vand.u32 4294901760, %v18554_v14 }
0x255b   : > { %v18556_v39 = vsub.f32 %v18554_v14, %v18555_v38 }
0x255d   : > { %v18557_v41 = vand.u32 4294901760, %v18556_v39 }
0x255f   : > { %28014 = vmatmul.mubr.f32.vlgmr.msra.gmra.mrb[30].mxu0 %v18557_v41 }
0x2560   : > { %31829 = vmatpush3.bf16.msra.mxu0 %v34487_v3  ;;  %28048 = vmatprep.mubr.msk.f32.mxu0 %vm32853_vm0, %v36202_v22 }
0x2561   : > { %31830 = vmatprep.subr.bf16.mxu0 %v38695_v61 }
0x2564   : > { %31832 = vmatpush3.bf16.msra.mxu0 %v34496_v33 }
0x2565   : > { %31833 = vmatprep.subr.bf16.mxu0 %v38695_v61 }
0x2568   : > { %31835 = vmatpush3.bf16.msra.mxu0 %v34502_v55 }
0x2569   : > { %31836 = vmatprep.subr.bf16.mxu0 %v38695_v61 }
0x256c   : > { %31838 = vmatpush3.bf16.msra.mxu0 %v34364_v17 }
0x256d   : > { %31839 = vmatprep.subr.bf16.mxu0 %v38695_v61 }
0x2570   : > { %31841 = vmatpush3.bf16.msra.mxu0 %v34368_v8 }
0x2571   : > { %31842 = vmatprep.subr.bf16.mxu0 %v38695_v61 }
0x2574   : > { %31844 = vmatpush3.bf16.msra.mxu0 %v34382_v43 }
0x2575   : > { %31845 = vmatprep.subr.bf16.mxu0 %v38695_v61 }
0x2578   : > { %31847 = vmatpush3.bf16.msra.mxu0 %v34402_v32 }
0x2579   : > { %31848 = vmatprep.subr.bf16.mxu0 %v38695_v61 }
0x257c   : > { %31850 = vmatpush3.bf16.msra.mxu0 %v39172_v53 }
0x257d   : > { %31851 = vmatprep.subr.bf16.mxu0 %v38695_v61 }
0x257f   : > { %28049 = vmatmul.mubr.f32.vlgmr.msra.gmra.mrb[30].mxu0 %v37999_v48 }
0x2580   : > { %31853 = vmatpush3.bf16.msra.mxu0 %v39173_v27  ;;  %28083 = vmatprep.mubr.msk.f32.mxu0 %vm32853_vm0, %v36202_v22 }
0x2581   : > { %31854 = vmatprep.subr.bf16.mxu0 %v38695_v61 }
0x2584   : > { %31856 = vmatpush3.bf16.msra.mxu0 %v39174_v13 }
0x2585   : > { %31857 = vmatprep.subr.bf16.mxu0 %v38695_v61 }
0x2588   : > { %31859 = vmatpush3.bf16.msra.mxu0 %v39175_v10 }
0x2589   : > { %31860 = vmatprep.subr.bf16.mxu0 %v38695_v61 }
0x258c   : > { %31862 = vmatpush3.bf16.msra.mxu0 %v39176_v37 }
0x258d   : > { %31863 = vmatprep.subr.bf16.mxu0 %v38695_v61 }
0x2590   : > { %31865 = vmatpush3.bf16.msra.mxu0 %v39177_v58 }
0x2591   : > { %31866 = vmatprep.subr.bf16.mxu0 %v38695_v61 }
0x2594   : > { %31868 = vmatpush3.bf16.msra.mxu0 %v39178_v18 }
0x2595   : > { %31869 = vmatprep.subr.bf16.mxu0 %v38695_v61 }
0x2598   : > { %31871 = vmatpush3.bf16.msra.mxu0 %v39179_v24 }
0x2599   : > { %31872 = vmatprep.subr.bf16.mxu0 %v38695_v61 }
0x259c   : > { %31874 = vmatpush3.bf16.msra.mxu0 %v39180_v44 }
0x259d   : > { %31875 = vmatprep.subr.bf16.mxu0 %v38695_v61 }
0x259f   : > { %28084 = vmatmul.mubr.f32.vlgmr.msra.gmra.mrb[30].mxu0 %v18554_v14 }
0x25a0   : > { %31877 = vmatpush3.bf16.msra.mxu0 %v34294_v31  ;;  %28118 = vmatprep.mubr.msk.f32.mxu0 %vm32853_vm0, %v36202_v22 }
0x25a1   : > { %31878 = vmatprep.subr.bf16.mxu0 %v38695_v61 }
0x25a4   : > { %31880 = vmatpush3.bf16.msra.mxu0 %v34301_v9 }
0x25a5   : > { %31881 = vmatprep.subr.bf16.mxu0 %v38695_v61 }
0x25a8   : > { %31883 = vmatpush3.bf16.msra.mxu0 %v34311_v30 }
0x25a9   : > { %31884 = vmatprep.subr.bf16.mxu0 %v38695_v61 }
0x25ac   : > { %31886 = vmatpush3.bf16.msra.mxu0 %v34316_v11 }
0x25ad   : > { %31887 = vmatprep.subr.bf16.mxu0 %v38695_v61 }
0x25b0   : > { %31889 = vmatpush3.bf16.msra.mxu0 %v34320_v20 }
0x25b1   : > { %31890 = vmatprep.subr.bf16.mxu0 %v38695_v61 }
0x25b4   : > { %31892 = vmatpush3.bf16.msra.mxu0 %v34324_v49 }
0x25b5   : > { %31893 = vmatprep.subr.bf16.mxu0 %v38695_v61 }
0x25b8   : > { %31895 = vmatpush3.bf16.msra.mxu0 %v34328_v6 }
0x25b9   : > { %31896 = vmatprep.subr.bf16.mxu0 %v38695_v61 }
0x25bc   : > { %31898 = vmatpush3.bf16.msra.mxu0 %v34332_v23 }
0x25bd   : > { %31899 = vmatprep.subr.bf16.mxu0 %v38695_v61 }
0x25bf   : > { %28119 = vmatmul.mubr.f32.vlgmr.msra.gmra.mrb[30].mxu0 %v18555_v38 }
0x25c0   : > { %31901 = vmatpush3.bf16.msra.mxu0 %v39181_v47  ;;  %28153 = vmatprep.mubr.msk.f32.mxu0 %vm32853_vm0, %v36202_v22 }
0x25c1   : > { %31902 = vmatprep.subr.bf16.mxu0 %v38695_v61 }
0x25c4   : > { %31904 = vmatpush3.bf16.msra.mxu0 %v39182_v60 }
0x25c5   : > { %31905 = vmatprep.subr.bf16.mxu0 %v38695_v61 }
0x25c8   : > { %31907 = vmatpush3.bf16.msra.mxu0 %v39183_v57 }
0x25c9   : > { %31908 = vmatprep.subr.bf16.mxu0 %v38695_v61 }
0x25cc   : > { %31910 = vmatpush3.bf16.msra.mxu0 %v39184_v2 }
0x25cd   : > { %31911 = vmatprep.subr.bf16.mxu0 %v38695_v61 }
0x25d0   : > { %31913 = vmatpush3.bf16.msra.mxu0 %v39185_v15 }
0x25d1   : > { %31914 = vmatprep.subr.bf16.mxu0 %v38695_v61 }
0x25d4   : > { %31916 = vmatpush3.bf16.msra.mxu0 %v39186_v19 }
0x25d5   : > { %31917 = vmatprep.subr.bf16.mxu0 %v38695_v61 }
0x25d8   : > { %31919 = vmatpush3.bf16.msra.mxu0 %v39187_v50 }
0x25d9   : > { %31920 = vmatprep.subr.bf16.mxu0 %v38695_v61 }
0x25dc   : > { %31922 = vmatpush3.bf16.msra.mxu0 %v39188_v51 }
0x25dd   : > { %31923 = vmatprep.subr.bf16.mxu0 %v38695_v61 }
0x25df   : > { %28154 = vmatmul.mubr.f32.vlgmr.msra.gmra.mrb[30].mxu0 %v37999_v48 }
0x25e0   : > { %31925 = vmatpush3.bf16.msra.mxu0 %v34294_v31  ;;  %28188 = vmatprep.mubr.msk.f32.mxu0 %vm32853_vm0, %v36202_v22 }
0x25e1   : > { %31926 = vmatprep.subr.bf16.mxu0 %v38695_v61 }
0x25e4   : > { %31928 = vmatpush3.bf16.msra.mxu0 %v34301_v9 }
0x25e5   : > { %31929 = vmatprep.subr.bf16.mxu0 %v38695_v61 }
0x25e8   : > { %31931 = vmatpush3.bf16.msra.mxu0 %v34311_v30 }
0x25e9   : > { %31932 = vmatprep.subr.bf16.mxu0 %v38695_v61 }
0x25ec   : > { %31934 = vmatpush3.bf16.msra.mxu0 %v34316_v11 }
0x25ed   : > { %31935 = vmatprep.subr.bf16.mxu0 %v38695_v61 }
0x25f0   : > { %31937 = vmatpush3.bf16.msra.mxu0 %v34320_v20 }
0x25f1   : > { %31938 = vmatprep.subr.bf16.mxu0 %v38695_v61 }
0x25f4   : > { %31940 = vmatpush3.bf16.msra.mxu0 %v34324_v49 }
0x25f5   : > { %31941 = vmatprep.subr.bf16.mxu0 %v38695_v61 }
0x25f8   : > { %31943 = vmatpush3.bf16.msra.mxu0 %v34328_v6 }
0x25f9   : > { %31944 = vmatprep.subr.bf16.mxu0 %v38695_v61 }
0x25fc   : > { %31946 = vmatpush3.bf16.msra.mxu0 %v34332_v23 }
0x25ff   : > { %28189 = vmatmul.mubr.f32.vlgmr.msra.gmra.mrb[30].mxu0 %v37999_v48 }
0x26d2   : > { %v19109_v29 = vpop.f32.mrb[30].mxu0 }
0x26d3   : > { %v19114_v52 = vrot.slane %v19109_v29, 4  ;;  %v28190_v54 = vpop.f32.mrb[31].mxu0 }
0x26d5   : > { %v38095_v42 = vsub.f32 %v37996_v40, %v19114_v52 }
0x26d7   : > { %v19117_v12 = vmul.f32 %v38095_v42, %v38095_v42 }
0x26d9   : > { %v19119_v1 = vrot.slane %v19117_v12, 4 }
0x26db   : > { %v38099_v5 = vand.u32 4294901760, %v19119_v1 }
0x26dd   : > { %v19203_v36 = vsub.f32 %v19119_v1, %v38099_v5 }
0x26df   : > { %v19204_v7 = vand.u32 4294901760, %v19203_v36 }
0x26e1   : > { %v19205_v16 = vsub.f32 %v19203_v36, %v19204_v7 }
0x26e3   : > { %v19206_v34 = vand.u32 4294901760, %v19205_v16 }
0x26e5   : > { %28224 = vmatmul.mubr.f32.vlgmr.msra.gmra.mrb[28].mxu1 %v19206_v34 }
0x26e6   : > { %31973 = vmatpush3.bf16.msra.mxu1 %v34487_v3  ;;  %28258 = vmatprep.mubr.msk.f32.mxu1 %vm32853_vm0, %v36202_v22 }
0x26e7   : > { %31974 = vmatprep.subr.bf16.mxu1 %v38695_v61 }
0x26ea   : > { %31976 = vmatpush3.bf16.msra.mxu1 %v34496_v33 }
0x26eb   : > { %31977 = vmatprep.subr.bf16.mxu1 %v38695_v61 }
0x26ee   : > { %31979 = vmatpush3.bf16.msra.mxu1 %v34502_v55 }
0x26ef   : > { %31980 = vmatprep.subr.bf16.mxu1 %v38695_v61 }
0x26f2   : > { %31982 = vmatpush3.bf16.msra.mxu1 %v34364_v17  ;;  %v19791_v17 = vpop.permute.xlu1 %19790 }
0x26f3   : > { %31983 = vmatprep.subr.bf16.mxu1 %v38695_v61 }
0x26f6   : > { %31985 = vmatpush3.bf16.msra.mxu1 %v34368_v8 }
0x26f7   : > { %31986 = vmatprep.subr.bf16.mxu1 %v38695_v61 }
0x26fa   : > { %31988 = vmatpush3.bf16.msra.mxu1 %v34382_v43 }
0x26fb   : > { %31989 = vmatprep.subr.bf16.mxu1 %v38695_v61 }
0x26fe   : > { %31991 = vmatpush3.bf16.msra.mxu1 %v34402_v32 }
0x26ff   : > { %31992 = vmatprep.subr.bf16.mxu1 %v38695_v61 }
0x2702   : > { %31994 = vmatpush3.bf16.msra.mxu1 %v39172_v53 }
0x2703   : > { %31995 = vmatprep.subr.bf16.mxu1 %v38695_v61 }
0x2705   : > { %28259 = vmatmul.mubr.f32.vlgmr.msra.gmra.mrb[28].mxu1 %v38099_v5 }
0x2706   : > { %31997 = vmatpush3.bf16.msra.mxu1 %v39173_v27  ;;  %28293 = vmatprep.mubr.msk.f32.mxu1 %vm32853_vm0, %v36202_v22 }
0x2707   : > { %31998 = vmatprep.subr.bf16.mxu1 %v38695_v61 }
0x270a   : > { %32000 = vmatpush3.bf16.msra.mxu1 %v39174_v13 }
0x270b   : > { %32001 = vmatprep.subr.bf16.mxu1 %v38695_v61 }
0x270e   : > { %32003 = vmatpush3.bf16.msra.mxu1 %v39175_v10 }
0x270f   : > { %32004 = vmatprep.subr.bf16.mxu1 %v38695_v61 }
0x2712   : > { %32006 = vmatpush3.bf16.msra.mxu1 %v39176_v37 }
0x2713   : > { %32007 = vmatprep.subr.bf16.mxu1 %v38695_v61 }
0x2716   : > { %32009 = vmatpush3.bf16.msra.mxu1 %v39177_v58 }
0x2717   : > { %32010 = vmatprep.subr.bf16.mxu1 %v38695_v61 }
0x271a   : > { %32012 = vmatpush3.bf16.msra.mxu1 %v39178_v18 }
0x271b   : > { %32013 = vmatprep.subr.bf16.mxu1 %v38695_v61 }
0x271e   : > { %32015 = vmatpush3.bf16.msra.mxu1 %v39179_v24 }
0x271f   : > { %32016 = vmatprep.subr.bf16.mxu1 %v38695_v61 }
0x2722   : > { %32018 = vmatpush3.bf16.msra.mxu1 %v39180_v44 }
0x2723   : > { %32019 = vmatprep.subr.bf16.mxu1 %v38695_v61 }
0x2725   : > { %28294 = vmatmul.mubr.f32.vlgmr.msra.gmra.mrb[28].mxu1 %v19203_v36 }
0x2726   : > { %32021 = vmatpush3.bf16.msra.mxu1 %v34294_v31  ;;  %28328 = vmatprep.mubr.msk.f32.mxu1 %vm32853_vm0, %v36202_v22 }
0x2727   : > { %32022 = vmatprep.subr.bf16.mxu1 %v38695_v61 }
0x272a   : > { %32024 = vmatpush3.bf16.msra.mxu1 %v34301_v9 }
0x272b   : > { %32025 = vmatprep.subr.bf16.mxu1 %v38695_v61 }
0x272e   : > { %32027 = vmatpush3.bf16.msra.mxu1 %v34311_v30 }
0x272f   : > { %32028 = vmatprep.subr.bf16.mxu1 %v38695_v61 }
0x2732   : > { %32030 = vmatpush3.bf16.msra.mxu1 %v34316_v11 }
0x2733   : > { %32031 = vmatprep.subr.bf16.mxu1 %v38695_v61 }
0x2736   : > { %32033 = vmatpush3.bf16.msra.mxu1 %v34320_v20 }
0x2737   : > { %32034 = vmatprep.subr.bf16.mxu1 %v38695_v61 }
0x273a   : > { %32036 = vmatpush3.bf16.msra.mxu1 %v34324_v49 }
0x273b   : > { %32037 = vmatprep.subr.bf16.mxu1 %v38695_v61 }
0x273e   : > { %32039 = vmatpush3.bf16.msra.mxu1 %v34328_v6 }
0x273f   : > { %32040 = vmatprep.subr.bf16.mxu1 %v38695_v61 }
0x2742   : > { %32042 = vmatpush3.bf16.msra.mxu1 %v34332_v23 }
0x2743   : > { %32043 = vmatprep.subr.bf16.mxu1 %v38695_v61 }
0x2745   : > { %28329 = vmatmul.mubr.f32.vlgmr.msra.gmra.mrb[28].mxu1 %v19204_v7 }
0x2746   : > { %32045 = vmatpush3.bf16.msra.mxu1 %v39181_v47  ;;  %28363 = vmatprep.mubr.msk.f32.mxu1 %vm32853_vm0, %v36202_v22 }
0x2747   : > { %32046 = vmatprep.subr.bf16.mxu1 %v38695_v61 }
0x274a   : > { %32048 = vmatpush3.bf16.msra.mxu1 %v39182_v60 }
0x274b   : > { %32049 = vmatprep.subr.bf16.mxu1 %v38695_v61 }
0x274e   : > { %32051 = vmatpush3.bf16.msra.mxu1 %v39183_v57 }
0x274f   : > { %32052 = vmatprep.subr.bf16.mxu1 %v38695_v61 }
0x2752   : > { %32054 = vmatpush3.bf16.msra.mxu1 %v39184_v2 }
0x2753   : > { %32055 = vmatprep.subr.bf16.mxu1 %v38695_v61 }
0x2756   : > { %32057 = vmatpush3.bf16.msra.mxu1 %v39185_v15 }
0x2757   : > { %32058 = vmatprep.subr.bf16.mxu1 %v38695_v61 }
0x275a   : > { %32060 = vmatpush3.bf16.msra.mxu1 %v39186_v19 }
0x275b   : > { %32061 = vmatprep.subr.bf16.mxu1 %v38695_v61 }
0x275e   : > { %32063 = vmatpush3.bf16.msra.mxu1 %v39187_v50 }
0x275f   : > { %32064 = vmatprep.subr.bf16.mxu1 %v38695_v61 }
0x2762   : > { %32066 = vmatpush3.bf16.msra.mxu1 %v39188_v51 }
0x2763   : > { %32067 = vmatprep.subr.bf16.mxu1 %v38695_v61 }
0x2765   : > { %28364 = vmatmul.mubr.f32.vlgmr.msra.gmra.mrb[28].mxu1 %v38099_v5 }
0x2766   : > { %32069 = vmatpush3.bf16.msra.mxu1 %v34294_v31  ;;  %28398 = vmatprep.mubr.msk.f32.mxu1 %vm32853_vm0, %v36202_v22 }
0x2767   : > { %32070 = vmatprep.subr.bf16.mxu1 %v38695_v61 }
0x276a   : > { %32072 = vmatpush3.bf16.msra.mxu1 %v34301_v9 }
0x276b   : > { %32073 = vmatprep.subr.bf16.mxu1 %v38695_v61 }
0x276e   : > { %32075 = vmatpush3.bf16.msra.mxu1 %v34311_v30 }
0x276f   : > { %32076 = vmatprep.subr.bf16.mxu1 %v38695_v61 }
0x2772   : > { %32078 = vmatpush3.bf16.msra.mxu1 %v34316_v11  ;;  %v19963_v11 = vld [vmem:[%s38251_s3 + $0x4] ss:$0 sm:$0xff] }
0x2773   : > { %32079 = vmatprep.subr.bf16.mxu1 %v38695_v61 }
0x2776   : > { %32081 = vmatpush3.bf16.msra.mxu1 %v34320_v20 }
0x2777   : > { %32082 = vmatprep.subr.bf16.mxu1 %v38695_v61 }
0x277a   : > { %32084 = vmatpush3.bf16.msra.mxu1 %v34324_v49 }
0x277b   : > { %32085 = vmatprep.subr.bf16.mxu1 %v38695_v61 }
0x277e   : > { %32087 = vmatpush3.bf16.msra.mxu1 %v34328_v6 }
0x277f   : > { %32088 = vmatprep.subr.bf16.mxu1 %v38695_v61  ;;  %v19965_v61 = vld [vmem:[%s38252_s4 + $0x4] ss:$0 sm:$0xff] }
0x2782   : > { %32090 = vmatpush3.bf16.msra.mxu1 %v34332_v23 }
0x2785   : > { %28399 = vmatmul.mubr.f32.vlgmr.msra.gmra.mrb[28].mxu1 %v38099_v5 }
0x2858   : > { %v19758_v33 = vpop.f32.mrb[28].mxu1 }
0x2859   : > { %v32096_v8 = vadd.f32 1e-05, %v19758_v33  ;;  %v28400_v31 = vpop.f32.mrb[29].mxu1 }
0x285b   : > { %32621 = vrsqrt.f32 %v32096_v8 }
0x2865   : > { %v32622_v9 = vpop.eup %32621 }
0x2866   : > { %v19764_v30 = vrot.slane %v32622_v9, 4 }
0x2868   : > { %v19766_v20 = vmul.f32 %v19764_v30, %v38095_v42 }
0x286a   : > { %v19775_v49 = vmul.f32 %v19963_v11, %v19766_v20 }
0x286c   : > { %v19784_v6 = vadd.f32 %v19965_v61, %v19775_v49 }
0x286e   : > { %v19794_v23 = vrot.slane %v19784_v6, 4  ;;  %vm19785_vm7 = vcmp.ge.f32.partialorder %v19784_v6, 0.0 }
0x2870   : > { %v19796_v43 = vmul.f32 %v19794_v23, %v19791_v17 }
0x2872   : > { %v19798_v32 = vrot.slane %v19796_v43, 4 }
0x2874   : > { %v19800_v3 = vsel %vm19785_vm7, %v19784_v6, %v19798_v32 }
0x2875   : > { %19801 = vst [vmem:[%s423_s11 - $0x4] sm:$0xf0] %v19800_v3 }
0x2876   : > { %32781 = shalt.err (!%p32778_p0)
}
0x2877   : > { %s32782_s18 = scalar_lea.hbm %s38206_s19, 64  ;;  %s32786_s6 = scalar_lea.hbm %s38258_s10, 128 }
0x2878   : > { %p32783_p10 = scmp.ne.s32.totalorder %s38206_s19, %s32782_s18  ;;  %p32787_p4 = scmp.lt.u32.totalorder %s38206_s19, %s38258_s10 }
0x2879   : > { %p32788_p12 = scmp.lt.u32.totalorder %s32786_s6, %s32782_s18  ;;  %p32790_p8 = scmp.lt.u32.totalorder %s32782_s18, %s38206_s19 }
0x287a   : > { %p32784_p2 = pnand %p32783_p10, %p39189_p11 }
0x287b   : > { %p32789_p7 = por %p32788_p12, %p32787_p4 }
0x287c   : > { %p32785_p3 = pneg %p32784_p2 }
0x287d   : > { %p32791_p13 = por %p32790_p8, %p32789_p7 }
0x287f   : > { %p32792_p1 = pnand %p32791_p13, %p32785_p3 }
0x2881   : > { %32795 = shalt.err (!%p32792_p1)
}
0x2882   : > { %32535 = dma.vmem_to_hbm [thread:$0]  (%p39189_p11), %s38208_s22, 64, %s38206_s19, %s19803_s12  }
0x2883 PF: > { %s39190_s24 = sld [smem:[#allocation19_spill]]  ;;  %s39191_s26 = sld [smem:[#allocation17_spill]] }
0x2884   : > { %s39192_s29 = sld [smem:[#allocation22_spill]] }
0x2889   : > { %p32567_p6 = scmp.ge.s32.totalorder %s39190_s24, 2  ;;  %s19828_s11 = sand.u32 1, %s39191_s26  }
0x288a   : > { %p39193_p9 = scmp.ne.s32.totalorder %s39192_s29, 0  ;;  %s19829_s27 = scalar_lea.sflag [#allocation5], %s19828_s11 }
0x288c   : > { %p32554_p5 = pnand %p32567_p6, %p39193_p9 }
0x288e   : > { %32825 = dma.done.wait (!%p32554_p5), %s19829_s27, 64  }
0x288f   : > { %32827 = vsyncadd (!%p32554_p5), %s19829_s27, 4294967232  ;;  %s39194_s16 = sld [smem:[#allocation20_spill]]  ;;  %s39195_s30 = sld [smem:[#allocation18_spill]] }
0x2890   : > { %s39196_s15 = sld [smem:[#allocation21_spill]]  ;;  %s39197_s13 = smov %s32834_s14 }
0x2895   : > { %p23_p0 = scmp.ge.s32.totalorder %s39194_s16, 4   ;;  %s39198_s14 = smov %s39195_s30 }
0x2897   :  { %25 = sbr.rel (!%p23_p0) target bundleno = 8 (0x8), region = 140 }
0x289e   :  { %19834 = vsyncpa [#allocation4], 1 }
0x289f   :  { %19836 = vsyncpa [#allocation4 + $0x1], 1 }
0x28a0   :  { %19837 = vsyncpa [#allocation7], 1 }
0x28a1   :  { %19838 = vsyncpa [#allocation10], 1 }
0x28a2   :  { %19839 = vsyncpa [#allocation5], 1 }
0x28a3   :  { %19841 = vsyncpa [#allocation5 + $0x1], 1 }

</bundles_post_ra>
